<compile_context>
chip_gen: v5e
topology: v5e:2x2
jax: 0.10.0
libtpu: 0.0.40
codegen_flags: <defaults>
</compile_context>

<pallas_src>
import math

import numpy as np
import jax
import jax.numpy as jnp
from jax import lax
from jax.experimental import pallas as pl
from jax.experimental.pallas import tpu as pltpu


# ----------------------------- static geometry ------------------------------
# Input 84x84x1 is implied by fc1.in_features == 64 * 2 * 2.
IMG = 84
C1_OUT, C1_K, C1_S = 32, 8, 4
C1_OH = (IMG - C1_K) // C1_S + 1          # 20
P1_OH = C1_OH // 2                        # 10
NPOS = P1_OH * P1_OH                      # 100 pool1 positions per image
PP = 104                                  # NPOS padded to a multiple of 8
C2_OUT, C2_K, C2_S = 64, 4, 2
C2_OH = (P1_OH - C2_K) // C2_S + 1        # 4
P2_OH = C2_OH // 2                        # 2
NQ = C2_OH * C2_OH                        # 16 conv2 output positions / image
FC1_OUT = 64
FC2_PAD = 128                             # lane-padded fc2 output width
TB = 8                                    # images processed per grid step
RPB = TB * PP                             # rows per pool-parity block (832)


def _build_conv2_gather():
    """0/1 gather matrix G [256, PP]: t_img = G @ p1_img stacks conv2 taps.

    Row index = ij*16 + q with ij = i*4 + j the conv2 kernel tap and
    q = ((u*2 + v)*2 + a)*2 + b, the conv2 output position (qh, qw) =
    (2u + a, 2v + b).  Each 16-row block is one tap; conv2 output rows come
    out ordered (u, v, a, b) so pool2 reduces 4 consecutive rows.
    Columns >= NPOS are the per-image pad rows and stay zero.
    """
    g = np.zeros((C2_K * C2_K * NQ, PP), np.float32)
    for i in range(C2_K):
        for j in range(C2_K):
            ij = i * C2_K + j
            for u in range(P2_OH):
                for v in range(P2_OH):
                    for a in range(2):
                        for b in range(2):
                            q = ((u * 2 + v) * 2 + a) * 2 + b
                            qh, qw = 2 * u + a, 2 * v + b
                            r = (C2_S * qh + i) * P1_OH + (C2_S * qw + j)
                            g[ij * NQ + q, r] = 1.0
    return jnp.asarray(g)


# ------------------------------ fused kernel --------------------------------

def _qnet_kernel(patches_ref, g_ref, w1_ref, b1_ref, w2_ref, b2_ref,
                 w3_ref, b3_ref, w4_ref, b4_ref, o_ref):
    f32 = jnp.float32

    # conv1: ONE MXU pass over all 4 pool-parity blocks x TB images.
    # patches rows are (parity, img, pos) -> [4*RPB, 64].
    a1 = jnp.dot(patches_ref[0], w1_ref[...],
                 preferred_element_type=f32)                   # [4*RPB, 32]

    # pool1: elementwise max over the 4 parity blocks (tile-aligned slices),
    # then shared bias + ReLU (relu(max(x)+b) == max(relu(x+b))).
    p1 = jnp.maximum(jnp.maximum(a1[0:RPB], a1[RPB:2 * RPB]),
                     jnp.maximum(a1[2 * RPB:3 * RPB], a1[3 * RPB:4 * RPB]))
    p1 = jnp.maximum(p1 + b1_ref[...], 0.0)                    # [RPB, 32]

    # conv2 patch gather: one 0/1 matmul per image (independent MXU chains);
    # per-image slices start at multiples of PP=104 (sublane-tile aligned).
    gmat = g_ref[...]                                          # [256, PP]
    t = [jnp.dot(gmat, p1[i * PP:(i + 1) * PP, :],
                 preferred_element_type=f32) for i in range(TB)]  # TBx[256,32]

    # conv2 (+bias+ReLU): 16 tap matmuls with all TB images stacked along M.
    a2 = None
    for ij in range(C2_K * C2_K):
        lhs = jnp.concatenate(
            [t[i][ij * NQ:(ij + 1) * NQ, :] for i in range(TB)],
            axis=0)                                            # [TB*16, 32]
        c = jnp.dot(lhs, w2_ref[ij], preferred_element_type=f32)  # [TB*16,64]
        a2 = c if a2 is None else a2 + c
    a2 = jnp.maximum(a2 + b2_ref[...], 0.0)   # rows = img*16 + (u,v,a,b)

    # pool2 + fc1 (+ReLU): for each pooled position p, reduce each image's
    # 4-row window and stack the TB results into one M=TB matmul.
    y = None
    for p in range(P2_OH * P2_OH):
        pooled = jnp.concatenate(
            [jnp.max(a2[i * NQ + 4 * p:i * NQ + 4 * p + 4, :],
                     axis=0, keepdims=True) for i in range(TB)],
            axis=0)                                            # [TB, 64]
        c = jnp.dot(pooled, w3_ref[p], preferred_element_type=f32)
        y = c if y is None else y + c
    y = jnp.maximum(y + b3_ref[...], 0.0)                      # [TB, 64]

    # fc2 into a lane-dense (TB, 128) output slab (unmasked store).
    o_ref[...] = jnp.dot(y, w4_ref[...],
                         preferred_element_type=f32) + b4_ref[...]


# ------------------------------ host-side glue ------------------------------

def _conv1_patches_grouped(x):
    """x: [Bp, 1, 84, 84] (Bp % TB == 0) -> [Bp//TB, 4*TB*PP, 64].

    Rows within a group are (parity, img, pos) so pool1 is a max over four
    832-row blocks and every per-image slice is 8-row aligned (PP = 104).
    """
    Bp = x.shape[0]
    p = lax.conv_general_dilated_patches(
        x, (C1_K, C1_K), (C1_S, C1_S), "VALID")        # [Bp, 64, 20, 20]
    p = p.reshape(Bp, C1_K * C1_K, P1_OH, 2, P1_OH, 2)  # [Bp, k, h1, a, w1, b]
    p = p.transpose(0, 3, 5, 2, 4, 1)                   # [Bp, a, b, h1, w1, k]
    p = p.reshape(Bp, 4, NPOS, C1_K * C1_K)
    p = jnp.pad(p, ((0, 0), (0, 0), (0, PP - NPOS), (0, 0)))   # [Bp,4,PP,64]
    grp = Bp // TB
    p = p.reshape(grp, TB, 4, PP, C1_K * C1_K).transpose(0, 2, 1, 3, 4)
    return p.reshape(grp, 4 * TB * PP, C1_K * C1_K)


def _prepare_params(params, action_size):
    """Re-layout PyTorch-convention weights for the channel-last fused kernel."""
    w1 = params["conv1_w"].reshape(C1_OUT, C1_K * C1_K).T          # [64, 32]
    b1 = params["conv1_b"].reshape(1, C1_OUT)
    # w2[ij][cin, cout] = conv2_w[cout, cin, i, j],  ij = i*4 + j
    w2 = jnp.transpose(params["conv2_w"], (2, 3, 1, 0)).reshape(
        C2_K * C2_K, C1_OUT, C2_OUT)                               # [16, 32, 64]
    b2 = params["conv2_b"].reshape(1, C2_OUT)
    # fc1 consumes pool2 in (h, w, c) order; PyTorch flatten is (c, h, w).
    w3 = params["fc1_w"].reshape(FC1_OUT, C2_OUT, P2_OH * P2_OH)
    w3 = jnp.transpose(w3, (2, 1, 0))                              # [4, 64, 64]
    b3 = params["fc1_b"].reshape(1, FC1_OUT)
    w4 = jnp.zeros((FC1_OUT, FC2_PAD), jnp.float32)
    w4 = w4.at[:, :action_size].set(params["fc2_w"].T)
    b4 = jnp.zeros((1, FC2_PAD), jnp.float32)
    b4 = b4.at[:, :action_size].set(params["fc2_b"])
    return w1, b1, w2, b2, w3, b3, w4, b4


def qnetwork_forward(params, x, action_size):
    assert action_size <= FC2_PAD
    B = x.shape[0]
    Bp = ((B + TB - 1) // TB) * TB
    if Bp != B:
        x = jnp.pad(x, ((0, Bp - B), (0, 0), (0, 0), (0, 0)))
    n_groups = Bp // TB

    patches = _conv1_patches_grouped(x)
    gmat = _build_conv2_gather()
    w1, b1, w2, b2, w3, b3, w4, b4 = _prepare_params(params, action_size)

    out = pl.pallas_call(
        _qnet_kernel,
        out_shape=jax.ShapeDtypeStruct((Bp, FC2_PAD), jnp.float32),
        grid=(n_groups,),
        in_specs=[
            pl.BlockSpec((1, 4 * TB * PP, C1_K * C1_K),
                         lambda g: (g, 0, 0)),                     # patches
            pl.BlockSpec((C2_K * C2_K * NQ, PP), lambda g: (0, 0)),  # gather G
            pl.BlockSpec((C1_K * C1_K, C1_OUT), lambda g: (0, 0)),     # w1
            pl.BlockSpec((1, C1_OUT), lambda g: (0, 0)),               # b1
            pl.BlockSpec((C2_K * C2_K, C1_OUT, C2_OUT),
                         lambda g: (0, 0, 0)),                         # w2
            pl.BlockSpec((1, C2_OUT), lambda g: (0, 0)),               # b2
            pl.BlockSpec((P2_OH * P2_OH, C2_OUT, FC1_OUT),
                         lambda g: (0, 0, 0)),                         # w3
            pl.BlockSpec((1, FC1_OUT), lambda g: (0, 0)),              # b3
            pl.BlockSpec((FC1_OUT, FC2_PAD), lambda g: (0, 0)),        # w4
            pl.BlockSpec((1, FC2_PAD), lambda g: (0, 0)),              # b4
        ],
        out_specs=pl.BlockSpec((TB, FC2_PAD), lambda g: (g, 0)),
        compiler_params=pltpu.CompilerParams(
            dimension_semantics=("parallel",),
            vmem_limit_bytes=32 * 1024 * 1024),
    )(patches, gmat, w1, b1, w2, b2, w3, b3, w4, b4)
    return out[:B, :action_size]


# ------------------------------ reference path ------------------------------

def init_params(key, action_size):
    """PyTorch-style uniform(-1/sqrt(fan_in), +1/sqrt(fan_in)) init."""
    ks = jax.random.split(key, 8)

    def u(k, shape, bound):
        return jax.random.uniform(k, shape, jnp.float32, -bound, bound)

    k1 = 1.0 / math.sqrt(1 * 8 * 8)
    k2 = 1.0 / math.sqrt(32 * 4 * 4)
    k3 = 1.0 / math.sqrt(64 * 2 * 2)
    k4 = 1.0 / math.sqrt(64)
    return dict(
        conv1_w=u(ks[0], (32, 1, 8, 8), k1),  conv1_b=u(ks[1], (32,), k1),
        conv2_w=u(ks[2], (64, 32, 4, 4), k2), conv2_b=u(ks[3], (64,), k2),
        fc1_w=u(ks[4], (64, 64 * 2 * 2), k3), fc1_b=u(ks[5], (64,), k3),
        fc2_w=u(ks[6], (action_size, 64), k4), fc2_b=u(ks[7], (action_size,), k4),
    )


def qnetwork_ref(params, x):
    """Pure-JAX reference for correctness checking."""
    prec = lax.Precision.HIGHEST

    def conv(x, w, b, s):
        y = lax.conv_general_dilated(x, w, (s, s), "VALID",
                                     dimension_numbers=("NCHW", "OIHW", "NCHW"),
                                     precision=prec)
        return jax.nn.relu(y + b[None, :, None, None])

    def pool(x):
        return lax.reduce_window(x, -jnp.inf, lax.max,
                                 (1, 1, 2, 2), (1, 1, 2, 2), "VALID")

    x = pool(conv(x, params["conv1_w"], params["conv1_b"], 4))
    x = pool(conv(x, params["conv2_w"], params["conv2_b"], 2))
    x = x.reshape(x.shape[0], -1)
    x = jax.nn.relu(jnp.dot(x, params["fc1_w"].T, precision=prec)
                    + params["fc1_b"])
    return jnp.dot(x, params["fc2_w"].T, precision=prec) + params["fc2_b"]


if __name__ == "__main__":
    key = jax.random.PRNGKey(0)
    pkey, xkey = jax.random.split(key)

    action_size = 6  # synthetic stand-in for env.action_space(...).n
    params = init_params(pkey, action_size)

    # 84x84 single-channel input is required so pool2 output is 2x2 (fc1=256).
    # batch=16 -> two TB=8 groups (grid length 2, even, for 2-core chips).
    batch = 16
    x = jax.random.uniform(xkey, (batch, 1, IMG, IMG), jnp.float32)

    fwd = jax.jit(qnetwork_forward, static_argnums=2)
    out = jax.block_until_ready(fwd(params, x, action_size))
    ref = qnetwork_ref(params, x)

    assert out.shape == (batch, action_size), out.shape
    err = float(jnp.max(jnp.abs(out - ref)))
    assert jnp.allclose(out, ref, rtol=1e-4, atol=1e-4), err
    print("KERNEL_OK")
</pallas_src>

<mosaic_0001>
module attributes {stable_mosaic.version = 11 : i64} {
  func.func @_qnet_kernel(%arg0: i32, %arg1: memref<1x3328x64xf32, #tpu.memory_space<vmem>>, %arg2: memref<256x104xf32, #tpu.memory_space<vmem>>, %arg3: memref<64x32xf32, #tpu.memory_space<vmem>>, %arg4: memref<1x32xf32, #tpu.memory_space<vmem>>, %arg5: memref<16x32x64xf32, #tpu.memory_space<vmem>>, %arg6: memref<1x64xf32, #tpu.memory_space<vmem>>, %arg7: memref<4x64x64xf32, #tpu.memory_space<vmem>>, %arg8: memref<1x64xf32, #tpu.memory_space<vmem>>, %arg9: memref<64x128xf32, #tpu.memory_space<vmem>>, %arg10: memref<1x128xf32, #tpu.memory_space<vmem>>, %arg11: memref<8x128xf32, #tpu.memory_space<vmem>>) attributes {dimension_semantics = [#tpu.dimension_semantics<parallel>], iteration_bounds = array<i64: 2>, scalar_prefetch = 0 : i64, scratch_operands = 0 : i64, tpu.core_type = #tpu.core_type<tc>, window_params = [{transform_indices = @transform_0, window_bounds = array<i64: 1, 3328, 64>}, {pipeline_mode = #tpu.pipeline_mode<synchronous>, transform_indices = @transform_1, window_bounds = array<i64: 256, 104>}, {pipeline_mode = #tpu.pipeline_mode<synchronous>, transform_indices = @transform_2, window_bounds = array<i64: 64, 32>}, {pipeline_mode = #tpu.pipeline_mode<synchronous>, transform_indices = @transform_3, window_bounds = array<i64: 1, 32>}, {pipeline_mode = #tpu.pipeline_mode<synchronous>, transform_indices = @transform_4, window_bounds = array<i64: 16, 32, 64>}, {pipeline_mode = #tpu.pipeline_mode<synchronous>, transform_indices = @transform_5, window_bounds = array<i64: 1, 64>}, {pipeline_mode = #tpu.pipeline_mode<synchronous>, transform_indices = @transform_6, window_bounds = array<i64: 4, 64, 64>}, {pipeline_mode = #tpu.pipeline_mode<synchronous>, transform_indices = @transform_7, window_bounds = array<i64: 1, 64>}, {pipeline_mode = #tpu.pipeline_mode<synchronous>, transform_indices = @transform_8, window_bounds = array<i64: 64, 128>}, {pipeline_mode = #tpu.pipeline_mode<synchronous>, transform_indices = @transform_9, window_bounds = array<i64: 1, 128>}, {transform_indices = @transform_10, window_bounds = array<i64: 8, 128>}]} {
    %c0 = arith.constant 0 : index
    %c0_0 = arith.constant 0 : index
    %c0_1 = arith.constant 0 : index
    %0 = vector.load %arg1[%c0, %c0_0, %c0_1] : memref<1x3328x64xf32, #tpu.memory_space<vmem>>, vector<1x3328x64xf32>
    %1 = vector.shape_cast %0 : vector<1x3328x64xf32> to vector<3328x64xf32>
    %c0_2 = arith.constant 0 : index
    %c0_3 = arith.constant 0 : index
    %2 = vector.load %arg3[%c0_2, %c0_3] : memref<64x32xf32, #tpu.memory_space<vmem>>, vector<64x32xf32>
    %cst = arith.constant dense<0.000000e+00> : vector<3328x32xf32>
    %3 = tpu.matmul %1, %2, %cst {dimension_numbers = #tpu.dot_dimension_numbers<[1], [0], [0], [1], [0, 0, 1, 1], [], []>} : vector<3328x64xf32>, vector<64x32xf32>, vector<3328x32xf32> -> vector<3328x32xf32>
    %4 = vector.extract_strided_slice %3 {offsets = [0, 0], sizes = [832, 32], strides = [1, 1]} : vector<3328x32xf32> to vector<832x32xf32>
    %5 = vector.extract_strided_slice %3 {offsets = [832, 0], sizes = [832, 32], strides = [1, 1]} : vector<3328x32xf32> to vector<832x32xf32>
    %6 = arith.maximumf %4, %5 : vector<832x32xf32>
    %7 = vector.extract_strided_slice %3 {offsets = [1664, 0], sizes = [832, 32], strides = [1, 1]} : vector<3328x32xf32> to vector<832x32xf32>
    %8 = vector.extract_strided_slice %3 {offsets = [2496, 0], sizes = [832, 32], strides = [1, 1]} : vector<3328x32xf32> to vector<832x32xf32>
    %9 = arith.maximumf %7, %8 : vector<832x32xf32>
    %10 = arith.maximumf %6, %9 : vector<832x32xf32>
    %c0_4 = arith.constant 0 : index
    %c0_5 = arith.constant 0 : index
    %11 = vector.load %arg4[%c0_4, %c0_5] : memref<1x32xf32, #tpu.memory_space<vmem>>, vector<1x32xf32>
    %12 = vector.broadcast %11 : vector<1x32xf32> to vector<832x32xf32>
    %13 = arith.addf %10, %12 : vector<832x32xf32>
    %cst_6 = arith.constant 0.000000e+00 : f32
    %14 = vector.broadcast %cst_6 : f32 to vector<832x32xf32>
    %15 = arith.maximumf %13, %14 : vector<832x32xf32>
    %c0_7 = arith.constant 0 : index
    %c0_8 = arith.constant 0 : index
    %16 = vector.load %arg2[%c0_7, %c0_8] : memref<256x104xf32, #tpu.memory_space<vmem>>, vector<256x104xf32>
    %17 = vector.extract_strided_slice %15 {offsets = [0, 0], sizes = [104, 32], strides = [1, 1]} : vector<832x32xf32> to vector<104x32xf32>
    %cst_9 = arith.constant dense<0.000000e+00> : vector<256x32xf32>
    %18 = tpu.matmul %16, %17, %cst_9 {dimension_numbers = #tpu.dot_dimension_numbers<[1], [0], [0], [1], [0, 0, 1, 1], [], []>} : vector<256x104xf32>, vector<104x32xf32>, vector<256x32xf32> -> vector<256x32xf32>
    %19 = vector.extract_strided_slice %15 {offsets = [104, 0], sizes = [104, 32], strides = [1, 1]} : vector<832x32xf32> to vector<104x32xf32>
    %cst_10 = arith.constant dense<0.000000e+00> : vector<256x32xf32>
    %20 = tpu.matmul %16, %19, %cst_10 {dimension_numbers = #tpu.dot_dimension_numbers<[1], [0], [0], [1], [0, 0, 1, 1], [], []>} : vector<256x104xf32>, vector<104x32xf32>, vector<256x32xf32> -> vector<256x32xf32>
    %21 = vector.extract_strided_slice %15 {offsets = [208, 0], sizes = [104, 32], strides = [1, 1]} : vector<832x32xf32> to vector<104x32xf32>
    %cst_11 = arith.constant dense<0.000000e+00> : vector<256x32xf32>
    %22 = tpu.matmul %16, %21, %cst_11 {dimension_numbers = #tpu.dot_dimension_numbers<[1], [0], [0], [1], [0, 0, 1, 1], [], []>} : vector<256x104xf32>, vector<104x32xf32>, vector<256x32xf32> -> vector<256x32xf32>
    %23 = vector.extract_strided_slice %15 {offsets = [312, 0], sizes = [104, 32], strides = [1, 1]} : vector<832x32xf32> to vector<104x32xf32>
    %cst_12 = arith.constant dense<0.000000e+00> : vector<256x32xf32>
    %24 = tpu.matmul %16, %23, %cst_12 {dimension_numbers = #tpu.dot_dimension_numbers<[1], [0], [0], [1], [0, 0, 1, 1], [], []>} : vector<256x104xf32>, vector<104x32xf32>, vector<256x32xf32> -> vector<256x32xf32>
    %25 = vector.extract_strided_slice %15 {offsets = [416, 0], sizes = [104, 32], strides = [1, 1]} : vector<832x32xf32> to vector<104x32xf32>
    %cst_13 = arith.constant dense<0.000000e+00> : vector<256x32xf32>
    %26 = tpu.matmul %16, %25, %cst_13 {dimension_numbers = #tpu.dot_dimension_numbers<[1], [0], [0], [1], [0, 0, 1, 1], [], []>} : vector<256x104xf32>, vector<104x32xf32>, vector<256x32xf32> -> vector<256x32xf32>
    %27 = vector.extract_strided_slice %15 {offsets = [520, 0], sizes = [104, 32], strides = [1, 1]} : vector<832x32xf32> to vector<104x32xf32>
    %cst_14 = arith.constant dense<0.000000e+00> : vector<256x32xf32>
    %28 = tpu.matmul %16, %27, %cst_14 {dimension_numbers = #tpu.dot_dimension_numbers<[1], [0], [0], [1], [0, 0, 1, 1], [], []>} : vector<256x104xf32>, vector<104x32xf32>, vector<256x32xf32> -> vector<256x32xf32>
    %29 = vector.extract_strided_slice %15 {offsets = [624, 0], sizes = [104, 32], strides = [1, 1]} : vector<832x32xf32> to vector<104x32xf32>
    %cst_15 = arith.constant dense<0.000000e+00> : vector<256x32xf32>
    %30 = tpu.matmul %16, %29, %cst_15 {dimension_numbers = #tpu.dot_dimension_numbers<[1], [0], [0], [1], [0, 0, 1, 1], [], []>} : vector<256x104xf32>, vector<104x32xf32>, vector<256x32xf32> -> vector<256x32xf32>
    %31 = vector.extract_strided_slice %15 {offsets = [728, 0], sizes = [104, 32], strides = [1, 1]} : vector<832x32xf32> to vector<104x32xf32>
    %cst_16 = arith.constant dense<0.000000e+00> : vector<256x32xf32>
    %32 = tpu.matmul %16, %31, %cst_16 {dimension_numbers = #tpu.dot_dimension_numbers<[1], [0], [0], [1], [0, 0, 1, 1], [], []>} : vector<256x104xf32>, vector<104x32xf32>, vector<256x32xf32> -> vector<256x32xf32>
    %33 = vector.extract_strided_slice %18 {offsets = [0, 0], sizes = [16, 32], strides = [1, 1]} : vector<256x32xf32> to vector<16x32xf32>
    %34 = vector.extract_strided_slice %20 {offsets = [0, 0], sizes = [16, 32], strides = [1, 1]} : vector<256x32xf32> to vector<16x32xf32>
    %35 = vector.extract_strided_slice %22 {offsets = [0, 0], sizes = [16, 32], strides = [1, 1]} : vector<256x32xf32> to vector<16x32xf32>
    %36 = vector.extract_strided_slice %24 {offsets = [0, 0], sizes = [16, 32], strides = [1, 1]} : vector<256x32xf32> to vector<16x32xf32>
    %37 = vector.extract_strided_slice %26 {offsets = [0, 0], sizes = [16, 32], strides = [1, 1]} : vector<256x32xf32> to vector<16x32xf32>
    %38 = vector.extract_strided_slice %28 {offsets = [0, 0], sizes = [16, 32], strides = [1, 1]} : vector<256x32xf32> to vector<16x32xf32>
    %39 = vector.extract_strided_slice %30 {offsets = [0, 0], sizes = [16, 32], strides = [1, 1]} : vector<256x32xf32> to vector<16x32xf32>
    %40 = vector.extract_strided_slice %32 {offsets = [0, 0], sizes = [16, 32], strides = [1, 1]} : vector<256x32xf32> to vector<16x32xf32>
    %41 = tpu.concatenate %33, %34, %35, %36, %37, %38, %39, %40 in 0 : vector<16x32xf32>, vector<16x32xf32>, vector<16x32xf32>, vector<16x32xf32>, vector<16x32xf32>, vector<16x32xf32>, vector<16x32xf32>, vector<16x32xf32> -> vector<128x32xf32>
    %c0_17 = arith.constant 0 : index
    %c0_18 = arith.constant 0 : index
    %c0_19 = arith.constant 0 : index
    %42 = vector.load %arg5[%c0_17, %c0_18, %c0_19] : memref<16x32x64xf32, #tpu.memory_space<vmem>>, vector<1x32x64xf32>
    %43 = vector.shape_cast %42 : vector<1x32x64xf32> to vector<32x64xf32>
    %cst_20 = arith.constant dense<0.000000e+00> : vector<128x64xf32>
    %44 = tpu.matmul %41, %43, %cst_20 {dimension_numbers = #tpu.dot_dimension_numbers<[1], [0], [0], [1], [0, 0, 1, 1], [], []>} : vector<128x32xf32>, vector<32x64xf32>, vector<128x64xf32> -> vector<128x64xf32>
    %45 = vector.extract_strided_slice %18 {offsets = [16, 0], sizes = [16, 32], strides = [1, 1]} : vector<256x32xf32> to vector<16x32xf32>
    %46 = vector.extract_strided_slice %20 {offsets = [16, 0], sizes = [16, 32], strides = [1, 1]} : vector<256x32xf32> to vector<16x32xf32>
    %47 = vector.extract_strided_slice %22 {offsets = [16, 0], sizes = [16, 32], strides = [1, 1]} : vector<256x32xf32> to vector<16x32xf32>
    %48 = vector.extract_strided_slice %24 {offsets = [16, 0], sizes = [16, 32], strides = [1, 1]} : vector<256x32xf32> to vector<16x32xf32>
    %49 = vector.extract_strided_slice %26 {offsets = [16, 0], sizes = [16, 32], strides = [1, 1]} : vector<256x32xf32> to vector<16x32xf32>
    %50 = vector.extract_strided_slice %28 {offsets = [16, 0], sizes = [16, 32], strides = [1, 1]} : vector<256x32xf32> to vector<16x32xf32>
    %51 = vector.extract_strided_slice %30 {offsets = [16, 0], sizes = [16, 32], strides = [1, 1]} : vector<256x32xf32> to vector<16x32xf32>
    %52 = vector.extract_strided_slice %32 {offsets = [16, 0], sizes = [16, 32], strides = [1, 1]} : vector<256x32xf32> to vector<16x32xf32>
    %53 = tpu.concatenate %45, %46, %47, %48, %49, %50, %51, %52 in 0 : vector<16x32xf32>, vector<16x32xf32>, vector<16x32xf32>, vector<16x32xf32>, vector<16x32xf32>, vector<16x32xf32>, vector<16x32xf32>, vector<16x32xf32> -> vector<128x32xf32>
    %c1 = arith.constant 1 : index
    %c0_21 = arith.constant 0 : index
    %c0_22 = arith.constant 0 : index
    %54 = vector.load %arg5[%c1, %c0_21, %c0_22] : memref<16x32x64xf32, #tpu.memory_space<vmem>>, vector<1x32x64xf32>
    %55 = vector.shape_cast %54 : vector<1x32x64xf32> to vector<32x64xf32>
    %cst_23 = arith.constant dense<0.000000e+00> : vector<128x64xf32>
    %56 = tpu.matmul %53, %55, %cst_23 {dimension_numbers = #tpu.dot_dimension_numbers<[1], [0], [0], [1], [0, 0, 1, 1], [], []>} : vector<128x32xf32>, vector<32x64xf32>, vector<128x64xf32> -> vector<128x64xf32>
    %57 = arith.addf %44, %56 : vector<128x64xf32>
    %58 = vector.extract_strided_slice %18 {offsets = [32, 0], sizes = [16, 32], strides = [1, 1]} : vector<256x32xf32> to vector<16x32xf32>
    %59 = vector.extract_strided_slice %20 {offsets = [32, 0], sizes = [16, 32], strides = [1, 1]} : vector<256x32xf32> to vector<16x32xf32>
    %60 = vector.extract_strided_slice %22 {offsets = [32, 0], sizes = [16, 32], strides = [1, 1]} : vector<256x32xf32> to vector<16x32xf32>
    %61 = vector.extract_strided_slice %24 {offsets = [32, 0], sizes = [16, 32], strides = [1, 1]} : vector<256x32xf32> to vector<16x32xf32>
    %62 = vector.extract_strided_slice %26 {offsets = [32, 0], sizes = [16, 32], strides = [1, 1]} : vector<256x32xf32> to vector<16x32xf32>
    %63 = vector.extract_strided_slice %28 {offsets = [32, 0], sizes = [16, 32], strides = [1, 1]} : vector<256x32xf32> to vector<16x32xf32>
    %64 = vector.extract_strided_slice %30 {offsets = [32, 0], sizes = [16, 32], strides = [1, 1]} : vector<256x32xf32> to vector<16x32xf32>
    %65 = vector.extract_strided_slice %32 {offsets = [32, 0], sizes = [16, 32], strides = [1, 1]} : vector<256x32xf32> to vector<16x32xf32>
    %66 = tpu.concatenate %58, %59, %60, %61, %62, %63, %64, %65 in 0 : vector<16x32xf32>, vector<16x32xf32>, vector<16x32xf32>, vector<16x32xf32>, vector<16x32xf32>, vector<16x32xf32>, vector<16x32xf32>, vector<16x32xf32> -> vector<128x32xf32>
    %c2 = arith.constant 2 : index
    %c0_24 = arith.constant 0 : index
    %c0_25 = arith.constant 0 : index
    %67 = vector.load %arg5[%c2, %c0_24, %c0_25] : memref<16x32x64xf32, #tpu.memory_space<vmem>>, vector<1x32x64xf32>
    %68 = vector.shape_cast %67 : vector<1x32x64xf32> to vector<32x64xf32>
    %cst_26 = arith.constant dense<0.000000e+00> : vector<128x64xf32>
    %69 = tpu.matmul %66, %68, %cst_26 {dimension_numbers = #tpu.dot_dimension_numbers<[1], [0], [0], [1], [0, 0, 1, 1], [], []>} : vector<128x32xf32>, vector<32x64xf32>, vector<128x64xf32> -> vector<128x64xf32>
    %70 = arith.addf %57, %69 : vector<128x64xf32>
    %71 = vector.extract_strided_slice %18 {offsets = [48, 0], sizes = [16, 32], strides = [1, 1]} : vector<256x32xf32> to vector<16x32xf32>
    %72 = vector.extract_strided_slice %20 {offsets = [48, 0], sizes = [16, 32], strides = [1, 1]} : vector<256x32xf32> to vector<16x32xf32>
    %73 = vector.extract_strided_slice %22 {offsets = [48, 0], sizes = [16, 32], strides = [1, 1]} : vector<256x32xf32> to vector<16x32xf32>
    %74 = vector.extract_strided_slice %24 {offsets = [48, 0], sizes = [16, 32], strides = [1, 1]} : vector<256x32xf32> to vector<16x32xf32>
    %75 = vector.extract_strided_slice %26 {offsets = [48, 0], sizes = [16, 32], strides = [1, 1]} : vector<256x32xf32> to vector<16x32xf32>
    %76 = vector.extract_strided_slice %28 {offsets = [48, 0], sizes = [16, 32], strides = [1, 1]} : vector<256x32xf32> to vector<16x32xf32>
    %77 = vector.extract_strided_slice %30 {offsets = [48, 0], sizes = [16, 32], strides = [1, 1]} : vector<256x32xf32> to vector<16x32xf32>
    %78 = vector.extract_strided_slice %32 {offsets = [48, 0], sizes = [16, 32], strides = [1, 1]} : vector<256x32xf32> to vector<16x32xf32>
    %79 = tpu.concatenate %71, %72, %73, %74, %75, %76, %77, %78 in 0 : vector<16x32xf32>, vector<16x32xf32>, vector<16x32xf32>, vector<16x32xf32>, vector<16x32xf32>, vector<16x32xf32>, vector<16x32xf32>, vector<16x32xf32> -> vector<128x32xf32>
    %c3 = arith.constant 3 : index
    %c0_27 = arith.constant 0 : index
    %c0_28 = arith.constant 0 : index
    %80 = vector.load %arg5[%c3, %c0_27, %c0_28] : memref<16x32x64xf32, #tpu.memory_space<vmem>>, vector<1x32x64xf32>
    %81 = vector.shape_cast %80 : vector<1x32x64xf32> to vector<32x64xf32>
    %cst_29 = arith.constant dense<0.000000e+00> : vector<128x64xf32>
    %82 = tpu.matmul %79, %81, %cst_29 {dimension_numbers = #tpu.dot_dimension_numbers<[1], [0], [0], [1], [0, 0, 1, 1], [], []>} : vector<128x32xf32>, vector<32x64xf32>, vector<128x64xf32> -> vector<128x64xf32>
    %83 = arith.addf %70, %82 : vector<128x64xf32>
    %84 = vector.extract_strided_slice %18 {offsets = [64, 0], sizes = [16, 32], strides = [1, 1]} : vector<256x32xf32> to vector<16x32xf32>
    %85 = vector.extract_strided_slice %20 {offsets = [64, 0], sizes = [16, 32], strides = [1, 1]} : vector<256x32xf32> to vector<16x32xf32>
    %86 = vector.extract_strided_slice %22 {offsets = [64, 0], sizes = [16, 32], strides = [1, 1]} : vector<256x32xf32> to vector<16x32xf32>
    %87 = vector.extract_strided_slice %24 {offsets = [64, 0], sizes = [16, 32], strides = [1, 1]} : vector<256x32xf32> to vector<16x32xf32>
    %88 = vector.extract_strided_slice %26 {offsets = [64, 0], sizes = [16, 32], strides = [1, 1]} : vector<256x32xf32> to vector<16x32xf32>
    %89 = vector.extract_strided_slice %28 {offsets = [64, 0], sizes = [16, 32], strides = [1, 1]} : vector<256x32xf32> to vector<16x32xf32>
    %90 = vector.extract_strided_slice %30 {offsets = [64, 0], sizes = [16, 32], strides = [1, 1]} : vector<256x32xf32> to vector<16x32xf32>
    %91 = vector.extract_strided_slice %32 {offsets = [64, 0], sizes = [16, 32], strides = [1, 1]} : vector<256x32xf32> to vector<16x32xf32>
    %92 = tpu.concatenate %84, %85, %86, %87, %88, %89, %90, %91 in 0 : vector<16x32xf32>, vector<16x32xf32>, vector<16x32xf32>, vector<16x32xf32>, vector<16x32xf32>, vector<16x32xf32>, vector<16x32xf32>, vector<16x32xf32> -> vector<128x32xf32>
    %c4 = arith.constant 4 : index
    %c0_30 = arith.constant 0 : index
    %c0_31 = arith.constant 0 : index
    %93 = vector.load %arg5[%c4, %c0_30, %c0_31] : memref<16x32x64xf32, #tpu.memory_space<vmem>>, vector<1x32x64xf32>
    %94 = vector.shape_cast %93 : vector<1x32x64xf32> to vector<32x64xf32>
    %cst_32 = arith.constant dense<0.000000e+00> : vector<128x64xf32>
    %95 = tpu.matmul %92, %94, %cst_32 {dimension_numbers = #tpu.dot_dimension_numbers<[1], [0], [0], [1], [0, 0, 1, 1], [], []>} : vector<128x32xf32>, vector<32x64xf32>, vector<128x64xf32> -> vector<128x64xf32>
    %96 = arith.addf %83, %95 : vector<128x64xf32>
    %97 = vector.extract_strided_slice %18 {offsets = [80, 0], sizes = [16, 32], strides = [1, 1]} : vector<256x32xf32> to vector<16x32xf32>
    %98 = vector.extract_strided_slice %20 {offsets = [80, 0], sizes = [16, 32], strides = [1, 1]} : vector<256x32xf32> to vector<16x32xf32>
    %99 = vector.extract_strided_slice %22 {offsets = [80, 0], sizes = [16, 32], strides = [1, 1]} : vector<256x32xf32> to vector<16x32xf32>
    %100 = vector.extract_strided_slice %24 {offsets = [80, 0], sizes = [16, 32], strides = [1, 1]} : vector<256x32xf32> to vector<16x32xf32>
    %101 = vector.extract_strided_slice %26 {offsets = [80, 0], sizes = [16, 32], strides = [1, 1]} : vector<256x32xf32> to vector<16x32xf32>
    %102 = vector.extract_strided_slice %28 {offsets = [80, 0], sizes = [16, 32], strides = [1, 1]} : vector<256x32xf32> to vector<16x32xf32>
    %103 = vector.extract_strided_slice %30 {offsets = [80, 0], sizes = [16, 32], strides = [1, 1]} : vector<256x32xf32> to vector<16x32xf32>
    %104 = vector.extract_strided_slice %32 {offsets = [80, 0], sizes = [16, 32], strides = [1, 1]} : vector<256x32xf32> to vector<16x32xf32>
    %105 = tpu.concatenate %97, %98, %99, %100, %101, %102, %103, %104 in 0 : vector<16x32xf32>, vector<16x32xf32>, vector<16x32xf32>, vector<16x32xf32>, vector<16x32xf32>, vector<16x32xf32>, vector<16x32xf32>, vector<16x32xf32> -> vector<128x32xf32>
    %c5 = arith.constant 5 : index
    %c0_33 = arith.constant 0 : index
    %c0_34 = arith.constant 0 : index
    %106 = vector.load %arg5[%c5, %c0_33, %c0_34] : memref<16x32x64xf32, #tpu.memory_space<vmem>>, vector<1x32x64xf32>
    %107 = vector.shape_cast %106 : vector<1x32x64xf32> to vector<32x64xf32>
    %cst_35 = arith.constant dense<0.000000e+00> : vector<128x64xf32>
    %108 = tpu.matmul %105, %107, %cst_35 {dimension_numbers = #tpu.dot_dimension_numbers<[1], [0], [0], [1], [0, 0, 1, 1], [], []>} : vector<128x32xf32>, vector<32x64xf32>, vector<128x64xf32> -> vector<128x64xf32>
    %109 = arith.addf %96, %108 : vector<128x64xf32>
    %110 = vector.extract_strided_slice %18 {offsets = [96, 0], sizes = [16, 32], strides = [1, 1]} : vector<256x32xf32> to vector<16x32xf32>
    %111 = vector.extract_strided_slice %20 {offsets = [96, 0], sizes = [16, 32], strides = [1, 1]} : vector<256x32xf32> to vector<16x32xf32>
    %112 = vector.extract_strided_slice %22 {offsets = [96, 0], sizes = [16, 32], strides = [1, 1]} : vector<256x32xf32> to vector<16x32xf32>
    %113 = vector.extract_strided_slice %24 {offsets = [96, 0], sizes = [16, 32], strides = [1, 1]} : vector<256x32xf32> to vector<16x32xf32>
    %114 = vector.extract_strided_slice %26 {offsets = [96, 0], sizes = [16, 32], strides = [1, 1]} : vector<256x32xf32> to vector<16x32xf32>
    %115 = vector.extract_strided_slice %28 {offsets = [96, 0], sizes = [16, 32], strides = [1, 1]} : vector<256x32xf32> to vector<16x32xf32>
    %116 = vector.extract_strided_slice %30 {offsets = [96, 0], sizes = [16, 32], strides = [1, 1]} : vector<256x32xf32> to vector<16x32xf32>
    %117 = vector.extract_strided_slice %32 {offsets = [96, 0], sizes = [16, 32], strides = [1, 1]} : vector<256x32xf32> to vector<16x32xf32>
    %118 = tpu.concatenate %110, %111, %112, %113, %114, %115, %116, %117 in 0 : vector<16x32xf32>, vector<16x32xf32>, vector<16x32xf32>, vector<16x32xf32>, vector<16x32xf32>, vector<16x32xf32>, vector<16x32xf32>, vector<16x32xf32> -> vector<128x32xf32>
    %c6 = arith.constant 6 : index
    %c0_36 = arith.constant 0 : index
    %c0_37 = arith.constant 0 : index
    %119 = vector.load %arg5[%c6, %c0_36, %c0_37] : memref<16x32x64xf32, #tpu.memory_space<vmem>>, vector<1x32x64xf32>
    %120 = vector.shape_cast %119 : vector<1x32x64xf32> to vector<32x64xf32>
    %cst_38 = arith.constant dense<0.000000e+00> : vector<128x64xf32>
    %121 = tpu.matmul %118, %120, %cst_38 {dimension_numbers = #tpu.dot_dimension_numbers<[1], [0], [0], [1], [0, 0, 1, 1], [], []>} : vector<128x32xf32>, vector<32x64xf32>, vector<128x64xf32> -> vector<128x64xf32>
    %122 = arith.addf %109, %121 : vector<128x64xf32>
    %123 = vector.extract_strided_slice %18 {offsets = [112, 0], sizes = [16, 32], strides = [1, 1]} : vector<256x32xf32> to vector<16x32xf32>
    %124 = vector.extract_strided_slice %20 {offsets = [112, 0], sizes = [16, 32], strides = [1, 1]} : vector<256x32xf32> to vector<16x32xf32>
    %125 = vector.extract_strided_slice %22 {offsets = [112, 0], sizes = [16, 32], strides = [1, 1]} : vector<256x32xf32> to vector<16x32xf32>
    %126 = vector.extract_strided_slice %24 {offsets = [112, 0], sizes = [16, 32], strides = [1, 1]} : vector<256x32xf32> to vector<16x32xf32>
    %127 = vector.extract_strided_slice %26 {offsets = [112, 0], sizes = [16, 32], strides = [1, 1]} : vector<256x32xf32> to vector<16x32xf32>
    %128 = vector.extract_strided_slice %28 {offsets = [112, 0], sizes = [16, 32], strides = [1, 1]} : vector<256x32xf32> to vector<16x32xf32>
    %129 = vector.extract_strided_slice %30 {offsets = [112, 0], sizes = [16, 32], strides = [1, 1]} : vector<256x32xf32> to vector<16x32xf32>
    %130 = vector.extract_strided_slice %32 {offsets = [112, 0], sizes = [16, 32], strides = [1, 1]} : vector<256x32xf32> to vector<16x32xf32>
    %131 = tpu.concatenate %123, %124, %125, %126, %127, %128, %129, %130 in 0 : vector<16x32xf32>, vector<16x32xf32>, vector<16x32xf32>, vector<16x32xf32>, vector<16x32xf32>, vector<16x32xf32>, vector<16x32xf32>, vector<16x32xf32> -> vector<128x32xf32>
    %c7 = arith.constant 7 : index
    %c0_39 = arith.constant 0 : index
    %c0_40 = arith.constant 0 : index
    %132 = vector.load %arg5[%c7, %c0_39, %c0_40] : memref<16x32x64xf32, #tpu.memory_space<vmem>>, vector<1x32x64xf32>
    %133 = vector.shape_cast %132 : vector<1x32x64xf32> to vector<32x64xf32>
    %cst_41 = arith.constant dense<0.000000e+00> : vector<128x64xf32>
    %134 = tpu.matmul %131, %133, %cst_41 {dimension_numbers = #tpu.dot_dimension_numbers<[1], [0], [0], [1], [0, 0, 1, 1], [], []>} : vector<128x32xf32>, vector<32x64xf32>, vector<128x64xf32> -> vector<128x64xf32>
    %135 = arith.addf %122, %134 : vector<128x64xf32>
    %136 = vector.extract_strided_slice %18 {offsets = [128, 0], sizes = [16, 32], strides = [1, 1]} : vector<256x32xf32> to vector<16x32xf32>
    %137 = vector.extract_strided_slice %20 {offsets = [128, 0], sizes = [16, 32], strides = [1, 1]} : vector<256x32xf32> to vector<16x32xf32>
    %138 = vector.extract_strided_slice %22 {offsets = [128, 0], sizes = [16, 32], strides = [1, 1]} : vector<256x32xf32> to vector<16x32xf32>
    %139 = vector.extract_strided_slice %24 {offsets = [128, 0], sizes = [16, 32], strides = [1, 1]} : vector<256x32xf32> to vector<16x32xf32>
    %140 = vector.extract_strided_slice %26 {offsets = [128, 0], sizes = [16, 32], strides = [1, 1]} : vector<256x32xf32> to vector<16x32xf32>
    %141 = vector.extract_strided_slice %28 {offsets = [128, 0], sizes = [16, 32], strides = [1, 1]} : vector<256x32xf32> to vector<16x32xf32>
    %142 = vector.extract_strided_slice %30 {offsets = [128, 0], sizes = [16, 32], strides = [1, 1]} : vector<256x32xf32> to vector<16x32xf32>
    %143 = vector.extract_strided_slice %32 {offsets = [128, 0], sizes = [16, 32], strides = [1, 1]} : vector<256x32xf32> to vector<16x32xf32>
    %144 = tpu.concatenate %136, %137, %138, %139, %140, %141, %142, %143 in 0 : vector<16x32xf32>, vector<16x32xf32>, vector<16x32xf32>, vector<16x32xf32>, vector<16x32xf32>, vector<16x32xf32>, vector<16x32xf32>, vector<16x32xf32> -> vector<128x32xf32>
    %c8 = arith.constant 8 : index
    %c0_42 = arith.constant 0 : index
    %c0_43 = arith.constant 0 : index
    %145 = vector.load %arg5[%c8, %c0_42, %c0_43] : memref<16x32x64xf32, #tpu.memory_space<vmem>>, vector<1x32x64xf32>
    %146 = vector.shape_cast %145 : vector<1x32x64xf32> to vector<32x64xf32>
    %cst_44 = arith.constant dense<0.000000e+00> : vector<128x64xf32>
    %147 = tpu.matmul %144, %146, %cst_44 {dimension_numbers = #tpu.dot_dimension_numbers<[1], [0], [0], [1], [0, 0, 1, 1], [], []>} : vector<128x32xf32>, vector<32x64xf32>, vector<128x64xf32> -> vector<128x64xf32>
    %148 = arith.addf %135, %147 : vector<128x64xf32>
    %149 = vector.extract_strided_slice %18 {offsets = [144, 0], sizes = [16, 32], strides = [1, 1]} : vector<256x32xf32> to vector<16x32xf32>
    %150 = vector.extract_strided_slice %20 {offsets = [144, 0], sizes = [16, 32], strides = [1, 1]} : vector<256x32xf32> to vector<16x32xf32>
    %151 = vector.extract_strided_slice %22 {offsets = [144, 0], sizes = [16, 32], strides = [1, 1]} : vector<256x32xf32> to vector<16x32xf32>
    %152 = vector.extract_strided_slice %24 {offsets = [144, 0], sizes = [16, 32], strides = [1, 1]} : vector<256x32xf32> to vector<16x32xf32>
    %153 = vector.extract_strided_slice %26 {offsets = [144, 0], sizes = [16, 32], strides = [1, 1]} : vector<256x32xf32> to vector<16x32xf32>
    %154 = vector.extract_strided_slice %28 {offsets = [144, 0], sizes = [16, 32], strides = [1, 1]} : vector<256x32xf32> to vector<16x32xf32>
    %155 = vector.extract_strided_slice %30 {offsets = [144, 0], sizes = [16, 32], strides = [1, 1]} : vector<256x32xf32> to vector<16x32xf32>
    %156 = vector.extract_strided_slice %32 {offsets = [144, 0], sizes = [16, 32], strides = [1, 1]} : vector<256x32xf32> to vector<16x32xf32>
    %157 = tpu.concatenate %149, %150, %151, %152, %153, %154, %155, %156 in 0 : vector<16x32xf32>, vector<16x32xf32>, vector<16x32xf32>, vector<16x32xf32>, vector<16x32xf32>, vector<16x32xf32>, vector<16x32xf32>, vector<16x32xf32> -> vector<128x32xf32>
    %c9 = arith.constant 9 : index
    %c0_45 = arith.constant 0 : index
    %c0_46 = arith.constant 0 : index
    %158 = vector.load %arg5[%c9, %c0_45, %c0_46] : memref<16x32x64xf32, #tpu.memory_space<vmem>>, vector<1x32x64xf32>
    %159 = vector.shape_cast %158 : vector<1x32x64xf32> to vector<32x64xf32>
    %cst_47 = arith.constant dense<0.000000e+00> : vector<128x64xf32>
    %160 = tpu.matmul %157, %159, %cst_47 {dimension_numbers = #tpu.dot_dimension_numbers<[1], [0], [0], [1], [0, 0, 1, 1], [], []>} : vector<128x32xf32>, vector<32x64xf32>, vector<128x64xf32> -> vector<128x64xf32>
    %161 = arith.addf %148, %160 : vector<128x64xf32>
    %162 = vector.extract_strided_slice %18 {offsets = [160, 0], sizes = [16, 32], strides = [1, 1]} : vector<256x32xf32> to vector<16x32xf32>
    %163 = vector.extract_strided_slice %20 {offsets = [160, 0], sizes = [16, 32], strides = [1, 1]} : vector<256x32xf32> to vector<16x32xf32>
    %164 = vector.extract_strided_slice %22 {offsets = [160, 0], sizes = [16, 32], strides = [1, 1]} : vector<256x32xf32> to vector<16x32xf32>
    %165 = vector.extract_strided_slice %24 {offsets = [160, 0], sizes = [16, 32], strides = [1, 1]} : vector<256x32xf32> to vector<16x32xf32>
    %166 = vector.extract_strided_slice %26 {offsets = [160, 0], sizes = [16, 32], strides = [1, 1]} : vector<256x32xf32> to vector<16x32xf32>
    %167 = vector.extract_strided_slice %28 {offsets = [160, 0], sizes = [16, 32], strides = [1, 1]} : vector<256x32xf32> to vector<16x32xf32>
    %168 = vector.extract_strided_slice %30 {offsets = [160, 0], sizes = [16, 32], strides = [1, 1]} : vector<256x32xf32> to vector<16x32xf32>
    %169 = vector.extract_strided_slice %32 {offsets = [160, 0], sizes = [16, 32], strides = [1, 1]} : vector<256x32xf32> to vector<16x32xf32>
    %170 = tpu.concatenate %162, %163, %164, %165, %166, %167, %168, %169 in 0 : vector<16x32xf32>, vector<16x32xf32>, vector<16x32xf32>, vector<16x32xf32>, vector<16x32xf32>, vector<16x32xf32>, vector<16x32xf32>, vector<16x32xf32> -> vector<128x32xf32>
    %c10 = arith.constant 10 : index
    %c0_48 = arith.constant 0 : index
    %c0_49 = arith.constant 0 : index
    %171 = vector.load %arg5[%c10, %c0_48, %c0_49] : memref<16x32x64xf32, #tpu.memory_space<vmem>>, vector<1x32x64xf32>
    %172 = vector.shape_cast %171 : vector<1x32x64xf32> to vector<32x64xf32>
    %cst_50 = arith.constant dense<0.000000e+00> : vector<128x64xf32>
    %173 = tpu.matmul %170, %172, %cst_50 {dimension_numbers = #tpu.dot_dimension_numbers<[1], [0], [0], [1], [0, 0, 1, 1], [], []>} : vector<128x32xf32>, vector<32x64xf32>, vector<128x64xf32> -> vector<128x64xf32>
    %174 = arith.addf %161, %173 : vector<128x64xf32>
    %175 = vector.extract_strided_slice %18 {offsets = [176, 0], sizes = [16, 32], strides = [1, 1]} : vector<256x32xf32> to vector<16x32xf32>
    %176 = vector.extract_strided_slice %20 {offsets = [176, 0], sizes = [16, 32], strides = [1, 1]} : vector<256x32xf32> to vector<16x32xf32>
    %177 = vector.extract_strided_slice %22 {offsets = [176, 0], sizes = [16, 32], strides = [1, 1]} : vector<256x32xf32> to vector<16x32xf32>
    %178 = vector.extract_strided_slice %24 {offsets = [176, 0], sizes = [16, 32], strides = [1, 1]} : vector<256x32xf32> to vector<16x32xf32>
    %179 = vector.extract_strided_slice %26 {offsets = [176, 0], sizes = [16, 32], strides = [1, 1]} : vector<256x32xf32> to vector<16x32xf32>
    %180 = vector.extract_strided_slice %28 {offsets = [176, 0], sizes = [16, 32], strides = [1, 1]} : vector<256x32xf32> to vector<16x32xf32>
    %181 = vector.extract_strided_slice %30 {offsets = [176, 0], sizes = [16, 32], strides = [1, 1]} : vector<256x32xf32> to vector<16x32xf32>
    %182 = vector.extract_strided_slice %32 {offsets = [176, 0], sizes = [16, 32], strides = [1, 1]} : vector<256x32xf32> to vector<16x32xf32>
    %183 = tpu.concatenate %175, %176, %177, %178, %179, %180, %181, %182 in 0 : vector<16x32xf32>, vector<16x32xf32>, vector<16x32xf32>, vector<16x32xf32>, vector<16x32xf32>, vector<16x32xf32>, vector<16x32xf32>, vector<16x32xf32> -> vector<128x32xf32>
    %c11 = arith.constant 11 : index
    %c0_51 = arith.constant 0 : index
    %c0_52 = arith.constant 0 : index
    %184 = vector.load %arg5[%c11, %c0_51, %c0_52] : memref<16x32x64xf32, #tpu.memory_space<vmem>>, vector<1x32x64xf32>
    %185 = vector.shape_cast %184 : vector<1x32x64xf32> to vector<32x64xf32>
    %cst_53 = arith.constant dense<0.000000e+00> : vector<128x64xf32>
    %186 = tpu.matmul %183, %185, %cst_53 {dimension_numbers = #tpu.dot_dimension_numbers<[1], [0], [0], [1], [0, 0, 1, 1], [], []>} : vector<128x32xf32>, vector<32x64xf32>, vector<128x64xf32> -> vector<128x64xf32>
    %187 = arith.addf %174, %186 : vector<128x64xf32>
    %188 = vector.extract_strided_slice %18 {offsets = [192, 0], sizes = [16, 32], strides = [1, 1]} : vector<256x32xf32> to vector<16x32xf32>
    %189 = vector.extract_strided_slice %20 {offsets = [192, 0], sizes = [16, 32], strides = [1, 1]} : vector<256x32xf32> to vector<16x32xf32>
    %190 = vector.extract_strided_slice %22 {offsets = [192, 0], sizes = [16, 32], strides = [1, 1]} : vector<256x32xf32> to vector<16x32xf32>
    %191 = vector.extract_strided_slice %24 {offsets = [192, 0], sizes = [16, 32], strides = [1, 1]} : vector<256x32xf32> to vector<16x32xf32>
    %192 = vector.extract_strided_slice %26 {offsets = [192, 0], sizes = [16, 32], strides = [1, 1]} : vector<256x32xf32> to vector<16x32xf32>
    %193 = vector.extract_strided_slice %28 {offsets = [192, 0], sizes = [16, 32], strides = [1, 1]} : vector<256x32xf32> to vector<16x32xf32>
    %194 = vector.extract_strided_slice %30 {offsets = [192, 0], sizes = [16, 32], strides = [1, 1]} : vector<256x32xf32> to vector<16x32xf32>
    %195 = vector.extract_strided_slice %32 {offsets = [192, 0], sizes = [16, 32], strides = [1, 1]} : vector<256x32xf32> to vector<16x32xf32>
    %196 = tpu.concatenate %188, %189, %190, %191, %192, %193, %194, %195 in 0 : vector<16x32xf32>, vector<16x32xf32>, vector<16x32xf32>, vector<16x32xf32>, vector<16x32xf32>, vector<16x32xf32>, vector<16x32xf32>, vector<16x32xf32> -> vector<128x32xf32>
    %c12 = arith.constant 12 : index
    %c0_54 = arith.constant 0 : index
    %c0_55 = arith.constant 0 : index
    %197 = vector.load %arg5[%c12, %c0_54, %c0_55] : memref<16x32x64xf32, #tpu.memory_space<vmem>>, vector<1x32x64xf32>
    %198 = vector.shape_cast %197 : vector<1x32x64xf32> to vector<32x64xf32>
    %cst_56 = arith.constant dense<0.000000e+00> : vector<128x64xf32>
    %199 = tpu.matmul %196, %198, %cst_56 {dimension_numbers = #tpu.dot_dimension_numbers<[1], [0], [0], [1], [0, 0, 1, 1], [], []>} : vector<128x32xf32>, vector<32x64xf32>, vector<128x64xf32> -> vector<128x64xf32>
    %200 = arith.addf %187, %199 : vector<128x64xf32>
    %201 = vector.extract_strided_slice %18 {offsets = [208, 0], sizes = [16, 32], strides = [1, 1]} : vector<256x32xf32> to vector<16x32xf32>
    %202 = vector.extract_strided_slice %20 {offsets = [208, 0], sizes = [16, 32], strides = [1, 1]} : vector<256x32xf32> to vector<16x32xf32>
    %203 = vector.extract_strided_slice %22 {offsets = [208, 0], sizes = [16, 32], strides = [1, 1]} : vector<256x32xf32> to vector<16x32xf32>
    %204 = vector.extract_strided_slice %24 {offsets = [208, 0], sizes = [16, 32], strides = [1, 1]} : vector<256x32xf32> to vector<16x32xf32>
    %205 = vector.extract_strided_slice %26 {offsets = [208, 0], sizes = [16, 32], strides = [1, 1]} : vector<256x32xf32> to vector<16x32xf32>
    %206 = vector.extract_strided_slice %28 {offsets = [208, 0], sizes = [16, 32], strides = [1, 1]} : vector<256x32xf32> to vector<16x32xf32>
    %207 = vector.extract_strided_slice %30 {offsets = [208, 0], sizes = [16, 32], strides = [1, 1]} : vector<256x32xf32> to vector<16x32xf32>
    %208 = vector.extract_strided_slice %32 {offsets = [208, 0], sizes = [16, 32], strides = [1, 1]} : vector<256x32xf32> to vector<16x32xf32>
    %209 = tpu.concatenate %201, %202, %203, %204, %205, %206, %207, %208 in 0 : vector<16x32xf32>, vector<16x32xf32>, vector<16x32xf32>, vector<16x32xf32>, vector<16x32xf32>, vector<16x32xf32>, vector<16x32xf32>, vector<16x32xf32> -> vector<128x32xf32>
    %c13 = arith.constant 13 : index
    %c0_57 = arith.constant 0 : index
    %c0_58 = arith.constant 0 : index
    %210 = vector.load %arg5[%c13, %c0_57, %c0_58] : memref<16x32x64xf32, #tpu.memory_space<vmem>>, vector<1x32x64xf32>
    %211 = vector.shape_cast %210 : vector<1x32x64xf32> to vector<32x64xf32>
    %cst_59 = arith.constant dense<0.000000e+00> : vector<128x64xf32>
    %212 = tpu.matmul %209, %211, %cst_59 {dimension_numbers = #tpu.dot_dimension_numbers<[1], [0], [0], [1], [0, 0, 1, 1], [], []>} : vector<128x32xf32>, vector<32x64xf32>, vector<128x64xf32> -> vector<128x64xf32>
    %213 = arith.addf %200, %212 : vector<128x64xf32>
    %214 = vector.extract_strided_slice %18 {offsets = [224, 0], sizes = [16, 32], strides = [1, 1]} : vector<256x32xf32> to vector<16x32xf32>
    %215 = vector.extract_strided_slice %20 {offsets = [224, 0], sizes = [16, 32], strides = [1, 1]} : vector<256x32xf32> to vector<16x32xf32>
    %216 = vector.extract_strided_slice %22 {offsets = [224, 0], sizes = [16, 32], strides = [1, 1]} : vector<256x32xf32> to vector<16x32xf32>
    %217 = vector.extract_strided_slice %24 {offsets = [224, 0], sizes = [16, 32], strides = [1, 1]} : vector<256x32xf32> to vector<16x32xf32>
    %218 = vector.extract_strided_slice %26 {offsets = [224, 0], sizes = [16, 32], strides = [1, 1]} : vector<256x32xf32> to vector<16x32xf32>
    %219 = vector.extract_strided_slice %28 {offsets = [224, 0], sizes = [16, 32], strides = [1, 1]} : vector<256x32xf32> to vector<16x32xf32>
    %220 = vector.extract_strided_slice %30 {offsets = [224, 0], sizes = [16, 32], strides = [1, 1]} : vector<256x32xf32> to vector<16x32xf32>
    %221 = vector.extract_strided_slice %32 {offsets = [224, 0], sizes = [16, 32], strides = [1, 1]} : vector<256x32xf32> to vector<16x32xf32>
    %222 = tpu.concatenate %214, %215, %216, %217, %218, %219, %220, %221 in 0 : vector<16x32xf32>, vector<16x32xf32>, vector<16x32xf32>, vector<16x32xf32>, vector<16x32xf32>, vector<16x32xf32>, vector<16x32xf32>, vector<16x32xf32> -> vector<128x32xf32>
    %c14 = arith.constant 14 : index
    %c0_60 = arith.constant 0 : index
    %c0_61 = arith.constant 0 : index
    %223 = vector.load %arg5[%c14, %c0_60, %c0_61] : memref<16x32x64xf32, #tpu.memory_space<vmem>>, vector<1x32x64xf32>
    %224 = vector.shape_cast %223 : vector<1x32x64xf32> to vector<32x64xf32>
    %cst_62 = arith.constant dense<0.000000e+00> : vector<128x64xf32>
    %225 = tpu.matmul %222, %224, %cst_62 {dimension_numbers = #tpu.dot_dimension_numbers<[1], [0], [0], [1], [0, 0, 1, 1], [], []>} : vector<128x32xf32>, vector<32x64xf32>, vector<128x64xf32> -> vector<128x64xf32>
    %226 = arith.addf %213, %225 : vector<128x64xf32>
    %227 = vector.extract_strided_slice %18 {offsets = [240, 0], sizes = [16, 32], strides = [1, 1]} : vector<256x32xf32> to vector<16x32xf32>
    %228 = vector.extract_strided_slice %20 {offsets = [240, 0], sizes = [16, 32], strides = [1, 1]} : vector<256x32xf32> to vector<16x32xf32>
    %229 = vector.extract_strided_slice %22 {offsets = [240, 0], sizes = [16, 32], strides = [1, 1]} : vector<256x32xf32> to vector<16x32xf32>
    %230 = vector.extract_strided_slice %24 {offsets = [240, 0], sizes = [16, 32], strides = [1, 1]} : vector<256x32xf32> to vector<16x32xf32>
    %231 = vector.extract_strided_slice %26 {offsets = [240, 0], sizes = [16, 32], strides = [1, 1]} : vector<256x32xf32> to vector<16x32xf32>
    %232 = vector.extract_strided_slice %28 {offsets = [240, 0], sizes = [16, 32], strides = [1, 1]} : vector<256x32xf32> to vector<16x32xf32>
    %233 = vector.extract_strided_slice %30 {offsets = [240, 0], sizes = [16, 32], strides = [1, 1]} : vector<256x32xf32> to vector<16x32xf32>
    %234 = vector.extract_strided_slice %32 {offsets = [240, 0], sizes = [16, 32], strides = [1, 1]} : vector<256x32xf32> to vector<16x32xf32>
    %235 = tpu.concatenate %227, %228, %229, %230, %231, %232, %233, %234 in 0 : vector<16x32xf32>, vector<16x32xf32>, vector<16x32xf32>, vector<16x32xf32>, vector<16x32xf32>, vector<16x32xf32>, vector<16x32xf32>, vector<16x32xf32> -> vector<128x32xf32>
    %c15 = arith.constant 15 : index
    %c0_63 = arith.constant 0 : index
    %c0_64 = arith.constant 0 : index
    %236 = vector.load %arg5[%c15, %c0_63, %c0_64] : memref<16x32x64xf32, #tpu.memory_space<vmem>>, vector<1x32x64xf32>
    %237 = vector.shape_cast %236 : vector<1x32x64xf32> to vector<32x64xf32>
    %cst_65 = arith.constant dense<0.000000e+00> : vector<128x64xf32>
    %238 = tpu.matmul %235, %237, %cst_65 {dimension_numbers = #tpu.dot_dimension_numbers<[1], [0], [0], [1], [0, 0, 1, 1], [], []>} : vector<128x32xf32>, vector<32x64xf32>, vector<128x64xf32> -> vector<128x64xf32>
    %239 = arith.addf %226, %238 : vector<128x64xf32>
    %c0_66 = arith.constant 0 : index
    %c0_67 = arith.constant 0 : index
    %240 = vector.load %arg6[%c0_66, %c0_67] : memref<1x64xf32, #tpu.memory_space<vmem>>, vector<1x64xf32>
    %241 = vector.broadcast %240 : vector<1x64xf32> to vector<128x64xf32>
    %242 = arith.addf %239, %241 : vector<128x64xf32>
    %cst_68 = arith.constant 0.000000e+00 : f32
    %243 = vector.broadcast %cst_68 : f32 to vector<128x64xf32>
    %244 = arith.maximumf %242, %243 : vector<128x64xf32>
    %245 = vector.extract_strided_slice %244 {offsets = [0, 0], sizes = [4, 64], strides = [1, 1]} : vector<128x64xf32> to vector<4x64xf32>
    %cst_69 = arith.constant dense<0xFF800000> : vector<64xf32>
    %246 = vector.multi_reduction <maximumf>, %245, %cst_69 [0] : vector<4x64xf32> to vector<64xf32>
    %247 = vector.shape_cast %246 : vector<64xf32> to vector<1x64xf32>
    %248 = vector.extract_strided_slice %244 {offsets = [16, 0], sizes = [4, 64], strides = [1, 1]} : vector<128x64xf32> to vector<4x64xf32>
    %cst_70 = arith.constant dense<0xFF800000> : vector<64xf32>
    %249 = vector.multi_reduction <maximumf>, %248, %cst_70 [0] : vector<4x64xf32> to vector<64xf32>
    %250 = vector.shape_cast %249 : vector<64xf32> to vector<1x64xf32>
    %251 = vector.extract_strided_slice %244 {offsets = [32, 0], sizes = [4, 64], strides = [1, 1]} : vector<128x64xf32> to vector<4x64xf32>
    %cst_71 = arith.constant dense<0xFF800000> : vector<64xf32>
    %252 = vector.multi_reduction <maximumf>, %251, %cst_71 [0] : vector<4x64xf32> to vector<64xf32>
    %253 = vector.shape_cast %252 : vector<64xf32> to vector<1x64xf32>
    %254 = vector.extract_strided_slice %244 {offsets = [48, 0], sizes = [4, 64], strides = [1, 1]} : vector<128x64xf32> to vector<4x64xf32>
    %cst_72 = arith.constant dense<0xFF800000> : vector<64xf32>
    %255 = vector.multi_reduction <maximumf>, %254, %cst_72 [0] : vector<4x64xf32> to vector<64xf32>
    %256 = vector.shape_cast %255 : vector<64xf32> to vector<1x64xf32>
    %257 = vector.extract_strided_slice %244 {offsets = [64, 0], sizes = [4, 64], strides = [1, 1]} : vector<128x64xf32> to vector<4x64xf32>
    %cst_73 = arith.constant dense<0xFF800000> : vector<64xf32>
    %258 = vector.multi_reduction <maximumf>, %257, %cst_73 [0] : vector<4x64xf32> to vector<64xf32>
    %259 = vector.shape_cast %258 : vector<64xf32> to vector<1x64xf32>
    %260 = vector.extract_strided_slice %244 {offsets = [80, 0], sizes = [4, 64], strides = [1, 1]} : vector<128x64xf32> to vector<4x64xf32>
    %cst_74 = arith.constant dense<0xFF800000> : vector<64xf32>
    %261 = vector.multi_reduction <maximumf>, %260, %cst_74 [0] : vector<4x64xf32> to vector<64xf32>
    %262 = vector.shape_cast %261 : vector<64xf32> to vector<1x64xf32>
    %263 = vector.extract_strided_slice %244 {offsets = [96, 0], sizes = [4, 64], strides = [1, 1]} : vector<128x64xf32> to vector<4x64xf32>
    %cst_75 = arith.constant dense<0xFF800000> : vector<64xf32>
    %264 = vector.multi_reduction <maximumf>, %263, %cst_75 [0] : vector<4x64xf32> to vector<64xf32>
    %265 = vector.shape_cast %264 : vector<64xf32> to vector<1x64xf32>
    %266 = vector.extract_strided_slice %244 {offsets = [112, 0], sizes = [4, 64], strides = [1, 1]} : vector<128x64xf32> to vector<4x64xf32>
    %cst_76 = arith.constant dense<0xFF800000> : vector<64xf32>
    %267 = vector.multi_reduction <maximumf>, %266, %cst_76 [0] : vector<4x64xf32> to vector<64xf32>
    %268 = vector.shape_cast %267 : vector<64xf32> to vector<1x64xf32>
    %269 = tpu.concatenate %247, %250, %253, %256, %259, %262, %265, %268 in 0 : vector<1x64xf32>, vector<1x64xf32>, vector<1x64xf32>, vector<1x64xf32>, vector<1x64xf32>, vector<1x64xf32>, vector<1x64xf32>, vector<1x64xf32> -> vector<8x64xf32>
    %c0_77 = arith.constant 0 : index
    %c0_78 = arith.constant 0 : index
    %c0_79 = arith.constant 0 : index
    %270 = vector.load %arg7[%c0_77, %c0_78, %c0_79] : memref<4x64x64xf32, #tpu.memory_space<vmem>>, vector<1x64x64xf32>
    %271 = vector.shape_cast %270 : vector<1x64x64xf32> to vector<64x64xf32>
    %cst_80 = arith.constant dense<0.000000e+00> : vector<8x64xf32>
    %272 = tpu.matmul %269, %271, %cst_80 {dimension_numbers = #tpu.dot_dimension_numbers<[1], [0], [0], [1], [0, 0, 1, 1], [], []>} : vector<8x64xf32>, vector<64x64xf32>, vector<8x64xf32> -> vector<8x64xf32>
    %273 = vector.extract_strided_slice %244 {offsets = [4, 0], sizes = [4, 64], strides = [1, 1]} : vector<128x64xf32> to vector<4x64xf32>
    %cst_81 = arith.constant dense<0xFF800000> : vector<64xf32>
    %274 = vector.multi_reduction <maximumf>, %273, %cst_81 [0] : vector<4x64xf32> to vector<64xf32>
    %275 = vector.shape_cast %274 : vector<64xf32> to vector<1x64xf32>
    %276 = vector.extract_strided_slice %244 {offsets = [20, 0], sizes = [4, 64], strides = [1, 1]} : vector<128x64xf32> to vector<4x64xf32>
    %cst_82 = arith.constant dense<0xFF800000> : vector<64xf32>
    %277 = vector.multi_reduction <maximumf>, %276, %cst_82 [0] : vector<4x64xf32> to vector<64xf32>
    %278 = vector.shape_cast %277 : vector<64xf32> to vector<1x64xf32>
    %279 = vector.extract_strided_slice %244 {offsets = [36, 0], sizes = [4, 64], strides = [1, 1]} : vector<128x64xf32> to vector<4x64xf32>
    %cst_83 = arith.constant dense<0xFF800000> : vector<64xf32>
    %280 = vector.multi_reduction <maximumf>, %279, %cst_83 [0] : vector<4x64xf32> to vector<64xf32>
    %281 = vector.shape_cast %280 : vector<64xf32> to vector<1x64xf32>
    %282 = vector.extract_strided_slice %244 {offsets = [52, 0], sizes = [4, 64], strides = [1, 1]} : vector<128x64xf32> to vector<4x64xf32>
    %cst_84 = arith.constant dense<0xFF800000> : vector<64xf32>
    %283 = vector.multi_reduction <maximumf>, %282, %cst_84 [0] : vector<4x64xf32> to vector<64xf32>
    %284 = vector.shape_cast %283 : vector<64xf32> to vector<1x64xf32>
    %285 = vector.extract_strided_slice %244 {offsets = [68, 0], sizes = [4, 64], strides = [1, 1]} : vector<128x64xf32> to vector<4x64xf32>
    %cst_85 = arith.constant dense<0xFF800000> : vector<64xf32>
    %286 = vector.multi_reduction <maximumf>, %285, %cst_85 [0] : vector<4x64xf32> to vector<64xf32>
    %287 = vector.shape_cast %286 : vector<64xf32> to vector<1x64xf32>
    %288 = vector.extract_strided_slice %244 {offsets = [84, 0], sizes = [4, 64], strides = [1, 1]} : vector<128x64xf32> to vector<4x64xf32>
    %cst_86 = arith.constant dense<0xFF800000> : vector<64xf32>
    %289 = vector.multi_reduction <maximumf>, %288, %cst_86 [0] : vector<4x64xf32> to vector<64xf32>
    %290 = vector.shape_cast %289 : vector<64xf32> to vector<1x64xf32>
    %291 = vector.extract_strided_slice %244 {offsets = [100, 0], sizes = [4, 64], strides = [1, 1]} : vector<128x64xf32> to vector<4x64xf32>
    %cst_87 = arith.constant dense<0xFF800000> : vector<64xf32>
    %292 = vector.multi_reduction <maximumf>, %291, %cst_87 [0] : vector<4x64xf32> to vector<64xf32>
    %293 = vector.shape_cast %292 : vector<64xf32> to vector<1x64xf32>
    %294 = vector.extract_strided_slice %244 {offsets = [116, 0], sizes = [4, 64], strides = [1, 1]} : vector<128x64xf32> to vector<4x64xf32>
    %cst_88 = arith.constant dense<0xFF800000> : vector<64xf32>
    %295 = vector.multi_reduction <maximumf>, %294, %cst_88 [0] : vector<4x64xf32> to vector<64xf32>
    %296 = vector.shape_cast %295 : vector<64xf32> to vector<1x64xf32>
    %297 = tpu.concatenate %275, %278, %281, %284, %287, %290, %293, %296 in 0 : vector<1x64xf32>, vector<1x64xf32>, vector<1x64xf32>, vector<1x64xf32>, vector<1x64xf32>, vector<1x64xf32>, vector<1x64xf32>, vector<1x64xf32> -> vector<8x64xf32>
    %c1_89 = arith.constant 1 : index
    %c0_90 = arith.constant 0 : index
    %c0_91 = arith.constant 0 : index
    %298 = vector.load %arg7[%c1_89, %c0_90, %c0_91] : memref<4x64x64xf32, #tpu.memory_space<vmem>>, vector<1x64x64xf32>
    %299 = vector.shape_cast %298 : vector<1x64x64xf32> to vector<64x64xf32>
    %cst_92 = arith.constant dense<0.000000e+00> : vector<8x64xf32>
    %300 = tpu.matmul %297, %299, %cst_92 {dimension_numbers = #tpu.dot_dimension_numbers<[1], [0], [0], [1], [0, 0, 1, 1], [], []>} : vector<8x64xf32>, vector<64x64xf32>, vector<8x64xf32> -> vector<8x64xf32>
    %301 = arith.addf %272, %300 : vector<8x64xf32>
    %302 = vector.extract_strided_slice %244 {offsets = [8, 0], sizes = [4, 64], strides = [1, 1]} : vector<128x64xf32> to vector<4x64xf32>
    %cst_93 = arith.constant dense<0xFF800000> : vector<64xf32>
    %303 = vector.multi_reduction <maximumf>, %302, %cst_93 [0] : vector<4x64xf32> to vector<64xf32>
    %304 = vector.shape_cast %303 : vector<64xf32> to vector<1x64xf32>
    %305 = vector.extract_strided_slice %244 {offsets = [24, 0], sizes = [4, 64], strides = [1, 1]} : vector<128x64xf32> to vector<4x64xf32>
    %cst_94 = arith.constant dense<0xFF800000> : vector<64xf32>
    %306 = vector.multi_reduction <maximumf>, %305, %cst_94 [0] : vector<4x64xf32> to vector<64xf32>
    %307 = vector.shape_cast %306 : vector<64xf32> to vector<1x64xf32>
    %308 = vector.extract_strided_slice %244 {offsets = [40, 0], sizes = [4, 64], strides = [1, 1]} : vector<128x64xf32> to vector<4x64xf32>
    %cst_95 = arith.constant dense<0xFF800000> : vector<64xf32>
    %309 = vector.multi_reduction <maximumf>, %308, %cst_95 [0] : vector<4x64xf32> to vector<64xf32>
    %310 = vector.shape_cast %309 : vector<64xf32> to vector<1x64xf32>
    %311 = vector.extract_strided_slice %244 {offsets = [56, 0], sizes = [4, 64], strides = [1, 1]} : vector<128x64xf32> to vector<4x64xf32>
    %cst_96 = arith.constant dense<0xFF800000> : vector<64xf32>
    %312 = vector.multi_reduction <maximumf>, %311, %cst_96 [0] : vector<4x64xf32> to vector<64xf32>
    %313 = vector.shape_cast %312 : vector<64xf32> to vector<1x64xf32>
    %314 = vector.extract_strided_slice %244 {offsets = [72, 0], sizes = [4, 64], strides = [1, 1]} : vector<128x64xf32> to vector<4x64xf32>
    %cst_97 = arith.constant dense<0xFF800000> : vector<64xf32>
    %315 = vector.multi_reduction <maximumf>, %314, %cst_97 [0] : vector<4x64xf32> to vector<64xf32>
    %316 = vector.shape_cast %315 : vector<64xf32> to vector<1x64xf32>
    %317 = vector.extract_strided_slice %244 {offsets = [88, 0], sizes = [4, 64], strides = [1, 1]} : vector<128x64xf32> to vector<4x64xf32>
    %cst_98 = arith.constant dense<0xFF800000> : vector<64xf32>
    %318 = vector.multi_reduction <maximumf>, %317, %cst_98 [0] : vector<4x64xf32> to vector<64xf32>
    %319 = vector.shape_cast %318 : vector<64xf32> to vector<1x64xf32>
    %320 = vector.extract_strided_slice %244 {offsets = [104, 0], sizes = [4, 64], strides = [1, 1]} : vector<128x64xf32> to vector<4x64xf32>
    %cst_99 = arith.constant dense<0xFF800000> : vector<64xf32>
    %321 = vector.multi_reduction <maximumf>, %320, %cst_99 [0] : vector<4x64xf32> to vector<64xf32>
    %322 = vector.shape_cast %321 : vector<64xf32> to vector<1x64xf32>
    %323 = vector.extract_strided_slice %244 {offsets = [120, 0], sizes = [4, 64], strides = [1, 1]} : vector<128x64xf32> to vector<4x64xf32>
    %cst_100 = arith.constant dense<0xFF800000> : vector<64xf32>
    %324 = vector.multi_reduction <maximumf>, %323, %cst_100 [0] : vector<4x64xf32> to vector<64xf32>
    %325 = vector.shape_cast %324 : vector<64xf32> to vector<1x64xf32>
    %326 = tpu.concatenate %304, %307, %310, %313, %316, %319, %322, %325 in 0 : vector<1x64xf32>, vector<1x64xf32>, vector<1x64xf32>, vector<1x64xf32>, vector<1x64xf32>, vector<1x64xf32>, vector<1x64xf32>, vector<1x64xf32> -> vector<8x64xf32>
    %c2_101 = arith.constant 2 : index
    %c0_102 = arith.constant 0 : index
    %c0_103 = arith.constant 0 : index
    %327 = vector.load %arg7[%c2_101, %c0_102, %c0_103] : memref<4x64x64xf32, #tpu.memory_space<vmem>>, vector<1x64x64xf32>
    %328 = vector.shape_cast %327 : vector<1x64x64xf32> to vector<64x64xf32>
    %cst_104 = arith.constant dense<0.000000e+00> : vector<8x64xf32>
    %329 = tpu.matmul %326, %328, %cst_104 {dimension_numbers = #tpu.dot_dimension_numbers<[1], [0], [0], [1], [0, 0, 1, 1], [], []>} : vector<8x64xf32>, vector<64x64xf32>, vector<8x64xf32> -> vector<8x64xf32>
    %330 = arith.addf %301, %329 : vector<8x64xf32>
    %331 = vector.extract_strided_slice %244 {offsets = [12, 0], sizes = [4, 64], strides = [1, 1]} : vector<128x64xf32> to vector<4x64xf32>
    %cst_105 = arith.constant dense<0xFF800000> : vector<64xf32>
    %332 = vector.multi_reduction <maximumf>, %331, %cst_105 [0] : vector<4x64xf32> to vector<64xf32>
    %333 = vector.shape_cast %332 : vector<64xf32> to vector<1x64xf32>
    %334 = vector.extract_strided_slice %244 {offsets = [28, 0], sizes = [4, 64], strides = [1, 1]} : vector<128x64xf32> to vector<4x64xf32>
    %cst_106 = arith.constant dense<0xFF800000> : vector<64xf32>
    %335 = vector.multi_reduction <maximumf>, %334, %cst_106 [0] : vector<4x64xf32> to vector<64xf32>
    %336 = vector.shape_cast %335 : vector<64xf32> to vector<1x64xf32>
    %337 = vector.extract_strided_slice %244 {offsets = [44, 0], sizes = [4, 64], strides = [1, 1]} : vector<128x64xf32> to vector<4x64xf32>
    %cst_107 = arith.constant dense<0xFF800000> : vector<64xf32>
    %338 = vector.multi_reduction <maximumf>, %337, %cst_107 [0] : vector<4x64xf32> to vector<64xf32>
    %339 = vector.shape_cast %338 : vector<64xf32> to vector<1x64xf32>
    %340 = vector.extract_strided_slice %244 {offsets = [60, 0], sizes = [4, 64], strides = [1, 1]} : vector<128x64xf32> to vector<4x64xf32>
    %cst_108 = arith.constant dense<0xFF800000> : vector<64xf32>
    %341 = vector.multi_reduction <maximumf>, %340, %cst_108 [0] : vector<4x64xf32> to vector<64xf32>
    %342 = vector.shape_cast %341 : vector<64xf32> to vector<1x64xf32>
    %343 = vector.extract_strided_slice %244 {offsets = [76, 0], sizes = [4, 64], strides = [1, 1]} : vector<128x64xf32> to vector<4x64xf32>
    %cst_109 = arith.constant dense<0xFF800000> : vector<64xf32>
    %344 = vector.multi_reduction <maximumf>, %343, %cst_109 [0] : vector<4x64xf32> to vector<64xf32>
    %345 = vector.shape_cast %344 : vector<64xf32> to vector<1x64xf32>
    %346 = vector.extract_strided_slice %244 {offsets = [92, 0], sizes = [4, 64], strides = [1, 1]} : vector<128x64xf32> to vector<4x64xf32>
    %cst_110 = arith.constant dense<0xFF800000> : vector<64xf32>
    %347 = vector.multi_reduction <maximumf>, %346, %cst_110 [0] : vector<4x64xf32> to vector<64xf32>
    %348 = vector.shape_cast %347 : vector<64xf32> to vector<1x64xf32>
    %349 = vector.extract_strided_slice %244 {offsets = [108, 0], sizes = [4, 64], strides = [1, 1]} : vector<128x64xf32> to vector<4x64xf32>
    %cst_111 = arith.constant dense<0xFF800000> : vector<64xf32>
    %350 = vector.multi_reduction <maximumf>, %349, %cst_111 [0] : vector<4x64xf32> to vector<64xf32>
    %351 = vector.shape_cast %350 : vector<64xf32> to vector<1x64xf32>
    %352 = vector.extract_strided_slice %244 {offsets = [124, 0], sizes = [4, 64], strides = [1, 1]} : vector<128x64xf32> to vector<4x64xf32>
    %cst_112 = arith.constant dense<0xFF800000> : vector<64xf32>
    %353 = vector.multi_reduction <maximumf>, %352, %cst_112 [0] : vector<4x64xf32> to vector<64xf32>
    %354 = vector.shape_cast %353 : vector<64xf32> to vector<1x64xf32>
    %355 = tpu.concatenate %333, %336, %339, %342, %345, %348, %351, %354 in 0 : vector<1x64xf32>, vector<1x64xf32>, vector<1x64xf32>, vector<1x64xf32>, vector<1x64xf32>, vector<1x64xf32>, vector<1x64xf32>, vector<1x64xf32> -> vector<8x64xf32>
    %c3_113 = arith.constant 3 : index
    %c0_114 = arith.constant 0 : index
    %c0_115 = arith.constant 0 : index
    %356 = vector.load %arg7[%c3_113, %c0_114, %c0_115] : memref<4x64x64xf32, #tpu.memory_space<vmem>>, vector<1x64x64xf32>
    %357 = vector.shape_cast %356 : vector<1x64x64xf32> to vector<64x64xf32>
    %cst_116 = arith.constant dense<0.000000e+00> : vector<8x64xf32>
    %358 = tpu.matmul %355, %357, %cst_116 {dimension_numbers = #tpu.dot_dimension_numbers<[1], [0], [0], [1], [0, 0, 1, 1], [], []>} : vector<8x64xf32>, vector<64x64xf32>, vector<8x64xf32> -> vector<8x64xf32>
    %359 = arith.addf %330, %358 : vector<8x64xf32>
    %c0_117 = arith.constant 0 : index
    %c0_118 = arith.constant 0 : index
    %360 = vector.load %arg8[%c0_117, %c0_118] : memref<1x64xf32, #tpu.memory_space<vmem>>, vector<1x64xf32>
    %361 = vector.broadcast %360 : vector<1x64xf32> to vector<8x64xf32>
    %362 = arith.addf %359, %361 : vector<8x64xf32>
    %cst_119 = arith.constant 0.000000e+00 : f32
    %363 = vector.broadcast %cst_119 : f32 to vector<8x64xf32>
    %364 = arith.maximumf %362, %363 : vector<8x64xf32>
    %c0_120 = arith.constant 0 : index
    %c0_121 = arith.constant 0 : index
    %365 = vector.load %arg9[%c0_120, %c0_121] : memref<64x128xf32, #tpu.memory_space<vmem>>, vector<64x128xf32>
    %cst_122 = arith.constant dense<0.000000e+00> : vector<8x128xf32>
    %366 = tpu.matmul %364, %365, %cst_122 {dimension_numbers = #tpu.dot_dimension_numbers<[1], [0], [0], [1], [0, 0, 1, 1], [], []>} : vector<8x64xf32>, vector<64x128xf32>, vector<8x128xf32> -> vector<8x128xf32>
    %c0_123 = arith.constant 0 : index
    %c0_124 = arith.constant 0 : index
    %367 = vector.load %arg10[%c0_123, %c0_124] : memref<1x128xf32, #tpu.memory_space<vmem>>, vector<1x128xf32>
    %368 = vector.broadcast %367 : vector<1x128xf32> to vector<8x128xf32>
    %369 = arith.addf %366, %368 : vector<8x128xf32>
    %c0_125 = arith.constant 0 : index
    %c0_126 = arith.constant 0 : index
    %370 = vector.load %arg11[%c0_125, %c0_126] : memref<8x128xf32, #tpu.memory_space<vmem>>, vector<8x128xf32>
    tpu.vector_store %arg11[%c0_125, %c0_126], %369 {strides = array<i32>} : memref<8x128xf32, #tpu.memory_space<vmem>>, vector<8x128xf32>,
    return
  }
  func.func @transform_0(%arg0: i32) -> (i32, i32, i32) {
    %c0_i32 = arith.constant 0 : i32
    %c0_i32_0 = arith.constant 0 : i32
    %c0_i32_1 = arith.constant 0 : i32
    return %arg0, %c0_i32, %c0_i32_0 : i32, i32, i32
  }
  func.func @transform_1(%arg0: i32) -> (i32, i32) {
    %c0_i32 = arith.constant 0 : i32
    %c0_i32_0 = arith.constant 0 : i32
    %c0_i32_1 = arith.constant 0 : i32
    return %c0_i32, %c0_i32_0 : i32, i32
  }
  func.func @transform_2(%arg0: i32) -> (i32, i32) {
    %c0_i32 = arith.constant 0 : i32
    %c0_i32_0 = arith.constant 0 : i32
    %c0_i32_1 = arith.constant 0 : i32
    return %c0_i32, %c0_i32_0 : i32, i32
  }
  func.func @transform_3(%arg0: i32) -> (i32, i32) {
    %c0_i32 = arith.constant 0 : i32
    %c0_i32_0 = arith.constant 0 : i32
    %c0_i32_1 = arith.constant 0 : i32
    return %c0_i32, %c0_i32_0 : i32, i32
  }
  func.func @transform_4(%arg0: i32) -> (i32, i32, i32) {
    %c0_i32 = arith.constant 0 : i32
    %c0_i32_0 = arith.constant 0 : i32
    %c0_i32_1 = arith.constant 0 : i32
    %c0_i32_2 = arith.constant 0 : i32
    return %c0_i32, %c0_i32_0, %c0_i32_1 : i32, i32, i32
  }
  func.func @transform_5(%arg0: i32) -> (i32, i32) {
    %c0_i32 = arith.constant 0 : i32
    %c0_i32_0 = arith.constant 0 : i32
    %c0_i32_1 = arith.constant 0 : i32
    return %c0_i32, %c0_i32_0 : i32, i32
  }
  func.func @transform_6(%arg0: i32) -> (i32, i32, i32) {
    %c0_i32 = arith.constant 0 : i32
    %c0_i32_0 = arith.constant 0 : i32
    %c0_i32_1 = arith.constant 0 : i32
    %c0_i32_2 = arith.constant 0 : i32
    return %c0_i32, %c0_i32_0, %c0_i32_1 : i32, i32, i32
  }
  func.func @transform_7(%arg0: i32) -> (i32, i32) {
    %c0_i32 = arith.constant 0 : i32
    %c0_i32_0 = arith.constant 0 : i32
    %c0_i32_1 = arith.constant 0 : i32
    return %c0_i32, %c0_i32_0 : i32, i32
  }
  func.func @transform_8(%arg0: i32) -> (i32, i32) {
    %c0_i32 = arith.constant 0 : i32
    %c0_i32_0 = arith.constant 0 : i32
    %c0_i32_1 = arith.constant 0 : i32
    return %c0_i32, %c0_i32_0 : i32, i32
  }
  func.func @transform_9(%arg0: i32) -> (i32, i32) {
    %c0_i32 = arith.constant 0 : i32
    %c0_i32_0 = arith.constant 0 : i32
    %c0_i32_1 = arith.constant 0 : i32
    return %c0_i32, %c0_i32_0 : i32, i32
  }
  func.func @transform_10(%arg0: i32) -> (i32, i32) {
    %c0_i32 = arith.constant 0 : i32
    %c0_i32_0 = arith.constant 0 : i32
    return %arg0, %c0_i32 : i32, i32
  }
}

</mosaic_0001>

<bundles_post_ra>
// kernel: qnetwork_forward.1
= control target key start
LH: loop header
LB: loop body
LE: loop exit
PB: predicated region body
PF: predicated region fallthrough
CT: control target
= control target key end

     0   :  { %s8631_s13 = smov 0   ;;  %s13314_s0 = inlined_call_operand.vmem [shape: f32[2,3328,64], index: 0, kind: input, shape index: {}]   ;;  %s13315_s1 = inlined_call_operand.vmem [shape: f32[256,104], index: 1, kind: input, shape index: {}]   ;;  %s13316_s2 = inlined_call_operand.vmem [shape: f32[64,32], index: 2, kind: input, shape index: {}]   ;;  %s13317_s3 = inlined_call_operand.vmem [shape: f32[1,32], index: 3, kind: input, shape index: {}]   ;;  %s13318_s4 = inlined_call_operand.vmem [shape: f32[16,32,64], index: 4, kind: input, shape index: {}]   ;;  %s13319_s5 = inlined_call_operand.vmem [shape: f32[1,64], index: 5, kind: input, shape index: {}]   ;;  %s13320_s6 = inlined_call_operand.vmem [shape: f32[4,64,64], index: 6, kind: input, shape index: {}]   ;;  %s13321_s7 = inlined_call_operand.vmem [shape: f32[1,64], index: 7, kind: input, shape index: {}]   ;;  %s13322_s8 = inlined_call_operand.vmem [shape: f32[64,128], index: 8, kind: input, shape index: {}]   ;;  %s13323_s9 = inlined_call_operand.vmem [shape: f32[1,128], index: 9, kind: input, shape index: {}]   ;;  %s13324_s10 = inlined_call_operand.vmem [shape: f32[16,128], index: 10, kind: output, shape index: {}]  }
   0x1 LB: > { %s7486_s14 = sadd.s32 4294967295, %s8574_s13   ;;  %p7490_p0 = scmp.ge.s32.totalorder %s8574_s13, 1  ;;  %s8574_s13 = sphi %s8631_s13, %s20_s13  }
   0x2   : > { %p312_p1 = scmp.lt.s32.totalorder %s8574_s13, 3 }
   0x4   : > { %p313_p2 = pnand %p7490_p0, %p312_p1 }
   0x6   : > { %316 = sbr.rel (%p313_p2) target bundleno = 3900 (0xf3c), region = 60 }
   0xb   : > { %v781_v0 = vld [vmem:[%s13316_s2 + $0x38] sm:$0xff]  ;;  %v780_v1 = vld [vmem:[%s13316_s2 + $0x30] sm:$0xff]  ;;  %p349_p3 = scmp.lt.s32.totalorder %s7486_s14, 1  ;;  %v779_v2 = vld [vmem:[%s13316_s2 + $0x28] sm:$0xff]  ;;  %vm782_vm0 = vcmask 523264   ;;  %vm3852_vm1 = vcmask 850944  }
   0xc   : > { %2039 = vmatpush.msra.mxu0 %v781_v0  ;;  %8513 = vmatpush.msra.mxu2 %v781_v0  ;;  %v778_v3 = vld [vmem:[%s13316_s2 + $0x20] sm:$0xff]  ;;  %v777_v4 = vld [vmem:[%s13316_s2 + $0x18] sm:$0xff]  ;;  %v776_v5 = vld [vmem:[%s13316_s2 + $0x10] sm:$0xff]  ;;  %vm4862_vm2 = vcmask 261120   ;;  %vm7001_vm3 = vcmask 519168   ;;  %vm7080_vm4 = vcmask 523268  }
   0xd   : > { %s14367_s14 = smov (!%p349_p3, %s7486_s14), 1  ;;  %8512 = vmatpush.msra.mxu1 %v781_v0  ;;  %8514 = vmatpush.msra.mxu3 %v781_v0  ;;  %v775_v6 = vld [vmem:[%s13316_s2 + $0x8] sm:$0xff]  ;;  %v774_v7 = vld [vmem:[%s13316_s2] sm:$0xff]  ;;  %vm7058_vm5 = vcmask 1040384   ;;  %vm7060_vm6 = vcmask 1041408   ;;  %vm7062_vm7 = vcmask 1042432  }
   0xe   : > { %2040 = vmatpush.msra.mxu0 %v780_v1  ;;  %8516 = vmatpush.msra.mxu2 %v780_v1  ;;  %s8536_s25 = smul.u32 3328, %s14367_s14  ;;  %vm7064_vm8 = vcmask 1043456   ;;  %vm7066_vm9 = vcmask 1044480   ;;  %vm7068_vm10 = vcmask 1045504   ;;  %vm7070_vm11 = vcmask 1046528   ;;  %s7492_s27 = sshll.u32 %s14367_s14, 3 }
   0xf   : > { %8515 = vmatpush.msra.mxu1 %v780_v1  ;;  %8517 = vmatpush.msra.mxu3 %v780_v1 }
  0x10   : > { %2041 = vmatpush.msra.mxu0 %v779_v2  ;;  %8519 = vmatpush.msra.mxu2 %v779_v2  ;;  %s8666_s12 = scalar_lea.vmem %s13314_s0, %s8536_s25 }
  0x11   : > { %8518 = vmatpush.msra.mxu1 %v779_v2  ;;  %8520 = vmatpush.msra.mxu3 %v779_v2  ;;  %v358_v8 = vld [vmem:[%s8666_s12] sm:$0xff]  ;;  %v359_v9 = vld [vmem:[%s8666_s12 + $0x8] sm:$0xff]  ;;  %v360_v10 = vld [vmem:[%s8666_s12 + $0x10] sm:$0xff] }
  0x12   : > { %2042 = vmatpush.msra.mxu0 %v778_v3  ;;  %8522 = vmatpush.msra.mxu2 %v778_v3  ;;  %v361_v11 = vld [vmem:[%s8666_s12 + $0x18] sm:$0xff]  ;;  %v362_v12 = vld [vmem:[%s8666_s12 + $0x20] sm:$0xff]  ;;  %v363_v13 = vld [vmem:[%s8666_s12 + $0x28] sm:$0xff] }
  0x13   : > { %8521 = vmatpush.msra.mxu1 %v778_v3  ;;  %8523 = vmatpush.msra.mxu3 %v778_v3  ;;  %v364_v14 = vld [vmem:[%s8666_s12 + $0x30] sm:$0xff]  ;;  %v365_v15 = vld [vmem:[%s8666_s12 + $0x38] sm:$0xff]  ;;  %v366_v16 = vld [vmem:[%s8666_s12 + $0x40] sm:$0xff] }
  0x14   : > { %2043 = vmatpush.msra.mxu0 %v777_v4  ;;  %8525 = vmatpush.msra.mxu2 %v777_v4  ;;  %v367_v17 = vld [vmem:[%s8666_s12 + $0x48] sm:$0xff]  ;;  %v368_v18 = vld [vmem:[%s8666_s12 + $0x50] sm:$0xff]  ;;  %v369_v19 = vld [vmem:[%s8666_s12 + $0x58] sm:$0xff] }
  0x15   : > { %8524 = vmatpush.msra.mxu1 %v777_v4  ;;  %8526 = vmatpush.msra.mxu3 %v777_v4  ;;  %v370_v20 = vld [vmem:[%s8666_s12 + $0x60] sm:$0xff]  ;;  %v371_v21 = vld [vmem:[%s8666_s12 + $0x68] sm:$0xff]  ;;  %v372_v22 = vld [vmem:[%s8666_s12 + $0x70] sm:$0xff] }
  0x16   : > { %2044 = vmatpush.msra.mxu0 %v776_v5  ;;  %8528 = vmatpush.msra.mxu2 %v776_v5  ;;  %v373_v23 = vld [vmem:[%s8666_s12 + $0x78] sm:$0xff]  ;;  %v374_v25 = vld [vmem:[%s8666_s12 + $0x80] sm:$0xff]  ;;  %v375_v27 = vld [vmem:[%s8666_s12 + $0x88] sm:$0xff] }
  0x17   : > { %8527 = vmatpush.msra.mxu1 %v776_v5  ;;  %8529 = vmatpush.msra.mxu3 %v776_v5  ;;  %v376_v29 = vld [vmem:[%s8666_s12 + $0x90] sm:$0xff]  ;;  %v377_v31 = vld [vmem:[%s8666_s12 + $0x98] sm:$0xff]  ;;  %v378_v33 = vld [vmem:[%s8666_s12 + $0xa0] sm:$0xff] }
  0x18   : > { %2045 = vmatpush.msra.mxu0 %v775_v6  ;;  %8531 = vmatpush.msra.mxu2 %v775_v6  ;;  %v379_v35 = vld [vmem:[%s8666_s12 + $0xa8] sm:$0xff]  ;;  %v380_v37 = vld [vmem:[%s8666_s12 + $0xb0] sm:$0xff]  ;;  %v381_v39 = vld [vmem:[%s8666_s12 + $0xb8] sm:$0xff] }
  0x19   : > { %8530 = vmatpush.msra.mxu1 %v775_v6  ;;  %8532 = vmatpush.msra.mxu3 %v775_v6  ;;  %v382_v41 = vld [vmem:[%s8666_s12 + $0xc0] sm:$0xff]  ;;  %v383_v43 = vld [vmem:[%s8666_s12 + $0xc8] sm:$0xff]  ;;  %v384_v45 = vld [vmem:[%s8666_s12 + $0xd0] sm:$0xff] }
  0x1a   : > { %2046 = vmatpush.msra.mxu0 %v774_v7  ;;  %8534 = vmatpush.msra.mxu2 %v774_v7  ;;  %v385_v47 = vld [vmem:[%s8666_s12 + $0xd8] sm:$0xff]  ;;  %v386_v49 = vld [vmem:[%s8666_s12 + $0xe0] sm:$0xff]  ;;  %v387_v51 = vld [vmem:[%s8666_s12 + $0xe8] sm:$0xff] }
  0x1b   : > { %7493 = vmatmul.msk.f32.vlgmr.msra.gmra.mxu0 %vm782_vm0, %v358_v8  ;;  %8533 = vmatpush.msra.mxu1 %v774_v7  ;;  %v388_v53 = vld [vmem:[%s8666_s12 + $0xf0] sm:$0xff]  ;;  %v389_v55 = vld [vmem:[%s8666_s12 + $0xf8] sm:$0xff]  ;;  %v390_v57 = vld [vmem:[%s8666_s12 + $0x100] sm:$0xff] }
  0x1c   : > { %8535 = vmatpush.msra.mxu3 %v774_v7  ;;  %v391_v59 = vld [vmem:[%s8666_s12 + $0x108] sm:$0xff]  ;;  %v392_v61 = vld [vmem:[%s8666_s12 + $0x110] sm:$0xff]  ;;  %v393_v63 = vld [vmem:[%s8666_s12 + $0x118] sm:$0xff] }
  0x1d   : > { %v394_v1 = vld [vmem:[%s8666_s12 + $0x120] sm:$0xff]  ;;  %v395_v3 = vld [vmem:[%s8666_s12 + $0x128] sm:$0xff]  ;;  %v396_v5 = vld [vmem:[%s8666_s12 + $0x130] sm:$0xff] }
  0x1e   : > { %v397_v7 = vld [vmem:[%s8666_s12 + $0x138] sm:$0xff] }
  0x23   : > { %7494 = vmatmul.msk.f32.gmra.mxu0 %vm782_vm0, %v359_v9  ;;  %v398_v9 = vld [vmem:[%s8666_s12 + $0x140] sm:$0xff] }
  0x2b   : > { %7495 = vmatmul.msk.f32.gmra.mxu0 %vm782_vm0, %v360_v10 }
  0x33   : > { %7496 = vmatmul.msk.f32.gmra.mxu0 %vm782_vm0, %v361_v11  ;;  %v399_v11 = vld [vmem:[%s8666_s12 + $0x148] sm:$0xff] }
  0x3b   : > { %7497 = vmatmul.msk.f32.gmra.mxu0 %vm782_vm0, %v362_v12 }
  0x43   : > { %7498 = vmatmul.msk.f32.gmra.mxu0 %vm782_vm0, %v363_v13  ;;  %v400_v13 = vld [vmem:[%s8666_s12 + $0x150] sm:$0xff] }
  0x4b   : > { %7499 = vmatmul.msk.f32.gmra.mxu0 %vm782_vm0, %v364_v14 }
  0x53   : > { %7500 = vmatmul.msk.f32.gmra.mxu0 %vm782_vm0, %v365_v15  ;;  %v401_v15 = vld [vmem:[%s8666_s12 + $0x158] sm:$0xff] }
  0x5b   : > { %7501 = vmatmul.msk.f32.gmra.mxu0 %vm782_vm0, %v366_v16 }
  0x63   : > { %7502 = vmatmul.msk.f32.gmra.mxu0 %vm782_vm0, %v367_v17  ;;  %v402_v17 = vld [vmem:[%s8666_s12 + $0x160] sm:$0xff] }
  0x6b   : > { %7503 = vmatmul.msk.f32.gmra.mxu0 %vm782_vm0, %v368_v18 }
  0x73   : > { %7504 = vmatmul.msk.f32.gmra.mxu0 %vm782_vm0, %v369_v19  ;;  %v403_v19 = vld [vmem:[%s8666_s12 + $0x168] sm:$0xff] }
  0x7b   : > { %7505 = vmatmul.msk.f32.gmra.mxu0 %vm782_vm0, %v370_v20 }
  0x83   : > { %7506 = vmatmul.msk.f32.gmra.mxu0 %vm782_vm0, %v371_v21  ;;  %v404_v21 = vld [vmem:[%s8666_s12 + $0x170] sm:$0xff] }
  0x8b   : > { %7507 = vmatmul.msk.f32.gmra.mxu0 %vm782_vm0, %v372_v22 }
  0x93   : > { %7508 = vmatmul.msk.f32.gmra.mxu0 %vm782_vm0, %v373_v23  ;;  %v405_v23 = vld [vmem:[%s8666_s12 + $0x178] sm:$0xff] }
  0x98   : > { %v8703_v24 = vpop.f32.mrf.mxu0 }
  0x99   : > { %13379 = vst [vmem:[#allocation2_spill] sm:$0xff] %v8703_v24 }
  0x9b   : > { %7509 = vmatmul.msk.f32.gmra.mxu0 %vm782_vm0, %v374_v25 }
  0xa0   : > { %v8707_v26 = vpop.f32.mrf.mxu0 }
  0xa1   : > { %13380 = vst [vmem:[#allocation3_spill] sm:$0xff] %v8707_v26 }
  0xa3   : > { %7510 = vmatmul.msk.f32.gmra.mxu0 %vm782_vm0, %v375_v27  ;;  %v406_v27 = vld [vmem:[%s8666_s12 + $0x180] sm:$0xff] }
  0xa8   : > { %v8711_v28 = vpop.f32.mrf.mxu0 }
  0xa9   : > { %13381 = vst [vmem:[#allocation4_spill] sm:$0xff] %v8711_v28  ;;  %v616_v28 = vld [vmem:[%s8666_s12 + $0x810] sm:$0xff] }
  0xab   : > { %7511 = vmatmul.msk.f32.gmra.mxu0 %vm782_vm0, %v376_v29 }
  0xb0   : > { %v8715_v30 = vpop.f32.mrf.mxu0 }
  0xb1   : > { %13382 = vst [vmem:[#allocation5_spill] sm:$0xff] %v8715_v30 }
  0xb3   : > { %7512 = vmatmul.msk.f32.gmra.mxu0 %vm782_vm0, %v377_v31  ;;  %v407_v31 = vld [vmem:[%s8666_s12 + $0x188] sm:$0xff] }
  0xb8   : > { %v8719_v32 = vpop.f32.mrf.mxu0 }
  0xb9   : > { %13383 = vst [vmem:[#allocation6_spill] sm:$0xff] %v8719_v32 }
  0xbb   : > { %7513 = vmatmul.msk.f32.gmra.mxu0 %vm782_vm0, %v378_v33 }
  0xc0   : > { %v8723_v34 = vpop.f32.mrf.mxu0 }
  0xc1   : > { %13384 = vst [vmem:[#allocation7_spill] sm:$0xff] %v8723_v34 }
  0xc3   : > { %7514 = vmatmul.msk.f32.gmra.mxu0 %vm782_vm0, %v379_v35  ;;  %v408_v35 = vld [vmem:[%s8666_s12 + $0x190] sm:$0xff] }
  0xc8   : > { %v8727_v36 = vpop.f32.mrf.mxu0 }
  0xc9   : > { %13385 = vst [vmem:[#allocation8_spill] sm:$0xff] %v8727_v36  ;;  %v621_v36 = vld [vmem:[%s8666_s12 + $0x838] sm:$0xff] }
  0xcb   : > { %7515 = vmatmul.msk.f32.gmra.mxu0 %vm782_vm0, %v380_v37 }
  0xd0   : > { %v8731_v38 = vpop.f32.mrf.mxu0 }
  0xd1   : > { %13386 = vst [vmem:[#allocation9_spill] sm:$0xff] %v8731_v38  ;;  %v622_v38 = vld [vmem:[%s8666_s12 + $0x840] sm:$0xff] }
  0xd3   : > { %7516 = vmatmul.msk.f32.gmra.mxu0 %vm782_vm0, %v381_v39  ;;  %v409_v39 = vld [vmem:[%s8666_s12 + $0x198] sm:$0xff] }
  0xd8   : > { %v8735_v40 = vpop.f32.mrf.mxu0 }
  0xd9   : > { %13387 = vst [vmem:[#allocation10_spill] sm:$0xff] %v8735_v40 }
  0xdb   : > { %7517 = vmatmul.msk.f32.gmra.mxu0 %vm782_vm0, %v382_v41 }
  0xe0   : > { %v8739_v42 = vpop.f32.mrf.mxu0 }
  0xe1   : > { %13388 = vst [vmem:[#allocation11_spill] sm:$0xff] %v8739_v42 }
  0xe3   : > { %7518 = vmatmul.msk.f32.gmra.mxu0 %vm782_vm0, %v383_v43  ;;  %v410_v43 = vld [vmem:[%s8666_s12 + $0x1a0] sm:$0xff] }
  0xe8   : > { %v8743_v44 = vpop.f32.mrf.mxu0 }
  0xeb   : > { %7519 = vmatmul.msk.f32.gmra.mxu0 %vm782_vm0, %v384_v45 }
  0xf0   : > { %v8747_v46 = vpop.f32.mrf.mxu0 }
  0xf3   : > { %7520 = vmatmul.msk.f32.gmra.mxu0 %vm782_vm0, %v385_v47  ;;  %v411_v47 = vld [vmem:[%s8666_s12 + $0x1a8] sm:$0xff] }
  0xf8   : > { %v8751_v48 = vpop.f32.mrf.mxu0 }
  0xfb   : > { %7521 = vmatmul.msk.f32.gmra.mxu0 %vm782_vm0, %v386_v49 }
 0x100   : > { %v8755_v50 = vpop.f32.mrf.mxu0 }
 0x101   : > { %13389 = vst [vmem:[#allocation12_spill] sm:$0xff] %v8755_v50 }
 0x103   : > { %7522 = vmatmul.msk.f32.gmra.mxu0 %vm782_vm0, %v387_v51  ;;  %v412_v51 = vld [vmem:[%s8666_s12 + $0x1b0] sm:$0xff] }
 0x108   : > { %v8759_v52 = vpop.f32.mrf.mxu0 }
 0x109   : > { %13390 = vst [vmem:[#allocation13_spill] sm:$0xff] %v8759_v52 }
 0x10b   : > { %7523 = vmatmul.msk.f32.gmra.mxu0 %vm782_vm0, %v388_v53 }
 0x110   : > { %v8763_v54 = vpop.f32.mrf.mxu0 }
 0x111   : > { %13391 = vst [vmem:[#allocation14_spill] sm:$0xff] %v8763_v54 }
 0x113   : > { %7524 = vmatmul.msk.f32.gmra.mxu0 %vm782_vm0, %v389_v55  ;;  %v413_v55 = vld [vmem:[%s8666_s12 + $0x1b8] sm:$0xff] }
 0x118   : > { %v8767_v56 = vpop.f32.mrf.mxu0 }
 0x119   : > { %13392 = vst [vmem:[#allocation15_spill] sm:$0xff] %v8767_v56 }
 0x11b   : > { %7525 = vmatmul.msk.f32.gmra.mxu0 %vm782_vm0, %v390_v57 }
 0x120   : > { %v8771_v58 = vpop.f32.mrf.mxu0 }
 0x121   : > { %13393 = vst [vmem:[#allocation16_spill] sm:$0xff] %v8771_v58 }
 0x123   : > { %7526 = vmatmul.msk.f32.gmra.mxu0 %vm782_vm0, %v391_v59  ;;  %v414_v59 = vld [vmem:[%s8666_s12 + $0x1c0] sm:$0xff] }
 0x128   : > { %v8775_v60 = vpop.f32.mrf.mxu0 }
 0x129   : > { %13394 = vst [vmem:[#allocation17_spill] sm:$0xff] %v8775_v60 }
 0x12b   : > { %7527 = vmatmul.msk.f32.gmra.mxu0 %vm782_vm0, %v392_v61 }
 0x130   : > { %v8779_v62 = vpop.f32.mrf.mxu0 }
 0x131   : > { %13395 = vst [vmem:[#allocation18_spill] sm:$0xff] %v8779_v62 }
 0x133   : > { %7528 = vmatmul.msk.f32.gmra.mxu0 %vm782_vm0, %v393_v63  ;;  %v415_v63 = vld [vmem:[%s8666_s12 + $0x1c8] sm:$0xff] }
 0x138   : > { %v8783_v0 = vpop.f32.mrf.mxu0 }
 0x139   : > { %13396 = vst [vmem:[#allocation19_spill] sm:$0xff] %v8783_v0 }
 0x13b   : > { %7529 = vmatmul.msk.f32.gmra.mxu0 %vm782_vm0, %v394_v1 }
 0x140   : > { %v8787_v2 = vpop.f32.mrf.mxu0 }
 0x141   : > { %13397 = vst [vmem:[#allocation20_spill] sm:$0xff] %v8787_v2 }
 0x143   : > { %7530 = vmatmul.msk.f32.gmra.mxu0 %vm782_vm0, %v395_v3  ;;  %v416_v3 = vld [vmem:[%s8666_s12 + $0x1d0] sm:$0xff] }
 0x148   : > { %v8791_v4 = vpop.f32.mrf.mxu0 }
 0x149   : > { %13398 = vst [vmem:[#allocation21_spill] sm:$0xff] %v8791_v4 }
 0x14b   : > { %7531 = vmatmul.msk.f32.gmra.mxu0 %vm782_vm0, %v396_v5 }
 0x150   : > { %v8795_v6 = vpop.f32.mrf.mxu0 }
 0x151   : > { %13399 = vst [vmem:[#allocation22_spill] sm:$0xff] %v8795_v6 }
 0x153   : > { %7532 = vmatmul.msk.f32.gmra.mxu0 %vm782_vm0, %v397_v7  ;;  %v417_v7 = vld [vmem:[%s8666_s12 + $0x1d8] sm:$0xff] }
 0x158   : > { %v8799_v8 = vpop.f32.mrf.mxu0 }
 0x159   : > { %13400 = vst [vmem:[#allocation23_spill] sm:$0xff] %v8799_v8 }
 0x15b   : > { %7533 = vmatmul.msk.f32.gmra.mxu0 %vm782_vm0, %v398_v9 }
 0x160   : > { %v8803_v10 = vpop.f32.mrf.mxu0 }
 0x161   : > { %13401 = vst [vmem:[#allocation24_spill] sm:$0xff] %v8803_v10 }
 0x163   : > { %7534 = vmatmul.msk.f32.gmra.mxu0 %vm782_vm0, %v399_v11  ;;  %v418_v11 = vld [vmem:[%s8666_s12 + $0x1e0] sm:$0xff] }
 0x168   : > { %v8807_v12 = vpop.f32.mrf.mxu0 }
 0x169   : > { %13402 = vst [vmem:[#allocation25_spill] sm:$0xff] %v8807_v12 }
 0x16b   : > { %7535 = vmatmul.msk.f32.gmra.mxu0 %vm782_vm0, %v400_v13 }
 0x170   : > { %v8811_v14 = vpop.f32.mrf.mxu0 }
 0x173   : > { %7536 = vmatmul.msk.f32.gmra.mxu0 %vm782_vm0, %v401_v15  ;;  %v419_v15 = vld [vmem:[%s8666_s12 + $0x1e8] sm:$0xff] }
 0x178   : > { %v8815_v16 = vpop.f32.mrf.mxu0 }
 0x17b   : > { %7537 = vmatmul.msk.f32.gmra.mxu0 %vm782_vm0, %v402_v17 }
 0x180   : > { %v8819_v18 = vpop.f32.mrf.mxu0 }
 0x183   : > { %7538 = vmatmul.msk.f32.gmra.mxu0 %vm782_vm0, %v403_v19  ;;  %v420_v19 = vld [vmem:[%s8666_s12 + $0x1f0] sm:$0xff] }
 0x188   : > { %v8823_v20 = vpop.f32.mrf.mxu0 }
 0x18b   : > { %7539 = vmatmul.msk.f32.gmra.mxu0 %vm782_vm0, %v404_v21 }
 0x190   : > { %v8827_v22 = vpop.f32.mrf.mxu0 }
 0x193   : > { %7540 = vmatmul.msk.f32.gmra.mxu0 %vm782_vm0, %v405_v23  ;;  %v421_v23 = vld [vmem:[%s8666_s12 + $0x1f8] sm:$0xff] }
 0x198   : > { %v8831_v25 = vpop.f32.mrf.mxu0 }
 0x19b   : > { %7541 = vmatmul.msk.f32.gmra.mxu0 %vm782_vm0, %v406_v27 }
 0x1a0   : > { %v8835_v29 = vpop.f32.mrf.mxu0 }
 0x1a3   : > { %7542 = vmatmul.msk.f32.gmra.mxu0 %vm782_vm0, %v407_v31  ;;  %v422_v31 = vld [vmem:[%s8666_s12 + $0x200] sm:$0xff] }
 0x1a8   : > { %v8839_v33 = vpop.f32.mrf.mxu0 }
 0x1ab   : > { %7543 = vmatmul.msk.f32.gmra.mxu0 %vm782_vm0, %v408_v35 }
 0x1b0   : > { %v8843_v37 = vpop.f32.mrf.mxu0 }
 0x1b3   : > { %7544 = vmatmul.msk.f32.gmra.mxu0 %vm782_vm0, %v409_v39  ;;  %v423_v39 = vld [vmem:[%s8666_s12 + $0x208] sm:$0xff] }
 0x1b8   : > { %v8847_v41 = vpop.f32.mrf.mxu0 }
 0x1bb   : > { %7545 = vmatmul.msk.f32.gmra.mxu0 %vm782_vm0, %v410_v43 }
 0x1c0   : > { %v8851_v45 = vpop.f32.mrf.mxu0 }
 0x1c3   : > { %7546 = vmatmul.msk.f32.gmra.mxu0 %vm782_vm0, %v411_v47  ;;  %v424_v47 = vld [vmem:[%s8666_s12 + $0x210] sm:$0xff] }
 0x1c8   : > { %v8855_v49 = vpop.f32.mrf.mxu0 }
 0x1cb   : > { %7547 = vmatmul.msk.f32.gmra.mxu0 %vm782_vm0, %v412_v51 }
 0x1d0   : > { %v8859_v53 = vpop.f32.mrf.mxu0 }
 0x1d1   : > { %13403 = vst [vmem:[#allocation26_spill] sm:$0xff] %v8859_v53  ;;  %v594_v53 = vld [vmem:[%s8666_s12 + $0x760] sm:$0xff] }
 0x1d3   : > { %7548 = vmatmul.msk.f32.gmra.mxu0 %vm782_vm0, %v413_v55  ;;  %v425_v55 = vld [vmem:[%s8666_s12 + $0x218] sm:$0xff] }
 0x1d8   : > { %v8863_v57 = vpop.f32.mrf.mxu0 }
 0x1d9   : > { %13404 = vst [vmem:[#allocation27_spill] sm:$0xff] %v8863_v57  ;;  %v699_v57 = vld [vmem:[%s8666_s12 + $0xaa8] sm:$0xff] }
 0x1db   : > { %7549 = vmatmul.msk.f32.gmra.mxu0 %vm782_vm0, %v414_v59 }
 0x1e0   : > { %v8867_v61 = vpop.f32.mrf.mxu0 }
 0x1e1   : > { %13405 = vst [vmem:[#allocation28_spill] sm:$0xff] %v8867_v61  ;;  %v595_v61 = vld [vmem:[%s8666_s12 + $0x768] sm:$0xff] }
 0x1e3   : > { %7550 = vmatmul.msk.f32.gmra.mxu0 %vm782_vm0, %v415_v63  ;;  %v426_v63 = vld [vmem:[%s8666_s12 + $0x220] sm:$0xff] }
 0x1e8   : > { %v8871_v1 = vpop.f32.mrf.mxu0 }
 0x1e9   : > { %13406 = vst [vmem:[#allocation29_spill] sm:$0xff] %v8871_v1  ;;  %v700_v1 = vld [vmem:[%s8666_s12 + $0xab0] sm:$0xff] }
 0x1eb   : > { %7551 = vmatmul.msk.f32.gmra.mxu0 %vm782_vm0, %v416_v3 }
 0x1f0   : > { %v8875_v5 = vpop.f32.mrf.mxu0 }
 0x1f1   : > { %13407 = vst [vmem:[#allocation30_spill] sm:$0xff] %v8875_v5  ;;  %v596_v5 = vld [vmem:[%s8666_s12 + $0x770] sm:$0xff] }
 0x1f3   : > { %7552 = vmatmul.msk.f32.gmra.mxu0 %vm782_vm0, %v417_v7  ;;  %v427_v7 = vld [vmem:[%s8666_s12 + $0x228] sm:$0xff] }
 0x1f8   : > { %v8879_v9 = vpop.f32.mrf.mxu0 }
 0x1f9   : > { %13408 = vst [vmem:[#allocation31_spill] sm:$0xff] %v8879_v9  ;;  %v597_v9 = vld [vmem:[%s8666_s12 + $0x778] sm:$0xff] }
 0x1fb   : > { %7553 = vmatmul.msk.f32.gmra.mxu0 %vm782_vm0, %v418_v11 }
 0x200   : > { %v8883_v13 = vpop.f32.mrf.mxu0 }
 0x201   : > { %13409 = vst [vmem:[#allocation32_spill] sm:$0xff] %v8883_v13  ;;  %v598_v13 = vld [vmem:[%s8666_s12 + $0x780] sm:$0xff] }
 0x203   : > { %7554 = vmatmul.msk.f32.gmra.mxu0 %vm782_vm0, %v419_v15  ;;  %v428_v15 = vld [vmem:[%s8666_s12 + $0x230] sm:$0xff] }
 0x208   : > { %v8887_v17 = vpop.f32.mrf.mxu0 }
 0x209   : > { %13410 = vst [vmem:[#allocation33_spill] sm:$0xff] %v8887_v17  ;;  %v599_v17 = vld [vmem:[%s8666_s12 + $0x788] sm:$0xff] }
 0x20b   : > { %7555 = vmatmul.msk.f32.gmra.mxu0 %vm782_vm0, %v420_v19 }
 0x210   : > { %v8891_v21 = vpop.f32.mrf.mxu0 }
 0x211   : > { %13411 = vst [vmem:[#allocation34_spill] sm:$0xff] %v8891_v21  ;;  %v610_v21 = vld [vmem:[%s8666_s12 + $0x7e0] sm:$0xff] }
 0x213   : > { %7556 = vmatmul.msk.f32.gmra.mxu0 %vm782_vm0, %v421_v23  ;;  %v429_v23 = vld [vmem:[%s8666_s12 + $0x238] sm:$0xff] }
 0x218   : > { %v8895_v27 = vpop.f32.mrf.mxu0 }
 0x219   : > { %13412 = vst [vmem:[#allocation35_spill] sm:$0xff] %v8895_v27  ;;  %v717_v27 = vld [vmem:[%s8666_s12 + $0xb38] sm:$0xff] }
 0x21b   : > { %7557 = vmatmul.msk.f32.gmra.mxu0 %vm782_vm0, %v422_v31 }
 0x220   : > { %v8899_v35 = vpop.f32.mrf.mxu0 }
 0x221   : > { %13413 = vst [vmem:[#allocation36_spill] sm:$0xff] %v8899_v35 }
 0x223   : > { %7558 = vmatmul.msk.f32.gmra.mxu0 %vm782_vm0, %v423_v39  ;;  %v430_v39 = vld [vmem:[%s8666_s12 + $0x240] sm:$0xff] }
 0x228   : > { %v8903_v43 = vpop.f32.mrf.mxu0 }
 0x229   : > { %13414 = vst [vmem:[#allocation37_spill] sm:$0xff] %v8903_v43 }
 0x22b   : > { %7559 = vmatmul.msk.f32.gmra.mxu0 %vm782_vm0, %v424_v47 }
 0x230   : > { %v8907_v51 = vpop.f32.mrf.mxu0 }
 0x231   : > { %13415 = vst [vmem:[#allocation38_spill] sm:$0xff] %v8907_v51  ;;  %v613_v51 = vld [vmem:[%s8666_s12 + $0x7f8] sm:$0xff] }
 0x233   : > { %7560 = vmatmul.msk.f32.gmra.mxu0 %vm782_vm0, %v425_v55  ;;  %v431_v55 = vld [vmem:[%s8666_s12 + $0x248] sm:$0xff] }
 0x238   : > { %v8911_v59 = vpop.f32.mrf.mxu0 }
 0x239   : > { %13416 = vst [vmem:[#allocation39_spill] sm:$0xff] %v8911_v59 }
 0x23b   : > { %7561 = vmatmul.msk.f32.gmra.mxu0 %vm782_vm0, %v426_v63 }
 0x240   : > { %v8915_v3 = vpop.f32.mrf.mxu0 }
 0x241   : > { %13417 = vst [vmem:[#allocation40_spill] sm:$0xff] %v8915_v3  ;;  %v435_v3 = vld [vmem:[%s8666_s12 + $0x268] sm:$0xff] }
 0x243   : > { %7562 = vmatmul.msk.f32.gmra.mxu0 %vm782_vm0, %v427_v7  ;;  %v432_v7 = vld [vmem:[%s8666_s12 + $0x250] sm:$0xff] }
 0x248   : > { %v8919_v11 = vpop.f32.mrf.mxu0 }
 0x249   : > { %13418 = vst [vmem:[#allocation41_spill] sm:$0xff] %v8919_v11  ;;  %v436_v11 = vld [vmem:[%s8666_s12 + $0x270] sm:$0xff] }
 0x24b   : > { %7563 = vmatmul.msk.f32.gmra.mxu0 %vm782_vm0, %v428_v15 }
 0x250   : > { %v8923_v19 = vpop.f32.mrf.mxu0 }
 0x251   : > { %13419 = vst [vmem:[#allocation42_spill] sm:$0xff] %v8923_v19  ;;  %v437_v19 = vld [vmem:[%s8666_s12 + $0x278] sm:$0xff] }
 0x253   : > { %7564 = vmatmul.msk.f32.gmra.mxu0 %vm782_vm0, %v429_v23  ;;  %v433_v23 = vld [vmem:[%s8666_s12 + $0x258] sm:$0xff] }
 0x258   : > { %v8927_v31 = vpop.f32.mrf.mxu0 }
 0x259   : > { %13420 = vst [vmem:[#allocation43_spill] sm:$0xff] %v8927_v31  ;;  %v438_v31 = vld [vmem:[%s8666_s12 + $0x280] sm:$0xff] }
 0x25b   : > { %7565 = vmatmul.msk.f32.gmra.mxu0 %vm782_vm0, %v430_v39  ;;  %v434_v39 = vld [vmem:[%s8666_s12 + $0x260] sm:$0xff] }
 0x260   : > { %v8931_v47 = vpop.f32.mrf.mxu0 }
 0x261   : > { %13421 = vst [vmem:[#allocation44_spill] sm:$0xff] %v8931_v47  ;;  %v439_v47 = vld [vmem:[%s8666_s12 + $0x288] sm:$0xff] }
 0x263   : > { %7566 = vmatmul.msk.f32.gmra.mxu0 %vm782_vm0, %v431_v55 }
 0x268   : > { %v8935_v63 = vpop.f32.mrf.mxu0 }
 0x269   : > { %13422 = vst [vmem:[#allocation45_spill] sm:$0xff] %v8935_v63 }
 0x26b   : > { %7567 = vmatmul.msk.f32.gmra.mxu0 %vm782_vm0, %v432_v7 }
 0x270   : > { %v8939_v15 = vpop.f32.mrf.mxu0 }
 0x271   : > { %13423 = vst [vmem:[#allocation46_spill] sm:$0xff] %v8939_v15  ;;  %v653_v15 = vld [vmem:[%s8666_s12 + $0x938] sm:$0xff] }
 0x273   : > { %7568 = vmatmul.msk.f32.gmra.mxu0 %vm782_vm0, %v433_v23 }
 0x278   : > { %v8943_v59 = vpop.f32.mrf.mxu0 }
 0x279   : > { %13424 = vst [vmem:[#allocation47_spill] sm:$0xff] %v8943_v59  ;;  %v441_v59 = vld [vmem:[%s8666_s12 + $0x298] sm:$0xff] }
 0x27b   : > { %7569 = vmatmul.msk.f32.gmra.mxu0 %vm782_vm0, %v434_v39 }
 0x280   : > { %v8947_v55 = vpop.f32.mrf.mxu0 }
 0x281   : > { %13425 = vst [vmem:[#allocation48_spill] sm:$0xff] %v8947_v55 }
 0x283   : > { %7570 = vmatmul.msk.f32.gmra.mxu0 %vm782_vm0, %v435_v3 }
 0x288   : > { %v8951_v7 = vpop.f32.mrf.mxu0 }
 0x289   : > { %13426 = vst [vmem:[#allocation49_spill] sm:$0xff] %v8951_v7 }
 0x28b   : > { %7571 = vmatmul.msk.f32.gmra.mxu0 %vm782_vm0, %v436_v11  ;;  %v652_v11 = vld [vmem:[%s8666_s12 + $0x930] sm:$0xff] }
 0x28c   : > { %7787 = vmatmul.msk.f32.vlgmr.msra.gmra.mxu2 %vm782_vm0, %v652_v11 }
 0x290   : > { %v8955_v23 = vpop.f32.mrf.mxu0 }
 0x291   : > { %13427 = vst [vmem:[#allocation50_spill] sm:$0xff] %v8955_v23  ;;  %v456_v23 = vld [vmem:[%s8666_s12 + $0x310] sm:$0xff] }
 0x293   : > { %7572 = vmatmul.msk.f32.gmra.mxu0 %vm782_vm0, %v437_v19  ;;  %v440_v19 = vld [vmem:[%s8666_s12 + $0x290] sm:$0xff] }
 0x294   : > { %7788 = vmatmul.msk.f32.gmra.mxu2 %vm782_vm0, %v653_v15 }
 0x298   : > { %v8959_v39 = vpop.f32.mrf.mxu0 }
 0x299   : > { %13428 = vst [vmem:[#allocation51_spill] sm:$0xff] %v8959_v39  ;;  %v455_v39 = vld [vmem:[%s8666_s12 + $0x308] sm:$0xff] }
 0x29b   : > { %7573 = vmatmul.msk.f32.gmra.mxu0 %vm782_vm0, %v438_v31 }
 0x2a0   : > { %v8963_v3 = vpop.f32.mrf.mxu0 }
 0x2a1   : > { %13429 = vst [vmem:[#allocation52_spill] sm:$0xff] %v8963_v3  ;;  %v442_v3 = vld [vmem:[%s8666_s12 + $0x2a0] sm:$0xff] }
 0x2a3   : > { %7574 = vmatmul.msk.f32.gmra.mxu0 %vm782_vm0, %v439_v47  ;;  %v654_v47 = vld [vmem:[%s8666_s12 + $0x940] sm:$0xff] }
 0x2a4   : > { %7789 = vmatmul.msk.f32.gmra.mxu2 %vm782_vm0, %v654_v47 }
 0x2a8   : > { %v8969_v63 = vpop.f32.mrf.mxu0 }
 0x2a9   : > { %13430 = vst [vmem:[#allocation53_spill] sm:$0xff] %v8969_v63  ;;  %v443_v63 = vld [vmem:[%s8666_s12 + $0x2a8] sm:$0xff] }
 0x2ab   : > { %7575 = vmatmul.msk.f32.gmra.mxu0 %vm782_vm0, %v440_v19  ;;  %v655_v19 = vld [vmem:[%s8666_s12 + $0x948] sm:$0xff] }
 0x2ac   : > { %7790 = vmatmul.msk.f32.gmra.mxu2 %vm782_vm0, %v655_v19 }
 0x2b0   : > { %v8975_v31 = vpop.f32.mrf.mxu0 }
 0x2b1   : > { %13431 = vst [vmem:[#allocation54_spill] sm:$0xff] %v8975_v31  ;;  %v444_v31 = vld [vmem:[%s8666_s12 + $0x2b0] sm:$0xff] }
 0x2b3   : > { %7576 = vmatmul.msk.f32.gmra.mxu0 %vm782_vm0, %v441_v59  ;;  %v656_v59 = vld [vmem:[%s8666_s12 + $0x950] sm:$0xff] }
 0x2b4   : > { %7791 = vmatmul.msk.f32.gmra.mxu2 %vm782_vm0, %v656_v59 }
 0x2b8   : > { %v8981_v11 = vpop.f32.mrf.mxu0 }
 0x2b9   : > { %13432 = vst [vmem:[#allocation55_spill] sm:$0xff] %v8981_v11  ;;  %v445_v11 = vld [vmem:[%s8666_s12 + $0x2b8] sm:$0xff] }
 0x2bb   : > { %7577 = vmatmul.msk.f32.gmra.mxu0 %vm782_vm0, %v442_v3  ;;  %v657_v3 = vld [vmem:[%s8666_s12 + $0x958] sm:$0xff] }
 0x2bc   : > { %7792 = vmatmul.msk.f32.gmra.mxu2 %vm782_vm0, %v657_v3 }
 0x2c0   : > { %v8987_v15 = vpop.f32.mrf.mxu0 }
 0x2c1   : > { %13433 = vst [vmem:[#allocation56_spill] sm:$0xff] %v8987_v15  ;;  %v446_v15 = vld [vmem:[%s8666_s12 + $0x2c0] sm:$0xff] }
 0x2c3   : > { %7578 = vmatmul.msk.f32.gmra.mxu0 %vm782_vm0, %v443_v63  ;;  %v658_v63 = vld [vmem:[%s8666_s12 + $0x960] sm:$0xff] }
 0x2c4   : > { %7793 = vmatmul.msk.f32.gmra.mxu2 %vm782_vm0, %v658_v63 }
 0x2c8   : > { %v8993_v47 = vpop.f32.mrf.mxu0 }
 0x2c9   : > { %13434 = vst [vmem:[#allocation57_spill] sm:$0xff] %v8993_v47  ;;  %v447_v47 = vld [vmem:[%s8666_s12 + $0x2c8] sm:$0xff] }
 0x2cb   : > { %7579 = vmatmul.msk.f32.gmra.mxu0 %vm782_vm0, %v444_v31  ;;  %v659_v31 = vld [vmem:[%s8666_s12 + $0x968] sm:$0xff] }
 0x2cc   : > { %7794 = vmatmul.msk.f32.gmra.mxu2 %vm782_vm0, %v659_v31 }
 0x2d0   : > { %v8999_v19 = vpop.f32.mrf.mxu0 }
 0x2d1   : > { %13435 = vst [vmem:[#allocation58_spill] sm:$0xff] %v8999_v19  ;;  %v448_v19 = vld [vmem:[%s8666_s12 + $0x2d0] sm:$0xff] }
 0x2d3   : > { %7580 = vmatmul.msk.f32.gmra.mxu0 %vm782_vm0, %v445_v11  ;;  %v660_v11 = vld [vmem:[%s8666_s12 + $0x970] sm:$0xff] }
 0x2d4   : > { %7795 = vmatmul.msk.f32.gmra.mxu2 %vm782_vm0, %v660_v11 }
 0x2d8   : > { %v9005_v59 = vpop.f32.mrf.mxu0 }
 0x2d9   : > { %13436 = vst [vmem:[#allocation59_spill] sm:$0xff] %v9005_v59  ;;  %v449_v59 = vld [vmem:[%s8666_s12 + $0x2d8] sm:$0xff] }
 0x2db   : > { %7581 = vmatmul.msk.f32.gmra.mxu0 %vm782_vm0, %v446_v15  ;;  %v661_v15 = vld [vmem:[%s8666_s12 + $0x978] sm:$0xff] }
 0x2dc   : > { %7796 = vmatmul.msk.f32.gmra.mxu2 %vm782_vm0, %v661_v15 }
 0x2e0   : > { %v9011_v3 = vpop.f32.mrf.mxu0 }
 0x2e1   : > { %13437 = vst [vmem:[#allocation60_spill] sm:$0xff] %v9011_v3  ;;  %v450_v3 = vld [vmem:[%s8666_s12 + $0x2e0] sm:$0xff] }
 0x2e3   : > { %7582 = vmatmul.msk.f32.gmra.mxu0 %vm782_vm0, %v447_v47  ;;  %v662_v47 = vld [vmem:[%s8666_s12 + $0x980] sm:$0xff] }
 0x2e4   : > { %7797 = vmatmul.msk.f32.gmra.mxu2 %vm782_vm0, %v662_v47 }
 0x2e8   : > { %v9017_v63 = vpop.f32.mrf.mxu0 }
 0x2e9   : > { %13438 = vst [vmem:[#allocation61_spill] sm:$0xff] %v9017_v63  ;;  %v451_v63 = vld [vmem:[%s8666_s12 + $0x2e8] sm:$0xff] }
 0x2eb   : > { %7583 = vmatmul.msk.f32.gmra.mxu0 %vm782_vm0, %v448_v19  ;;  %v663_v19 = vld [vmem:[%s8666_s12 + $0x988] sm:$0xff] }
 0x2ec   : > { %7798 = vmatmul.msk.f32.gmra.mxu2 %vm782_vm0, %v663_v19 }
 0x2f0   : > { %v9023_v31 = vpop.f32.mrf.mxu0 }
 0x2f1   : > { %13439 = vst [vmem:[#allocation62_spill] sm:$0xff] %v9023_v31  ;;  %v452_v31 = vld [vmem:[%s8666_s12 + $0x2f0] sm:$0xff] }
 0x2f3   : > { %7584 = vmatmul.msk.f32.gmra.mxu0 %vm782_vm0, %v449_v59  ;;  %v664_v59 = vld [vmem:[%s8666_s12 + $0x990] sm:$0xff] }
 0x2f4   : > { %7799 = vmatmul.msk.f32.gmra.mxu2 %vm782_vm0, %v664_v59 }
 0x2f8   : > { %v9029_v11 = vpop.f32.mrf.mxu0 }
 0x2f9   : > { %13440 = vst [vmem:[#allocation63_spill] sm:$0xff] %v9029_v11  ;;  %v453_v11 = vld [vmem:[%s8666_s12 + $0x2f8] sm:$0xff] }
 0x2fb   : > { %7585 = vmatmul.msk.f32.gmra.mxu0 %vm782_vm0, %v450_v3  ;;  %v665_v3 = vld [vmem:[%s8666_s12 + $0x998] sm:$0xff] }
 0x2fc   : > { %7800 = vmatmul.msk.f32.gmra.mxu2 %vm782_vm0, %v665_v3 }
 0x300   : > { %v9035_v15 = vpop.f32.mrf.mxu0 }
 0x301   : > { %13441 = vst [vmem:[#allocation64_spill] sm:$0xff] %v9035_v15  ;;  %v454_v15 = vld [vmem:[%s8666_s12 + $0x300] sm:$0xff] }
 0x303   : > { %7586 = vmatmul.msk.f32.gmra.mxu0 %vm782_vm0, %v451_v63  ;;  %v666_v63 = vld [vmem:[%s8666_s12 + $0x9a0] sm:$0xff] }
 0x304   : > { %7801 = vmatmul.msk.f32.gmra.mxu2 %vm782_vm0, %v666_v63 }
 0x308   : > { %v9041_v47 = vpop.f32.mrf.mxu0 }
 0x309   : > { %13442 = vst [vmem:[#allocation65_spill] sm:$0xff] %v9041_v47 }
 0x30b   : > { %7587 = vmatmul.msk.f32.gmra.mxu0 %vm782_vm0, %v452_v31  ;;  %v667_v31 = vld [vmem:[%s8666_s12 + $0x9a8] sm:$0xff] }
 0x30c   : > { %7802 = vmatmul.msk.f32.gmra.mxu2 %vm782_vm0, %v667_v31 }
 0x30f   : > { %v9068_v7 = vpop.f32.mrf.mxu2 }
 0x310   : > { %v9047_v19 = vpop.f32.mrf.mxu0  ;;  %13447 = vst [vmem:[#allocation70_spill] sm:$0xff] %v9068_v7 }
 0x311   : > { %13443 = vst [vmem:[#allocation66_spill] sm:$0xff] %v9047_v19 }
 0x313   : > { %7588 = vmatmul.msk.f32.gmra.mxu0 %vm782_vm0, %v453_v11  ;;  %v668_v11 = vld [vmem:[%s8666_s12 + $0x9b0] sm:$0xff] }
 0x314   : > { %7803 = vmatmul.msk.f32.gmra.mxu2 %vm782_vm0, %v668_v11  ;;  %v670_v11 = vld [vmem:[%s8666_s12 + $0x9c0] sm:$0xff] }
 0x317   : > { %v9076_v55 = vpop.f32.mrf.mxu2 }
 0x318   : > { %v9053_v59 = vpop.f32.mrf.mxu0  ;;  %13449 = vst [vmem:[#allocation72_spill] sm:$0xff] %v9076_v55 }
 0x319   : > { %13444 = vst [vmem:[#allocation67_spill] sm:$0xff] %v9053_v59 }
 0x31b   : > { %7589 = vmatmul.msk.f32.gmra.mxu0 %vm782_vm0, %v454_v15  ;;  %v669_v15 = vld [vmem:[%s8666_s12 + $0x9b8] sm:$0xff] }
 0x31c   : > { %7804 = vmatmul.msk.f32.gmra.mxu2 %vm782_vm0, %v669_v15  ;;  %v671_v15 = vld [vmem:[%s8666_s12 + $0x9c8] sm:$0xff] }
 0x320   : > { %v9059_v3 = vpop.f32.mrf.mxu0 }
 0x321   : > { %13445 = vst [vmem:[#allocation68_spill] sm:$0xff] %v9059_v3 }
 0x323   : > { %7590 = vmatmul.msk.f32.gmra.mxu0 %vm782_vm0, %v455_v39  ;;  %v457_v39 = vld [vmem:[%s8666_s12 + $0x318] sm:$0xff] }
 0x324   : > { %7805 = vmatmul.msk.f32.gmra.mxu2 %vm782_vm0, %v670_v11  ;;  %v672_v11 = vld [vmem:[%s8666_s12 + $0x9d0] sm:$0xff] }
 0x327   : > { %v9084_v10 = vpop.f32.mrf.mxu2 }
 0x328   : > { %v9065_v63 = vpop.f32.mrf.mxu0  ;;  %13451 = vst [vmem:[#allocation74_spill] sm:$0xff] %v9084_v10 }
 0x329   : > { %13446 = vst [vmem:[#allocation69_spill] sm:$0xff] %v9065_v63 }
 0x32b   : > { %7591 = vmatmul.msk.f32.gmra.mxu0 %vm782_vm0, %v456_v23  ;;  %v458_v23 = vld [vmem:[%s8666_s12 + $0x320] sm:$0xff] }
 0x32c   : > { %7806 = vmatmul.msk.f32.gmra.mxu2 %vm782_vm0, %v671_v15  ;;  %v673_v15 = vld [vmem:[%s8666_s12 + $0x9d8] sm:$0xff] }
 0x32f   : > { %v9092_v6 = vpop.f32.mrf.mxu2 }
 0x330   : > { %v9073_v31 = vpop.f32.mrf.mxu0  ;;  %13453 = vst [vmem:[#allocation76_spill] sm:$0xff] %v9092_v6  ;;  %v485_v6 = vld [vmem:[%s8666_s12 + $0x3f8] sm:$0xff] }
 0x331   : > { %13448 = vst [vmem:[#allocation71_spill] sm:$0xff] %v9073_v31 }
 0x333   : > { %7592 = vmatmul.msk.f32.gmra.mxu0 %vm782_vm0, %v457_v39  ;;  %v459_v39 = vld [vmem:[%s8666_s12 + $0x328] sm:$0xff] }
 0x334   : > { %7807 = vmatmul.msk.f32.gmra.mxu2 %vm782_vm0, %v672_v11  ;;  %v674_v11 = vld [vmem:[%s8666_s12 + $0x9e0] sm:$0xff] }
 0x337   : > { %v9100_v2 = vpop.f32.mrf.mxu2 }
 0x338   : > { %v9081_v12 = vpop.f32.mrf.mxu0  ;;  %13455 = vst [vmem:[#allocation78_spill] sm:$0xff] %v9100_v2  ;;  %v486_v2 = vld [vmem:[%s8666_s12 + $0x400] sm:$0xff] }
 0x339   : > { %13450 = vst [vmem:[#allocation73_spill] sm:$0xff] %v9081_v12 }
 0x33b   : > { %7593 = vmatmul.msk.f32.gmra.mxu0 %vm782_vm0, %v458_v23  ;;  %v460_v23 = vld [vmem:[%s8666_s12 + $0x330] sm:$0xff] }
 0x33c   : > { %7808 = vmatmul.msk.f32.gmra.mxu2 %vm782_vm0, %v673_v15  ;;  %v675_v15 = vld [vmem:[%s8666_s12 + $0x9e8] sm:$0xff] }
 0x33f   : > { %v9108_v62 = vpop.f32.mrf.mxu2 }
 0x340   : > { %v9089_v8 = vpop.f32.mrf.mxu0  ;;  %13457 = vst [vmem:[#allocation80_spill] sm:$0xff] %v9108_v62 }
 0x341   : > { %13452 = vst [vmem:[#allocation75_spill] sm:$0xff] %v9089_v8 }
 0x343   : > { %7594 = vmatmul.msk.f32.gmra.mxu0 %vm782_vm0, %v459_v39  ;;  %v461_v39 = vld [vmem:[%s8666_s12 + $0x338] sm:$0xff] }
 0x344   : > { %7809 = vmatmul.msk.f32.gmra.mxu2 %vm782_vm0, %v674_v11  ;;  %v676_v11 = vld [vmem:[%s8666_s12 + $0x9f0] sm:$0xff] }
 0x347   : > { %v9116_v58 = vpop.f32.mrf.mxu2 }
 0x348   : > { %v9097_v4 = vpop.f32.mrf.mxu0  ;;  %13459 = vst [vmem:[#allocation82_spill] sm:$0xff] %v9116_v58 }
 0x349   : > { %13454 = vst [vmem:[#allocation77_spill] sm:$0xff] %v9097_v4 }
 0x34b   : > { %7595 = vmatmul.msk.f32.gmra.mxu0 %vm782_vm0, %v460_v23  ;;  %v462_v23 = vld [vmem:[%s8666_s12 + $0x340] sm:$0xff] }
 0x34c   : > { %7810 = vmatmul.msk.f32.gmra.mxu2 %vm782_vm0, %v675_v15  ;;  %v677_v15 = vld [vmem:[%s8666_s12 + $0x9f8] sm:$0xff] }
 0x34f   : > { %v9124_v62 = vpop.f32.mrf.mxu2 }
 0x350   : > { %v9105_v0 = vpop.f32.mrf.mxu0  ;;  %13461 = vst [vmem:[#allocation84_spill] sm:$0xff] %v9124_v62 }
 0x351   : > { %13456 = vst [vmem:[#allocation79_spill] sm:$0xff] %v9105_v0 }
 0x353   : > { %7596 = vmatmul.msk.f32.gmra.mxu0 %vm782_vm0, %v461_v39  ;;  %v463_v39 = vld [vmem:[%s8666_s12 + $0x348] sm:$0xff] }
 0x354   : > { %7811 = vmatmul.msk.f32.gmra.mxu2 %vm782_vm0, %v676_v11  ;;  %v678_v11 = vld [vmem:[%s8666_s12 + $0xa00] sm:$0xff] }
 0x357   : > { %v9132_v58 = vpop.f32.mrf.mxu2 }
 0x358   : > { %v9113_v60 = vpop.f32.mrf.mxu0  ;;  %13463 = vst [vmem:[#allocation86_spill] sm:$0xff] %v9132_v58 }
 0x359   : > { %13458 = vst [vmem:[#allocation81_spill] sm:$0xff] %v9113_v60 }
 0x35b   : > { %7597 = vmatmul.msk.f32.gmra.mxu0 %vm782_vm0, %v462_v23  ;;  %v464_v23 = vld [vmem:[%s8666_s12 + $0x350] sm:$0xff] }
 0x35c   : > { %7812 = vmatmul.msk.f32.gmra.mxu2 %vm782_vm0, %v677_v15  ;;  %v679_v15 = vld [vmem:[%s8666_s12 + $0xa08] sm:$0xff] }
 0x35f   : > { %v9140_v62 = vpop.f32.mrf.mxu2 }
 0x360   : > { %v9121_v56 = vpop.f32.mrf.mxu0  ;;  %13465 = vst [vmem:[#allocation88_spill] sm:$0xff] %v9140_v62 }
 0x361   : > { %13460 = vst [vmem:[#allocation83_spill] sm:$0xff] %v9121_v56 }
 0x363   : > { %7598 = vmatmul.msk.f32.gmra.mxu0 %vm782_vm0, %v463_v39  ;;  %v465_v39 = vld [vmem:[%s8666_s12 + $0x358] sm:$0xff] }
 0x364   : > { %7813 = vmatmul.msk.f32.gmra.mxu2 %vm782_vm0, %v678_v11  ;;  %v680_v11 = vld [vmem:[%s8666_s12 + $0xa10] sm:$0xff] }
 0x367   : > { %v9148_v58 = vpop.f32.mrf.mxu2 }
 0x368   : > { %v9129_v54 = vpop.f32.mrf.mxu0  ;;  %13467 = vst [vmem:[#allocation90_spill] sm:$0xff] %v9148_v58 }
 0x369   : > { %13462 = vst [vmem:[#allocation85_spill] sm:$0xff] %v9129_v54  ;;  %v698_v54 = vld [vmem:[%s8666_s12 + $0xaa0] sm:$0xff] }
 0x36b   : > { %7599 = vmatmul.msk.f32.gmra.mxu0 %vm782_vm0, %v464_v23  ;;  %v466_v23 = vld [vmem:[%s8666_s12 + $0x360] sm:$0xff] }
 0x36c   : > { %7814 = vmatmul.msk.f32.gmra.mxu2 %vm782_vm0, %v679_v15  ;;  %v681_v15 = vld [vmem:[%s8666_s12 + $0xa18] sm:$0xff] }
 0x36f   : > { %v9156_v62 = vpop.f32.mrf.mxu2 }
 0x370   : > { %v9137_v52 = vpop.f32.mrf.mxu0  ;;  %13469 = vst [vmem:[#allocation92_spill] sm:$0xff] %v9156_v62 }
 0x371   : > { %13464 = vst [vmem:[#allocation87_spill] sm:$0xff] %v9137_v52 }
 0x373   : > { %7600 = vmatmul.msk.f32.gmra.mxu0 %vm782_vm0, %v465_v39  ;;  %v467_v39 = vld [vmem:[%s8666_s12 + $0x368] sm:$0xff] }
 0x374   : > { %7815 = vmatmul.msk.f32.gmra.mxu2 %vm782_vm0, %v680_v11  ;;  %v682_v11 = vld [vmem:[%s8666_s12 + $0xa20] sm:$0xff] }
 0x377   : > { %v9164_v58 = vpop.f32.mrf.mxu2 }
 0x378   : > { %v9145_v50 = vpop.f32.mrf.mxu0  ;;  %13471 = vst [vmem:[#allocation94_spill] sm:$0xff] %v9164_v58 }
 0x379   : > { %13466 = vst [vmem:[#allocation89_spill] sm:$0xff] %v9145_v50 }
 0x37b   : > { %7601 = vmatmul.msk.f32.gmra.mxu0 %vm782_vm0, %v466_v23  ;;  %v468_v23 = vld [vmem:[%s8666_s12 + $0x370] sm:$0xff] }
 0x37c   : > { %7816 = vmatmul.msk.f32.gmra.mxu2 %vm782_vm0, %v681_v15  ;;  %v683_v15 = vld [vmem:[%s8666_s12 + $0xa28] sm:$0xff] }
 0x37f   : > { %v9172_v62 = vpop.f32.mrf.mxu2 }
 0x380   : > { %v9153_v52 = vpop.f32.mrf.mxu0  ;;  %13473 = vst [vmem:[#allocation96_spill] sm:$0xff] %v9172_v62 }
 0x381   : > { %13468 = vst [vmem:[#allocation91_spill] sm:$0xff] %v9153_v52 }
 0x383   : > { %7602 = vmatmul.msk.f32.gmra.mxu0 %vm782_vm0, %v467_v39  ;;  %v469_v39 = vld [vmem:[%s8666_s12 + $0x378] sm:$0xff] }
 0x384   : > { %7817 = vmatmul.msk.f32.gmra.mxu2 %vm782_vm0, %v682_v11  ;;  %v684_v11 = vld [vmem:[%s8666_s12 + $0xa30] sm:$0xff] }
 0x387   : > { %v9180_v58 = vpop.f32.mrf.mxu2 }
 0x388   : > { %v9161_v50 = vpop.f32.mrf.mxu0  ;;  %13475 = vst [vmem:[#allocation98_spill] sm:$0xff] %v9180_v58 }
 0x389   : > { %13470 = vst [vmem:[#allocation93_spill] sm:$0xff] %v9161_v50 }
 0x38b   : > { %7603 = vmatmul.msk.f32.gmra.mxu0 %vm782_vm0, %v468_v23  ;;  %v470_v23 = vld [vmem:[%s8666_s12 + $0x380] sm:$0xff] }
 0x38c   : > { %7818 = vmatmul.msk.f32.gmra.mxu2 %vm782_vm0, %v683_v15  ;;  %v685_v15 = vld [vmem:[%s8666_s12 + $0xa38] sm:$0xff] }
 0x38f   : > { %v9188_v62 = vpop.f32.mrf.mxu2 }
 0x390   : > { %v9169_v52 = vpop.f32.mrf.mxu0  ;;  %13477 = vst [vmem:[#allocation100_spill] sm:$0xff] %v9188_v62 }
 0x391   : > { %13472 = vst [vmem:[#allocation95_spill] sm:$0xff] %v9169_v52 }
 0x393   : > { %7604 = vmatmul.msk.f32.gmra.mxu0 %vm782_vm0, %v469_v39  ;;  %v471_v39 = vld [vmem:[%s8666_s12 + $0x388] sm:$0xff] }
 0x394   : > { %7819 = vmatmul.msk.f32.gmra.mxu2 %vm782_vm0, %v684_v11  ;;  %v686_v11 = vld [vmem:[%s8666_s12 + $0xa40] sm:$0xff] }
 0x397   : > { %v9196_v58 = vpop.f32.mrf.mxu2 }
 0x398   : > { %v9177_v50 = vpop.f32.mrf.mxu0  ;;  %13479 = vst [vmem:[#allocation102_spill] sm:$0xff] %v9196_v58 }
 0x399   : > { %13474 = vst [vmem:[#allocation97_spill] sm:$0xff] %v9177_v50 }
 0x39b   : > { %7605 = vmatmul.msk.f32.gmra.mxu0 %vm782_vm0, %v470_v23  ;;  %v472_v23 = vld [vmem:[%s8666_s12 + $0x390] sm:$0xff] }
 0x39c   : > { %7820 = vmatmul.msk.f32.gmra.mxu2 %vm782_vm0, %v685_v15  ;;  %v687_v15 = vld [vmem:[%s8666_s12 + $0xa48] sm:$0xff] }
 0x39f   : > { %v9204_v62 = vpop.f32.mrf.mxu2 }
 0x3a0   : > { %v9185_v52 = vpop.f32.mrf.mxu0  ;;  %13481 = vst [vmem:[#allocation104_spill] sm:$0xff] %v9204_v62 }
 0x3a1   : > { %13476 = vst [vmem:[#allocation99_spill] sm:$0xff] %v9185_v52 }
 0x3a3   : > { %7606 = vmatmul.msk.f32.gmra.mxu0 %vm782_vm0, %v471_v39  ;;  %v473_v39 = vld [vmem:[%s8666_s12 + $0x398] sm:$0xff] }
 0x3a4   : > { %7821 = vmatmul.msk.f32.gmra.mxu2 %vm782_vm0, %v686_v11  ;;  %v688_v11 = vld [vmem:[%s8666_s12 + $0xa50] sm:$0xff] }
 0x3a7   : > { %v9212_v58 = vpop.f32.mrf.mxu2 }
 0x3a8   : > { %v9193_v50 = vpop.f32.mrf.mxu0  ;;  %13483 = vst [vmem:[#allocation106_spill] sm:$0xff] %v9212_v58  ;;  %v720_v58 = vld [vmem:[%s8666_s12 + $0xb50] sm:$0xff] }
 0x3a9   : > { %13478 = vst [vmem:[#allocation101_spill] sm:$0xff] %v9193_v50 }
 0x3ab   : > { %7607 = vmatmul.msk.f32.gmra.mxu0 %vm782_vm0, %v472_v23  ;;  %v474_v23 = vld [vmem:[%s8666_s12 + $0x3a0] sm:$0xff] }
 0x3ac   : > { %7822 = vmatmul.msk.f32.gmra.mxu2 %vm782_vm0, %v687_v15  ;;  %v689_v15 = vld [vmem:[%s8666_s12 + $0xa58] sm:$0xff] }
 0x3af   : > { %v9220_v62 = vpop.f32.mrf.mxu2 }
 0x3b0   : > { %v9201_v52 = vpop.f32.mrf.mxu0  ;;  %13485 = vst [vmem:[#allocation108_spill] sm:$0xff] %v9220_v62  ;;  %v721_v62 = vld [vmem:[%s8666_s12 + $0xb58] sm:$0xff] }
 0x3b1   : > { %13480 = vst [vmem:[#allocation103_spill] sm:$0xff] %v9201_v52 }
 0x3b3   : > { %7608 = vmatmul.msk.f32.gmra.mxu0 %vm782_vm0, %v473_v39  ;;  %v475_v39 = vld [vmem:[%s8666_s12 + $0x3a8] sm:$0xff] }
 0x3b4   : > { %7823 = vmatmul.msk.f32.gmra.mxu2 %vm782_vm0, %v688_v11  ;;  %v690_v11 = vld [vmem:[%s8666_s12 + $0xa60] sm:$0xff] }
 0x3b7   : > { %v9228_v47 = vpop.f32.mrf.mxu2 }
 0x3b8   : > { %v9209_v50 = vpop.f32.mrf.mxu0  ;;  %13487 = vst [vmem:[#allocation110_spill] sm:$0xff] %v9228_v47 }
 0x3b9   : > { %13482 = vst [vmem:[#allocation105_spill] sm:$0xff] %v9209_v50 }
 0x3bb   : > { %7609 = vmatmul.msk.f32.gmra.mxu0 %vm782_vm0, %v474_v23  ;;  %v476_v23 = vld [vmem:[%s8666_s12 + $0x3b0] sm:$0xff] }
 0x3bc   : > { %7824 = vmatmul.msk.f32.gmra.mxu2 %vm782_vm0, %v689_v15  ;;  %v691_v15 = vld [vmem:[%s8666_s12 + $0xa68] sm:$0xff] }
 0x3bf   : > { %v9236_v19 = vpop.f32.mrf.mxu2 }
 0x3c0   : > { %v9217_v52 = vpop.f32.mrf.mxu0  ;;  %13489 = vst [vmem:[#allocation112_spill] sm:$0xff] %v9236_v19  ;;  %v617_v19 = vld [vmem:[%s8666_s12 + $0x818] sm:$0xff] }
 0x3c1   : > { %13484 = vst [vmem:[#allocation107_spill] sm:$0xff] %v9217_v52 }
 0x3c3   : > { %7610 = vmatmul.msk.f32.gmra.mxu0 %vm782_vm0, %v475_v39  ;;  %v477_v39 = vld [vmem:[%s8666_s12 + $0x3b8] sm:$0xff] }
 0x3c4   : > { %7825 = vmatmul.msk.f32.gmra.mxu2 %vm782_vm0, %v690_v11  ;;  %v692_v11 = vld [vmem:[%s8666_s12 + $0xa70] sm:$0xff] }
 0x3c7   : > { %v9244_v59 = vpop.f32.mrf.mxu2 }
 0x3c8   : > { %v9225_v50 = vpop.f32.mrf.mxu0  ;;  %13491 = vst [vmem:[#allocation114_spill] sm:$0xff] %v9244_v59  ;;  %v512_v59 = vld [vmem:[%s8666_s12 + $0x4d0] sm:$0xff] }
 0x3c9   : > { %13486 = vst [vmem:[#allocation109_spill] sm:$0xff] %v9225_v50 }
 0x3cb   : > { %7611 = vmatmul.msk.f32.gmra.mxu0 %vm782_vm0, %v476_v23  ;;  %v478_v23 = vld [vmem:[%s8666_s12 + $0x3c0] sm:$0xff] }
 0x3cc   : > { %7826 = vmatmul.msk.f32.gmra.mxu2 %vm782_vm0, %v691_v15  ;;  %v693_v15 = vld [vmem:[%s8666_s12 + $0xa78] sm:$0xff] }
 0x3cf   : > { %v9252_v3 = vpop.f32.mrf.mxu2 }
 0x3d0   : > { %v9233_v52 = vpop.f32.mrf.mxu0  ;;  %13493 = vst [vmem:[#allocation116_spill] sm:$0xff] %v9252_v3 }
 0x3d1   : > { %13488 = vst [vmem:[#allocation111_spill] sm:$0xff] %v9233_v52 }
 0x3d3   : > { %7612 = vmatmul.msk.f32.gmra.mxu0 %vm782_vm0, %v477_v39  ;;  %v479_v39 = vld [vmem:[%s8666_s12 + $0x3c8] sm:$0xff] }
 0x3d4   : > { %7827 = vmatmul.msk.f32.gmra.mxu2 %vm782_vm0, %v692_v11  ;;  %v694_v11 = vld [vmem:[%s8666_s12 + $0xa80] sm:$0xff] }
 0x3d7   : > { %v9260_v31 = vpop.f32.mrf.mxu2 }
 0x3d8   : > { %v9241_v50 = vpop.f32.mrf.mxu0  ;;  %13495 = vst [vmem:[#allocation118_spill] sm:$0xff] %v9260_v31  ;;  %v514_v31 = vld [vmem:[%s8666_s12 + $0x4e0] sm:$0xff] }
 0x3d9   : > { %13490 = vst [vmem:[#allocation113_spill] sm:$0xff] %v9241_v50  ;;  %v614_v50 = vld [vmem:[%s8666_s12 + $0x800] sm:$0xff] }
 0x3db   : > { %7613 = vmatmul.msk.f32.gmra.mxu0 %vm782_vm0, %v478_v23  ;;  %v480_v23 = vld [vmem:[%s8666_s12 + $0x3d0] sm:$0xff] }
 0x3dc   : > { %7828 = vmatmul.msk.f32.gmra.mxu2 %vm782_vm0, %v693_v15  ;;  %v695_v15 = vld [vmem:[%s8666_s12 + $0xa88] sm:$0xff] }
 0x3df   : > { %v9268_v8 = vpop.f32.mrf.mxu2 }
 0x3e0   : > { %v9249_v52 = vpop.f32.mrf.mxu0  ;;  %13497 = vst [vmem:[#allocation120_spill] sm:$0xff] %v9268_v8 }
 0x3e1   : > { %13492 = vst [vmem:[#allocation115_spill] sm:$0xff] %v9249_v52  ;;  %v615_v52 = vld [vmem:[%s8666_s12 + $0x808] sm:$0xff] }
 0x3e3   : > { %7614 = vmatmul.msk.f32.gmra.mxu0 %vm782_vm0, %v479_v39  ;;  %v481_v39 = vld [vmem:[%s8666_s12 + $0x3d8] sm:$0xff] }
 0x3e4   : > { %7829 = vmatmul.msk.f32.gmra.mxu2 %vm782_vm0, %v694_v11  ;;  %v696_v11 = vld [vmem:[%s8666_s12 + $0xa90] sm:$0xff] }
 0x3e7   : > { %v9276_v7 = vpop.f32.mrf.mxu2 }
 0x3e8   : > { %v9257_v63 = vpop.f32.mrf.mxu0  ;;  %13499 = vst [vmem:[#allocation122_spill] sm:$0xff] %v9276_v7 }
 0x3e9   : > { %13494 = vst [vmem:[#allocation117_spill] sm:$0xff] %v9257_v63  ;;  %v722_v63 = vld [vmem:[%s8666_s12 + $0xb60] sm:$0xff] }
 0x3eb   : > { %7615 = vmatmul.msk.f32.gmra.mxu0 %vm782_vm0, %v480_v23  ;;  %v482_v23 = vld [vmem:[%s8666_s12 + $0x3e0] sm:$0xff] }
 0x3ec   : > { %7830 = vmatmul.msk.f32.gmra.mxu2 %vm782_vm0, %v695_v15  ;;  %v697_v15 = vld [vmem:[%s8666_s12 + $0xa98] sm:$0xff] }
 0x3ef   : > { %v9284_v55 = vpop.f32.mrf.mxu2 }
 0x3f0   : > { %v9265_v12 = vpop.f32.mrf.mxu0  ;;  %13501 = vst [vmem:[#allocation124_spill] sm:$0xff] %v9284_v55 }
 0x3f1   : > { %13496 = vst [vmem:[#allocation119_spill] sm:$0xff] %v9265_v12 }
 0x3f3   : > { %7616 = vmatmul.msk.f32.gmra.mxu0 %vm782_vm0, %v481_v39  ;;  %v483_v39 = vld [vmem:[%s8666_s12 + $0x3e8] sm:$0xff] }
 0x3f4   : > { %7831 = vmatmul.msk.f32.gmra.mxu2 %vm782_vm0, %v696_v11  ;;  %v593_v11 = vld [vmem:[%s8666_s12 + $0x758] sm:$0xff] }
 0x3f5   : > { %7728 = vmatmul.msk.f32.vlgmr.msra.gmra.mxu1 %vm782_vm0, %v593_v11  ;;  %v487_v11 = vld [vmem:[%s8666_s12 + $0x408] sm:$0xff] }
 0x3f7   : > { %v9292_v10 = vpop.f32.mrf.mxu2 }
 0x3f8   : > { %v9273_v4 = vpop.f32.mrf.mxu0 }
 0x3f9   : > { %13498 = vst [vmem:[#allocation121_spill] sm:$0xff] %v9273_v4  ;;  %v725_v4 = vld [vmem:[%s8666_s12 + $0xb78] sm:$0xff] }
 0x3fb   : > { %7617 = vmatmul.msk.f32.gmra.mxu0 %vm782_vm0, %v482_v23  ;;  %v484_v23 = vld [vmem:[%s8666_s12 + $0x3f0] sm:$0xff] }
 0x3fc   : > { %7832 = vmatmul.msk.f32.gmra.mxu2 %vm782_vm0, %v697_v15 }
 0x3fd   : > { %7729 = vmatmul.msk.f32.gmra.mxu1 %vm782_vm0, %v594_v53  ;;  %v488_v53 = vld [vmem:[%s8666_s12 + $0x410] sm:$0xff] }
 0x400   : > { %v9281_v0 = vpop.f32.mrf.mxu0 }
 0x401   : > { %13500 = vst [vmem:[#allocation123_spill] sm:$0xff] %v9281_v0  ;;  %v620_v0 = vld [vmem:[%s8666_s12 + $0x830] sm:$0xff] }
 0x403   : > { %7618 = vmatmul.msk.f32.gmra.mxu0 %vm782_vm0, %v483_v39  ;;  %v9300_v39 = vpop.f32.mrf.mxu2 }
 0x404   : > { %7833 = vmatmul.msk.f32.gmra.mxu2 %vm782_vm0, %v698_v54 }
 0x405   : > { %7730 = vmatmul.msk.f32.gmra.mxu1 %vm782_vm0, %v595_v61 }
 0x408   : > { %v9289_v60 = vpop.f32.mrf.mxu0 }
 0x409   : > { %13502 = vst [vmem:[#allocation125_spill] sm:$0xff] %v9289_v60  ;;  %v727_v60 = vld [vmem:[%s8666_s12 + $0xb88] sm:$0xff] }
 0x40b   : > { %7619 = vmatmul.msk.f32.gmra.mxu0 %vm782_vm0, %v484_v23  ;;  %v9310_v15 = vpop.f32.mrf.mxu2 }
 0x40c   : > { %13505 = vst [vmem:[#allocation128_spill] sm:$0xff] %v9310_v15  ;;  %7834 = vmatmul.msk.f32.gmra.mxu2 %vm782_vm0, %v699_v57  ;;  %v516_v15 = vld [vmem:[%s8666_s12 + $0x4f0] sm:$0xff] }
 0x40d   : > { %7731 = vmatmul.msk.f32.gmra.mxu1 %vm782_vm0, %v596_v5 }
 0x410   : > { %v9297_v56 = vpop.f32.mrf.mxu0 }
 0x411   : > { %13503 = vst [vmem:[#allocation126_spill] sm:$0xff] %v9297_v56  ;;  %v728_v56 = vld [vmem:[%s8666_s12 + $0xb90] sm:$0xff] }
 0x413   : > { %7620 = vmatmul.msk.f32.gmra.mxu0 %vm782_vm0, %v485_v6  ;;  %v9320_v54 = vpop.f32.mrf.mxu2 }
 0x414   : > { %13507 = vst [vmem:[#allocation130_spill] sm:$0xff] %v9320_v54  ;;  %7835 = vmatmul.msk.f32.gmra.mxu2 %vm782_vm0, %v700_v1  ;;  %v701_v54 = vld [vmem:[%s8666_s12 + $0xab8] sm:$0xff] }
 0x415   : > { %7732 = vmatmul.msk.f32.gmra.mxu1 %vm782_vm0, %v597_v9 }
 0x418   : > { %v9307_v23 = vpop.f32.mrf.mxu0 }
 0x419   : > { %13504 = vst [vmem:[#allocation127_spill] sm:$0xff] %v9307_v23  ;;  %v729_v23 = vld [vmem:[%s8666_s12 + $0xb98] sm:$0xff] }
 0x41b   : > { %7621 = vmatmul.msk.f32.gmra.mxu0 %vm782_vm0, %v486_v2  ;;  %v9330_v57 = vpop.f32.mrf.mxu2 }
 0x41c   : > { %13508 = vst [vmem:[#allocation131_spill] sm:$0xff] %v9330_v57  ;;  %7836 = vmatmul.msk.f32.gmra.mxu2 %vm782_vm0, %v701_v54  ;;  %v702_v57 = vld [vmem:[%s8666_s12 + $0xac0] sm:$0xff] }
 0x41d   : > { %7733 = vmatmul.msk.f32.gmra.mxu1 %vm782_vm0, %v598_v13 }
 0x420   : > { %v9317_v6 = vpop.f32.mrf.mxu0 }
 0x421   : > { %13506 = vst [vmem:[#allocation129_spill] sm:$0xff] %v9317_v6 }
 0x423   : > { %7622 = vmatmul.msk.f32.gmra.mxu0 %vm782_vm0, %v487_v11  ;;  %v489_v11 = vld [vmem:[%s8666_s12 + $0x418] sm:$0xff]  ;;  %v9340_v1 = vpop.f32.mrf.mxu2 }
 0x424   : > { %13509 = vst [vmem:[#allocation132_spill] sm:$0xff] %v9340_v1  ;;  %7837 = vmatmul.msk.f32.gmra.mxu2 %vm782_vm0, %v702_v57  ;;  %v703_v1 = vld [vmem:[%s8666_s12 + $0xac8] sm:$0xff] }
 0x425   : > { %7734 = vmatmul.msk.f32.gmra.mxu1 %vm782_vm0, %v599_v17 }
 0x428   : > { %v9327_v2 = vpop.f32.mrf.mxu0 }
 0x42b   : > { %7623 = vmatmul.msk.f32.gmra.mxu0 %vm782_vm0, %v488_v53  ;;  %v490_v53 = vld [vmem:[%s8666_s12 + $0x420] sm:$0xff]  ;;  %v9350_v54 = vpop.f32.mrf.mxu2 }
 0x42c   : > { %13510 = vst [vmem:[#allocation133_spill] sm:$0xff] %v9350_v54  ;;  %7838 = vmatmul.msk.f32.gmra.mxu2 %vm782_vm0, %v703_v1  ;;  %v704_v54 = vld [vmem:[%s8666_s12 + $0xad0] sm:$0xff] }
 0x430   : > { %v9337_v61 = vpop.f32.mrf.mxu0 }
 0x433   : > { %7624 = vmatmul.msk.f32.gmra.mxu0 %vm782_vm0, %v489_v11  ;;  %v491_v11 = vld [vmem:[%s8666_s12 + $0x428] sm:$0xff]  ;;  %v9360_v57 = vpop.f32.mrf.mxu2 }
 0x434   : > { %13512 = vst [vmem:[#allocation135_spill] sm:$0xff] %v9360_v57  ;;  %7839 = vmatmul.msk.f32.gmra.mxu2 %vm782_vm0, %v704_v54  ;;  %v493_v54 = vld [vmem:[%s8666_s12 + $0x438] sm:$0xff] }
 0x438   : > { %v9347_v5 = vpop.f32.mrf.mxu0 }
 0x43b   : > { %7625 = vmatmul.msk.f32.gmra.mxu0 %vm782_vm0, %v490_v53  ;;  %v492_v53 = vld [vmem:[%s8666_s12 + $0x430] sm:$0xff]  ;;  %v9370_v1 = vpop.f32.mrf.mxu2 }
 0x43c   : > { %13514 = vst [vmem:[#allocation137_spill] sm:$0xff] %v9370_v1 }
 0x440   : > { %v9357_v9 = vpop.f32.mrf.mxu0 }
 0x441   : > { %13511 = vst [vmem:[#allocation134_spill] sm:$0xff] %v9357_v9  ;;  %v600_v9 = vld [vmem:[%s8666_s12 + $0x790] sm:$0xff] }
 0x442   : > { %7735 = vmatmul.msk.f32.gmra.mxu1 %vm782_vm0, %v600_v9 }
 0x443   : > { %7626 = vmatmul.msk.f32.gmra.mxu0 %vm782_vm0, %v491_v11  ;;  %v705_v11 = vld [vmem:[%s8666_s12 + $0xad8] sm:$0xff]  ;;  %v9380_v57 = vpop.f32.mrf.mxu2 }
 0x444   : > { %7840 = vmatmul.msk.f32.gmra.mxu2 %vm782_vm0, %v705_v11  ;;  %13516 = vst [vmem:[#allocation139_spill] sm:$0xff] %v9380_v57  ;;  %v494_v11 = vld [vmem:[%s8666_s12 + $0x440] sm:$0xff] }
 0x445   : > { %v602_v57 = vld [vmem:[%s8666_s12 + $0x7a0] sm:$0xff] }
 0x448   : > { %v9367_v13 = vpop.f32.mrf.mxu0 }
 0x449   : > { %13513 = vst [vmem:[#allocation136_spill] sm:$0xff] %v9367_v13  ;;  %v601_v13 = vld [vmem:[%s8666_s12 + $0x798] sm:$0xff] }
 0x44a   : > { %7736 = vmatmul.msk.f32.gmra.mxu1 %vm782_vm0, %v601_v13  ;;  %v707_v13 = vld [vmem:[%s8666_s12 + $0xae8] sm:$0xff] }
 0x44b   : > { %7627 = vmatmul.msk.f32.gmra.mxu0 %vm782_vm0, %v492_v53  ;;  %v706_v53 = vld [vmem:[%s8666_s12 + $0xae0] sm:$0xff]  ;;  %v9390_v1 = vpop.f32.mrf.mxu2 }
 0x44c   : > { %7841 = vmatmul.msk.f32.gmra.mxu2 %vm782_vm0, %v706_v53  ;;  %13518 = vst [vmem:[#allocation141_spill] sm:$0xff] %v9390_v1  ;;  %v495_v53 = vld [vmem:[%s8666_s12 + $0x448] sm:$0xff] }
 0x450   : > { %v9377_v17 = vpop.f32.mrf.mxu0 }
 0x451   : > { %13515 = vst [vmem:[#allocation138_spill] sm:$0xff] %v9377_v17  ;;  %v708_v17 = vld [vmem:[%s8666_s12 + $0xaf0] sm:$0xff] }
 0x452   : > { %7843 = vmatmul.msk.f32.vlgmr.msra.gmra.mxu3 %vm782_vm0, %v708_v17  ;;  %7737 = vmatmul.msk.f32.gmra.mxu1 %vm782_vm0, %v602_v57  ;;  %v603_v17 = vld [vmem:[%s8666_s12 + $0x7a8] sm:$0xff] }
 0x453   : > { %7628 = vmatmul.msk.f32.gmra.mxu0 %vm782_vm0, %v493_v54  ;;  %v9403_v1 = vpop.f32.mrf.mxu2 }
 0x454   : > { %7842 = vmatmul.msk.f32.gmra.mxu2 %vm782_vm0, %v707_v13  ;;  %13520 = vst [vmem:[#allocation143_spill] sm:$0xff] %v9403_v1  ;;  %v710_v13 = vld [vmem:[%s8666_s12 + $0xb00] sm:$0xff] }
 0x458   : > { %v9387_v9 = vpop.f32.mrf.mxu0 }
 0x459   : > { %13517 = vst [vmem:[#allocation140_spill] sm:$0xff] %v9387_v9  ;;  %v709_v9 = vld [vmem:[%s8666_s12 + $0xaf8] sm:$0xff] }
 0x45a   : > { %7844 = vmatmul.msk.f32.gmra.mxu3 %vm782_vm0, %v709_v9  ;;  %7738 = vmatmul.msk.f32.gmra.mxu1 %vm782_vm0, %v603_v17  ;;  %v711_v17 = vld [vmem:[%s8666_s12 + $0xb08] sm:$0xff] }
 0x45b   : > { %7629 = vmatmul.msk.f32.gmra.mxu0 %vm782_vm0, %v494_v11  ;;  %v496_v11 = vld [vmem:[%s8666_s12 + $0x450] sm:$0xff]  ;;  %v9417_v9 = vpop.f32.mrf.mxu2 }
 0x45c   : > { %13522 = vst [vmem:[#allocation145_spill] sm:$0xff] %v9417_v9  ;;  %v712_v9 = vld [vmem:[%s8666_s12 + $0xb10] sm:$0xff] }
 0x460   : > { %v9399_v54 = vpop.f32.mrf.mxu0 }
 0x461   : > { %13519 = vst [vmem:[#allocation142_spill] sm:$0xff] %v9399_v54  ;;  %v604_v54 = vld [vmem:[%s8666_s12 + $0x7b0] sm:$0xff] }
 0x462   : > { %7845 = vmatmul.msk.f32.gmra.mxu3 %vm782_vm0, %v710_v13  ;;  %7739 = vmatmul.msk.f32.gmra.mxu1 %vm782_vm0, %v604_v54  ;;  %v498_v54 = vld [vmem:[%s8666_s12 + $0x460] sm:$0xff] }
 0x463   : > { %7630 = vmatmul.msk.f32.gmra.mxu0 %vm782_vm0, %v495_v53  ;;  %v497_v53 = vld [vmem:[%s8666_s12 + $0x458] sm:$0xff]  ;;  %v9427_v13 = vpop.f32.mrf.mxu2 }
 0x464   : > { %13524 = vst [vmem:[#allocation147_spill] sm:$0xff] %v9427_v13  ;;  %v713_v13 = vld [vmem:[%s8666_s12 + $0xb18] sm:$0xff] }
 0x468   : > { %v9409_v57 = vpop.f32.mrf.mxu0 }
 0x469   : > { %13521 = vst [vmem:[#allocation144_spill] sm:$0xff] %v9409_v57  ;;  %v605_v57 = vld [vmem:[%s8666_s12 + $0x7b8] sm:$0xff] }
 0x46a   : > { %7846 = vmatmul.msk.f32.gmra.mxu3 %vm782_vm0, %v711_v17  ;;  %7740 = vmatmul.msk.f32.gmra.mxu1 %vm782_vm0, %v605_v57 }
 0x46b   : > { %7631 = vmatmul.msk.f32.gmra.mxu0 %vm782_vm0, %v496_v11  ;;  %v9440_v57 = vpop.f32.mrf.mxu2 }
 0x46c   : > { %13527 = vst [vmem:[#allocation150_spill] sm:$0xff] %v9440_v57  ;;  %v608_v57 = vld [vmem:[%s8666_s12 + $0x7d0] sm:$0xff] }
 0x470   : > { %v9419_v1 = vpop.f32.mrf.mxu0 }
 0x471   : > { %13523 = vst [vmem:[#allocation146_spill] sm:$0xff] %v9419_v1  ;;  %v606_v1 = vld [vmem:[%s8666_s12 + $0x7c0] sm:$0xff] }
 0x472   : > { %7847 = vmatmul.msk.f32.gmra.mxu3 %vm782_vm0, %v712_v9  ;;  %7741 = vmatmul.msk.f32.gmra.mxu1 %vm782_vm0, %v606_v1  ;;  %v714_v1 = vld [vmem:[%s8666_s12 + $0xb20] sm:$0xff] }
 0x473   : > { %7632 = vmatmul.msk.f32.gmra.mxu0 %vm782_vm0, %v497_v53  ;;  %v499_v53 = vld [vmem:[%s8666_s12 + $0x468] sm:$0xff] }
 0x478   : > { %v9429_v11 = vpop.f32.mrf.mxu0 }
 0x479   : > { %13525 = vst [vmem:[#allocation148_spill] sm:$0xff] %v9429_v11  ;;  %v607_v11 = vld [vmem:[%s8666_s12 + $0x7c8] sm:$0xff] }
 0x47a   : > { %7848 = vmatmul.msk.f32.gmra.mxu3 %vm782_vm0, %v713_v13  ;;  %7742 = vmatmul.msk.f32.gmra.mxu1 %vm782_vm0, %v607_v11  ;;  %v9460_v11 = vpop.f32.mrf.mxu1 }
 0x47b   : > { %7633 = vmatmul.msk.f32.gmra.mxu0 %vm782_vm0, %v498_v54  ;;  %v500_v54 = vld [vmem:[%s8666_s12 + $0x470] sm:$0xff] }
 0x480   : > { %v9437_v17 = vpop.f32.mrf.mxu0 }
 0x481   : > { %13526 = vst [vmem:[#allocation149_spill] sm:$0xff] %v9437_v17  ;;  %v9451_v17 = vpop.f32.mrf.mxu2 }
 0x482   : > { %13529 = vst [vmem:[#allocation152_spill] sm:$0xff] %v9451_v17  ;;  %7849 = vmatmul.msk.f32.gmra.mxu3 %vm782_vm0, %v714_v1  ;;  %7743 = vmatmul.msk.f32.gmra.mxu1 %vm782_vm0, %v608_v57  ;;  %v715_v17 = vld [vmem:[%s8666_s12 + $0xb28] sm:$0xff]  ;;  %v502_v57 = vld [vmem:[%s8666_s12 + $0x480] sm:$0xff] }
 0x483   : > { %7634 = vmatmul.msk.f32.gmra.mxu0 %vm782_vm0, %v499_v53  ;;  %v501_v53 = vld [vmem:[%s8666_s12 + $0x478] sm:$0xff] }
 0x488   : > { %v9447_v9 = vpop.f32.mrf.mxu0 }
 0x489   : > { %13528 = vst [vmem:[#allocation151_spill] sm:$0xff] %v9447_v9  ;;  %v609_v9 = vld [vmem:[%s8666_s12 + $0x7d8] sm:$0xff]  ;;  %v9466_v1 = vpop.f32.mrf.mxu2 }
 0x48a   : > { %7744 = vmatmul.msk.f32.gmra.mxu1 %vm782_vm0, %v609_v9  ;;  %13531 = vst [vmem:[#allocation154_spill] sm:$0xff] %v9466_v1  ;;  %7850 = vmatmul.msk.f32.gmra.mxu3 %vm782_vm0, %v715_v17  ;;  %v503_v17 = vld [vmem:[%s8666_s12 + $0x488] sm:$0xff] }
 0x48b   : > { %7635 = vmatmul.msk.f32.gmra.mxu0 %vm782_vm0, %v500_v54 }
 0x490   : > { %v9457_v13 = vpop.f32.mrf.mxu0 }
 0x491   : > { %13530 = vst [vmem:[#allocation153_spill] sm:$0xff] %v9457_v13  ;;  %v9472_v13 = vpop.f32.mrf.mxu1  ;;  %v9479_v9 = vpop.f32.mrf.mxu2 }
 0x492   : > { %7745 = vmatmul.msk.f32.gmra.mxu1 %vm782_vm0, %v610_v21 }
 0x493   : > { %7636 = vmatmul.msk.f32.gmra.mxu0 %vm782_vm0, %v501_v53  ;;  %v716_v53 = vld [vmem:[%s8666_s12 + $0xb30] sm:$0xff] }
 0x494   : > { %7851 = vmatmul.msk.f32.gmra.mxu3 %vm782_vm0, %v716_v53  ;;  %v504_v53 = vld [vmem:[%s8666_s12 + $0x490] sm:$0xff] }
 0x498   : > { %v9469_v54 = vpop.f32.mrf.mxu0 }
 0x499   : > { %13532 = vst [vmem:[#allocation155_spill] sm:$0xff] %v9469_v54  ;;  %v611_v54 = vld [vmem:[%s8666_s12 + $0x7e8] sm:$0xff]  ;;  %v9494_v35 = vpop.f32.mrf.mxu2 }
 0x49a   : > { %7746 = vmatmul.msk.f32.gmra.mxu1 %vm782_vm0, %v611_v54 }
 0x49b   : > { %7637 = vmatmul.msk.f32.gmra.mxu0 %vm782_vm0, %v502_v57  ;;  %v9488_v57 = vpop.f32.mrf.mxu1 }
 0x49c   : > { %7852 = vmatmul.msk.f32.gmra.mxu3 %vm782_vm0, %v717_v27  ;;  %v505_v27 = vld [vmem:[%s8666_s12 + $0x498] sm:$0xff] }
 0x4a0   : > { %v9481_v1 = vpop.f32.mrf.mxu0 }
 0x4a1   : > { %13533 = vst [vmem:[#allocation156_spill] sm:$0xff] %v9481_v1  ;;  %v612_v1 = vld [vmem:[%s8666_s12 + $0x7f0] sm:$0xff] }
 0x4a2   : > { %7747 = vmatmul.msk.f32.gmra.mxu1 %vm782_vm0, %v612_v1 }
 0x4a3   : > { %7638 = vmatmul.msk.f32.gmra.mxu0 %vm782_vm0, %v503_v17  ;;  %v718_v17 = vld [vmem:[%s8666_s12 + $0xb40] sm:$0xff]  ;;  %v9501_v54 = vpop.f32.mrf.mxu1 }
 0x4a4   : > { %7853 = vmatmul.msk.f32.gmra.mxu3 %vm782_vm0, %v718_v17  ;;  %v506_v17 = vld [vmem:[%s8666_s12 + $0x4a0] sm:$0xff] }
 0x4a8   : > { %v9491_v21 = vpop.f32.mrf.mxu0 }
 0x4a9   : > { %13534 = vst [vmem:[#allocation157_spill] sm:$0xff] %v9491_v21  ;;  %v9506_v21 = vpop.f32.mrf.mxu2 }
 0x4aa   : > { %7748 = vmatmul.msk.f32.gmra.mxu1 %vm782_vm0, %v613_v51 }
 0x4ab   : > { %7639 = vmatmul.msk.f32.gmra.mxu0 %vm782_vm0, %v504_v53  ;;  %v719_v53 = vld [vmem:[%s8666_s12 + $0xb48] sm:$0xff]  ;;  %v2765_v24 = vpop.f32.mrf.mxu1 }
 0x4ac   : > { %7854 = vmatmul.msk.f32.gmra.mxu3 %vm782_vm0, %v719_v53  ;;  %v507_v53 = vld [vmem:[%s8666_s12 + $0x4a8] sm:$0xff] }
 0x4b0   : > { %v9503_v43 = vpop.f32.mrf.mxu0 }
 0x4b2   : > { %7749 = vmatmul.msk.f32.gmra.mxu1 %vm782_vm0, %v614_v50 }
 0x4b3   : > { %7640 = vmatmul.msk.f32.gmra.mxu0 %vm782_vm0, %v505_v27  ;;  %v9520_v27 = vpop.f32.mrf.mxu2  ;;  %v9526_v26 = vpop.f32.mrf.mxu1 }
 0x4b4   : > { %7855 = vmatmul.msk.f32.gmra.mxu3 %vm782_vm0, %v720_v58  ;;  %v508_v58 = vld [vmem:[%s8666_s12 + $0x4b0] sm:$0xff] }
 0x4b8   : > { %v9513_v1 = vpop.f32.mrf.mxu0 }
 0x4ba   : > { %7750 = vmatmul.msk.f32.gmra.mxu1 %vm782_vm0, %v615_v52 }
 0x4bb   : > { %7641 = vmatmul.msk.f32.gmra.mxu0 %vm782_vm0, %v506_v17  ;;  %v3077_v50 = vpop.f32.mrf.mxu2  ;;  %v9540_v47 = vpop.f32.mrf.mxu1 }
 0x4bc   : > { %7856 = vmatmul.msk.f32.gmra.mxu3 %vm782_vm0, %v721_v62  ;;  %v3431_v52 = vmax.f32 %v2765_v24, %v3077_v50  ;;  %v509_v62 = vld [vmem:[%s8666_s12 + $0x4b8] sm:$0xff]  ;;  %v510_v50 = vld [vmem:[%s8666_s12 + $0x4c0] sm:$0xff] }
 0x4c0   : > { %v9523_v51 = vpop.f32.mrf.mxu0 }
 0x4c2   : > { %7751 = vmatmul.msk.f32.gmra.mxu1 %vm782_vm0, %v616_v28  ;;  %v723_v28 = vld [vmem:[%s8666_s12 + $0xb68] sm:$0xff] }
 0x4c3   : > { %7642 = vmatmul.msk.f32.gmra.mxu0 %vm782_vm0, %v507_v53  ;;  %v9544_v30 = vpop.f32.mrf.mxu2  ;;  %v9554_v24 = vpop.f32.mrf.mxu1 }
 0x4c4   : > { %7857 = vmatmul.msk.f32.gmra.mxu3 %vm782_vm0, %v722_v63 }
 0x4c8   : > { %v9533_v17 = vpop.f32.mrf.mxu0 }
 0x4ca   : > { %7752 = vmatmul.msk.f32.gmra.mxu1 %vm782_vm0, %v617_v19 }
 0x4cb   : > { %7643 = vmatmul.msk.f32.gmra.mxu0 %vm782_vm0, %v508_v58  ;;  %v9559_v58 = vpop.f32.mrf.mxu2 }
 0x4cc   : > { %7858 = vmatmul.msk.f32.gmra.mxu3 %vm782_vm0, %v723_v28  ;;  %v619_v28 = vld [vmem:[%s8666_s12 + $0x828] sm:$0xff] }
 0x4d0   : > { %v2453_v53 = vpop.f32.mrf.mxu0 }
 0x4d1   : > { %v3327_v12 = vmax.f32 %v8827_v22, %v2453_v53  ;;  %v618_v22 = vld [vmem:[%s8666_s12 + $0x820] sm:$0xff]  ;;  %v511_v53 = vld [vmem:[%s8666_s12 + $0x4c8] sm:$0xff] }
 0x4d2   : > { %7753 = vmatmul.msk.f32.gmra.mxu1 %vm782_vm0, %v618_v22 }
 0x4d3   : > { %v9548_v32 = vmax.f32 %v3327_v12, %v3431_v52  ;;  %7644 = vmatmul.msk.f32.gmra.mxu0 %vm782_vm0, %v509_v62  ;;  %v724_v12 = vld [vmem:[%s8666_s12 + $0xb70] sm:$0xff]  ;;  %v9571_v62 = vpop.f32.mrf.mxu1 }
 0x4d4   : > { %7859 = vmatmul.msk.f32.gmra.mxu3 %vm782_vm0, %v724_v12 }
 0x4d5   : > { %v9566_v19 = vpop.f32.mrf.mxu3 }
 0x4d8   : > { %v9556_v63 = vpop.f32.mrf.mxu0 }
 0x4da   : > { %7754 = vmatmul.msk.f32.gmra.mxu1 %vm782_vm0, %v619_v28 }
 0x4db   : > { %7645 = vmatmul.msk.f32.gmra.mxu0 %vm782_vm0, %v510_v50  ;;  %v9577_v50 = vpop.f32.mrf.mxu2  ;;  %v2780_v34 = vpop.f32.mrf.mxu1 }
 0x4dc   : > { %7860 = vmatmul.msk.f32.gmra.mxu3 %vm782_vm0, %v725_v4 }
 0x4dd   : > { %v9580_v22 = vpop.f32.mrf.mxu3 }
 0x4de   : > { %13535 = vst [vmem:[#allocation158_spill] sm:$0xff] %v9580_v22  ;;  %v513_v22 = vld [vmem:[%s8666_s12 + $0x4d8] sm:$0xff] }
 0x4e0   : > { %v9568_v52 = vpop.f32.mrf.mxu0 }
 0x4e2   : > { %7755 = vmatmul.msk.f32.gmra.mxu1 %vm782_vm0, %v620_v0 }
 0x4e3   : > { %7646 = vmatmul.msk.f32.gmra.mxu0 %vm782_vm0, %v511_v53  ;;  %v726_v53 = vld [vmem:[%s8666_s12 + $0xb80] sm:$0xff]  ;;  %v3089_v4 = vpop.f32.mrf.mxu2 }
 0x4e4   : > { %7861 = vmatmul.msk.f32.gmra.mxu3 %vm782_vm0, %v726_v53  ;;  %v3435_v55 = vmax.f32 %v9571_v62, %v3089_v4  ;;  %v3328_v62 = vmax.f32 %v8831_v25, %v9556_v63  ;;  %v3430_v4 = vmax.f32 %v9501_v54, %v9520_v27  ;;  %v3326_v25 = vmax.f32 %v8823_v20, %v9533_v17 }
 0x4e5   : > { %v9590_v28 = vpop.f32.mrf.mxu3  ;;  %v3325_v54 = vmax.f32 %v8819_v18, %v9523_v51  ;;  %v3429_v27 = vmax.f32 %v9488_v57, %v9506_v21  ;;  %v3427_v57 = vmax.f32 %v9460_v11, %v9479_v9  ;;  %v518_v51 = vld [vmem:[%s8666_s12 + $0x500] sm:$0xff]  ;;  %v732_v9 = vld [vmem:[%s8666_s12 + $0xbb0] sm:$0xff] }
 0x4e6   : > { %13536 = vst [vmem:[#allocation159_spill] sm:$0xff] %v9590_v28 }
 0x4e8   : > { %v9582_v12 = vpop.f32.mrf.mxu0 }
 0x4ea   : > { %7756 = vmatmul.msk.f32.gmra.mxu1 %vm782_vm0, %v621_v36 }
 0x4eb   : > { %7647 = vmatmul.msk.f32.gmra.mxu0 %vm782_vm0, %v512_v59  ;;  %v2783_v59 = vpop.f32.mrf.mxu1  ;;  %v3092_v28 = vpop.f32.mrf.mxu2 }
 0x4ec   : > { %7862 = vmatmul.msk.f32.gmra.mxu3 %vm782_vm0, %v727_v60  ;;  %v515_v60 = vld [vmem:[%s8666_s12 + $0x4e8] sm:$0xff]  ;;  %v3436_v7 = vmax.f32 %v2780_v34, %v3092_v28  ;;  %v3330_v34 = vmax.f32 %v8839_v33, %v9582_v12  ;;  %v3329_v33 = vmax.f32 %v8835_v29, %v9568_v52 }
 0x4ed   : > { %v9598_v0 = vpop.f32.mrf.mxu3 }
 0x4ee   : > { %13537 = vst [vmem:[#allocation160_spill] sm:$0xff] %v9598_v0  ;;  %v623_v0 = vld [vmem:[%s8666_s12 + $0x848] sm:$0xff] }
 0x4f0   : > { %v2465_v3 = vpop.f32.mrf.mxu0 }
 0x4f2   : > { %7757 = vmatmul.msk.f32.gmra.mxu1 %vm782_vm0, %v622_v38 }
 0x4f3   : > { %7648 = vmatmul.msk.f32.gmra.mxu0 %vm782_vm0, %v513_v22  ;;  %v2786_v36 = vpop.f32.mrf.mxu1  ;;  %v3095_v40 = vpop.f32.mrf.mxu2 }
 0x4f4   : > { %7863 = vmatmul.msk.f32.gmra.mxu3 %vm782_vm0, %v728_v56  ;;  %v3438_v42 = vmax.f32 %v2786_v36, %v9566_v19  ;;  %v3428_v36 = vmax.f32 %v9472_v13, %v9494_v35  ;;  %v3323_v35 = vmax.f32 %v8811_v14, %v9503_v43  ;;  %v3533_v13 = vmax.f32 %v3325_v54, %v3429_v27  ;;  %v630_v27 = vld [vmem:[%s8666_s12 + $0x880] sm:$0xff] }
 0x4f5   : > { %v9606_v22 = vpop.f32.mrf.mxu3 }
 0x4f6   : > { %13538 = vst [vmem:[#allocation161_spill] sm:$0xff] %v9606_v22  ;;  %v3531_v14 = vmax.f32 %v3323_v35, %v3427_v57  ;;  %v524_v35 = vld [vmem:[%s8666_s12 + $0x530] sm:$0xff] }
 0x4f8   : > { %v2468_v53 = vpop.f32.mrf.mxu0 }
 0x4f9   : > { %v3332_v22 = vmax.f32 %v8847_v41, %v2468_v53 }
 0x4fa   : > { %7758 = vmatmul.msk.f32.gmra.mxu1 %vm782_vm0, %v623_v0  ;;  %v3331_v0 = vmax.f32 %v8843_v37, %v2465_v3  ;;  %v9634_v37 = vld [vmem:[%s13317_s3] ss:$0 sm:$0xff] }
 0x4fb   : > { %7649 = vmatmul.msk.f32.gmra.mxu0 %vm782_vm0, %v514_v31  ;;  %v3437_v31 = vmax.f32 %v2783_v59, %v3095_v40  ;;  %v3434_v40 = vmax.f32 %v9554_v24, %v9577_v50  ;;  %v3540_v41 = vmax.f32 %v3332_v22, %v3436_v7  ;;  %v730_v3 = vld [vmem:[%s8666_s12 + $0xba0] sm:$0xff]  ;;  %v3432_v24 = vmax.f32 %v9526_v26, %v9544_v30  ;;  %v625_v30 = vld [vmem:[%s8666_s12 + $0x858] sm:$0xff]  ;;  %v731_v22 = vld [vmem:[%s8666_s12 + $0xba8] sm:$0xff] }
 0x4fc   : > { %7864 = vmatmul.msk.f32.gmra.mxu3 %vm782_vm0, %v729_v23  ;;  %v3641_v43 = vadd.f32 %v9634_v37, %v3533_v13  ;;  %v632_v13 = vld [vmem:[%s8666_s12 + $0x890] sm:$0xff] }
 0x4fd   : > { %v9615_v56 = vpop.f32.mrf.mxu3  ;;  %v3648_v50 = vadd.f32 %v9634_v37, %v3540_v41  ;;  %v3536_v63 = vmax.f32 %v3328_v62, %v3432_v24  ;;  %v733_v62 = vld [vmem:[%s8666_s12 + $0xbb8] sm:$0xff] }
 0x4ff   : > { %v3752_v59 = vmax.f32 %v3648_v50, 0.0  ;;  %v520_v50 = vld [vmem:[%s8666_s12 + $0x510] sm:$0xff] }
 0x500   : > { %v2471_v8 = vpop.f32.mrf.mxu0 }
 0x501   : > { %v3333_v38 = vmax.f32 %v8851_v45, %v2471_v8  ;;  %v624_v45 = vld [vmem:[%s8666_s12 + $0x850] sm:$0xff] }
 0x502   : > { %7759 = vmatmul.msk.f32.gmra.mxu1 %vm782_vm0, %v624_v45 }
 0x503   : > { %7650 = vmatmul.msk.f32.gmra.mxu0 %vm782_vm0, %v515_v60  ;;  %v9620_v60 = vpop.f32.mrf.mxu1  ;;  %v3541_v23 = vmax.f32 %v3333_v38, %v3437_v31  ;;  %v3324_v38 = vmax.f32 %v8815_v16, %v9513_v1  ;;  %v3534_v31 = vmax.f32 %v3326_v25, %v3430_v4  ;;  %v3643_v1 = vadd.f32 %v9634_v37, %v9548_v32 }
 0x504   : > { %13539 = vst [vmem:[#allocation162_spill] sm:$0xff] %v9620_v60  ;;  %7865 = vmatmul.msk.f32.gmra.mxu3 %vm782_vm0, %v730_v3 }
 0x505   : > { %v3642_v11 = vadd.f32 %v9634_v37, %v3534_v31  ;;  %v3747_v32 = vmax.f32 %v3643_v1, 0.0  ;;  %v631_v31 = vld [vmem:[%s8666_s12 + $0x888] sm:$0xff] }
 0x507   : > { %v3746_v41 = vmax.f32 %v3642_v11, 0.0  ;;  %v633_v11 = vld [vmem:[%s8666_s12 + $0x898] sm:$0xff] }
 0x508   : > { %v2474_v6 = vpop.f32.mrf.mxu0 }
 0x509   : > { %v3334_v8 = vmax.f32 %v8855_v49, %v2474_v6  ;;  %v3433_v49 = vmax.f32 %v9540_v47, %v9559_v58  ;;  %v9645_v6 = vpop.f32.mrf.mxu3  ;;  %v3538_v47 = vmax.f32 %v3330_v34, %v3434_v40  ;;  %v3532_v40 = vmax.f32 %v3324_v38, %v3428_v36  ;;  %v523_v38 = vld [vmem:[%s8666_s12 + $0x528] sm:$0xff] }
 0x50a   : > { %7760 = vmatmul.msk.f32.gmra.mxu1 %vm782_vm0, %v625_v30  ;;  %v521_v30 = vld [vmem:[%s8666_s12 + $0x518] sm:$0xff] }
 0x50b   : > { %v3542_v19 = vmax.f32 %v3334_v8, %v3438_v42  ;;  %7651 = vmatmul.msk.f32.gmra.mxu0 %vm782_vm0, %v516_v15  ;;  %v3539_v42 = vmax.f32 %v3331_v0, %v3435_v55  ;;  %v3649_v15 = vadd.f32 %v9634_v37, %v3541_v23  ;;  %v517_v55 = vld [vmem:[%s8666_s12 + $0x4f8] sm:$0xff]  ;;  %v3537_v52 = vmax.f32 %v3329_v33, %v3433_v49  ;;  %v9658_v26 = vpop.f32.mrf.mxu1  ;;  %v626_v8 = vld [vmem:[%s8666_s12 + $0x860] sm:$0xff]  ;;  %v519_v33 = vld [vmem:[%s8666_s12 + $0x508] sm:$0xff] }
 0x50c   : > { %13541 = vst [vmem:[#allocation164_spill] sm:$0xff] %v9658_v26  ;;  %v3646_v53 = vadd.f32 %v9634_v37, %v3538_v47  ;;  %7866 = vmatmul.msk.f32.gmra.mxu3 %vm782_vm0, %v731_v22  ;;  %v3644_v23 = vadd.f32 %v9634_v37, %v3536_v63  ;;  %v629_v63 = vld [vmem:[%s8666_s12 + $0x878] sm:$0xff]  ;;  %v522_v22 = vld [vmem:[%s8666_s12 + $0x520] sm:$0xff]  ;;  %v13666_v26 = vld [vmem:[#allocation11_spill] sm:$0xff] }
 0x50d   : > { %v3650_v7 = vadd.f32 %v9634_v37, %v3542_v19  ;;  %v3753_v12 = vmax.f32 %v3649_v15, 0.0  ;;  %v3647_v28 = vadd.f32 %v9634_v37, %v3539_v42  ;;  %v3645_v17 = vadd.f32 %v9634_v37, %v3537_v52  ;;  %v627_v15 = vld [vmem:[%s8666_s12 + $0x868] sm:$0xff]  ;;  %v628_v52 = vld [vmem:[%s8666_s12 + $0x870] sm:$0xff] }
 0x50e   : > { %v3750_v0 = vmax.f32 %v3646_v53, 0.0  ;;  %v3748_v45 = vmax.f32 %v3644_v23, 0.0  ;;  %v3640_v19 = vadd.f32 %v9634_v37, %v3532_v40  ;;  %v3745_v42 = vmax.f32 %v3641_v43, 0.0  ;;  %v525_v40 = vld [vmem:[%s8666_s12 + $0x538] sm:$0xff]  ;;  %v526_v43 = vld [vmem:[%s8666_s12 + $0x540] sm:$0xff] }
 0x50f   : > { %v3754_v58 = vmax.f32 %v3650_v7, 0.0  ;;  %v3751_v20 = vmax.f32 %v3647_v28, 0.0  ;;  %v3749_v16 = vmax.f32 %v3645_v17, 0.0  ;;  %v3639_v7 = vadd.f32 %v9634_v37, %v3531_v14 }
 0x510   : > { %v9652_v29 = vpop.f32.mrf.mxu0  ;;  %v3744_v24 = vmax.f32 %v3640_v19, 0.0  ;;  %v634_v19 = vld [vmem:[%s8666_s12 + $0x8a0] sm:$0xff] }
 0x511   : > { %13540 = vst [vmem:[#allocation163_spill] sm:$0xff] %v9652_v29  ;;  %4178 = vmatpush.msrb.mxu3 %v3754_v58  ;;  %v9678_v18 = vpop.f32.mrf.mxu3  ;;  %v3743_v47 = vmax.f32 %v3639_v7, 0.0  ;;  %v527_v7 = vld [vmem:[%s8666_s12 + $0x548] sm:$0xff] }
 0x512   : > { %7761 = vmatmul.msk.f32.gmra.mxu1 %vm782_vm0, %v626_v8 }
 0x513   : > { %7652 = vmatmul.msk.f32.gmra.mxu0 %vm782_vm0, %v517_v55  ;;  %4179 = vmatpush.msrb.mxu3 %v3753_v12  ;;  %v9693_v34 = vpop.f32.mrf.mxu1  ;;  %v734_v12 = vld [vmem:[%s8666_s12 + $0xbc0] sm:$0xff] }
 0x514   : > { %13543 = vst [vmem:[#allocation166_spill] sm:$0xff] %v9693_v34  ;;  %7867 = vmatmul.msk.f32.gmra.mxu3 %vm782_vm0, %v732_v9  ;;  %v739_v9 = vld [vmem:[%s8666_s12 + $0xbe8] sm:$0xff]  ;;  %v13670_v34 = vld [vmem:[#allocation120_spill] sm:$0xff] }
 0x515   : > { %4180 = vmatpush.msrb.mxu3 %v3752_v59  ;;  %v735_v59 = vld [vmem:[%s8666_s12 + $0xbc8] sm:$0xff] }
 0x517   : > { %4181 = vmatpush.msrb.mxu3 %v3751_v20  ;;  %v736_v20 = vld [vmem:[%s8666_s12 + $0xbd0] sm:$0xff] }
 0x518   : > { %v9682_v21 = vpop.f32.mrf.mxu0 }
 0x519   : > { %13542 = vst [vmem:[#allocation165_spill] sm:$0xff] %v9682_v21  ;;  %4182 = vmatpush.msrb.mxu3 %v3750_v0  ;;  %v9699_v3 = vpop.f32.mrf.mxu3  ;;  %v737_v0 = vld [vmem:[%s8666_s12 + $0xbd8] sm:$0xff] }
 0x51a   : > { %7762 = vmatmul.msk.f32.gmra.mxu1 %vm782_vm0, %v627_v15 }
 0x51b   : > { %7653 = vmatmul.msk.f32.gmra.mxu0 %vm782_vm0, %v518_v51  ;;  %4183 = vmatpush.msrb.mxu3 %v3749_v16  ;;  %v9710_v58 = vpop.f32.mrf.mxu1  ;;  %v738_v16 = vld [vmem:[%s8666_s12 + $0xbe0] sm:$0xff] }
 0x51c   : > { %7868 = vmatmul.msk.f32.gmra.mxu3 %vm782_vm0, %v733_v62 }
 0x51d   : > { %4184 = vmatpush.msrb.mxu3 %v3748_v45 }
 0x51f   : > { %4185 = vmatpush.msrb.mxu3 %v3747_v32 }
 0x520   : > { %v9701_v49 = vpop.f32.mrf.mxu0 }
 0x521   : > { %13544 = vst [vmem:[#allocation167_spill] sm:$0xff] %v9701_v49  ;;  %4186 = vmatpush.msrb.mxu3 %v3746_v41  ;;  %v9715_v55 = vpop.f32.mrf.mxu3  ;;  %v13668_v49 = vld [vmem:[#allocation127_spill] sm:$0xff] }
 0x522   : > { %7763 = vmatmul.msk.f32.gmra.mxu1 %vm782_vm0, %v628_v52  ;;  %v528_v52 = vld [vmem:[%s8666_s12 + $0x550] sm:$0xff] }
 0x523   : > { %7654 = vmatmul.msk.f32.gmra.mxu0 %vm782_vm0, %v519_v33  ;;  %4187 = vmatpush.msrb.mxu3 %v3745_v42  ;;  %v9724_v4 = vpop.f32.mrf.mxu1  ;;  %v740_v33 = vld [vmem:[%s8666_s12 + $0xbf0] sm:$0xff] }
 0x524   : > { %7869 = vmatmul.msk.f32.gmra.mxu3 %vm782_vm0, %v734_v12  ;;  %v636_v12 = vld [vmem:[%s8666_s12 + $0x8b0] sm:$0xff] }
 0x525   : > { %4188 = vmatpush.msrb.mxu3 %v3744_v24  ;;  %v635_v24 = vld [vmem:[%s8666_s12 + $0x8a8] sm:$0xff] }
 0x527   : > { %4189 = vmatpush.msrb.mxu3 %v3743_v47  ;;  %v741_v47 = vld [vmem:[%s8666_s12 + $0xbf8] sm:$0xff] }
 0x528   : > { %v9712_v37 = vpop.f32.mrf.mxu0 }
 0x529   : > { %13545 = vst [vmem:[#allocation168_spill] sm:$0xff] %v9712_v37  ;;  %v9727_v25 = vpop.f32.mrf.mxu3 }
 0x52a   : > { %7764 = vmatmul.msk.f32.gmra.mxu1 %vm782_vm0, %v629_v63  ;;  %v742_v63 = vld [vmem:[%s8666_s12 + $0xc00] sm:$0xff] }
 0x52b   : > { %7655 = vmatmul.msk.f32.gmra.mxu0 %vm782_vm0, %v520_v50  ;;  %v9737_v54 = vpop.f32.mrf.mxu1 }
 0x52c   : > { %7870 = vmatmul.msk.f32.gmra.mxu3 %vm782_vm0, %v735_v59 }
 0x530   : > { %v9722_v28 = vpop.f32.mrf.mxu0 }
 0x531   : > { %v9742_v17 = vpop.f32.mrf.mxu3 }
 0x532   : > { %7765 = vmatmul.msk.f32.gmra.mxu1 %vm782_vm0, %v630_v27  ;;  %v529_v27 = vld [vmem:[%s8666_s12 + $0x558] sm:$0xff] }
 0x533   : > { %7656 = vmatmul.msk.f32.gmra.mxu0 %vm782_vm0, %v521_v30  ;;  %v9752_v23 = vpop.f32.mrf.mxu1 }
 0x534   : > { %7871 = vmatmul.msk.f32.gmra.mxu3 %vm782_vm0, %v736_v20  ;;  %v637_v20 = vld [vmem:[%s8666_s12 + $0x8b8] sm:$0xff] }
 0x538   : > { %v9734_v53 = vpop.f32.mrf.mxu0 }
 0x539   : > { %v9756_v57 = vpop.f32.mrf.mxu3 }
 0x53a   : > { %7766 = vmatmul.msk.f32.gmra.mxu1 %vm782_vm0, %v631_v31 }
 0x53b   : > { %7657 = vmatmul.msk.f32.gmra.mxu0 %vm782_vm0, %v522_v22  ;;  %v9766_v1 = vpop.f32.mrf.mxu1 }
 0x53c   : > { %7872 = vmatmul.msk.f32.gmra.mxu3 %vm782_vm0, %v737_v0 }
 0x540   : > { %v9746_v36 = vpop.f32.mrf.mxu0 }
 0x541   : > { %v9771_v45 = vpop.f32.mrf.mxu3 }
 0x542   : > { %7767 = vmatmul.msk.f32.gmra.mxu1 %vm782_vm0, %v632_v13 }
 0x543   : > { %7658 = vmatmul.msk.f32.gmra.mxu0 %vm782_vm0, %v523_v38  ;;  %v9777_v14 = vpop.f32.mrf.mxu1  ;;  %v743_v38 = vld [vmem:[%s8666_s12 + $0xc08] sm:$0xff] }
 0x544   : > { %7873 = vmatmul.msk.f32.gmra.mxu3 %vm782_vm0, %v738_v16  ;;  %v638_v16 = vld [vmem:[%s8666_s12 + $0x8c0] sm:$0xff] }
 0x548   : > { %v9758_v51 = vpop.f32.mrf.mxu0 }
 0x549   : > { %v9783_v41 = vpop.f32.mrf.mxu3 }
 0x54a   : > { %7768 = vmatmul.msk.f32.gmra.mxu1 %vm782_vm0, %v633_v11  ;;  %13546 = vst [vmem:[#allocation169_spill] sm:$0xff] %v9783_v41  ;;  %v536_v41 = vld [vmem:[%s8666_s12 + $0x590] sm:$0xff] }
 0x54b   : > { %7659 = vmatmul.msk.f32.gmra.mxu0 %vm782_vm0, %v524_v35  ;;  %v9793_v15 = vpop.f32.mrf.mxu1  ;;  %v530_v35 = vld [vmem:[%s8666_s12 + $0x560] sm:$0xff] }
 0x54c   : > { %7874 = vmatmul.msk.f32.gmra.mxu3 %vm782_vm0, %v739_v9 }
 0x550   : > { %v9768_v8 = vpop.f32.mrf.mxu0 }
 0x551   : > { %v9797_v62 = vpop.f32.mrf.mxu3 }
 0x552   : > { %7769 = vmatmul.msk.f32.gmra.mxu1 %vm782_vm0, %v634_v19  ;;  %13547 = vst [vmem:[#allocation170_spill] sm:$0xff] %v9797_v62 }
 0x553   : > { %7660 = vmatmul.msk.f32.gmra.mxu0 %vm782_vm0, %v525_v40  ;;  %v9807_v30 = vpop.f32.mrf.mxu1  ;;  %v744_v40 = vld [vmem:[%s8666_s12 + $0xc10] sm:$0xff] }
 0x554   : > { %7875 = vmatmul.msk.f32.gmra.mxu3 %vm782_vm0, %v740_v33  ;;  %v639_v33 = vld [vmem:[%s8666_s12 + $0x8c8] sm:$0xff] }
 0x558   : > { %v9779_v32 = vpop.f32.mrf.mxu0 }
 0x559   : > { %v9811_v59 = vpop.f32.mrf.mxu3 }
 0x55a   : > { %7770 = vmatmul.msk.f32.gmra.mxu1 %vm782_vm0, %v635_v24  ;;  %13548 = vst [vmem:[#allocation171_spill] sm:$0xff] %v9811_v59  ;;  %v646_v59 = vld [vmem:[%s8666_s12 + $0x900] sm:$0xff] }
 0x55b   : > { %7661 = vmatmul.msk.f32.gmra.mxu0 %vm782_vm0, %v526_v43  ;;  %v9821_v31 = vpop.f32.mrf.mxu1  ;;  %v531_v43 = vld [vmem:[%s8666_s12 + $0x568] sm:$0xff] }
 0x55c   : > { %7876 = vmatmul.msk.f32.gmra.mxu3 %vm782_vm0, %v741_v47  ;;  %v532_v47 = vld [vmem:[%s8666_s12 + $0x570] sm:$0xff] }
 0x560   : > { %v9789_v42 = vpop.f32.mrf.mxu0 }
 0x561   : > { %v9826_v13 = vpop.f32.mrf.mxu3 }
 0x562   : > { %7771 = vmatmul.msk.f32.gmra.mxu1 %vm782_vm0, %v636_v12  ;;  %13550 = vst [vmem:[#allocation173_spill] sm:$0xff] %v9826_v13  ;;  %v640_v12 = vld [vmem:[%s8666_s12 + $0x8d0] sm:$0xff] }
 0x563   : > { %7662 = vmatmul.msk.f32.gmra.mxu0 %vm782_vm0, %v527_v7  ;;  %v9833_v11 = vpop.f32.mrf.mxu1  ;;  %v745_v7 = vld [vmem:[%s8666_s12 + $0xc18] sm:$0xff] }
 0x564   : > { %7877 = vmatmul.msk.f32.gmra.mxu3 %vm782_vm0, %v742_v63 }
 0x568   : > { %v9801_v50 = vpop.f32.mrf.mxu0 }
 0x569   : > { %v9839_v19 = vpop.f32.mrf.mxu3 }
 0x56a   : > { %7772 = vmatmul.msk.f32.gmra.mxu1 %vm782_vm0, %v637_v20  ;;  %13552 = vst [vmem:[#allocation175_spill] sm:$0xff] %v9839_v19 }
 0x56b   : > { %7663 = vmatmul.msk.f32.gmra.mxu0 %vm782_vm0, %v528_v52  ;;  %v9849_v52 = vpop.f32.mrf.mxu1 }
 0x56c   : > { %7878 = vmatmul.msk.f32.gmra.mxu3 %vm782_vm0, %v743_v38  ;;  %13554 = vst [vmem:[#allocation177_spill] sm:$0xff] %v9849_v52  ;;  %v533_v38 = vld [vmem:[%s8666_s12 + $0x578] sm:$0xff] }
 0x570   : > { %v9813_v22 = vpop.f32.mrf.mxu0 }
 0x571   : > { %v9853_v63 = vpop.f32.mrf.mxu3 }
 0x572   : > { %7773 = vmatmul.msk.f32.gmra.mxu1 %vm782_vm0, %v638_v16  ;;  %13555 = vst [vmem:[#allocation178_spill] sm:$0xff] %v9853_v63  ;;  %v649_v63 = vld [vmem:[%s8666_s12 + $0x918] sm:$0xff] }
 0x573   : > { %7664 = vmatmul.msk.f32.gmra.mxu0 %vm782_vm0, %v529_v27  ;;  %v746_v27 = vld [vmem:[%s8666_s12 + $0xc20] sm:$0xff]  ;;  %v9863_v16 = vpop.f32.mrf.mxu1 }
 0x574   : > { %7879 = vmatmul.msk.f32.gmra.mxu3 %vm782_vm0, %v744_v40  ;;  %13557 = vst [vmem:[#allocation180_spill] sm:$0xff] %v9863_v16  ;;  %v747_v40 = vld [vmem:[%s8666_s12 + $0xc28] sm:$0xff]  ;;  %v644_v16 = vld [vmem:[%s8666_s12 + $0x8f0] sm:$0xff] }
 0x578   : > { %v9823_v0 = vpop.f32.mrf.mxu0 }
 0x579   : > { %13549 = vst [vmem:[#allocation172_spill] sm:$0xff] %v9823_v0 }
 0x57a   : > { %7774 = vmatmul.msk.f32.gmra.mxu1 %vm782_vm0, %v639_v33 }
 0x57b   : > { %7665 = vmatmul.msk.f32.gmra.mxu0 %vm782_vm0, %v530_v35  ;;  %v641_v35 = vld [vmem:[%s8666_s12 + $0x8d8] sm:$0xff] }
 0x57c   : > { %7880 = vmatmul.msk.f32.gmra.mxu3 %vm782_vm0, %v745_v7  ;;  %v534_v7 = vld [vmem:[%s8666_s12 + $0x580] sm:$0xff] }
 0x580   : > { %v9835_v9 = vpop.f32.mrf.mxu0 }
 0x581   : > { %13551 = vst [vmem:[#allocation174_spill] sm:$0xff] %v9835_v9 }
 0x582   : > { %7775 = vmatmul.msk.f32.gmra.mxu1 %vm782_vm0, %v640_v12  ;;  %v748_v12 = vld [vmem:[%s8666_s12 + $0xc30] sm:$0xff] }
 0x583   : > { %7666 = vmatmul.msk.f32.gmra.mxu0 %vm782_vm0, %v531_v43  ;;  %v9867_v43 = vpop.f32.mrf.mxu3 }
 0x584   : > { %7881 = vmatmul.msk.f32.gmra.mxu3 %vm782_vm0, %v746_v27  ;;  %13558 = vst [vmem:[#allocation181_spill] sm:$0xff] %v9867_v43  ;;  %v9877_v27 = vpop.f32.mrf.mxu1  ;;  %v543_v43 = vld [vmem:[%s8666_s12 + $0x5c8] sm:$0xff] }
 0x585   : > { %13560 = vst [vmem:[#allocation183_spill] sm:$0xff] %v9877_v27  ;;  %v538_v27 = vld [vmem:[%s8666_s12 + $0x5a0] sm:$0xff] }
 0x588   : > { %v9845_v24 = vpop.f32.mrf.mxu0 }
 0x589   : > { %13553 = vst [vmem:[#allocation176_spill] sm:$0xff] %v9845_v24 }
 0x58a   : > { %7776 = vmatmul.msk.f32.gmra.mxu1 %vm782_vm0, %v641_v35  ;;  %v535_v35 = vld [vmem:[%s8666_s12 + $0x588] sm:$0xff] }
 0x58b   : > { %7667 = vmatmul.msk.f32.gmra.mxu0 %vm782_vm0, %v532_v47  ;;  %v642_v47 = vld [vmem:[%s8666_s12 + $0x8e0] sm:$0xff]  ;;  %v9882_v0 = vpop.f32.mrf.mxu3 }
 0x58c   : > { %7882 = vmatmul.msk.f32.gmra.mxu3 %vm782_vm0, %v747_v40  ;;  %13562 = vst [vmem:[#allocation185_spill] sm:$0xff] %v9882_v0  ;;  %v643_v40 = vld [vmem:[%s8666_s12 + $0x8e8] sm:$0xff]  ;;  %v544_v0 = vld [vmem:[%s8666_s12 + $0x5d0] sm:$0xff] }
 0x590   : > { %v9857_v20 = vpop.f32.mrf.mxu0 }
 0x591   : > { %13556 = vst [vmem:[#allocation179_spill] sm:$0xff] %v9857_v20  ;;  %v752_v20 = vld [vmem:[%s8666_s12 + $0xc50] sm:$0xff] }
 0x592   : > { %7777 = vmatmul.msk.f32.gmra.mxu1 %vm782_vm0, %v642_v47  ;;  %v9889_v47 = vpop.f32.mrf.mxu1 }
 0x593   : > { %7668 = vmatmul.msk.f32.gmra.mxu0 %vm782_vm0, %v533_v38  ;;  %13563 = vst [vmem:[#allocation186_spill] sm:$0xff] %v9889_v47  ;;  %v9895_v9 = vpop.f32.mrf.mxu3  ;;  %v539_v47 = vld [vmem:[%s8666_s12 + $0x5a8] sm:$0xff] }
 0x594   : > { %7883 = vmatmul.msk.f32.gmra.mxu3 %vm782_vm0, %v748_v12  ;;  %13565 = vst [vmem:[#allocation188_spill] sm:$0xff] %v9895_v9  ;;  %v750_v12 = vld [vmem:[%s8666_s12 + $0xc40] sm:$0xff] }
 0x598   : > { %v9869_v33 = vpop.f32.mrf.mxu0 }
 0x599   : > { %13559 = vst [vmem:[#allocation182_spill] sm:$0xff] %v9869_v33 }
 0x59a   : > { %7778 = vmatmul.msk.f32.gmra.mxu1 %vm782_vm0, %v643_v40  ;;  %v537_v40 = vld [vmem:[%s8666_s12 + $0x598] sm:$0xff]  ;;  %v9905_v62 = vpop.f32.mrf.mxu1 }
 0x59b   : > { %7669 = vmatmul.msk.f32.gmra.mxu0 %vm782_vm0, %v534_v7  ;;  %v749_v7 = vld [vmem:[%s8666_s12 + $0xc38] sm:$0xff]  ;;  %13567 = vst [vmem:[#allocation190_spill] sm:$0xff] %v9905_v62  ;;  %v9909_v24 = vpop.f32.mrf.mxu3  ;;  %v540_v62 = vld [vmem:[%s8666_s12 + $0x5b0] sm:$0xff] }
 0x59c   : > { %7884 = vmatmul.msk.f32.gmra.mxu3 %vm782_vm0, %v749_v7  ;;  %v645_v7 = vld [vmem:[%s8666_s12 + $0x8f8] sm:$0xff]  ;;  %13568 = vst [vmem:[#allocation191_spill] sm:$0xff] %v9909_v24 }
 0x5a0   : > { %v9879_v38 = vpop.f32.mrf.mxu0 }
 0x5a1   : > { %13561 = vst [vmem:[#allocation184_spill] sm:$0xff] %v9879_v38  ;;  %v541_v38 = vld [vmem:[%s8666_s12 + $0x5b8] sm:$0xff] }
 0x5a2   : > { %7779 = vmatmul.msk.f32.gmra.mxu1 %vm782_vm0, %v644_v16 }
 0x5a3   : > { %7670 = vmatmul.msk.f32.gmra.mxu0 %vm782_vm0, %v535_v35 }
 0x5a4   : > { %7885 = vmatmul.msk.f32.gmra.mxu3 %vm782_vm0, %v750_v12  ;;  %v9919_v12 = vpop.f32.mrf.mxu1 }
 0x5a5   : > { %13570 = vst [vmem:[#allocation193_spill] sm:$0xff] %v9919_v12 }
 0x5a8   : > { %v9891_v52 = vpop.f32.mrf.mxu0 }
 0x5a9   : > { %13564 = vst [vmem:[#allocation187_spill] sm:$0xff] %v9891_v52 }
 0x5aa   : > { %7780 = vmatmul.msk.f32.gmra.mxu1 %vm782_vm0, %v645_v7 }
 0x5ab   : > { %7671 = vmatmul.msk.f32.gmra.mxu0 %vm782_vm0, %v536_v41  ;;  %v751_v41 = vld [vmem:[%s8666_s12 + $0xc48] sm:$0xff] }
 0x5ac   : > { %7886 = vmatmul.msk.f32.gmra.mxu3 %vm782_vm0, %v751_v41  ;;  %v647_v41 = vld [vmem:[%s8666_s12 + $0x908] sm:$0xff]  ;;  %v9933_v13 = vpop.f32.mrf.mxu1 }
 0x5ad   : > { %13573 = vst [vmem:[#allocation196_spill] sm:$0xff] %v9933_v13 }
 0x5b0   : > { %v9901_v35 = vpop.f32.mrf.mxu0 }
 0x5b1   : > { %13566 = vst [vmem:[#allocation189_spill] sm:$0xff] %v9901_v35  ;;  %v651_v35 = vld [vmem:[%s8666_s12 + $0x928] sm:$0xff] }
 0x5b2   : > { %7781 = vmatmul.msk.f32.gmra.mxu1 %vm782_vm0, %v646_v59 }
 0x5b3   : > { %7672 = vmatmul.msk.f32.gmra.mxu0 %vm782_vm0, %v537_v40  ;;  %v9922_v40 = vpop.f32.mrf.mxu3 }
 0x5b4   : > { %13571 = vst [vmem:[#allocation194_spill] sm:$0xff] %v9922_v40  ;;  %7887 = vmatmul.msk.f32.gmra.mxu3 %vm782_vm0, %v752_v20  ;;  %v648_v20 = vld [vmem:[%s8666_s12 + $0x910] sm:$0xff] }
 0x5b8   : > { %v9913_v16 = vpop.f32.mrf.mxu0 }
 0x5b9   : > { %13569 = vst [vmem:[#allocation192_spill] sm:$0xff] %v9913_v16 }
 0x5ba   : > { %7782 = vmatmul.msk.f32.gmra.mxu1 %vm782_vm0, %v647_v41  ;;  %v9945_v41 = vpop.f32.mrf.mxu1 }
 0x5bb   : > { %7673 = vmatmul.msk.f32.gmra.mxu0 %vm782_vm0, %v538_v27  ;;  %v753_v27 = vld [vmem:[%s8666_s12 + $0xc58] sm:$0xff]  ;;  %v9935_v59 = vpop.f32.mrf.mxu3  ;;  %13576 = vst [vmem:[#allocation199_spill] sm:$0xff] %v9945_v41 }
 0x5bc   : > { %13574 = vst [vmem:[#allocation197_spill] sm:$0xff] %v9935_v59  ;;  %7888 = vmatmul.msk.f32.gmra.mxu3 %vm782_vm0, %v753_v27 }
 0x5c0   : > { %v9925_v7 = vpop.f32.mrf.mxu0 }
 0x5c1   : > { %13572 = vst [vmem:[#allocation195_spill] sm:$0xff] %v9925_v7 }
 0x5c2   : > { %7783 = vmatmul.msk.f32.gmra.mxu1 %vm782_vm0, %v648_v20  ;;  %v542_v20 = vld [vmem:[%s8666_s12 + $0x5c0] sm:$0xff]  ;;  %v9961_v52 = vpop.f32.mrf.mxu1 }
 0x5c3   : > { %7674 = vmatmul.msk.f32.gmra.mxu0 %vm782_vm0, %v539_v47  ;;  %v754_v47 = vld [vmem:[%s8666_s12 + $0xc60] sm:$0xff]  ;;  %v9951_v12 = vpop.f32.mrf.mxu3  ;;  %13580 = vst [vmem:[#allocation203_spill] sm:$0xff] %v9961_v52 }
 0x5c4   : > { %7889 = vmatmul.msk.f32.gmra.mxu3 %vm782_vm0, %v754_v47  ;;  %13578 = vst [vmem:[#allocation201_spill] sm:$0xff] %v9951_v12  ;;  %v650_v47 = vld [vmem:[%s8666_s12 + $0x920] sm:$0xff]  ;;  %v563_v12 = vld [vmem:[%s8666_s12 + $0x668] sm:$0xff] }
 0x5c8   : > { %v9937_v33 = vpop.f32.mrf.mxu0 }
 0x5c9   : > { %13575 = vst [vmem:[#allocation198_spill] sm:$0xff] %v9937_v33  ;;  %v561_v33 = vld [vmem:[%s8666_s12 + $0x658] sm:$0xff] }
 0x5ca   : > { %7784 = vmatmul.msk.f32.gmra.mxu1 %vm782_vm0, %v649_v63 }
 0x5cb   : > { %7675 = vmatmul.msk.f32.gmra.mxu0 %vm782_vm0, %v540_v62  ;;  %v755_v62 = vld [vmem:[%s8666_s12 + $0xc68] sm:$0xff]  ;;  %v9965_v13 = vpop.f32.mrf.mxu3 }
 0x5cc   : > { %7890 = vmatmul.msk.f32.gmra.mxu3 %vm782_vm0, %v755_v62  ;;  %13581 = vst [vmem:[#allocation204_spill] sm:$0xff] %v9965_v13  ;;  %v9975_v62 = vpop.f32.mrf.mxu1 }
 0x5cd   : > { %13583 = vst [vmem:[#allocation206_spill] sm:$0xff] %v9975_v62 }
 0x5d0   : > { %v9947_v19 = vpop.f32.mrf.mxu0 }
 0x5d1   : > { %13577 = vst [vmem:[#allocation200_spill] sm:$0xff] %v9947_v19 }
 0x5d2   : > { %7785 = vmatmul.msk.f32.gmra.mxu1 %vm782_vm0, %v650_v47 }
 0x5d3   : > { %7676 = vmatmul.msk.f32.gmra.mxu0 %vm782_vm0, %v541_v38  ;;  %v756_v38 = vld [vmem:[%s8666_s12 + $0xc70] sm:$0xff]  ;;  %v9979_v41 = vpop.f32.mrf.mxu3 }
 0x5d4   : > { %7891 = vmatmul.msk.f32.gmra.mxu3 %vm782_vm0, %v756_v38  ;;  %13584 = vst [vmem:[#allocation207_spill] sm:$0xff] %v9979_v41  ;;  %v758_v38 = vld [vmem:[%s8666_s12 + $0xc80] sm:$0xff] }
 0x5d8   : > { %v9957_v27 = vpop.f32.mrf.mxu0 }
 0x5d9   : > { %13579 = vst [vmem:[#allocation202_spill] sm:$0xff] %v9957_v27 }
 0x5da   : > { %7786 = vmatmul.msk.f32.gmra.mxu1 %vm782_vm0, %v651_v35  ;;  %v759_v35 = vld [vmem:[%s8666_s12 + $0xc88] sm:$0xff] }
 0x5db   : > { %7677 = vmatmul.msk.f32.gmra.mxu0 %vm782_vm0, %v542_v20  ;;  %v757_v20 = vld [vmem:[%s8666_s12 + $0xc78] sm:$0xff]  ;;  %v9987_v16 = vpop.f32.mrf.mxu3 }
 0x5dc   : > { %7892 = vmatmul.msk.f32.gmra.mxu3 %vm782_vm0, %v757_v20  ;;  %13586 = vst [vmem:[#allocation209_spill] sm:$0xff] %v9987_v16  ;;  %v546_v20 = vld [vmem:[%s8666_s12 + $0x5e0] sm:$0xff] }
 0x5e0   : > { %v9969_v63 = vpop.f32.mrf.mxu0 }
 0x5e1   : > { %13582 = vst [vmem:[#allocation205_spill] sm:$0xff] %v9969_v63  ;;  %v545_v63 = vld [vmem:[%s8666_s12 + $0x5d8] sm:$0xff] }
 0x5e3   : > { %7678 = vmatmul.msk.f32.gmra.mxu0 %vm782_vm0, %v543_v43 }
 0x5e4   : > { %7893 = vmatmul.msk.f32.gmra.mxu3 %vm782_vm0, %v758_v38  ;;  %v547_v38 = vld [vmem:[%s8666_s12 + $0x5e8] sm:$0xff] }
 0x5e8   : > { %v9981_v47 = vpop.f32.mrf.mxu0 }
 0x5e9   : > { %13585 = vst [vmem:[#allocation208_spill] sm:$0xff] %v9981_v47  ;;  %v760_v47 = vld [vmem:[%s8666_s12 + $0xc90] sm:$0xff] }
 0x5eb   : > { %7679 = vmatmul.msk.f32.gmra.mxu0 %vm782_vm0, %v544_v0  ;;  %v9999_v0 = vpop.f32.mrf.mxu3 }
 0x5ec   : > { %7894 = vmatmul.msk.f32.gmra.mxu3 %vm782_vm0, %v759_v35  ;;  %13589 = vst [vmem:[#allocation212_spill] sm:$0xff] %v9999_v0  ;;  %v548_v35 = vld [vmem:[%s8666_s12 + $0x5f0] sm:$0xff] }
 0x5f0   : > { %v9989_v43 = vpop.f32.mrf.mxu0 }
 0x5f1   : > { %13587 = vst [vmem:[#allocation210_spill] sm:$0xff] %v9989_v43  ;;  %v761_v43 = vld [vmem:[%s8666_s12 + $0xc98] sm:$0xff] }
 0x5f3   : > { %7680 = vmatmul.msk.f32.gmra.mxu0 %vm782_vm0, %v545_v63  ;;  %v10008_v63 = vpop.f32.mrf.mxu3 }
 0x5f4   : > { %7895 = vmatmul.msk.f32.gmra.mxu3 %vm782_vm0, %v760_v47  ;;  %13591 = vst [vmem:[#allocation214_spill] sm:$0xff] %v10008_v63  ;;  %v549_v47 = vld [vmem:[%s8666_s12 + $0x5f8] sm:$0xff] }
 0x5f8   : > { %v9995_v13 = vpop.f32.mrf.mxu0 }
 0x5f9   : > { %13588 = vst [vmem:[#allocation211_spill] sm:$0xff] %v9995_v13 }
 0x5fb   : > { %7681 = vmatmul.msk.f32.gmra.mxu0 %vm782_vm0, %v546_v20  ;;  %v762_v20 = vld [vmem:[%s8666_s12 + $0xca0] sm:$0xff]  ;;  %v10017_v13 = vpop.f32.mrf.mxu3 }
 0x5fc   : > { %7896 = vmatmul.msk.f32.gmra.mxu3 %vm782_vm0, %v761_v43  ;;  %13593 = vst [vmem:[#allocation216_spill] sm:$0xff] %v10017_v13  ;;  %v550_v43 = vld [vmem:[%s8666_s12 + $0x600] sm:$0xff] }
 0x600   : > { %v10003_v41 = vpop.f32.mrf.mxu0 }
 0x601   : > { %13590 = vst [vmem:[#allocation213_spill] sm:$0xff] %v10003_v41 }
 0x603   : > { %7682 = vmatmul.msk.f32.gmra.mxu0 %vm782_vm0, %v547_v38  ;;  %v763_v38 = vld [vmem:[%s8666_s12 + $0xca8] sm:$0xff]  ;;  %v10025_v41 = vpop.f32.mrf.mxu3 }
 0x604   : > { %7897 = vmatmul.msk.f32.gmra.mxu3 %vm782_vm0, %v762_v20  ;;  %13595 = vst [vmem:[#allocation218_spill] sm:$0xff] %v10025_v41  ;;  %v551_v20 = vld [vmem:[%s8666_s12 + $0x608] sm:$0xff] }
 0x608   : > { %v10011_v16 = vpop.f32.mrf.mxu0 }
 0x609   : > { %13592 = vst [vmem:[#allocation215_spill] sm:$0xff] %v10011_v16 }
 0x60b   : > { %7683 = vmatmul.msk.f32.gmra.mxu0 %vm782_vm0, %v548_v35  ;;  %v764_v35 = vld [vmem:[%s8666_s12 + $0xcb0] sm:$0xff] }
 0x60c   : > { %7898 = vmatmul.msk.f32.gmra.mxu3 %vm782_vm0, %v763_v38  ;;  %v552_v38 = vld [vmem:[%s8666_s12 + $0x610] sm:$0xff] }
 0x610   : > { %v10019_v0 = vpop.f32.mrf.mxu0 }
 0x611   : > { %13594 = vst [vmem:[#allocation217_spill] sm:$0xff] %v10019_v0 }
 0x613   : > { %7684 = vmatmul.msk.f32.gmra.mxu0 %vm782_vm0, %v549_v47  ;;  %v10037_v47 = vpop.f32.mrf.mxu3 }
 0x614   : > { %7899 = vmatmul.msk.f32.gmra.mxu3 %vm782_vm0, %v764_v35  ;;  %13598 = vst [vmem:[#allocation221_spill] sm:$0xff] %v10037_v47  ;;  %v553_v35 = vld [vmem:[%s8666_s12 + $0x618] sm:$0xff] }
 0x618   : > { %v10027_v16 = vpop.f32.mrf.mxu0 }
 0x619   : > { %13596 = vst [vmem:[#allocation219_spill] sm:$0xff] %v10027_v16  ;;  %v765_v16 = vld [vmem:[%s8666_s12 + $0xcb8] sm:$0xff] }
 0x61b   : > { %7685 = vmatmul.msk.f32.gmra.mxu0 %vm782_vm0, %v550_v43  ;;  %v10046_v43 = vpop.f32.mrf.mxu3 }
 0x61c   : > { %7900 = vmatmul.msk.f32.gmra.mxu3 %vm782_vm0, %v765_v16  ;;  %13600 = vst [vmem:[#allocation223_spill] sm:$0xff] %v10046_v43  ;;  %v554_v16 = vld [vmem:[%s8666_s12 + $0x620] sm:$0xff] }
 0x620   : > { %v10033_v0 = vpop.f32.mrf.mxu0 }
 0x621   : > { %13597 = vst [vmem:[#allocation220_spill] sm:$0xff] %v10033_v0  ;;  %v766_v0 = vld [vmem:[%s8666_s12 + $0xcc0] sm:$0xff] }
 0x623   : > { %7686 = vmatmul.msk.f32.gmra.mxu0 %vm782_vm0, %v551_v20  ;;  %v767_v20 = vld [vmem:[%s8666_s12 + $0xcc8] sm:$0xff] }
 0x624   : > { %7901 = vmatmul.msk.f32.gmra.mxu3 %vm782_vm0, %v766_v0  ;;  %v555_v0 = vld [vmem:[%s8666_s12 + $0x628] sm:$0xff] }
 0x628   : > { %v10041_v41 = vpop.f32.mrf.mxu0 }
 0x629   : > { %13599 = vst [vmem:[#allocation222_spill] sm:$0xff] %v10041_v41  ;;  %v10055_v41 = vpop.f32.mrf.mxu3 }
 0x62a   : > { %13602 = vst [vmem:[#allocation225_spill] sm:$0xff] %v10055_v41 }
 0x62b   : > { %7687 = vmatmul.msk.f32.gmra.mxu0 %vm782_vm0, %v552_v38  ;;  %v768_v38 = vld [vmem:[%s8666_s12 + $0xcd0] sm:$0xff] }
 0x62c   : > { %7902 = vmatmul.msk.f32.gmra.mxu3 %vm782_vm0, %v767_v20  ;;  %v556_v20 = vld [vmem:[%s8666_s12 + $0x630] sm:$0xff] }
 0x630   : > { %v10049_v13 = vpop.f32.mrf.mxu0 }
 0x631   : > { %13601 = vst [vmem:[#allocation224_spill] sm:$0xff] %v10049_v13  ;;  %v10063_v13 = vpop.f32.mrf.mxu3 }
 0x632   : > { %13604 = vst [vmem:[#allocation227_spill] sm:$0xff] %v10063_v13  ;;  %v770_v13 = vld [vmem:[%s8666_s12 + $0xce0] sm:$0xff] }
 0x633   : > { %7688 = vmatmul.msk.f32.gmra.mxu0 %vm782_vm0, %v553_v35  ;;  %v769_v35 = vld [vmem:[%s8666_s12 + $0xcd8] sm:$0xff] }
 0x634   : > { %7903 = vmatmul.msk.f32.gmra.mxu3 %vm782_vm0, %v768_v38  ;;  %v557_v38 = vld [vmem:[%s8666_s12 + $0x638] sm:$0xff] }
 0x638   : > { %v10057_v47 = vpop.f32.mrf.mxu0 }
 0x639   : > { %13603 = vst [vmem:[#allocation226_spill] sm:$0xff] %v10057_v47 }
 0x63b   : > { %7689 = vmatmul.msk.f32.gmra.mxu0 %vm782_vm0, %v554_v16  ;;  %v10075_v16 = vpop.f32.mrf.mxu3 }
 0x63c   : > { %7904 = vmatmul.msk.f32.gmra.mxu3 %vm782_vm0, %v769_v35  ;;  %13607 = vst [vmem:[#allocation230_spill] sm:$0xff] %v10075_v16  ;;  %v558_v35 = vld [vmem:[%s8666_s12 + $0x640] sm:$0xff] }
 0x640   : > { %v10065_v43 = vpop.f32.mrf.mxu0 }
 0x641   : > { %13605 = vst [vmem:[#allocation228_spill] sm:$0xff] %v10065_v43  ;;  %v771_v43 = vld [vmem:[%s8666_s12 + $0xce8] sm:$0xff] }
 0x643   : > { %7690 = vmatmul.msk.f32.gmra.mxu0 %vm782_vm0, %v555_v0  ;;  %v10084_v0 = vpop.f32.mrf.mxu3 }
 0x644   : > { %7905 = vmatmul.msk.f32.gmra.mxu3 %vm782_vm0, %v770_v13  ;;  %13609 = vst [vmem:[#allocation232_spill] sm:$0xff] %v10084_v0  ;;  %v559_v13 = vld [vmem:[%s8666_s12 + $0x648] sm:$0xff] }
 0x648   : > { %v10071_v41 = vpop.f32.mrf.mxu0 }
 0x649   : > { %13606 = vst [vmem:[#allocation229_spill] sm:$0xff] %v10071_v41 }
 0x64b   : > { %7691 = vmatmul.msk.f32.gmra.mxu0 %vm782_vm0, %v556_v20  ;;  %v772_v20 = vld [vmem:[%s8666_s12 + $0xcf0] sm:$0xff]  ;;  %v10093_v16 = vpop.f32.mrf.mxu3 }
 0x64c   : > { %7906 = vmatmul.msk.f32.gmra.mxu3 %vm782_vm0, %v771_v43  ;;  %13611 = vst [vmem:[#allocation234_spill] sm:$0xff] %v10093_v16  ;;  %v560_v43 = vld [vmem:[%s8666_s12 + $0x650] sm:$0xff]  ;;  %v10152_v16 = vpop.f32.mrf.mxu1 }
 0x64d   : > { %13626 = vst [vmem:[#allocation249_spill] sm:$0xff] %v10152_v16 }
 0x650   : > { %v10079_v47 = vpop.f32.mrf.mxu0 }
 0x651   : > { %13608 = vst [vmem:[#allocation231_spill] sm:$0xff] %v10079_v47 }
 0x653   : > { %7692 = vmatmul.msk.f32.gmra.mxu0 %vm782_vm0, %v557_v38  ;;  %v773_v38 = vld [vmem:[%s8666_s12 + $0xcf8] sm:$0xff]  ;;  %v10101_v0 = vpop.f32.mrf.mxu3 }
 0x654   : > { %7907 = vmatmul.msk.f32.gmra.mxu3 %vm782_vm0, %v772_v20  ;;  %13613 = vst [vmem:[#allocation236_spill] sm:$0xff] %v10101_v0  ;;  %v10161_v47 = vpop.f32.mrf.mxu1 }
 0x655   : > { %13629 = vst [vmem:[#allocation252_spill] sm:$0xff] %v10161_v47 }
 0x658   : > { %v10087_v63 = vpop.f32.mrf.mxu0 }
 0x659   : > { %13610 = vst [vmem:[#allocation233_spill] sm:$0xff] %v10087_v63  ;;  %v585_v63 = vld [vmem:[%s8666_s12 + $0x718] sm:$0xff] }
 0x65b   : > { %7693 = vmatmul.msk.f32.gmra.mxu0 %vm782_vm0, %v558_v35 }
 0x65c   : > { %7908 = vmatmul.msk.f32.gmra.mxu3 %vm782_vm0, %v773_v38 }
 0x660   : > { %v10095_v27 = vpop.f32.mrf.mxu0 }
 0x661   : > { %13612 = vst [vmem:[#allocation235_spill] sm:$0xff] %v10095_v27 }
 0x663   : > { %7694 = vmatmul.msk.f32.gmra.mxu0 %vm782_vm0, %v559_v13  ;;  %v562_v13 = vld [vmem:[%s8666_s12 + $0x660] sm:$0xff] }
 0x668   : > { %v10103_v19 = vpop.f32.mrf.mxu0 }
 0x669   : > { %13614 = vst [vmem:[#allocation237_spill] sm:$0xff] %v10103_v19 }
 0x66b   : > { %7695 = vmatmul.msk.f32.gmra.mxu0 %vm782_vm0, %v560_v43  ;;  %v564_v43 = vld [vmem:[%s8666_s12 + $0x670] sm:$0xff] }
 0x670   : > { %v10108_v35 = vpop.f32.mrf.mxu0 }
 0x671   : > { %13615 = vst [vmem:[#allocation238_spill] sm:$0xff] %v10108_v35 }
 0x673   : > { %7696 = vmatmul.msk.f32.gmra.mxu0 %vm782_vm0, %v561_v33  ;;  %v565_v33 = vld [vmem:[%s8666_s12 + $0x678] sm:$0xff] }
 0x678   : > { %v10112_v20 = vpop.f32.mrf.mxu0 }
 0x679   : > { %13616 = vst [vmem:[#allocation239_spill] sm:$0xff] %v10112_v20 }
 0x67b   : > { %7697 = vmatmul.msk.f32.gmra.mxu0 %vm782_vm0, %v562_v13  ;;  %v566_v13 = vld [vmem:[%s8666_s12 + $0x680] sm:$0xff] }
 0x680   : > { %v10116_v7 = vpop.f32.mrf.mxu0 }
 0x681   : > { %13617 = vst [vmem:[#allocation240_spill] sm:$0xff] %v10116_v7 }
 0x683   : > { %7698 = vmatmul.msk.f32.gmra.mxu0 %vm782_vm0, %v563_v12  ;;  %v567_v12 = vld [vmem:[%s8666_s12 + $0x688] sm:$0xff] }
 0x688   : > { %v10120_v38 = vpop.f32.mrf.mxu0 }
 0x689   : > { %13618 = vst [vmem:[#allocation241_spill] sm:$0xff] %v10120_v38 }
 0x68b   : > { %7699 = vmatmul.msk.f32.gmra.mxu0 %vm782_vm0, %v564_v43  ;;  %v568_v43 = vld [vmem:[%s8666_s12 + $0x690] sm:$0xff] }
 0x690   : > { %v10124_v59 = vpop.f32.mrf.mxu0 }
 0x691   : > { %13619 = vst [vmem:[#allocation242_spill] sm:$0xff] %v10124_v59  ;;  %v591_v59 = vld [vmem:[%s8666_s12 + $0x748] sm:$0xff] }
 0x693   : > { %7700 = vmatmul.msk.f32.gmra.mxu0 %vm782_vm0, %v565_v33  ;;  %v569_v33 = vld [vmem:[%s8666_s12 + $0x698] sm:$0xff] }
 0x698   : > { %v10128_v40 = vpop.f32.mrf.mxu0 }
 0x699   : > { %13620 = vst [vmem:[#allocation243_spill] sm:$0xff] %v10128_v40 }
 0x69b   : > { %7701 = vmatmul.msk.f32.gmra.mxu0 %vm782_vm0, %v566_v13  ;;  %v570_v13 = vld [vmem:[%s8666_s12 + $0x6a0] sm:$0xff] }
 0x6a0   : > { %v10132_v62 = vpop.f32.mrf.mxu0 }
 0x6a1   : > { %13621 = vst [vmem:[#allocation244_spill] sm:$0xff] %v10132_v62 }
 0x6a3   : > { %7702 = vmatmul.msk.f32.gmra.mxu0 %vm782_vm0, %v567_v12  ;;  %v571_v12 = vld [vmem:[%s8666_s12 + $0x6a8] sm:$0xff] }
 0x6a8   : > { %v10136_v24 = vpop.f32.mrf.mxu0 }
 0x6a9   : > { %13622 = vst [vmem:[#allocation245_spill] sm:$0xff] %v10136_v24 }
 0x6ab   : > { %7703 = vmatmul.msk.f32.gmra.mxu0 %vm782_vm0, %v568_v43 }
 0x6b0   : > { %v10140_v52 = vpop.f32.mrf.mxu0 }
 0x6b1   : > { %13623 = vst [vmem:[#allocation246_spill] sm:$0xff] %v10140_v52  ;;  %v572_v52 = vld [vmem:[%s8666_s12 + $0x6b0] sm:$0xff] }
 0x6b3   : > { %7704 = vmatmul.msk.f32.gmra.mxu0 %vm782_vm0, %v569_v33 }
 0x6b8   : > { %v10144_v9 = vpop.f32.mrf.mxu0 }
 0x6b9   : > { %13624 = vst [vmem:[#allocation247_spill] sm:$0xff] %v10144_v9  ;;  %v573_v9 = vld [vmem:[%s8666_s12 + $0x6b8] sm:$0xff] }
 0x6bb   : > { %7705 = vmatmul.msk.f32.gmra.mxu0 %vm782_vm0, %v570_v13 }
 0x6c0   : > { %v10148_v41 = vpop.f32.mrf.mxu0 }
 0x6c1   : > { %13625 = vst [vmem:[#allocation248_spill] sm:$0xff] %v10148_v41  ;;  %v10167_v41 = vpop.f32.mrf.mxu1 }
 0x6c2   : > { %13631 = vst [vmem:[#allocation254_spill] sm:$0xff] %v10167_v41  ;;  %v578_v41 = vld [vmem:[%s8666_s12 + $0x6e0] sm:$0xff] }
 0x6c3   : > { %7706 = vmatmul.msk.f32.gmra.mxu0 %vm782_vm0, %v571_v12  ;;  %v574_v12 = vld [vmem:[%s8666_s12 + $0x6c0] sm:$0xff] }
 0x6c8   : > { %v10154_v43 = vpop.f32.mrf.mxu0 }
 0x6c9   : > { %13627 = vst [vmem:[#allocation250_spill] sm:$0xff] %v10154_v43 }
 0x6cb   : > { %7707 = vmatmul.msk.f32.gmra.mxu0 %vm782_vm0, %v572_v52  ;;  %v575_v52 = vld [vmem:[%s8666_s12 + $0x6c8] sm:$0xff] }
 0x6d0   : > { %v10158_v33 = vpop.f32.mrf.mxu0 }
 0x6d1   : > { %13628 = vst [vmem:[#allocation251_spill] sm:$0xff] %v10158_v33  ;;  %v10174_v33 = vpop.f32.mrf.mxu1 }
 0x6d2   : > { %13633 = vst [vmem:[#allocation256_spill] sm:$0xff] %v10174_v33 }
 0x6d3   : > { %7708 = vmatmul.msk.f32.gmra.mxu0 %vm782_vm0, %v573_v9  ;;  %v576_v9 = vld [vmem:[%s8666_s12 + $0x6d0] sm:$0xff] }
 0x6d8   : > { %v10164_v13 = vpop.f32.mrf.mxu0 }
 0x6d9   : > { %13630 = vst [vmem:[#allocation253_spill] sm:$0xff] %v10164_v13  ;;  %v10180_v13 = vpop.f32.mrf.mxu1 }
 0x6da   : > { %13635 = vst [vmem:[#allocation258_spill] sm:$0xff] %v10180_v13  ;;  %v580_v13 = vld [vmem:[%s8666_s12 + $0x6f0] sm:$0xff] }
 0x6db   : > { %7709 = vmatmul.msk.f32.gmra.mxu0 %vm782_vm0, %v574_v12  ;;  %v577_v12 = vld [vmem:[%s8666_s12 + $0x6d8] sm:$0xff] }
 0x6e0   : > { %v10170_v43 = vpop.f32.mrf.mxu0 }
 0x6e1   : > { %13632 = vst [vmem:[#allocation255_spill] sm:$0xff] %v10170_v43 }
 0x6e3   : > { %7710 = vmatmul.msk.f32.gmra.mxu0 %vm782_vm0, %v575_v52  ;;  %v10189_v52 = vpop.f32.mrf.mxu1 }
 0x6e4   : > { %13638 = vst [vmem:[#allocation261_spill] sm:$0xff] %v10189_v52  ;;  %v581_v52 = vld [vmem:[%s8666_s12 + $0x6f8] sm:$0xff] }
 0x6e8   : > { %v10176_v16 = vpop.f32.mrf.mxu0 }
 0x6e9   : > { %13634 = vst [vmem:[#allocation257_spill] sm:$0xff] %v10176_v16 }
 0x6eb   : > { %7711 = vmatmul.msk.f32.gmra.mxu0 %vm782_vm0, %v576_v9  ;;  %v579_v9 = vld [vmem:[%s8666_s12 + $0x6e8] sm:$0xff]  ;;  %v10195_v33 = vpop.f32.mrf.mxu1 }
 0x6ec   : > { %13640 = vst [vmem:[#allocation263_spill] sm:$0xff] %v10195_v33  ;;  %v582_v33 = vld [vmem:[%s8666_s12 + $0x700] sm:$0xff] }
 0x6f0   : > { %v10182_v47 = vpop.f32.mrf.mxu0 }
 0x6f1   : > { %13636 = vst [vmem:[#allocation259_spill] sm:$0xff] %v10182_v47 }
 0x6f3   : > { %7712 = vmatmul.msk.f32.gmra.mxu0 %vm782_vm0, %v577_v12  ;;  %v10202_v12 = vpop.f32.mrf.mxu1 }
 0x6f4   : > { %13642 = vst [vmem:[#allocation265_spill] sm:$0xff] %v10202_v12  ;;  %v584_v12 = vld [vmem:[%s8666_s12 + $0x710] sm:$0xff] }
 0x6f8   : > { %v10186_v43 = vpop.f32.mrf.mxu0 }
 0x6f9   : > { %13637 = vst [vmem:[#allocation260_spill] sm:$0xff] %v10186_v43 }
 0x6fb   : > { %7713 = vmatmul.msk.f32.gmra.mxu0 %vm782_vm0, %v578_v41  ;;  %v10208_v41 = vpop.f32.mrf.mxu1 }
 0x6fc   : > { %13644 = vst [vmem:[#allocation267_spill] sm:$0xff] %v10208_v41 }
 0x700   : > { %v10192_v16 = vpop.f32.mrf.mxu0 }
 0x701   : > { %13639 = vst [vmem:[#allocation262_spill] sm:$0xff] %v10192_v16 }
 0x703   : > { %7714 = vmatmul.msk.f32.gmra.mxu0 %vm782_vm0, %v579_v9 }
 0x708   : > { %v10198_v47 = vpop.f32.mrf.mxu0 }
 0x709   : > { %13641 = vst [vmem:[#allocation264_spill] sm:$0xff] %v10198_v47  ;;  %v583_v47 = vld [vmem:[%s8666_s12 + $0x708] sm:$0xff] }
 0x70b   : > { %7715 = vmatmul.msk.f32.gmra.mxu0 %vm782_vm0, %v580_v13  ;;  %v10217_v13 = vpop.f32.mrf.mxu1 }
 0x70c   : > { %13645 = vst [vmem:[#allocation268_spill] sm:$0xff] %v10217_v13 }
 0x710   : > { %v10204_v43 = vpop.f32.mrf.mxu0 }
 0x711   : > { %13643 = vst [vmem:[#allocation266_spill] sm:$0xff] %v10204_v43  ;;  %v10220_v43 = vpop.f32.mrf.mxu3 }
 0x712   : > { %13646 = vst [vmem:[#allocation269_spill] sm:$0xff] %v10220_v43  ;;  %v586_v43 = vld [vmem:[%s8666_s12 + $0x720] sm:$0xff] }
 0x713   : > { %7716 = vmatmul.msk.f32.gmra.mxu0 %vm782_vm0, %v581_v52  ;;  %v10225_v41 = vpop.f32.mrf.mxu1 }
 0x714   : > { %13647 = vst [vmem:[#allocation270_spill] sm:$0xff] %v10225_v41 }
 0x718   : > { %v10210_v16 = vpop.f32.mrf.mxu0 }
 0x71b   : > { %7717 = vmatmul.msk.f32.gmra.mxu0 %vm782_vm0, %v582_v33  ;;  %v10228_v33 = vpop.f32.mrf.mxu3  ;;  %v10234_v13 = vpop.f32.mrf.mxu1 }
 0x71c   : > { %13648 = vst [vmem:[#allocation271_spill] sm:$0xff] %v10228_v33  ;;  %v587_v33 = vld [vmem:[%s8666_s12 + $0x728] sm:$0xff] }
 0x71d   : > { %13649 = vst [vmem:[#allocation272_spill] sm:$0xff] %v10234_v13  ;;  %v588_v13 = vld [vmem:[%s8666_s12 + $0x730] sm:$0xff] }
 0x720   : > { %v10214_v9 = vpop.f32.mrf.mxu0 }
 0x723   : > { %7718 = vmatmul.msk.f32.gmra.mxu0 %vm782_vm0, %v583_v47  ;;  %v10239_v27 = vpop.f32.mrf.mxu3  ;;  %v10242_v41 = vpop.f32.mrf.mxu1 }
 0x724   : > { %13650 = vst [vmem:[#allocation273_spill] sm:$0xff] %v10239_v27 }
 0x725   : > { %13651 = vst [vmem:[#allocation274_spill] sm:$0xff] %v10242_v41  ;;  %v589_v41 = vld [vmem:[%s8666_s12 + $0x738] sm:$0xff] }
 0x728   : > { %v10222_v52 = vpop.f32.mrf.mxu0 }
 0x72b   : > { %7719 = vmatmul.msk.f32.gmra.mxu0 %vm782_vm0, %v584_v12  ;;  %v10247_v19 = vpop.f32.mrf.mxu3  ;;  %v10251_v35 = vpop.f32.mrf.mxu1 }
 0x72c   : > { %13652 = vst [vmem:[#allocation275_spill] sm:$0xff] %v10247_v19 }
 0x72d   : > { %13653 = vst [vmem:[#allocation276_spill] sm:$0xff] %v10251_v35 }
 0x730   : > { %v10230_v0 = vpop.f32.mrf.mxu0 }
 0x733   : > { %7720 = vmatmul.msk.f32.gmra.mxu0 %vm782_vm0, %v585_v63  ;;  %v10254_v27 = vpop.f32.mrf.mxu3  ;;  %v10257_v20 = vpop.f32.mrf.mxu1 }
 0x734   : > { %13654 = vst [vmem:[#allocation277_spill] sm:$0xff] %v10254_v27 }
 0x735   : > { %13655 = vst [vmem:[#allocation278_spill] sm:$0xff] %v10257_v20  ;;  %v592_v20 = vld [vmem:[%s8666_s12 + $0x750] sm:$0xff] }
 0x738   : > { %v10236_v47 = vpop.f32.mrf.mxu0 }
 0x73b   : > { %7721 = vmatmul.msk.f32.gmra.mxu0 %vm782_vm0, %v586_v43  ;;  %v10260_v7 = vpop.f32.mrf.mxu3  ;;  %v10264_v38 = vpop.f32.mrf.mxu1 }
 0x73c   : > { %13656 = vst [vmem:[#allocation279_spill] sm:$0xff] %v10260_v7 }
 0x73d   : > { %13657 = vst [vmem:[#allocation280_spill] sm:$0xff] %v10264_v38 }
 0x740   : > { %v10244_v12 = vpop.f32.mrf.mxu0 }
 0x743   : > { %7722 = vmatmul.msk.f32.gmra.mxu0 %vm782_vm0, %v587_v33  ;;  %v590_v33 = vld [vmem:[%s8666_s12 + $0x740] sm:$0xff]  ;;  %v10270_v27 = vpop.f32.mrf.mxu1  ;;  %s357_s12 = scalar_lea.vmem %s13324_s10, %s7492_s27 }
 0x744   : > { %13659 = vst [vmem:[#allocation282_spill] sm:$0xff] %v10270_v27  ;;  %v3306_v27 = vmax.f32 %v8743_v44, %v9327_v2  ;;  %v13669_v44 = vld [vmem:[#allocation10_spill] sm:$0xff] }
 0x745   : > { %v3304_v2 = vmax.f32 %v13669_v44, %v13668_v49  ;;  %v13678_v44 = vld [vmem:[#allocation7_spill] sm:$0xff] }
 0x748   : > { %v2690_v63 = vpop.f32.mrf.mxu0 }
 0x74b   : > { %7723 = vmatmul.msk.f32.gmra.mxu0 %vm782_vm0, %v588_v13  ;;  %v10267_v13 = vpop.f32.mrf.mxu3  ;;  %v10276_v7 = vpop.f32.mrf.mxu1 }
 0x74c   : > { %13658 = vst [vmem:[#allocation281_spill] sm:$0xff] %v10267_v13  ;;  %v3307_v13 = vmax.f32 %v8747_v46, %v9337_v61  ;;  %v13667_v46 = vld [vmem:[#allocation122_spill] sm:$0xff] }
 0x74d   : > { %13661 = vst [vmem:[#allocation284_spill] sm:$0xff] %v10276_v7  ;;  %v13664_v7 = vld [vmem:[#allocation128_spill] sm:$0xff] }
 0x750   : > { %v2693_v43 = vpop.f32.mrf.mxu0 }
 0x751   : > { %v3407_v37 = vmax.f32 %v2693_v43, %v13670_v34  ;;  %v13674_v34 = vld [vmem:[#allocation125_spill] sm:$0xff]  ;;  %v13675_v43 = vld [vmem:[#allocation8_spill] sm:$0xff] }
 0x753   : > { %7724 = vmatmul.msk.f32.gmra.mxu0 %vm782_vm0, %v589_v41  ;;  %v10273_v62 = vpop.f32.mrf.mxu3 }
 0x754   : > { %13660 = vst [vmem:[#allocation283_spill] sm:$0xff] %v10273_v62  ;;  %v3308_v62 = vmax.f32 %v8751_v48, %v9347_v5  ;;  %v10301_v5 = vld [vmem:[%s13317_s3] ss:$0 sm:$0xff] }
 0x758   : > { %v2696_v19 = vpop.f32.mrf.mxu0 }
 0x759   : > { %v3408_v61 = vmax.f32 %v2696_v19, %v13667_v46 }
 0x75b   : > { %7725 = vmatmul.msk.f32.gmra.mxu0 %vm782_vm0, %v590_v33  ;;  %v10278_v33 = vpop.f32.mrf.mxu3  ;;  %v3512_v49 = vmax.f32 %v3304_v2, %v3408_v61  ;;  %v13679_v61 = vld [vmem:[#allocation114_spill] sm:$0xff] }
 0x75c   : > { %13662 = vst [vmem:[#allocation285_spill] sm:$0xff] %v10278_v33  ;;  %v13665_v33 = vld [vmem:[#allocation129_spill] sm:$0xff]  ;;  %v3404_v2 = vmax.f32 %v10236_v47, %v13679_v61 }
 0x75d   : > { %v13684_v47 = vld [vmem:[#allocation5_spill] sm:$0xff] }
 0x760   : > { %v2699_v35 = vpop.f32.mrf.mxu0 }
 0x763   : > { %7726 = vmatmul.msk.f32.gmra.mxu0 %vm782_vm0, %v591_v59 }
 0x768   : > { %v2702_v40 = vpop.f32.mrf.mxu0 }
 0x769   : > { %v3410_v59 = vmax.f32 %v2702_v40, %v9292_v10 }
 0x76b   : > { %7727 = vmatmul.msk.f32.gmra.mxu0 %vm782_vm0, %v592_v20  ;;  %v13663_v20 = vld [vmem:[#allocation124_spill] sm:$0xff]  ;;  %v3514_v10 = vmax.f32 %v3306_v27, %v3410_v59  ;;  %v10307_v27 = vpop.f32.mrf.mxu3 }
 0x76c   : > { %v3409_v29 = vmax.f32 %v2699_v35, %v13663_v20  ;;  %v13672_v35 = vld [vmem:[#allocation9_spill] sm:$0xff]  ;;  %v13676_v59 = vld [vmem:[#allocation116_spill] sm:$0xff] }
 0x76d   : > { %v3405_v20 = vmax.f32 %v10244_v12, %v13676_v59 }
 0x770   : > { %v2705_v41 = vpop.f32.mrf.mxu0 }
 0x771   : > { %v3411_v38 = vmax.f32 %v2705_v41, %v9300_v39  ;;  %v3305_v39 = vmax.f32 %v13666_v26, %v13665_v33  ;;  %v10292_v41 = vpop.f32.mrf.mxu1 }
 0x773   : > { %v3515_v60 = vmax.f32 %v3307_v13, %v3411_v38  ;;  %v3513_v48 = vmax.f32 %v3305_v39, %v3409_v29  ;;  %v3622_v29 = vadd.f32 %v10301_v5, %v3514_v10  ;;  %v3302_v13 = vmax.f32 %v13675_v43, %v13674_v34  ;;  %v13683_v43 = vld [vmem:[#allocation119_spill] sm:$0xff] }
 0x775   : > { %v3623_v26 = vadd.f32 %v10301_v5, %v3515_v60  ;;  %v3621_v46 = vadd.f32 %v10301_v5, %v3513_v48 }
 0x777   : > { %v3727_v39 = vmax.f32 %v3623_v26, 0.0 }
 0x778   : > { %v2708_v24 = vpop.f32.mrf.mxu0 }
 0x779   : > { %v3412_v21 = vmax.f32 %v2708_v24, %v13664_v7  ;;  %v13671_v7 = vld [vmem:[#allocation126_spill] sm:$0xff]  ;;  %v10325_v12 = vpop.f32.mrf.mxu1 }
 0x77a   : > { %v3303_v19 = vmax.f32 %v13672_v35, %v13671_v7  ;;  %v3620_v7 = vadd.f32 %v10301_v5, %v3512_v49  ;;  %v13680_v35 = vld [vmem:[#allocation121_spill] sm:$0xff] }
 0x77b   : > { %v3516_v40 = vmax.f32 %v3308_v62, %v3412_v21  ;;  %v13673_v21 = vld [vmem:[#allocation118_spill] sm:$0xff] }
 0x77c   : > { %v3406_v62 = vmax.f32 %v2690_v63, %v13673_v21  ;;  %v3511_v60 = vmax.f32 %v3303_v19, %v3407_v37  ;;  %v13681_v21 = vld [vmem:[#allocation6_spill] sm:$0xff]  ;;  %v13682_v37 = vld [vmem:[#allocation112_spill] sm:$0xff]  ;;  %v3725_v19 = vmax.f32 %v3621_v46, 0.0  ;;  %v3724_v59 = vmax.f32 %v3620_v7, 0.0 }
 0x77d   : > { %v3624_v24 = vadd.f32 %v10301_v5, %v3516_v40  ;;  %v13677_v40 = vld [vmem:[#allocation123_spill] sm:$0xff]  ;;  %v3300_v34 = vmax.f32 %v13681_v21, %v13680_v35  ;;  %v3403_v26 = vmax.f32 %v10230_v0, %v13682_v37  ;;  %v13688_v46 = vld [vmem:[#allocation108_spill] sm:$0xff]  ;;  %v13691_v21 = vld [vmem:[#allocation106_spill] sm:$0xff] }
 0x77e   : > { %v3301_v63 = vmax.f32 %v13678_v44, %v13677_v40  ;;  %v3510_v10 = vmax.f32 %v3302_v13, %v3406_v62  ;;  %v3299_v62 = vmax.f32 %v13684_v47, %v13683_v43  ;;  %v13685_v13 = vld [vmem:[#allocation110_spill] sm:$0xff]  ;;  %v13686_v40 = vld [vmem:[#allocation117_spill] sm:$0xff]  ;;  %v13687_v44 = vld [vmem:[#allocation4_spill] sm:$0xff] }
 0x77f   : > { %v3728_v38 = vmax.f32 %v3624_v24, 0.0  ;;  %v3726_v24 = vmax.f32 %v3622_v29, 0.0  ;;  %v3402_v29 = vmax.f32 %v10222_v52, %v13685_v13  ;;  %v3508_v49 = vmax.f32 %v3300_v34, %v3404_v2  ;;  %v13689_v2 = vld [vmem:[#allocation115_spill] sm:$0xff]  ;;  %v13692_v43 = vld [vmem:[#allocation113_spill] sm:$0xff]  ;;  %v13693_v47 = vld [vmem:[#allocation2_spill] sm:$0xff] }
 0x780   : > { %v10313_v33 = vpop.f32.mrf.mxu0  ;;  %v3509_v48 = vmax.f32 %v3301_v63, %v3405_v20  ;;  %v3298_v61 = vmax.f32 %v13687_v44, %v13686_v40  ;;  %v10339_v20 = vpop.f32.mrf.mxu3  ;;  %v3507_v63 = vmax.f32 %v3299_v62, %v3403_v26  ;;  %v13690_v35 = vld [vmem:[#allocation3_spill] sm:$0xff]  ;;  %v3296_v13 = vmax.f32 %v13693_v47, %v13692_v43  ;;  %v13694_v26 = vld [vmem:[#allocation38_spill] sm:$0xff] }
 0x781   : > { %3952 = vmatpush.msrb.mxu1 %v3728_v38  ;;  %v3619_v38 = vadd.f32 %v10301_v5, %v3511_v60  ;;  %v3401_v60 = vmax.f32 %v10214_v9, %v13688_v46  ;;  %v3297_v7 = vmax.f32 %v13690_v35, %v13689_v2  ;;  %v3451_v9 = vmax.f32 %v9833_v11, %v9771_v45  ;;  %v13699_v35 = vld [vmem:[#allocation34_spill] sm:$0xff] }
 0x782   : > { %v3617_v52 = vadd.f32 %v10301_v5, %v3509_v48  ;;  %v3506_v34 = vmax.f32 %v3298_v61, %v3402_v29  ;;  %v3347_v48 = vmax.f32 %v13694_v26, %v9813_v22  ;;  %v13695_v29 = vld [vmem:[#allocation37_spill] sm:$0xff]  ;;  %v3449_v22 = vmax.f32 %v9807_v30, %v9742_v17  ;;  %v13696_v61 = vld [vmem:[#allocation36_spill] sm:$0xff] }
 0x783   : > { %3953 = vmatpush.msrb.mxu1 %v3727_v39  ;;  %v3618_v39 = vadd.f32 %v10301_v5, %v3510_v10  ;;  %v3400_v10 = vmax.f32 %v10210_v16, %v13691_v21  ;;  %v3450_v16 = vmax.f32 %v9821_v31, %v9756_v57  ;;  %v3345_v46 = vmax.f32 %v13696_v61, %v9789_v42 }
 0x784   : > { %v3721_v62 = vmax.f32 %v3617_v52, 0.0  ;;  %v3614_v45 = vadd.f32 %v10301_v5, %v3506_v34  ;;  %v3448_v31 = vmax.f32 %v9793_v15, %v9727_v25  ;;  %v3447_v42 = vmax.f32 %v9777_v14, %v9715_v55  ;;  %v10389_v55 = vld [vmem:[%s13315_s1] sm:$0xff] }
 0x785   : > { %3954 = vmatpush.msrb.mxu1 %v3726_v24  ;;  %v3723_v24 = vmax.f32 %v3619_v38, 0.0  ;;  %v3722_v37 = vmax.f32 %v3618_v39, 0.0  ;;  %v3505_v38 = vmax.f32 %v3297_v7, %v3401_v60  ;;  %v10360_v39 = vpop.f32.mrf.mxu1  ;;  %v3504_v40 = vmax.f32 %v3296_v13, %v3400_v10 }
 0x786   : > { %v3555_v60 = vmax.f32 %v3347_v48, %v3451_v9  ;;  %v3718_v17 = vmax.f32 %v3614_v45, 0.0  ;;  %v3343_v7 = vmax.f32 %v13699_v35, %v9768_v8  ;;  %v3553_v21 = vmax.f32 %v3345_v46, %v3449_v22  ;;  %v13707_v45 = vld [vmem:[#allocation29_spill] sm:$0xff] }
 0x787   : > { %3955 = vmatpush.msrb.mxu1 %v3725_v19  ;;  %v3616_v19 = vadd.f32 %v10301_v5, %v3508_v49  ;;  %v3346_v49 = vmax.f32 %v13695_v29, %v9801_v50  ;;  %v3613_v50 = vadd.f32 %v10301_v5, %v3505_v38  ;;  %v3612_v30 = vadd.f32 %v10301_v5, %v3504_v40  ;;  %v13705_v40 = vld [vmem:[#allocation161_spill] sm:$0xff] }
 0x788   : > { %v10337_v0 = vpop.f32.mrf.mxu0  ;;  %v10374_v2 = vpop.f32.mrf.mxu3  ;;  %v3663_v10 = vadd.f32 %v10301_v5, %v3555_v60  ;;  %v3446_v34 = vmax.f32 %v9766_v1, %v9699_v3  ;;  %v3445_v14 = vmax.f32 %v9752_v23, %v9678_v18  ;;  %v3551_v3 = vmax.f32 %v3343_v7, %v3447_v42  ;;  %v13702_v18 = vld [vmem:[#allocation31_spill] sm:$0xff]  ;;  %v13710_v60 = vld [vmem:[#allocation166_spill] sm:$0xff]  ;;  %v13714_v42 = vld [vmem:[#allocation164_spill] sm:$0xff] }
 0x789   : > { %3956 = vmatpush.msrb.mxu1 %v3724_v59  ;;  %v3615_v59 = vadd.f32 %v10301_v5, %v3507_v63  ;;  %v3720_v44 = vmax.f32 %v3616_v19, 0.0  ;;  %v13697_v63 = vld [vmem:[#allocation35_spill] sm:$0xff]  ;;  %v3554_v52 = vmax.f32 %v3346_v49, %v3450_v16  ;;  %13698 = vst [vmem:[#allocation124_spill] sm:$0xff] %v10374_v2  ;;  %v3717_v25 = vmax.f32 %v3613_v50, 0.0  ;;  %v13715_v7 = vld [vmem:[#allocation165_spill] sm:$0xff]  ;;  %v13846_v2 = vld [vmem:[#allocation226_spill] sm:$0xff] }
 0x78a   : > { %v3716_v19 = vmax.f32 %v3612_v30, 0.0  ;;  %v3767_v1 = vmax.f32 %v3663_v10, 0.0  ;;  %v3661_v9 = vadd.f32 %v10301_v5, %v3553_v21  ;;  %v3444_v26 = vmax.f32 %v9737_v54, %v9645_v6  ;;  %v13713_v30 = vld [vmem:[#allocation159_spill] sm:$0xff] }
 0x78b   : > { %3957 = vmatpush.msrb.mxu1 %v3723_v24  ;;  %v3719_v57 = vmax.f32 %v3615_v59, 0.0  ;;  %v3344_v24 = vmax.f32 %v13697_v63, %v9779_v32  ;;  %v13700_v32 = vld [vmem:[#allocation33_spill] sm:$0xff]  ;;  %v3662_v8 = vadd.f32 %v10301_v5, %v3554_v52  ;;  %v3340_v23 = vmax.f32 %v13702_v18, %v9734_v53  ;;  %v13703_v59 = vld [vmem:[#allocation30_spill] sm:$0xff]  ;;  %v13716_v21 = vld [vmem:[#allocation27_spill] sm:$0xff] }
 0x78c   : > { %v3342_v15 = vmax.f32 %v13700_v32, %v9758_v51  ;;  %v13701_v51 = vld [vmem:[#allocation32_spill] sm:$0xff]  ;;  %v3339_v16 = vmax.f32 %v13703_v59, %v9722_v28  ;;  %v3765_v6 = vmax.f32 %v3661_v9, 0.0  ;;  %v3659_v54 = vadd.f32 %v10301_v5, %v3551_v3 }
 0x78d   : > { %3958 = vmatpush.msrb.mxu1 %v3722_v37  ;;  %v3552_v37 = vmax.f32 %v3344_v24, %v3448_v31  ;;  %v3341_v47 = vmax.f32 %v13701_v51, %v9746_v36  ;;  %v10398_v13 = vpop.f32.mrf.mxu1  ;;  %v3766_v38 = vmax.f32 %v3662_v8, 0.0  ;;  %v3442_v53 = vmax.f32 %v9710_v58, %v13705_v40  ;;  %v13711_v31 = vld [vmem:[#allocation167_spill] sm:$0xff]  ;;  %v13712_v58 = vld [vmem:[#allocation28_spill] sm:$0xff]  ;;  %v13720_v51 = vld [vmem:[#allocation26_spill] sm:$0xff] }
 0x78e   : > { %v3550_v48 = vmax.f32 %v3342_v15, %v3446_v34  ;;  %v3548_v61 = vmax.f32 %v3340_v23, %v3444_v26  ;;  %v3337_v63 = vmax.f32 %v13712_v58, %v13711_v31  ;;  %v3763_v52 = vmax.f32 %v3659_v54, 0.0  ;;  %v13721_v26 = vld [vmem:[#allocation78_spill] sm:$0xff]  ;;  %v13722_v23 = vld [vmem:[#allocation245_spill] sm:$0xff]  ;;  %v13727_v40 = vld [vmem:[#allocation244_spill] sm:$0xff] }
 0x78f   : > { %3959 = vmatpush.msrb.mxu1 %v3721_v62  ;;  %v3660_v36 = vadd.f32 %v10301_v5, %v3552_v37  ;;  %v3443_v62 = vmax.f32 %v9724_v4, %v9615_v56  ;;  %v3549_v29 = vmax.f32 %v3341_v47, %v3445_v14  ;;  %v10422_v56 = vld [vmem:[%s13315_s1 + $0x8] sm:$0xff]  ;;  %v13709_v4 = vld [vmem:[#allocation160_spill] sm:$0xff]  ;;  %v3440_v35 = vmax.f32 %v13714_v42, %v13713_v30  ;;  %v13717_v37 = vld [vmem:[#allocation158_spill] sm:$0xff] }
 0x790   : > { %v10365_v11 = vpop.f32.mrf.mxu0  ;;  %v10412_v49 = vpop.f32.mrf.mxu3  ;;  %13708 = vst [vmem:[#allocation129_spill] sm:$0xff] %v10422_v56  ;;  %v3658_v28 = vadd.f32 %v10301_v5, %v3550_v48  ;;  %v3336_v10 = vmax.f32 %v13716_v21, %v13715_v7  ;;  %v3656_v34 = vadd.f32 %v10301_v5, %v3548_v61  ;;  %v13719_v14 = vld [vmem:[#allocation163_spill] sm:$0xff]  ;;  %v3490_v18 = vmax.f32 %v13721_v26, %v10339_v20  ;;  %v13723_v48 = vld [vmem:[#allocation85_spill] sm:$0xff]  ;;  %v13735_v30 = vld [vmem:[#allocation242_spill] sm:$0xff] }
 0x791   : > { %3960 = vmatpush.msrb.mxu1 %v3720_v44  ;;  %13704 = vst [vmem:[#allocation128_spill] sm:$0xff] %v10412_v49  ;;  %v13706_v44 = vld [vmem:[#allocation168_spill] sm:$0xff]  ;;  %v3764_v46 = vmax.f32 %v3660_v36, 0.0  ;;  %v3547_v24 = vmax.f32 %v3339_v16, %v3443_v62  ;;  %v3335_v47 = vmax.f32 %v13720_v51, %v13719_v14  ;;  %v13728_v20 = vld [vmem:[#allocation83_spill] sm:$0xff] }
 0x792   : > { %v3338_v22 = vmax.f32 %v13707_v45, %v13706_v44  ;;  %v3762_v15 = vmax.f32 %v3658_v28, 0.0  ;;  %v3544_v36 = vmax.f32 %v3336_v10, %v3440_v35  ;;  %v3760_v59 = vmax.f32 %v3656_v34, 0.0  ;;  %v10455_v16 = vld [vmem:[%s13315_s1 + $0x10] sm:$0xff]  ;;  %v13730_v28 = vld [vmem:[#allocation74_spill] sm:$0xff]  ;;  %v13736_v42 = vld [vmem:[#allocation79_spill] sm:$0xff] }
 0x793   : > { %3961 = vmatpush.msrb.mxu1 %v3719_v57  ;;  %v3441_v57 = vmax.f32 %v13710_v60, %v13709_v4  ;;  %v3655_v9 = vadd.f32 %v10301_v5, %v3547_v24  ;;  %13725 = vst [vmem:[#allocation122_spill] sm:$0xff] %v10455_v16  ;;  %v13731_v60 = vld [vmem:[#allocation243_spill] sm:$0xff]  ;;  %v3383_v35 = vmax.f32 %v13736_v42, %v13735_v30  ;;  %v13738_v34 = vld [vmem:[#allocation70_spill] sm:$0xff] }
 0x794   : > { %v13733_v24 = vld [vmem:[#allocation283_spill] sm:$0xff] }
 0x795   : > { %3962 = vmatpush.msrb.mxu1 %v3718_v17  ;;  %v3657_v17 = vadd.f32 %v10301_v5, %v3549_v29  ;;  %v10438_v32 = vpop.f32.mrf.mxu1  ;;  %v3545_v3 = vmax.f32 %v3337_v63, %v3441_v57  ;;  %v13732_v57 = vld [vmem:[#allocation81_spill] sm:$0xff]  ;;  %v3652_v63 = vadd.f32 %v10301_v5, %v3544_v36  ;;  %v13743_v26 = vld [vmem:[#allocation75_spill] sm:$0xff] }
 0x796   : > { %v3384_v31 = vmax.f32 %v13732_v57, %v13731_v60  ;;  %v13750_v60 = vld [vmem:[#allocation238_spill] sm:$0xff] }
 0x797   : > { %3963 = vmatpush.msrb.mxu1 %v3717_v25  ;;  %v3546_v25 = vmax.f32 %v3338_v22, %v3442_v53  ;;  %v3385_v53 = vmax.f32 %v13728_v20, %v13727_v40  ;;  %v3759_v22 = vmax.f32 %v3655_v9, 0.0  ;;  %v3653_v61 = vadd.f32 %v10301_v5, %v3545_v3  ;;  %v13742_v9 = vld [vmem:[#allocation240_spill] sm:$0xff]  ;;  %v13747_v20 = vld [vmem:[#allocation239_spill] sm:$0xff] }
 0x798   : > { %v10394_v43 = vpop.f32.mrf.mxu0  ;;  %v10450_v62 = vpop.f32.mrf.mxu3  ;;  %v3756_v3 = vmax.f32 %v3652_v63, 0.0  ;;  %v13752_v63 = vld [vmem:[#allocation273_spill] sm:$0xff] }
 0x799   : > { %3964 = vmatpush.msrb.mxu1 %v3716_v19  ;;  %v13718_v19 = vld [vmem:[#allocation162_spill] sm:$0xff]  ;;  %13724 = vst [vmem:[#allocation11_spill] sm:$0xff] %v10450_v62  ;;  %v3654_v29 = vadd.f32 %v10301_v5, %v3546_v25  ;;  %v3757_v10 = vmax.f32 %v3653_v61, 0.0  ;;  %v13820_v62 = vld [vmem:[#allocation152_spill] sm:$0xff] }
 0x79a   : > { %7909 = vmatmul.msk.f32.vlgmr.msrb.gmra.mxu1 %vm3852_vm1, %v10389_v55  ;;  %v3439_v8 = vmax.f32 %v13718_v19, %v13717_v37  ;;  %v13739_v19 = vld [vmem:[#allocation241_spill] sm:$0xff] }
 0x79b   : > { %4291 = vmatpush.msra.mxu1 %v3767_v1  ;;  %v3761_v1 = vmax.f32 %v3657_v17, 0.0 }
 0x79c   : > { %v3543_v45 = vmax.f32 %v3335_v47, %v3439_v8  ;;  %v13740_v8 = vld [vmem:[#allocation77_spill] sm:$0xff] }
 0x79d   : > { %4292 = vmatpush.msra.mxu1 %v3766_v38  ;;  %v3386_v38 = vmax.f32 %v13723_v48, %v13722_v23  ;;  %v2927_v21 = vpop.f32.mrf.mxu1  ;;  %v3382_v14 = vmax.f32 %v13740_v8, %v13739_v19  ;;  %v13744_v23 = vld [vmem:[#allocation279_spill] sm:$0xff] }
 0x79e   : > { %v3651_v25 = vadd.f32 %v10301_v5, %v3543_v45  ;;  %v3485_v48 = vmax.f32 %v2927_v21, %v13744_v23  ;;  %v13762_v23 = vld [vmem:[#allocation236_spill] sm:$0xff] }
 0x79f   : > { %4293 = vmatpush.msra.mxu1 %v3765_v6  ;;  %v13726_v6 = vld [vmem:[#allocation76_spill] sm:$0xff]  ;;  %v3594_v58 = vmax.f32 %v3386_v38, %v3490_v18  ;;  %v3381_v18 = vmax.f32 %v13743_v26, %v13742_v9 }
 0x7a0   : > { %v10427_v50 = vpop.f32.mrf.mxu0  ;;  %v3489_v54 = vmax.f32 %v13726_v6, %v10307_v27  ;;  %v3758_v27 = vmax.f32 %v3654_v29, 0.0  ;;  %v13745_v29 = vld [vmem:[#allocation277_spill] sm:$0xff]  ;;  %v3755_v40 = vmax.f32 %v3651_v25, 0.0  ;;  %v13757_v25 = vld [vmem:[#allocation68_spill] sm:$0xff] }
 0x7a1   : > { %4294 = vmatpush.msra.mxu1 %v3764_v46  ;;  %v13729_v46 = vld [vmem:[#allocation285_spill] sm:$0xff]  ;;  %v3702_v47 = vadd.f32 %v10301_v5, %v3594_v58  ;;  %v3484_v6 = vmax.f32 %v10438_v32, %v13745_v29  ;;  %v13751_v32 = vld [vmem:[#allocation71_spill] sm:$0xff] }
 0x7a2   : > { %7910 = vmatmul.msk.f32.gmra.mxu1 %vm3852_vm1, %v10422_v56  ;;  %v3488_v4 = vmax.f32 %v13730_v28, %v13729_v46  ;;  %v3593_v7 = vmax.f32 %v3385_v53, %v3489_v54  ;;  %v10495_v54 = vpop.f32.mrf.mxu3  ;;  %v13748_v53 = vld [vmem:[#allocation73_spill] sm:$0xff]  ;;  %v13749_v28 = vld [vmem:[#allocation275_spill] sm:$0xff]  ;;  %v3379_v57 = vmax.f32 %v13751_v32, %v13750_v60 }
 0x7a3   : > { %4295 = vmatpush.msra.mxu1 %v3763_v52  ;;  %v13734_v52 = vld [vmem:[#allocation72_spill] sm:$0xff]  ;;  %13746 = vst [vmem:[#allocation10_spill] sm:$0xff] %v10495_v54  ;;  %v3380_v45 = vmax.f32 %v13748_v53, %v13747_v20  ;;  %v3806_v61 = vmax.f32 %v3702_v47, 0.0  ;;  %v13760_v47 = vld [vmem:[#allocation233_spill] sm:$0xff]  ;;  %v13765_v29 = vld [vmem:[#allocation231_spill] sm:$0xff] }
 0x7a4   : > { %v3487_v17 = vmax.f32 %v13734_v52, %v13733_v24  ;;  %v3592_v51 = vmax.f32 %v3384_v31, %v3488_v4  ;;  %v3483_v4 = vmax.f32 %v10398_v13, %v13749_v28  ;;  %v3589_v31 = vmax.f32 %v3381_v18, %v3485_v48  ;;  %v13753_v52 = vld [vmem:[#allocation237_spill] sm:$0xff]  ;;  %v13763_v48 = vld [vmem:[#allocation284_spill] sm:$0xff] }
 0x7a5   : > { %4296 = vmatpush.msra.mxu1 %v3762_v15  ;;  %v13737_v15 = vld [vmem:[#allocation281_spill] sm:$0xff]  ;;  %v3482_v24 = vmax.f32 %v10360_v39, %v13752_v63  ;;  %v3588_v42 = vmax.f32 %v3380_v45, %v3484_v6  ;;  %v10521_v39 = vld [vmem:[%s13315_s1 + $0x20] sm:$0xff]  ;;  %v10548_v63 = vld [vmem:[%s13315_s1 + $0x28] sm:$0xff] }
 0x7a6   : > { %v3486_v37 = vmax.f32 %v13738_v34, %v13737_v15  ;;  %v3591_v38 = vmax.f32 %v3383_v35, %v3487_v17  ;;  %v3700_v46 = vadd.f32 %v10301_v5, %v3592_v51  ;;  %v13754_v17 = vld [vmem:[#allocation69_spill] sm:$0xff]  ;;  %v3587_v34 = vmax.f32 %v3379_v57, %v3483_v4  ;;  %13758 = vst [vmem:[#allocation120_spill] sm:$0xff] %v10521_v39  ;;  %v13766_v6 = vld [vmem:[#allocation66_spill] sm:$0xff] }
 0x7a7   : > { %4297 = vmatpush.msra.mxu1 %v3761_v1  ;;  %v10485_v1 = vld [vmem:[%s13315_s1 + $0x18] sm:$0xff]  ;;  %v3378_v30 = vmax.f32 %v13754_v17, %v13753_v52  ;;  %v3697_v8 = vadd.f32 %v10301_v5, %v3589_v31  ;;  %v3696_v18 = vadd.f32 %v10301_v5, %v3588_v42  ;;  %v13767_v45 = vld [vmem:[#allocation234_spill] sm:$0xff]  ;;  %13771 = vst [vmem:[#allocation9_spill] sm:$0xff] %v10548_v63 }
 0x7a8   : > { %v10462_v44 = vpop.f32.mrf.mxu0  ;;  %13741 = vst [vmem:[#allocation127_spill] sm:$0xff] %v10485_v1  ;;  %v3804_v35 = vmax.f32 %v3700_v46, 0.0  ;;  %v3695_v53 = vadd.f32 %v10301_v5, %v3587_v34  ;;  %v13769_v46 = vld [vmem:[#allocation229_spill] sm:$0xff] }
 0x7a9   : > { %4298 = vmatpush.msra.mxu1 %v3760_v59  ;;  %v3701_v59 = vadd.f32 %v10301_v5, %v3593_v7  ;;  %v13755_v7 = vld [vmem:[#allocation271_spill] sm:$0xff]  ;;  %v3586_v9 = vmax.f32 %v3378_v30, %v3482_v24  ;;  %v3801_v20 = vmax.f32 %v3697_v8, 0.0  ;;  %v13770_v28 = vld [vmem:[#allocation65_spill] sm:$0xff]  ;;  %v3800_v32 = vmax.f32 %v3696_v18, 0.0  ;;  %v13780_v18 = vld [vmem:[#allocation136_spill] sm:$0xff] }
 0x7aa   : > { %7911 = vmatmul.msk.f32.gmra.mxu1 %vm3852_vm1, %v10455_v16  ;;  %v3481_v21 = vmax.f32 %v10325_v12, %v13755_v7  ;;  %v13761_v12 = vld [vmem:[#allocation67_spill] sm:$0xff]  ;;  %v3374_v4 = vmax.f32 %v13770_v28, %v13769_v46  ;;  %v13789_v46 = vld [vmem:[#allocation17_spill] sm:$0xff]  ;;  %v13804_v28 = vld [vmem:[#allocation24_spill] sm:$0xff] }
 0x7ab   : > { %4299 = vmatpush.msra.mxu1 %v3759_v22  ;;  %v3590_v22 = vmax.f32 %v3382_v14, %v3486_v37  ;;  %v3805_v58 = vmax.f32 %v3701_v59, 0.0  ;;  %v13759_v14 = vld [vmem:[#allocation269_spill] sm:$0xff]  ;;  %v10531_v59 = vpop.f32.mrf.mxu3  ;;  %v3694_v57 = vadd.f32 %v10301_v5, %v3586_v9  ;;  %v13779_v9 = vld [vmem:[#allocation12_spill] sm:$0xff]  ;;  %v13828_v16 = vld [vmem:[#allocation51_spill] sm:$0xff] }
 0x7ac   : > { %v3480_v51 = vmax.f32 %v10292_v41, %v13759_v14  ;;  %13764 = vst [vmem:[#allocation126_spill] sm:$0xff] %v10531_v59  ;;  %v10570_v14 = vld [vmem:[%s13315_s1 + $0x38] sm:$0xff]  ;;  %v13840_v59 = vld [vmem:[#allocation280_spill] sm:$0xff] }
 0x7ad   : > { %4300 = vmatpush.msra.mxu1 %v3758_v27  ;;  %v3699_v27 = vadd.f32 %v10301_v5, %v3591_v38  ;;  %v3698_v13 = vadd.f32 %v10301_v5, %v3590_v22  ;;  %v3479_v38 = vmax.f32 %v13763_v48, %v13762_v23  ;;  %v13768_v22 = vld [vmem:[#allocation282_spill] sm:$0xff]  ;;  %v3798_v17 = vmax.f32 %v3694_v57, 0.0  ;;  %13775 = vst [vmem:[#allocation116_spill] sm:$0xff] %v10570_v14  ;;  %v13781_v23 = vld [vmem:[#allocation13_spill] sm:$0xff]  ;;  %v13801_v48 = vld [vmem:[#allocation155_spill] sm:$0xff] }
 0x7ae   : > { %v13792_v57 = vld [vmem:[#allocation150_spill] sm:$0xff] }
 0x7af   : > { %4301 = vmatpush.msra.mxu1 %v3757_v10  ;;  %v13756_v10 = vld [vmem:[#allocation235_spill] sm:$0xff]  ;;  %v3803_v19 = vmax.f32 %v3699_v27, 0.0  ;;  %v3802_v26 = vmax.f32 %v3698_v13, 0.0  ;;  %v3799_v27 = vmax.f32 %v3695_v53, 0.0  ;;  %v13786_v53 = vld [vmem:[#allocation142_spill] sm:$0xff] }
 0x7b0   : > { %v10490_v36 = vpop.f32.mrf.mxu0  ;;  %v3377_v15 = vmax.f32 %v13757_v25, %v13756_v10 }
 0x7b1   : > { %4302 = vmatpush.msra.mxu1 %v3756_v3  ;;  %v3376_v3 = vmax.f32 %v13761_v12, %v13760_v47  ;;  %v10577_v47 = vld [vmem:[%s13315_s1 + $0x40] sm:$0xff] }
 0x7b2   : > { %7912 = vmatmul.msk.f32.gmra.mxu1 %vm3852_vm1, %v10485_v1  ;;  %v3585_v41 = vmax.f32 %v3377_v15, %v3481_v21  ;;  %v10561_v15 = vld [vmem:[%s13315_s1 + $0x30] sm:$0xff]  ;;  %13776 = vst [vmem:[#allocation123_spill] sm:$0xff] %v10577_v47 }
 0x7b3   : > { %4303 = vmatpush.msra.mxu1 %v3755_v40  ;;  %v3375_v40 = vmax.f32 %v13766_v6, %v13765_v29  ;;  %v3584_v60 = vmax.f32 %v3376_v3, %v3480_v51  ;;  %v10555_v13 = vpop.f32.mrf.mxu3  ;;  %13773 = vst [vmem:[#allocation125_spill] sm:$0xff] %v10561_v15  ;;  %v13778_v3 = vld [vmem:[#allocation134_spill] sm:$0xff]  ;;  %v13802_v6 = vld [vmem:[#allocation23_spill] sm:$0xff] }
 0x7b4   : > { %v3693_v24 = vadd.f32 %v10301_v5, %v3585_v41  ;;  %13772 = vst [vmem:[#allocation118_spill] sm:$0xff] %v10555_v13  ;;  %v13783_v29 = vld [vmem:[#allocation14_spill] sm:$0xff]  ;;  %v13785_v41 = vld [vmem:[#allocation15_spill] sm:$0xff]  ;;  %v13841_v13 = vld [vmem:[#allocation141_spill] sm:$0xff] }
 0x7b5   : > { %4630 = vmatpush.msrb.mxu1 %v3806_v61  ;;  %v3478_v61 = vmax.f32 %v13768_v22, %v13767_v45  ;;  %v3583_v31 = vmax.f32 %v3375_v40, %v3479_v38  ;;  %v3692_v30 = vadd.f32 %v10301_v5, %v3584_v60  ;;  %v13782_v38 = vld [vmem:[#allocation138_spill] sm:$0xff]  ;;  %v13784_v40 = vld [vmem:[#allocation140_spill] sm:$0xff] }
 0x7b6   : > { %v3797_v42 = vmax.f32 %v3693_v24, 0.0  ;;  %v13787_v45 = vld [vmem:[#allocation16_spill] sm:$0xff]  ;;  %v13791_v60 = vld [vmem:[#allocation18_spill] sm:$0xff]  ;;  %v13794_v24 = vld [vmem:[#allocation19_spill] sm:$0xff] }
 0x7b7   : > { %4631 = vmatpush.msrb.mxu1 %v3805_v58  ;;  %v3582_v52 = vmax.f32 %v3374_v4, %v3478_v61  ;;  %v3796_v7 = vmax.f32 %v3692_v30, 0.0  ;;  %v13788_v61 = vld [vmem:[#allocation144_spill] sm:$0xff]  ;;  %v13790_v4 = vld [vmem:[#allocation146_spill] sm:$0xff] }
 0x7b8   : > { %v10516_v37 = vpop.f32.mrf.mxu0  ;;  %v13796_v30 = vld [vmem:[#allocation20_spill] sm:$0xff] }
 0x7b9   : > { %4632 = vmatpush.msrb.mxu1 %v3804_v35  ;;  %v3691_v35 = vadd.f32 %v10301_v5, %v3583_v31  ;;  %v3690_v21 = vadd.f32 %v10301_v5, %v3582_v52  ;;  %v13803_v22 = vld [vmem:[#allocation156_spill] sm:$0xff] }
 0x7ba   : > { %7913 = vmatmul.msk.f32.gmra.mxu1 %vm3852_vm1, %v10521_v39  ;;  %v13836_v39 = vld [vmem:[#allocation268_spill] sm:$0xff] }
 0x7bb   : > { %4633 = vmatpush.msrb.mxu1 %v3803_v19  ;;  %v3795_v25 = vmax.f32 %v3691_v35, 0.0  ;;  %v3794_v34 = vmax.f32 %v3690_v21, 0.0  ;;  %v10565_v19 = vpop.f32.mrf.mxu3  ;;  %v13797_v35 = vld [vmem:[#allocation151_spill] sm:$0xff] }
 0x7bc   : > { %13774 = vst [vmem:[#allocation8_spill] sm:$0xff] %v10565_v19  ;;  %v13847_v19 = vld [vmem:[#allocation63_spill] sm:$0xff] }
 0x7bd   : > { %4634 = vmatpush.msrb.mxu1 %v3802_v26 }
 0x7bf   : > { %4635 = vmatpush.msrb.mxu1 %v3801_v20  ;;  %v3320_v20 = vmax.f32 %v13802_v6, %v13801_v48  ;;  %v13835_v48 = vld [vmem:[#allocation218_spill] sm:$0xff] }
 0x7c0   : > { %v10543_v58 = vpop.f32.mrf.mxu0 }
 0x7c1   : > { %4636 = vmatpush.msrb.mxu1 %v3800_v32  ;;  %v3315_v32 = vmax.f32 %v13791_v60, %v13790_v4  ;;  %v3321_v4 = vmax.f32 %v13804_v28, %v13803_v22  ;;  %v13805_v60 = vld [vmem:[#allocation157_spill] sm:$0xff]  ;;  %v10624_v22 = vld [vmem:[%s13315_s1 + $0x48] sm:$0xff] }
 0x7c2   : > { %7914 = vmatmul.msk.f32.gmra.mxu1 %vm3852_vm1, %v10548_v63  ;;  %13816 = vst [vmem:[#allocation114_spill] sm:$0xff] %v10624_v22  ;;  %v13817_v28 = vld [vmem:[#allocation201_spill] sm:$0xff]  ;;  %v13838_v63 = vld [vmem:[#allocation64_spill] sm:$0xff] }
 0x7c3   : > { %4637 = vmatpush.msrb.mxu1 %v3799_v27  ;;  %v10579_v12 = vpop.f32.mrf.mxu3  ;;  %v13793_v27 = vld [vmem:[#allocation148_spill] sm:$0xff] }
 0x7c4   : > { %13777 = vst [vmem:[#allocation7_spill] sm:$0xff] %v10579_v12  ;;  %v3316_v52 = vmax.f32 %v13794_v24, %v13793_v27  ;;  %v13837_v24 = vld [vmem:[#allocation228_spill] sm:$0xff]  ;;  %v13849_v12 = vld [vmem:[#allocation278_spill] sm:$0xff] }
 0x7c5   : > { %4638 = vmatpush.msrb.mxu1 %v3798_v17  ;;  %v13795_v17 = vld [vmem:[#allocation149_spill] sm:$0xff]  ;;  %v3373_v56 = vmax.f32 %v13838_v63, %v13837_v24  ;;  %v3372_v63 = vmax.f32 %v13847_v19, %v13846_v2  ;;  %v13848_v24 = vld [vmem:[#allocation230_spill] sm:$0xff] }
 0x7c7   : > { %4639 = vmatpush.msrb.mxu1 %v3797_v42  ;;  %v3317_v42 = vmax.f32 %v13796_v30, %v13795_v17  ;;  %v13830_v30 = vld [vmem:[#allocation265_spill] sm:$0xff] }
 0x7c8   : > { %v2738_v10 = vpop.f32.mrf.mxu0 }
 0x7c9   : > { %4640 = vmatpush.msrb.mxu1 %v3796_v7  ;;  %v13798_v7 = vld [vmem:[#allocation21_spill] sm:$0xff] }
 0x7ca   : > { %7915 = vmatmul.msk.f32.gmra.mxu1 %vm3852_vm1, %v10561_v15  ;;  %v3318_v21 = vmax.f32 %v13798_v7, %v13797_v35  ;;  %v13845_v7 = vld [vmem:[#allocation272_spill] sm:$0xff] }
 0x7cb   : > { %4641 = vmatpush.msrb.mxu1 %v3795_v25  ;;  %v13799_v25 = vld [vmem:[#allocation153_spill] sm:$0xff]  ;;  %v10640_v15 = vpop.f32.mrf.mxu3 }
 0x7cc   : > { %13831 = vst [vmem:[#allocation121_spill] sm:$0xff] %v10640_v15 }
 0x7cd   : > { %4642 = vmatpush.msrb.mxu1 %v3794_v34  ;;  %v13800_v34 = vld [vmem:[#allocation22_spill] sm:$0xff] }
 0x7ce   : > { %v3319_v26 = vmax.f32 %v13800_v34, %v13799_v25 }
 0x7d0   : > { %v2741_v8 = vpop.f32.mrf.mxu0 }
 0x7d2   : > { %7916 = vmatmul.msk.f32.gmra.mxu1 %vm3852_vm1, %v10570_v14  ;;  %v13829_v14 = vld [vmem:[#allocation214_spill] sm:$0xff] }
 0x7d8   : > { %v2744_v51 = vpop.f32.mrf.mxu0 }
 0x7d9   : > { %v3424_v31 = vmax.f32 %v2744_v51, %v13792_v57  ;;  %v13806_v51 = vld [vmem:[#allocation25_spill] sm:$0xff] }
 0x7da   : > { %7917 = vmatmul.msk.f32.gmra.mxu1 %vm3852_vm1, %v10577_v47  ;;  %v3322_v57 = vmax.f32 %v13806_v51, %v13805_v60  ;;  %v13807_v47 = vld [vmem:[#allocation147_spill] sm:$0xff]  ;;  %v13819_v60 = vld [vmem:[#allocation145_spill] sm:$0xff] }
 0x7db   : > { %v3423_v27 = vmax.f32 %v2741_v8, %v13807_v47  ;;  %v13818_v8 = vld [vmem:[#allocation254_spill] sm:$0xff]  ;;  %v3422_v51 = vmax.f32 %v2738_v10, %v13819_v60  ;;  %v3528_v17 = vmax.f32 %v3320_v20, %v3424_v31  ;;  %v13832_v10 = vld [vmem:[#allocation143_spill] sm:$0xff]  ;;  %v13839_v47 = vld [vmem:[#allocation232_spill] sm:$0xff] }
 0x7dc   : > { %v13834_v60 = vld [vmem:[#allocation267_spill] sm:$0xff]  ;;  %v3477_v15 = vmax.f32 %v13840_v59, %v13839_v47  ;;  %v3476_v59 = vmax.f32 %v13849_v12, %v13848_v24  ;;  %v10678_v12 = vld [vmem:[%s13315_s1 + $0x50] sm:$0xff]  ;;  %v13857_v24 = vld [vmem:[#allocation222_spill] sm:$0xff] }
 0x7dd   : > { %v3527_v20 = vmax.f32 %v3319_v26, %v3423_v27  ;;  %v3526_v26 = vmax.f32 %v3318_v21, %v3422_v51  ;;  %v3636_v27 = vadd.f32 %v10301_v5, %v3528_v17  ;;  %v13850_v47 = vld [vmem:[#allocation139_spill] sm:$0xff]  ;;  %v13851_v17 = vld [vmem:[#allocation224_spill] sm:$0xff] }
 0x7df   : > { %v3635_v51 = vadd.f32 %v10301_v5, %v3527_v20  ;;  %v3740_v20 = vmax.f32 %v3636_v27, 0.0  ;;  %v13863_v27 = vld [vmem:[#allocation60_spill] sm:$0xff] }
 0x7e0   : > { %v2747_v6 = vpop.f32.mrf.mxu0 }
 0x7e1   : > { %v3425_v35 = vmax.f32 %v2747_v6, %v13820_v62  ;;  %v3421_v62 = vmax.f32 %v10543_v58, %v13832_v10  ;;  %v13833_v6 = vld [vmem:[#allocation216_spill] sm:$0xff]  ;;  %v3420_v58 = vmax.f32 %v10516_v37, %v13841_v13  ;;  %v13843_v10 = vld [vmem:[#allocation270_spill] sm:$0xff]  ;;  %v3419_v37 = vmax.f32 %v10490_v36, %v13850_v47  ;;  %v13858_v47 = vld [vmem:[#allocation61_spill] sm:$0xff] }
 0x7e2   : > { %7918 = vmatmul.msk.f32.gmra.mxu1 %vm3852_vm1, %v10624_v22  ;;  %v13844_v22 = vld [vmem:[#allocation223_spill] sm:$0xff] }
 0x7e3   : > { %v3529_v31 = vmax.f32 %v3321_v4, %v3425_v35  ;;  %v13842_v35 = vld [vmem:[#allocation221_spill] sm:$0xff]  ;;  %v3473_v54 = vmax.f32 %v13845_v7, %v13844_v22  ;;  %v3525_v13 = vmax.f32 %v3317_v42, %v3421_v62  ;;  %v3581_v7 = vmax.f32 %v3373_v56, %v3477_v15  ;;  %v13856_v42 = vld [vmem:[#allocation154_spill] sm:$0xff] }
 0x7e4   : > { %v3472_v25 = vmax.f32 %v13843_v10, %v13842_v35  ;;  %v13853_v35 = vld [vmem:[#allocation227_spill] sm:$0xff]  ;;  %v13854_v10 = vld [vmem:[#allocation276_spill] sm:$0xff]  ;;  %v13855_v22 = vld [vmem:[#allocation137_spill] sm:$0xff]  ;;  %v3524_v36 = vmax.f32 %v3316_v52, %v3420_v58  ;;  %v3739_v52 = vmax.f32 %v3635_v51, 0.0 }
 0x7e5   : > { %v3637_v4 = vadd.f32 %v10301_v5, %v3529_v31  ;;  %v13852_v31 = vld [vmem:[#allocation62_spill] sm:$0xff]  ;;  %v3475_v49 = vmax.f32 %v13854_v10, %v13853_v35  ;;  %v3418_v2 = vmax.f32 %v10462_v44, %v13855_v22  ;;  %v13859_v56 = vld [vmem:[#allocation225_spill] sm:$0xff]  ;;  %v3580_v44 = vmax.f32 %v3372_v63, %v3476_v59  ;;  %v13861_v35 = vld [vmem:[#allocation135_spill] sm:$0xff]  ;;  %v10696_v59 = vpop.f32.mrf.mxu3 }
 0x7e6   : > { %v3371_v34 = vmax.f32 %v13852_v31, %v13851_v17  ;;  %v3370_v17 = vmax.f32 %v13858_v47, %v13857_v24  ;;  %v13860_v15 = vld [vmem:[#allocation274_spill] sm:$0xff]  ;;  %v3417_v10 = vmax.f32 %v10427_v50, %v13861_v35  ;;  %v3523_v22 = vmax.f32 %v3315_v32, %v3419_v37  ;;  %v13864_v24 = vld [vmem:[#allocation133_spill] sm:$0xff]  ;;  %v13866_v51 = vld [vmem:[#allocation219_spill] sm:$0xff] }
 0x7e7   : > { %v3741_v21 = vmax.f32 %v3637_v4, 0.0  ;;  %v3634_v4 = vadd.f32 %v10301_v5, %v3526_v26  ;;  %v3474_v31 = vmax.f32 %v13860_v15, %v13859_v56  ;;  %v3633_v58 = vadd.f32 %v10301_v5, %v3525_v13  ;;  %v13862_v26 = vld [vmem:[#allocation220_spill] sm:$0xff] }
 0x7e8   : > { %v2750_v19 = vpop.f32.mrf.mxu0  ;;  %v3416_v63 = vmax.f32 %v10394_v43, %v13864_v24  ;;  %v13865_v50 = vmax.f32 %v13789_v46, %v13788_v61  ;;  %v3632_v13 = vadd.f32 %v10301_v5, %v3524_v36  ;;  %v3688_v43 = vadd.f32 %v10301_v5, %v3580_v44  ;;  %v13871_v36 = vld [vmem:[#allocation58_spill] sm:$0xff] }
 0x7e9   : > { %v3426_v62 = vmax.f32 %v2750_v19, %v13856_v42  ;;  %4065 = vmatpush.msrb.mxu2 %v3741_v21  ;;  %v3369_v21 = vmax.f32 %v13863_v27, %v13862_v26  ;;  %v3579_v19 = vmax.f32 %v3371_v34, %v3475_v49  ;;  %v3689_v42 = vadd.f32 %v10301_v5, %v3581_v7  ;;  %v13868_v7 = vld [vmem:[#allocation132_spill] sm:$0xff] }
 0x7ea   : > { %7919 = vmatmul.msk.f32.gmra.mxu1 %vm3852_vm1, %v10678_v12  ;;  %v3522_v32 = vmax.f32 %v13865_v50, %v3418_v2  ;;  %v3578_v34 = vmax.f32 %v3370_v17, %v3474_v31  ;;  %v13869_v47 = vmax.f32 %v13787_v45, %v13786_v53  ;;  %v3737_v46 = vmax.f32 %v3633_v58, 0.0  ;;  %v13872_v31 = vld [vmem:[#allocation131_spill] sm:$0xff] }
 0x7eb   : > { %v3530_v1 = vmax.f32 %v3322_v57, %v3426_v62  ;;  %4066 = vmatpush.msrb.mxu2 %v3740_v20  ;;  %v3738_v57 = vmax.f32 %v3634_v4, 0.0  ;;  %v13867_v62 = vld [vmem:[#allocation59_spill] sm:$0xff]  ;;  %v3415_v20 = vmax.f32 %v10365_v11, %v13868_v7  ;;  %v13870_v4 = vld [vmem:[#allocation217_spill] sm:$0xff]  ;;  %v3577_v15 = vmax.f32 %v3369_v21, %v3473_v54 }
 0x7ec   : > { %v3368_v49 = vmax.f32 %v13867_v62, %v13866_v51  ;;  %v3521_v61 = vmax.f32 %v13869_v47, %v3417_v10  ;;  %v3367_v56 = vmax.f32 %v13871_v36, %v13870_v4  ;;  %v3793_v35 = vmax.f32 %v3689_v42, 0.0  ;;  %v10717_v11 = vld [vmem:[%s13315_s1 + $0x58] sm:$0xff] }
 0x7ed   : > { %4067 = vmatpush.msrb.mxu2 %v3739_v52  ;;  %v3638_v37 = vadd.f32 %v10301_v5, %v3530_v1  ;;  %v3631_v1 = vadd.f32 %v10301_v5, %v3523_v22  ;;  %v3687_v17 = vadd.f32 %v10301_v5, %v3579_v19  ;;  %v3414_v53 = vmax.f32 %v10337_v0, %v13872_v31  ;;  %v13874_v22 = vld [vmem:[#allocation215_spill] sm:$0xff]  ;;  %v13875_v52 = vld [vmem:[#allocation57_spill] sm:$0xff]  ;;  %v13876_v19 = vld [vmem:[#allocation130_spill] sm:$0xff] }
 0x7ee   : > { %v13873_v45 = vmax.f32 %v13785_v41, %v13784_v40  ;;  %v3736_v10 = vmax.f32 %v3632_v13, 0.0  ;;  %v3630_v54 = vadd.f32 %v10301_v5, %v3522_v32  ;;  %v3366_v58 = vmax.f32 %v13875_v52, %v13874_v22  ;;  %v10773_v31 = vld [vmem:[%s13315_s1 + $0x60] sm:$0xff] }
 0x7ef   : > { %4068 = vmatpush.msrb.mxu2 %v3738_v57  ;;  %v3742_v2 = vmax.f32 %v3638_v37, 0.0  ;;  %v3576_v26 = vmax.f32 %v3368_v49, %v3472_v25  ;;  %v3792_v27 = vmax.f32 %v3688_v43, 0.0  ;;  %v3686_v21 = vadd.f32 %v10301_v5, %v3578_v34  ;;  %v13879_v25 = vld [vmem:[#allocation56_spill] sm:$0xff]  ;;  %v13897_v22 = vld [vmem:[#allocation258_spill] sm:$0xff] }
 0x7f0   : > { %v3520_v44 = vmax.f32 %v13873_v45, %v3416_v63  ;;  %v3413_v0 = vmax.f32 %v10313_v33, %v13876_v19  ;;  %v13877_v40 = vmax.f32 %v13783_v29, %v13782_v38  ;;  %v3735_v42 = vmax.f32 %v3631_v1, 0.0  ;;  %v13878_v63 = vld [vmem:[#allocation213_spill] sm:$0xff]  ;;  %v13881_v38 = vld [vmem:[#allocation212_spill] sm:$0xff]  ;;  %v13882_v29 = vld [vmem:[#allocation263_spill] sm:$0xff] }
 0x7f1   : > { %4069 = vmatpush.msrb.mxu2 %v3737_v46  ;;  %4190 = vmatpush.msrb.mxu3 %v3742_v2  ;;  %v3629_v24 = vadd.f32 %v10301_v5, %v3521_v61  ;;  %v3365_v50 = vmax.f32 %v13879_v25, %v13878_v63  ;;  %v13880_v32 = vmax.f32 %v13836_v39, %v13835_v48  ;;  %v3791_v33 = vmax.f32 %v3687_v17, 0.0  ;;  %v13884_v39 = vld [vmem:[#allocation211_spill] sm:$0xff]  ;;  %v10759_v2 = vpop.f32.mrf.mxu3  ;;  %v13894_v45 = vld [vmem:[#allocation202_spill] sm:$0xff]  ;;  %v13906_v63 = vld [vmem:[#allocation204_spill] sm:$0xff] }
 0x7f2   : > { %v3519_v41 = vmax.f32 %v13877_v40, %v3415_v20  ;;  %7920 = vmatmul.msk.f32.gmra.mxu1 %vm3852_vm1, %v10717_v11  ;;  %v3685_v37 = vadd.f32 %v10301_v5, %v3577_v15  ;;  %v3468_v13 = vmax.f32 %v13882_v29, %v13881_v38  ;;  %v13883_v51 = vmax.f32 %v13781_v23, %v13780_v18  ;;  %v13885_v48 = vld [vmem:[#allocation55_spill] sm:$0xff]  ;;  %v13887_v18 = vld [vmem:[#allocation209_spill] sm:$0xff]  ;;  %v13890_v15 = vld [vmem:[#allocation210_spill] sm:$0xff] }
 0x7f3   : > { %4517 = vmatpush.msra.mxu3 %v3793_v35  ;;  %4070 = vmatpush.msrb.mxu2 %v3736_v10  ;;  %v3575_v57 = vmax.f32 %v3367_v56, %v13880_v32  ;;  %v3734_v49 = vmax.f32 %v3630_v54, 0.0  ;;  %v3628_v34 = vadd.f32 %v10301_v5, %v3520_v44  ;;  %v3364_v7 = vmax.f32 %v13885_v48, %v13884_v39  ;;  %v13888_v23 = vld [vmem:[#allocation261_spill] sm:$0xff]  ;;  %v13896_v54 = vld [vmem:[#allocation207_spill] sm:$0xff]  ;;  %v13907_v25 = vld [vmem:[#allocation256_spill] sm:$0xff] }
 0x7f4   : > { %v3518_v62 = vmax.f32 %v13883_v51, %v3414_v53  ;;  %7973 = vmatmul.msk.f32.vlgmr.msrb.gmra.mxu3 %vm3852_vm1, %v10389_v55  ;;  %v13886_v20 = vmax.f32 %v13834_v60, %v13833_v6  ;;  %v3790_v47 = vmax.f32 %v3686_v21, 0.0  ;;  %v3684_v61 = vadd.f32 %v10301_v5, %v3576_v26  ;;  %v13891_v6 = vld [vmem:[#allocation54_spill] sm:$0xff]  ;;  %v13899_v26 = vld [vmem:[#allocation53_spill] sm:$0xff] }
 0x7f5   : > { %4518 = vmatpush.msra.mxu3 %v3792_v27  ;;  %4071 = vmatpush.msrb.mxu2 %v3735_v42  ;;  %v3467_v46 = vmax.f32 %v13888_v23, %v13887_v18  ;;  %v13889_v1 = vmax.f32 %v13779_v9, %v13778_v3  ;;  %v3733_v36 = vmax.f32 %v3629_v24, 0.0  ;;  %v3627_v56 = vadd.f32 %v10301_v5, %v3519_v41  ;;  %v13904_v41 = vld [vmem:[#allocation200_spill] sm:$0xff]  ;;  %v13912_v39 = vld [vmem:[#allocation249_spill] sm:$0xff]  ;;  %v13913_v48 = vld [vmem:[#allocation194_spill] sm:$0xff] }
 0x7f6   : > { %v3574_v43 = vmax.f32 %v3366_v58, %v13886_v20  ;;  %v3363_v60 = vmax.f32 %v13891_v6, %v13890_v15  ;;  %v13892_v35 = vmax.f32 %v13830_v30, %v13829_v14  ;;  %v3789_v53 = vmax.f32 %v3685_v37, 0.0  ;;  %v13898_v58 = vld [vmem:[#allocation208_spill] sm:$0xff]  ;;  %v13915_v20 = vld [vmem:[#allocation49_spill] sm:$0xff] }
 0x7f7   : > { %4519 = vmatpush.msra.mxu3 %v3791_v33  ;;  %v3517_v4 = vmax.f32 %v13889_v1, %v3413_v0  ;;  %4072 = vmatpush.msrb.mxu2 %v3734_v49  ;;  %v3683_v3 = vadd.f32 %v10301_v5, %v3575_v57  ;;  %v13893_v9 = vmax.f32 %v13818_v8, %v13817_v28  ;;  %v3732_v30 = vmax.f32 %v3628_v34, 0.0  ;;  %v13900_v28 = vld [vmem:[#allocation252_spill] sm:$0xff]  ;;  %v13901_v8 = vld [vmem:[#allocation197_spill] sm:$0xff]  ;;  %v13911_v49 = vld [vmem:[#allocation47_spill] sm:$0xff] }
 0x7f8   : > { %v3573_v17 = vmax.f32 %v3365_v50, %v13892_v35  ;;  %v13895_v44 = vmax.f32 %v13828_v16, %v13894_v45  ;;  %v3466_v14 = vmax.f32 %v13897_v22, %v13896_v54  ;;  %v3626_v52 = vadd.f32 %v10301_v5, %v3518_v62  ;;  %v13903_v16 = vld [vmem:[#allocation50_spill] sm:$0xff]  ;;  %v13908_v33 = vld [vmem:[#allocation205_spill] sm:$0xff]  ;;  %v13909_v37 = vld [vmem:[#allocation52_spill] sm:$0xff] }
 0x7f9   : > { %4520 = vmatpush.msra.mxu3 %v3790_v47  ;;  %4073 = vmatpush.msrb.mxu2 %v3733_v36  ;;  %v3362_v27 = vmax.f32 %v13899_v26, %v13898_v58  ;;  %v3572_v21 = vmax.f32 %v3364_v7, %v3468_v13  ;;  %v3788_v19 = vmax.f32 %v3684_v61, 0.0  ;;  %v3682_v0 = vadd.f32 %v10301_v5, %v3574_v43  ;;  %v13910_v62 = vld [vmem:[#allocation192_spill] sm:$0xff]  ;;  %v13916_v43 = vld [vmem:[#allocation198_spill] sm:$0xff]  ;;  %v13918_v1 = vld [vmem:[#allocation129_spill] sm:$0xff] }
 0x7fa   : > { %v3568_v10 = vmax.f32 %v13895_v44, %v13893_v9  ;;  %v13902_v40 = vmax.f32 %v13900_v28, %v13901_v8  ;;  %v13905_v42 = vmax.f32 %v13903_v16, %v13904_v41  ;;  %v3465_v50 = vmax.f32 %v13907_v25, %v13906_v63  ;;  %7921 = vmatmul.msk.f32.gmra.mxu1 %vm3852_vm1, %v10773_v31  ;;  %v13922_v35 = vld [vmem:[#allocation46_spill] sm:$0xff]  ;;  %v13926_v45 = vld [vmem:[#allocation48_spill] sm:$0xff]  ;;  %v13927_v44 = vld [vmem:[#allocation195_spill] sm:$0xff]  ;;  %v10838_v63 = vpop.f32.mrf.mxu3 }
 0x7fb   : > { %4521 = vmatpush.msra.mxu3 %v3789_v53  ;;  %4074 = vmatpush.msrb.mxu2 %v3732_v30  ;;  %v3731_v32 = vmax.f32 %v3627_v56, 0.0  ;;  %v3625_v57 = vadd.f32 %v10301_v5, %v3517_v4  ;;  %v3361_v38 = vmax.f32 %v13909_v37, %v13908_v33  ;;  %v3571_v29 = vmax.f32 %v3363_v60, %v3467_v46  ;;  %v13919_v46 = vld [vmem:[#allocation185_spill] sm:$0xff]  ;;  %v13920_v4 = vld [vmem:[#allocation199_spill] sm:$0xff]  ;;  %v13923_v53 = vld [vmem:[#allocation206_spill] sm:$0xff] }
 0x7fc   : > { %v3567_v24 = vmax.f32 %v13905_v42, %v13902_v40  ;;  %v3787_v13 = vmax.f32 %v3683_v3, 0.0  ;;  %v3681_v51 = vadd.f32 %v10301_v5, %v3573_v17  ;;  %v3356_v34 = vmax.f32 %v13911_v49, %v13910_v62  ;;  %7974 = vmatmul.msk.f32.gmra.mxu3 %vm3852_vm1, %v13918_v1  ;;  %v13921_v60 = vld [vmem:[#allocation189_spill] sm:$0xff]  ;;  %v13924_v3 = vld [vmem:[#allocation191_spill] sm:$0xff]  ;;  %v13934_v16 = vld [vmem:[#allocation188_spill] sm:$0xff] }
 0x7fd   : > { %4522 = vmatpush.msra.mxu3 %v3788_v19  ;;  %v13914_v7 = vmax.f32 %v13912_v39, %v13913_v48  ;;  %v13917_v47 = vmax.f32 %v13915_v20, %v13916_v43  ;;  %v3676_v18 = vadd.f32 %v10301_v5, %v3568_v10  ;;  %4075 = vmatpush.msrb.mxu2 %v3731_v32  ;;  %v3730_v23 = vmax.f32 %v3626_v52, 0.0  ;;  %v13929_v52 = vld [vmem:[#allocation181_spill] sm:$0xff]  ;;  %v13933_v40 = vld [vmem:[#allocation203_spill] sm:$0xff]  ;;  %v13941_v39 = vld [vmem:[#allocation190_spill] sm:$0xff] }
 0x7fe   : > { %v3459_v36 = vmax.f32 %v13920_v4, %v13919_v46  ;;  %v3570_v56 = vmax.f32 %v3362_v27, %v3466_v14  ;;  %v3786_v15 = vmax.f32 %v3682_v0, 0.0  ;;  %v3680_v6 = vadd.f32 %v10301_v5, %v3572_v21  ;;  %v13930_v14 = vld [vmem:[#allocation196_spill] sm:$0xff]  ;;  %v10830_v27 = vld [vmem:[%s13315_s1 + $0x68] sm:$0xff]  ;;  %v13932_v28 = vld [vmem:[#allocation45_spill] sm:$0xff] }
 0x7ff   : > { %v3566_v61 = vmax.f32 %v13917_v47, %v13914_v7  ;;  %4523 = vmatpush.msra.mxu3 %v3787_v13  ;;  %v3355_v17 = vmax.f32 %v13922_v35, %v13921_v60  ;;  %v13925_v9 = vmax.f32 %v13923_v53, %v13924_v3  ;;  %v13928_v10 = vmax.f32 %v13926_v45, %v13927_v44  ;;  %v13931_v0 = vld [vmem:[#allocation187_spill] sm:$0xff]  ;;  %v13937_v32 = vld [vmem:[#allocation193_spill] sm:$0xff]  ;;  %v13942_v20 = vld [vmem:[#allocation182_spill] sm:$0xff] }
 0x800   : > { %4076 = vmatpush.msrb.mxu2 %v3730_v23  ;;  %v3729_v22 = vmax.f32 %v3625_v57, 0.0  ;;  %v3675_v30 = vadd.f32 %v10301_v5, %v3567_v24  ;;  %v3458_v58 = vmax.f32 %v13930_v14, %v13929_v52  ;;  %v3569_v26 = vmax.f32 %v3361_v38, %v3465_v50  ;;  %v13936_v50 = vld [vmem:[#allocation178_spill] sm:$0xff]  ;;  %v13938_v38 = vld [vmem:[#allocation184_spill] sm:$0xff]  ;;  %v13943_v43 = vld [vmem:[#allocation43_spill] sm:$0xff] }
 0x801   : > { %v3565_v54 = vmax.f32 %v13928_v10, %v13925_v9  ;;  %4524 = vmatpush.msra.mxu3 %v3786_v15  ;;  %v3785_v21 = vmax.f32 %v3681_v51, 0.0  ;;  %v3679_v19 = vadd.f32 %v10301_v5, %v3571_v29  ;;  %v3354_v8 = vmax.f32 %v13932_v28, %v13931_v0  ;;  %v13939_v29 = vld [vmem:[#allocation44_spill] sm:$0xff]  ;;  %v13944_v46 = vld [vmem:[#allocation122_spill] sm:$0xff]  ;;  %v13945_v4 = vld [vmem:[#allocation173_spill] sm:$0xff] }
 0x802   : > { %v13935_v41 = vmax.f32 %v13933_v40, %v13934_v16  ;;  %v3780_v24 = vmax.f32 %v3676_v18, 0.0  ;;  %4077 = vmatpush.msrb.mxu2 %v3729_v22  ;;  %v3674_v25 = vadd.f32 %v10301_v5, %v3566_v61  ;;  %v3457_v57 = vmax.f32 %v13937_v32, %v13936_v50  ;;  %7922 = vmatmul.msk.f32.gmra.mxu1 %vm3852_vm1, %v10830_v27  ;;  %v13948_v60 = vld [vmem:[#allocation42_spill] sm:$0xff]  ;;  %v13949_v9 = vld [vmem:[#allocation171_spill] sm:$0xff]  ;;  %v10869_v10 = vld [vmem:[%s13315_s1 + $0x70] sm:$0xff] }
 0x803   : > { %7941 = vmatmul.msk.f32.vlgmr.msrb.gmra.mxu2 %vm3852_vm1, %v10389_v55  ;;  %4525 = vmatpush.msra.mxu3 %v3785_v21  ;;  %v3784_v33 = vmax.f32 %v3680_v6, 0.0  ;;  %v3678_v37 = vadd.f32 %v10301_v5, %v3570_v56  ;;  %v3353_v13 = vmax.f32 %v13939_v29, %v13938_v38  ;;  %v3563_v51 = vmax.f32 %v3355_v17, %v3459_v36  ;;  %v13946_v36 = vld [vmem:[#allocation186_spill] sm:$0xff]  ;;  %v13947_v6 = vld [vmem:[#allocation179_spill] sm:$0xff]  ;;  %v13951_v22 = vld [vmem:[#allocation176_spill] sm:$0xff] }
 0x804   : > { %v3564_v42 = vmax.f32 %v3356_v34, %v13935_v41  ;;  %4404 = vmatpush.msra.mxu2 %v3780_v24  ;;  %v3779_v62 = vmax.f32 %v3675_v30, 0.0  ;;  %v3673_v49 = vadd.f32 %v10301_v5, %v3565_v54  ;;  %v13940_v34 = vld [vmem:[#allocation175_spill] sm:$0xff]  ;;  %v3783_v55 = vmax.f32 %v3679_v19, 0.0  ;;  %7975 = vmatmul.msk.f32.gmra.mxu3 %vm3852_vm1, %v13944_v46  ;;  %v13952_v30 = vld [vmem:[#allocation41_spill] sm:$0xff]  ;;  %v13953_v21 = vld [vmem:[#allocation170_spill] sm:$0xff]  ;;  %v3293_v41 = vpop.f32.mrf.mxu3 }
 0x805   : > { %v3456_v48 = vmax.f32 %v13941_v39, %v13940_v34  ;;  %4526 = vmatpush.msra.mxu3 %v3784_v33  ;;  %v3677_v7 = vadd.f32 %v10301_v5, %v3569_v26  ;;  %v3352_v47 = vmax.f32 %v13943_v43, %v13942_v20  ;;  %v3562_v61 = vmax.f32 %v3354_v8, %v3458_v58  ;;  %v13950_v45 = vld [vmem:[#allocation183_spill] sm:$0xff]  ;;  %v13954_v19 = vld [vmem:[#allocation180_spill] sm:$0xff]  ;;  %v13955_v28 = vld [vmem:[#allocation174_spill] sm:$0xff] }
 0x806   : > { %4405 = vmatpush.msra.mxu2 %v3779_v62  ;;  %v3778_v18 = vmax.f32 %v3674_v25, 0.0  ;;  %v3672_v23 = vadd.f32 %v10301_v5, %v3564_v42  ;;  %v3455_v56 = vmax.f32 %v13946_v36, %v13945_v4  ;;  %v3782_v15 = vmax.f32 %v3678_v37, 0.0  ;;  %v13956_v8 = vld [vmem:[#allocation40_spill] sm:$0xff]  ;;  %v13957_v25 = vld [vmem:[#allocation169_spill] sm:$0xff]  ;;  %v13960_v33 = vld [vmem:[#allocation39_spill] sm:$0xff] }
 0x807   : > { %4527 = vmatpush.msra.mxu3 %v3783_v55  ;;  %v3351_v35 = vmax.f32 %v13948_v60, %v13947_v6  ;;  %v3561_v17 = vmax.f32 %v3353_v13, %v3457_v57  ;;  %v3777_v53 = vmax.f32 %v3673_v49, 0.0  ;;  %v3671_v3 = vadd.f32 %v10301_v5, %v3563_v51  ;;  %v13958_v50 = vld [vmem:[#allocation177_spill] sm:$0xff]  ;;  %v13959_v57 = vld [vmem:[#allocation172_spill] sm:$0xff]  ;;  %v13961_v13 = vld [vmem:[#allocation127_spill] sm:$0xff] }
 0x808   : > { %4406 = vmatpush.msra.mxu2 %v3778_v18  ;;  %v3454_v44 = vmax.f32 %v13950_v45, %v13949_v9  ;;  %v3781_v54 = vmax.f32 %v3677_v7, 0.0  ;;  %v3350_v52 = vmax.f32 %v13952_v30, %v13951_v22  ;;  %v3560_v14 = vmax.f32 %v3352_v47, %v3456_v48  ;;  %v13962_v51 = vld [vmem:[#allocation104_spill] sm:$0xff]  ;;  %v13963_v49 = vld [vmem:[#allocation266_spill] sm:$0xff]  ;;  %v13964_v34 = vld [vmem:[#allocation111_spill] sm:$0xff] }
 0x809   : > { %4528 = vmatpush.msra.mxu3 %v3782_v15  ;;  %v3776_v58 = vmax.f32 %v3672_v23, 0.0  ;;  %v3670_v26 = vadd.f32 %v10301_v5, %v3562_v61  ;;  %v3453_v0 = vmax.f32 %v13954_v19, %v13953_v21  ;;  %v3349_v40 = vmax.f32 %v13956_v8, %v13955_v28  ;;  %v10896_v7 = vld [vmem:[%s13317_s3] ss:$0 sm:$0xff]  ;;  %v13966_v47 = vld [vmem:[#allocation264_spill] sm:$0xff]  ;;  %v13967_v61 = vld [vmem:[#allocation109_spill] sm:$0xff] }
 0x80a   : > { %4407 = vmatpush.msra.mxu2 %v3777_v53  ;;  %v3559_v16 = vmax.f32 %v3351_v35, %v3455_v56  ;;  %7923 = vmatmul.msk.f32.gmra.mxu1 %vm3852_vm1, %v10869_v10  ;;  %v3775_v42 = vmax.f32 %v3671_v3, 0.0  ;;  %v3669_v24 = vadd.f32 %v10301_v5, %v3561_v17  ;;  %v3452_v32 = vmax.f32 %v13958_v50, %v13957_v25  ;;  %v10906_v23 = vld [vmem:[%s13315_s1 + $0x78] sm:$0xff]  ;;  %v13968_v15 = vld [vmem:[#allocation100_spill] sm:$0xff]  ;;  %v13969_v60 = vld [vmem:[#allocation262_spill] sm:$0xff] }
 0x80b   : > { %7942 = vmatmul.msk.f32.gmra.mxu2 %vm3852_vm1, %v13918_v1  ;;  %4529 = vmatpush.msra.mxu3 %v3781_v54  ;;  %v3348_v37 = vmax.f32 %v13960_v33, %v13959_v57  ;;  %v3558_v1 = vmax.f32 %v3350_v52, %v3454_v44  ;;  %v3774_v38 = vmax.f32 %v3670_v26, 0.0  ;;  %v3668_v29 = vadd.f32 %v10301_v5, %v3560_v14  ;;  %v13965_v5 = vld [vmem:[#allocation102_spill] sm:$0xff]  ;;  %v13970_v35 = vld [vmem:[#allocation107_spill] sm:$0xff]  ;;  %v13972_v44 = vld [vmem:[#allocation260_spill] sm:$0xff] }
 0x80c   : > { %4408 = vmatpush.msra.mxu2 %v3776_v58  ;;  %7976 = vmatmul.msk.f32.gmra.mxu3 %vm3852_vm1, %v13961_v13  ;;  %v3503_v62 = vmax.f32 %v13962_v51, %v3293_v41  ;;  %v3399_v39 = vmax.f32 %v13964_v34, %v13963_v49  ;;  %v3557_v48 = vmax.f32 %v3349_v40, %v3453_v0  ;;  %v3773_v55 = vmax.f32 %v3669_v24, 0.0  ;;  %v13971_v9 = vld [vmem:[#allocation98_spill] sm:$0xff]  ;;  %v13973_v54 = vld [vmem:[#allocation105_spill] sm:$0xff]  ;;  %v13974_v14 = vld [vmem:[#allocation120_spill] sm:$0xff] }
 0x80d   : > { %v3667_v20 = vadd.f32 %v10896_v7, %v3559_v16  ;;  %v3502_v43 = vmax.f32 %v13965_v5, %v10838_v63  ;;  %v3398_v18 = vmax.f32 %v13967_v61, %v13966_v47  ;;  %v3556_v4 = vmax.f32 %v3348_v37, %v3452_v32  ;;  %v13976_v58 = vld [vmem:[#allocation96_spill] sm:$0xff]  ;;  %v13977_v21 = vld [vmem:[#allocation259_spill] sm:$0xff]  ;;  %v13980_v41 = vld [vmem:[#allocation94_spill] sm:$0xff] }
 0x80e   : > { %4409 = vmatpush.msra.mxu2 %v3775_v42  ;;  %v3772_v36 = vmax.f32 %v3668_v29, 0.0  ;;  %v3666_v56 = vadd.f32 %v10896_v7, %v3558_v1  ;;  %v3501_v6 = vmax.f32 %v13968_v15, %v10759_v2  ;;  %v3397_v17 = vmax.f32 %v13970_v35, %v13969_v60  ;;  %v13978_v19 = vld [vmem:[#allocation103_spill] sm:$0xff]  ;;  %v13981_v24 = vld [vmem:[#allocation257_spill] sm:$0xff]  ;;  %v10939_v57 = vld [vmem:[%s13315_s1 + $0x80] sm:$0xff] }
 0x80f   : > { %v3607_v63 = vmax.f32 %v3399_v39, %v3503_v62  ;;  %v3771_v53 = vmax.f32 %v3667_v20, 0.0  ;;  %v3665_v3 = vadd.f32 %v10896_v7, %v3557_v48  ;;  %v3500_v45 = vmax.f32 %v13971_v9, %v10696_v59  ;;  %v13979_v16 = vld [vmem:[#allocation7_spill] sm:$0xff]  ;;  %v13982_v25 = vld [vmem:[#allocation101_spill] sm:$0xff]  ;;  %v13983_v37 = vld [vmem:[#allocation8_spill] sm:$0xff] }
 0x810   : > { %4410 = vmatpush.msra.mxu2 %v3774_v38  ;;  %v3396_v2 = vmax.f32 %v13973_v54, %v13972_v44  ;;  %v3606_v22 = vmax.f32 %v3398_v18, %v3502_v43  ;;  %v3770_v30 = vmax.f32 %v3666_v56, 0.0  ;;  %v3664_v52 = vadd.f32 %v10896_v7, %v3556_v4  ;;  %v13984_v1 = vld [vmem:[#allocation92_spill] sm:$0xff]  ;;  %v13985_v51 = vld [vmem:[#allocation255_spill] sm:$0xff]  ;;  %v13988_v20 = vld [vmem:[#allocation90_spill] sm:$0xff] }
 0x811   : > { %v3395_v0 = vmax.f32 %v13978_v19, %v13977_v21  ;;  %v3605_v28 = vmax.f32 %v3397_v17, %v3501_v6  ;;  %v3715_v59 = vadd.f32 %v10896_v7, %v3607_v63  ;;  %v3769_v40 = vmax.f32 %v3665_v3, 0.0  ;;  %v13986_v62 = vld [vmem:[#allocation99_spill] sm:$0xff]  ;;  %v13989_v43 = vld [vmem:[#allocation253_spill] sm:$0xff]  ;;  %v13991_v56 = vld [vmem:[#allocation126_spill] sm:$0xff] }
 0x812   : > { %4411 = vmatpush.msra.mxu2 %v3773_v55  ;;  %7924 = vmatmul.msk.f32.gmra.mxu1 %vm3852_vm1, %v10906_v23  ;;  %v3498_v42 = vmax.f32 %v13980_v41, %v13979_v16  ;;  %v3394_v50 = vmax.f32 %v13982_v25, %v13981_v24  ;;  %v3604_v32 = vmax.f32 %v3396_v2, %v3500_v45  ;;  %v3768_v29 = vmax.f32 %v3664_v52, 0.0  ;;  %v13987_v55 = vld [vmem:[#allocation118_spill] sm:$0xff]  ;;  %v13990_v47 = vld [vmem:[#allocation97_spill] sm:$0xff]  ;;  %v13992_v15 = vld [vmem:[#allocation88_spill] sm:$0xff] }
 0x813   : > { %7943 = vmatmul.msk.f32.gmra.mxu2 %vm3852_vm1, %v13944_v46  ;;  %v13975_v46 = vld [vmem:[#allocation121_spill] sm:$0xff]  ;;  %v3714_v33 = vadd.f32 %v10896_v7, %v3606_v22  ;;  %v3497_v38 = vmax.f32 %v13984_v1, %v13983_v37  ;;  %v3393_v49 = vmax.f32 %v13986_v62, %v13985_v51  ;;  %v3819_v39 = vmax.f32 %v3715_v59, 0.0  ;;  %v13994_v60 = vld [vmem:[#allocation251_spill] sm:$0xff]  ;;  %v13996_v9 = vld [vmem:[#allocation10_spill] sm:$0xff] }
 0x814   : > { %4412 = vmatpush.msra.mxu2 %v3772_v36  ;;  %7977 = vmatmul.msk.f32.gmra.mxu3 %vm3852_vm1, %v13974_v14  ;;  %v3499_v26 = vmax.f32 %v13976_v58, %v13975_v46  ;;  %v3713_v48 = vadd.f32 %v10896_v7, %v3605_v28  ;;  %v3496_v5 = vmax.f32 %v13988_v20, %v13987_v55  ;;  %v13993_v6 = vld [vmem:[#allocation9_spill] sm:$0xff]  ;;  %v13995_v35 = vld [vmem:[#allocation95_spill] sm:$0xff]  ;;  %v13997_v45 = vld [vmem:[#allocation86_spill] sm:$0xff] }
 0x815   : > { %v3392_v61 = vmax.f32 %v13990_v47, %v13989_v43  ;;  %v3602_v18 = vmax.f32 %v3394_v50, %v3498_v42  ;;  %v3818_v4 = vmax.f32 %v3714_v33, 0.0  ;;  %v3712_v36 = vadd.f32 %v10896_v7, %v3604_v32  ;;  %v13998_v2 = vld [vmem:[#allocation250_spill] sm:$0xff]  ;;  %v13999_v22 = vld [vmem:[#allocation93_spill] sm:$0xff]  ;;  %v10972_v58 = vld [vmem:[%s13315_s1 + $0x88] sm:$0xff] }
 0x816   : > { %4413 = vmatpush.msra.mxu2 %v3771_v53  ;;  %v3603_v34 = vmax.f32 %v3395_v0, %v3499_v26  ;;  %v3391_v17 = vmax.f32 %v13995_v35, %v13994_v60  ;;  %v3601_v63 = vmax.f32 %v3393_v49, %v3497_v38  ;;  %v3817_v53 = vmax.f32 %v3713_v48, 0.0  ;;  %v14000_v21 = vld [vmem:[#allocation11_spill] sm:$0xff]  ;;  %v14001_v19 = vld [vmem:[#allocation84_spill] sm:$0xff]  ;;  %v14005_v25 = vld [vmem:[#allocation82_spill] sm:$0xff] }
 0x817   : > { %v10930_v8 = vpop.f32.mrf.mxu1  ;;  %v3494_v44 = vmax.f32 %v13997_v45, %v13996_v9  ;;  %v3600_v52 = vmax.f32 %v3392_v61, %v3496_v5  ;;  %v3816_v46 = vmax.f32 %v3712_v36, 0.0  ;;  %v3710_v26 = vadd.f32 %v10896_v7, %v3602_v18  ;;  %v14002_v28 = vld [vmem:[#allocation248_spill] sm:$0xff]  ;;  %v14003_v59 = vld [vmem:[#allocation91_spill] sm:$0xff]  ;;  %v14007_v33 = vld [vmem:[#allocation89_spill] sm:$0xff] }
 0x818   : > { %4414 = vmatpush.msra.mxu2 %v3770_v30  ;;  %v3711_v3 = vadd.f32 %v10896_v7, %v3603_v34  ;;  %v3390_v30 = vmax.f32 %v13999_v22, %v13998_v2  ;;  %v3493_v0 = vmax.f32 %v14001_v19, %v14000_v21  ;;  %v3709_v42 = vadd.f32 %v10896_v7, %v3601_v63  ;;  %v14004_v24 = vld [vmem:[#allocation128_spill] sm:$0xff]  ;;  %v14006_v32 = vld [vmem:[#allocation247_spill] sm:$0xff]  ;;  %v14010_v34 = vld [vmem:[#allocation125_spill] sm:$0xff] }
 0x819   : > { %v3492_v50 = vmax.f32 %v14005_v25, %v14004_v24  ;;  %v3388_v37 = vmax.f32 %v14007_v33, %v14006_v32  ;;  %v3814_v38 = vmax.f32 %v3710_v26, 0.0  ;;  %v14008_v51 = vld [vmem:[#allocation124_spill] sm:$0xff]  ;;  %v14012_v48 = vld [vmem:[#allocation87_spill] sm:$0xff]  ;;  %v11018_v9 = vld [vmem:[%s13315_s1 + $0x98] sm:$0xff] }
 0x81a   : > { %4415 = vmatpush.msra.mxu2 %v3769_v40  ;;  %7925 = vmatmul.msk.f32.gmra.mxu1 %vm3852_vm1, %v10939_v57  ;;  %v3389_v40 = vmax.f32 %v14003_v59, %v14002_v28  ;;  %v3815_v41 = vmax.f32 %v3711_v3, 0.0  ;;  %v3598_v1 = vmax.f32 %v3390_v30, %v3494_v44  ;;  %v14009_v62 = vld [vmem:[#allocation80_spill] sm:$0xff]  ;;  %v14014_v44 = vld [vmem:[#allocation123_spill] sm:$0xff]  ;;  %v11031_v2 = vld [vmem:[%s13315_s1 + $0xa0] sm:$0xff] }
 0x81b   : > { %7944 = vmatmul.msk.f32.gmra.mxu2 %vm3852_vm1, %v13961_v13  ;;  %v3495_v13 = vmax.f32 %v13992_v15, %v13991_v56  ;;  %v3491_v49 = vmax.f32 %v14009_v62, %v14008_v51  ;;  %v3596_v47 = vmax.f32 %v3388_v37, %v3492_v50  ;;  %v11001_v18 = vld [vmem:[%s13315_s1 + $0x90] sm:$0xff]  ;;  %v14015_v22 = vld [vmem:[#allocation114_spill] sm:$0xff]  ;;  %v11070_v19 = vld [vmem:[%s13315_s1 + $0xb8] sm:$0xff] }
 0x81c   : > { %4416 = vmatpush.msra.mxu2 %v3768_v29  ;;  %7978 = vmatmul.msk.f32.gmra.mxu3 %vm3852_vm1, %v13993_v6  ;;  %v3708_v29 = vadd.f32 %v10896_v7, %v3600_v52  ;;  %v3597_v20 = vmax.f32 %v3389_v40, %v3493_v0  ;;  %v14013_v35 = vld [vmem:[#allocation116_spill] sm:$0xff]  ;;  %v11044_v52 = vld [vmem:[%s13315_s1 + $0xa8] sm:$0xff]  ;;  %v11083_v28 = vld [vmem:[%s13315_s1 + $0xc0] sm:$0xff] }
 0x81d   : > { %v3599_v16 = vmax.f32 %v3391_v17, %v3495_v13  ;;  %v3704_v60 = vadd.f32 %v10896_v7, %v3596_v47  ;;  %v11057_v26 = vld [vmem:[%s13315_s1 + $0xb0] sm:$0xff]  ;;  %v11096_v40 = vld [vmem:[%s13315_s1 + $0xc8] sm:$0xff]  ;;  %v11122_v24 = vld [vmem:[%s13315_s1 + $0xd8] sm:$0xff] }
 0x81e   : > { %4743 = vmatpush.msrb.mxu2 %v3819_v39  ;;  %v14011_v39 = vld [vmem:[#allocation246_spill] sm:$0xff]  ;;  %v3812_v61 = vmax.f32 %v3708_v29, 0.0  ;;  %v3705_v15 = vadd.f32 %v10896_v7, %v3597_v20  ;;  %v11150_v37 = vld [vmem:[%s13315_s1 + $0xe8] sm:$0xff]  ;;  %v11167_v51 = vld [vmem:[%s13315_s1 + $0xf0] sm:$0xff] }
 0x81f   : > { %v10965_v54 = vpop.f32.mrf.mxu1  ;;  %v3387_v55 = vmax.f32 %v14012_v48, %v14011_v39  ;;  %v3707_v5 = vadd.f32 %v10896_v7, %v3599_v16  ;;  %v3808_v3 = vmax.f32 %v3704_v60, 0.0  ;;  %v11135_v50 = vld [vmem:[%s13315_s1 + $0xe0] sm:$0xff]  ;;  %v11184_v48 = vld [vmem:[%s13315_s1 + $0xf8] sm:$0xff] }
 0x820   : > { %4744 = vmatpush.msrb.mxu2 %v3818_v4  ;;  %v3706_v4 = vadd.f32 %v10896_v7, %v3598_v1  ;;  %v3809_v17 = vmax.f32 %v3705_v15, 0.0  ;;  %v11205_v47 = vld [vmem:[%s13315_s1] sm:$0xff] }
 0x821   : > { %v3595_v36 = vmax.f32 %v3387_v55, %v3491_v49  ;;  %v3811_v56 = vmax.f32 %v3707_v5, 0.0 }
 0x822   : > { %4745 = vmatpush.msrb.mxu2 %v3817_v53  ;;  %7926 = vmatmul.msk.f32.gmra.mxu1 %vm3852_vm1, %v10972_v58  ;;  %v3810_v13 = vmax.f32 %v3706_v4, 0.0 }
 0x823   : > { %7945 = vmatmul.msk.f32.gmra.mxu2 %vm3852_vm1, %v13974_v14  ;;  %v3813_v14 = vmax.f32 %v3709_v42, 0.0  ;;  %v3703_v63 = vadd.f32 %v10896_v7, %v3595_v36 }
 0x824   : > { %4746 = vmatpush.msrb.mxu2 %v3816_v46  ;;  %7979 = vmatmul.msk.f32.gmra.mxu3 %vm3852_vm1, %v14010_v34 }
 0x825   : > { %v3807_v45 = vmax.f32 %v3703_v63, 0.0 }
 0x826   : > { %4747 = vmatpush.msrb.mxu2 %v3815_v41  ;;  %v11109_v41 = vld [vmem:[%s13315_s1 + $0xd0] sm:$0xff] }
 0x827   : > { %v10996_v43 = vpop.f32.mrf.mxu1 }
 0x828   : > { %4748 = vmatpush.msrb.mxu2 %v3814_v38 }
 0x82a   : > { %4749 = vmatpush.msrb.mxu2 %v3813_v14  ;;  %7927 = vmatmul.msk.f32.gmra.mxu1 %vm3852_vm1, %v11001_v18 }
 0x82b   : > { %7946 = vmatmul.msk.f32.gmra.mxu2 %vm3852_vm1, %v13993_v6 }
 0x82c   : > { %4750 = vmatpush.msrb.mxu2 %v3812_v61  ;;  %7980 = vmatmul.msk.f32.gmra.mxu3 %vm3852_vm1, %v14013_v35 }
 0x82e   : > { %4751 = vmatpush.msrb.mxu2 %v3811_v56  ;;  %v11222_v56 = vld [vmem:[%s13315_s1 + $0x8] sm:$0xff] }
 0x82f   : > { %v11013_v53 = vpop.f32.mrf.mxu1 }
 0x830   : > { %4752 = vmatpush.msrb.mxu2 %v3810_v13 }
 0x832   : > { %4753 = vmatpush.msrb.mxu2 %v3809_v17  ;;  %7928 = vmatmul.msk.f32.gmra.mxu1 %vm3852_vm1, %v11018_v9  ;;  %v11239_v17 = vld [vmem:[%s13315_s1 + $0x10] sm:$0xff] }
 0x833   : > { %7947 = vmatmul.msk.f32.gmra.mxu2 %vm3852_vm1, %v14010_v34 }
 0x834   : > { %4754 = vmatpush.msrb.mxu2 %v3808_v3  ;;  %7981 = vmatmul.msk.f32.gmra.mxu3 %vm3852_vm1, %v14014_v44 }
 0x836   : > { %4755 = vmatpush.msrb.mxu2 %v3807_v45 }
 0x837   : > { %v11026_v7 = vpop.f32.mrf.mxu1 }
 0x83a   : > { %7929 = vmatmul.msk.f32.gmra.mxu1 %vm3852_vm1, %v11031_v2 }
 0x83b   : > { %7948 = vmatmul.msk.f32.gmra.mxu2 %vm3852_vm1, %v14013_v35 }
 0x83c   : > { %7982 = vmatmul.msk.f32.gmra.mxu3 %vm3852_vm1, %v14015_v22 }
 0x83f   : > { %v11039_v30 = vpop.f32.mrf.mxu1 }
 0x842   : > { %7930 = vmatmul.msk.f32.gmra.mxu1 %vm3852_vm1, %v11044_v52 }
 0x843   : > { %7949 = vmatmul.msk.f32.gmra.mxu2 %vm3852_vm1, %v14014_v44 }
 0x844   : > { %7983 = vmatmul.msk.f32.gmra.mxu3 %vm3852_vm1, %v10678_v12 }
 0x847   : > { %v11052_v46 = vpop.f32.mrf.mxu1 }
 0x848   : > { %14016 = vst [vmem:[#allocation6_spill] sm:$0xff] %v11052_v46 }
 0x84a   : > { %7931 = vmatmul.msk.f32.gmra.mxu1 %vm3852_vm1, %v11057_v26 }
 0x84b   : > { %7950 = vmatmul.msk.f32.gmra.mxu2 %vm3852_vm1, %v14015_v22 }
 0x84c   : > { %7984 = vmatmul.msk.f32.gmra.mxu3 %vm3852_vm1, %v10717_v11 }
 0x84f   : > { %v11065_v21 = vpop.f32.mrf.mxu1 }
 0x850   : > { %14017 = vst [vmem:[#allocation112_spill] sm:$0xff] %v11065_v21 }
 0x852   : > { %7932 = vmatmul.msk.f32.gmra.mxu1 %vm3852_vm1, %v11070_v19 }
 0x853   : > { %7951 = vmatmul.msk.f32.gmra.mxu2 %vm3852_vm1, %v10678_v12 }
 0x854   : > { %7985 = vmatmul.msk.f32.gmra.mxu3 %vm3852_vm1, %v10773_v31 }
 0x857   : > { %v11078_v0 = vpop.f32.mrf.mxu1 }
 0x858   : > { %14018 = vst [vmem:[#allocation119_spill] sm:$0xff] %v11078_v0 }
 0x85a   : > { %7933 = vmatmul.msk.f32.gmra.mxu1 %vm3852_vm1, %v11083_v28 }
 0x85b   : > { %7952 = vmatmul.msk.f32.gmra.mxu2 %vm3852_vm1, %v10717_v11 }
 0x85c   : > { %7986 = vmatmul.msk.f32.gmra.mxu3 %vm3852_vm1, %v10830_v27 }
 0x85f   : > { %v11091_v59 = vpop.f32.mrf.mxu1 }
 0x860   : > { %14019 = vst [vmem:[#allocation5_spill] sm:$0xff] %v11091_v59 }
 0x862   : > { %7934 = vmatmul.msk.f32.gmra.mxu1 %vm3852_vm1, %v11096_v40 }
 0x863   : > { %7953 = vmatmul.msk.f32.gmra.mxu2 %vm3852_vm1, %v10773_v31 }
 0x864   : > { %7987 = vmatmul.msk.f32.gmra.mxu3 %vm3852_vm1, %v10869_v10 }
 0x867   : > { %v11104_v16 = vpop.f32.mrf.mxu1 }
 0x868   : > { %14020 = vst [vmem:[#allocation110_spill] sm:$0xff] %v11104_v16 }
 0x86a   : > { %7935 = vmatmul.msk.f32.gmra.mxu1 %vm3852_vm1, %v11109_v41 }
 0x86b   : > { %7954 = vmatmul.msk.f32.gmra.mxu2 %vm3852_vm1, %v10830_v27 }
 0x86c   : > { %7988 = vmatmul.msk.f32.gmra.mxu3 %vm3852_vm1, %v10906_v23 }
 0x86f   : > { %v11117_v42 = vpop.f32.mrf.mxu1 }
 0x870   : > { %14021 = vst [vmem:[#allocation117_spill] sm:$0xff] %v11117_v42 }
 0x872   : > { %7936 = vmatmul.msk.f32.gmra.mxu1 %vm3852_vm1, %v11122_v24 }
 0x873   : > { %7955 = vmatmul.msk.f32.gmra.mxu2 %vm3852_vm1, %v10869_v10 }
 0x874   : > { %7989 = vmatmul.msk.f32.gmra.mxu3 %vm3852_vm1, %v10939_v57 }
 0x877   : > { %v11130_v25 = vpop.f32.mrf.mxu1  ;;  %v11137_v32 = vpop.f32.mrf.mxu3 }
 0x878   : > { %14022 = vst [vmem:[#allocation4_spill] sm:$0xff] %v11130_v25 }
 0x87a   : > { %7937 = vmatmul.msk.f32.gmra.mxu1 %vm3852_vm1, %v11135_v50 }
 0x87b   : > { %7956 = vmatmul.msk.f32.gmra.mxu2 %vm3852_vm1, %v10906_v23 }
 0x87c   : > { %7990 = vmatmul.msk.f32.gmra.mxu3 %vm3852_vm1, %v10972_v58 }
 0x87f   : > { %v11145_v33 = vpop.f32.mrf.mxu1  ;;  %v11152_v1 = vpop.f32.mrf.mxu3 }
 0x880   : > { %14023 = vst [vmem:[#allocation108_spill] sm:$0xff] %v11145_v33 }
 0x882   : > { %7938 = vmatmul.msk.f32.gmra.mxu1 %vm3852_vm1, %v11150_v37 }
 0x883   : > { %7957 = vmatmul.msk.f32.gmra.mxu2 %vm3852_vm1, %v10939_v57 }
 0x884   : > { %7991 = vmatmul.msk.f32.gmra.mxu3 %vm3852_vm1, %v11001_v18 }
 0x886   : > { %v11158_v38 = vpop.f32.mrf.mxu2 }
 0x887   : > { %v11162_v29 = vpop.f32.mrf.mxu1  ;;  %v11169_v62 = vpop.f32.mrf.mxu3 }
 0x888   : > { %14024 = vst [vmem:[#allocation115_spill] sm:$0xff] %v11162_v29 }
 0x88a   : > { %7939 = vmatmul.msk.f32.gmra.mxu1 %vm3852_vm1, %v11167_v51 }
 0x88b   : > { %7958 = vmatmul.msk.f32.gmra.mxu2 %vm3852_vm1, %v10972_v58 }
 0x88c   : > { %7992 = vmatmul.msk.f32.gmra.mxu3 %vm3852_vm1, %v11018_v9 }
 0x88e   : > { %v11175_v49 = vpop.f32.mrf.mxu2 }
 0x88f   : > { %v11179_v39 = vpop.f32.mrf.mxu1  ;;  %v11186_v55 = vpop.f32.mrf.mxu3 }
 0x890   : > { %14025 = vst [vmem:[#allocation3_spill] sm:$0xff] %v11179_v39 }
 0x892   : > { %7940 = vmatmul.msk.f32.gmra.mxu1 %vm3852_vm1, %v11184_v48 }
 0x893   : > { %7959 = vmatmul.msk.f32.gmra.mxu2 %vm3852_vm1, %v11001_v18 }
 0x894   : > { %7993 = vmatmul.msk.f32.gmra.mxu3 %vm3852_vm1, %v11031_v2 }
 0x896   : > { %v11192_v20 = vpop.f32.mrf.mxu2 }
 0x897   : > { %v11196_v14 = vpop.f32.mrf.mxu1  ;;  %v11198_v5 = vpop.f32.mrf.mxu3 }
 0x898   : > { %14026 = vst [vmem:[#allocation106_spill] sm:$0xff] %v11196_v14 }
 0x89a   : > { %8005 = vmatmul.msk.f32.vlgmr.msra.gmra.mxu1 %vm3852_vm1, %v11205_v47 }
 0x89b   : > { %7960 = vmatmul.msk.f32.gmra.mxu2 %vm3852_vm1, %v11018_v9 }
 0x89c   : > { %7994 = vmatmul.msk.f32.gmra.mxu3 %vm3852_vm1, %v11044_v52 }
 0x89e   : > { %v11209_v61 = vpop.f32.mrf.mxu2 }
 0x89f   : > { %v11213_v4 = vpop.f32.mrf.mxu1  ;;  %v11215_v36 = vpop.f32.mrf.mxu3 }
 0x8a0   : > { %14027 = vst [vmem:[#allocation113_spill] sm:$0xff] %v11213_v4  ;;  %v11273_v4 = vld [vmem:[%s13315_s1 + $0x20] sm:$0xff] }
 0x8a2   : > { %8006 = vmatmul.msk.f32.gmra.mxu1 %vm3852_vm1, %v11222_v56 }
 0x8a3   : > { %7961 = vmatmul.msk.f32.gmra.mxu2 %vm3852_vm1, %v11031_v2 }
 0x8a4   : > { %7995 = vmatmul.msk.f32.gmra.mxu3 %vm3852_vm1, %v11057_v26 }
 0x8a6   : > { %v11228_v15 = vpop.f32.mrf.mxu2 }
 0x8a7   : > { %v11230_v13 = vpop.f32.mrf.mxu1  ;;  %v11232_v60 = vpop.f32.mrf.mxu3 }
 0x8a8   : > { %14028 = vst [vmem:[#allocation2_spill] sm:$0xff] %v11230_v13  ;;  %v11256_v13 = vld [vmem:[%s13315_s1 + $0x18] sm:$0xff] }
 0x8a9   : > { %14029 = vst [vmem:[#allocation38_spill] sm:$0xff] %v11232_v60 }
 0x8aa   : > { %8007 = vmatmul.msk.f32.gmra.mxu1 %vm3852_vm1, %v11239_v17 }
 0x8ab   : > { %7962 = vmatmul.msk.f32.gmra.mxu2 %vm3852_vm1, %v11044_v52 }
 0x8ac   : > { %7996 = vmatmul.msk.f32.gmra.mxu3 %vm3852_vm1, %v11070_v19 }
 0x8ae   : > { %v11245_v63 = vpop.f32.mrf.mxu2 }
 0x8af   : > { %v11247_v3 = vpop.f32.mrf.mxu1  ;;  %v11249_v45 = vpop.f32.mrf.mxu3 }
 0x8b0   : > { %14030 = vst [vmem:[#allocation37_spill] sm:$0xff] %v11247_v3 }
 0x8b1   : > { %14031 = vst [vmem:[#allocation36_spill] sm:$0xff] %v11249_v45 }
 0x8b2   : > { %8008 = vmatmul.msk.f32.gmra.mxu1 %vm3852_vm1, %v11256_v13 }
 0x8b3   : > { %7963 = vmatmul.msk.f32.gmra.mxu2 %vm3852_vm1, %v11057_v26 }
 0x8b4   : > { %7997 = vmatmul.msk.f32.gmra.mxu3 %vm3852_vm1, %v11083_v28 }
 0x8b6   : > { %v11262_v39 = vpop.f32.mrf.mxu2 }
 0x8b7   : > { %14032 = vst [vmem:[#allocation35_spill] sm:$0xff] %v11262_v39  ;;  %v11264_v29 = vpop.f32.mrf.mxu1  ;;  %v11266_v3 = vpop.f32.mrf.mxu3 }
 0x8b8   : > { %14033 = vst [vmem:[#allocation34_spill] sm:$0xff] %v11264_v29 }
 0x8b9   : > { %14034 = vst [vmem:[#allocation33_spill] sm:$0xff] %v11266_v3 }
 0x8ba   : > { %8009 = vmatmul.msk.f32.gmra.mxu1 %vm3852_vm1, %v11273_v4 }
 0x8bb   : > { %7964 = vmatmul.msk.f32.gmra.mxu2 %vm3852_vm1, %v11070_v19 }
 0x8bc   : > { %7998 = vmatmul.msk.f32.gmra.mxu3 %vm3852_vm1, %v11096_v40 }
 0x8be   : > { %v11279_v14 = vpop.f32.mrf.mxu2 }
 0x8bf   : > { %14035 = vst [vmem:[#allocation32_spill] sm:$0xff] %v11279_v14  ;;  %v11281_v33 = vpop.f32.mrf.mxu1  ;;  %v11283_v29 = vpop.f32.mrf.mxu3 }
 0x8c0   : > { %14036 = vst [vmem:[#allocation31_spill] sm:$0xff] %v11281_v33 }
 0x8c1   : > { %14037 = vst [vmem:[#allocation30_spill] sm:$0xff] %v11283_v29 }
 0x8c2   : > { %8010 = vmatmul.msk.f32.gmra.mxu1 %vm3852_vm1, %v13993_v6 }
 0x8c3   : > { %7965 = vmatmul.msk.f32.gmra.mxu2 %vm3852_vm1, %v11083_v28 }
 0x8c4   : > { %7999 = vmatmul.msk.f32.gmra.mxu3 %vm3852_vm1, %v11109_v41 }
 0x8c6   : > { %v11291_v25 = vpop.f32.mrf.mxu2 }
 0x8c7   : > { %14038 = vst [vmem:[#allocation161_spill] sm:$0xff] %v11291_v25  ;;  %v11293_v3 = vpop.f32.mrf.mxu1  ;;  %v11295_v59 = vpop.f32.mrf.mxu3 }
 0x8c8   : > { %14039 = vst [vmem:[#allocation168_spill] sm:$0xff] %v11293_v3 }
 0x8c9   : > { %14040 = vst [vmem:[#allocation29_spill] sm:$0xff] %v11295_v59 }
 0x8ca   : > { %8011 = vmatmul.msk.f32.gmra.mxu1 %vm3852_vm1, %v14010_v34 }
 0x8cb   : > { %7966 = vmatmul.msk.f32.gmra.mxu2 %vm3852_vm1, %v11096_v40 }
 0x8cc   : > { %8000 = vmatmul.msk.f32.gmra.mxu3 %vm3852_vm1, %v11122_v24 }
 0x8ce   : > { %v11303_v33 = vpop.f32.mrf.mxu2 }
 0x8cf   : > { %14041 = vst [vmem:[#allocation160_spill] sm:$0xff] %v11303_v33  ;;  %v11305_v6 = vpop.f32.mrf.mxu1  ;;  %v11307_v29 = vpop.f32.mrf.mxu3 }
 0x8d0   : > { %14042 = vst [vmem:[#allocation166_spill] sm:$0xff] %v11305_v6 }
 0x8d1   : > { %14043 = vst [vmem:[#allocation167_spill] sm:$0xff] %v11307_v29 }
 0x8d2   : > { %8012 = vmatmul.msk.f32.gmra.mxu1 %vm3852_vm1, %v14013_v35 }
 0x8d3   : > { %7967 = vmatmul.msk.f32.gmra.mxu2 %vm3852_vm1, %v11109_v41 }
 0x8d4   : > { %8001 = vmatmul.msk.f32.gmra.mxu3 %vm3852_vm1, %v11135_v50 }
 0x8d6   : > { %v11315_v3 = vpop.f32.mrf.mxu2 }
 0x8d7   : > { %14044 = vst [vmem:[#allocation28_spill] sm:$0xff] %v11315_v3  ;;  %v11317_v34 = vpop.f32.mrf.mxu1  ;;  %v11319_v59 = vpop.f32.mrf.mxu3 }
 0x8d8   : > { %14045 = vst [vmem:[#allocation159_spill] sm:$0xff] %v11317_v34 }
 0x8d9   : > { %14046 = vst [vmem:[#allocation164_spill] sm:$0xff] %v11319_v59 }
 0x8da   : > { %8013 = vmatmul.msk.f32.gmra.mxu1 %vm3852_vm1, %v14014_v44 }
 0x8db   : > { %7968 = vmatmul.msk.f32.gmra.mxu2 %vm3852_vm1, %v11122_v24 }
 0x8dc   : > { %8002 = vmatmul.msk.f32.gmra.mxu3 %vm3852_vm1, %v11150_v37 }
 0x8de   : > { %v11327_v6 = vpop.f32.mrf.mxu2 }
 0x8df   : > { %14047 = vst [vmem:[#allocation165_spill] sm:$0xff] %v11327_v6  ;;  %v11329_v35 = vpop.f32.mrf.mxu1  ;;  %v11331_v29 = vpop.f32.mrf.mxu3 }
 0x8e0   : > { %14048 = vst [vmem:[#allocation27_spill] sm:$0xff] %v11329_v35 }
 0x8e1   : > { %14049 = vst [vmem:[#allocation158_spill] sm:$0xff] %v11331_v29 }
 0x8e2   : > { %8014 = vmatmul.msk.f32.gmra.mxu1 %vm3852_vm1, %v14015_v22 }
 0x8e3   : > { %7969 = vmatmul.msk.f32.gmra.mxu2 %vm3852_vm1, %v11135_v50 }
 0x8e4   : > { %8003 = vmatmul.msk.f32.gmra.mxu3 %vm3852_vm1, %v11167_v51 }
 0x8e6   : > { %v11339_v34 = vpop.f32.mrf.mxu2 }
 0x8e7   : > { %14050 = vst [vmem:[#allocation162_spill] sm:$0xff] %v11339_v34  ;;  %v11341_v44 = vpop.f32.mrf.mxu1  ;;  %v11343_v59 = vpop.f32.mrf.mxu3 }
 0x8e8   : > { %14051 = vst [vmem:[#allocation163_spill] sm:$0xff] %v11341_v44 }
 0x8e9   : > { %14052 = vst [vmem:[#allocation26_spill] sm:$0xff] %v11343_v59 }
 0x8ea   : > { %8015 = vmatmul.msk.f32.gmra.mxu1 %vm3852_vm1, %v10678_v12 }
 0x8eb   : > { %7970 = vmatmul.msk.f32.gmra.mxu2 %vm3852_vm1, %v11150_v37 }
 0x8ec   : > { %8004 = vmatmul.msk.f32.gmra.mxu3 %vm3852_vm1, %v11184_v48 }
 0x8ee   : > { %v11351_v35 = vpop.f32.mrf.mxu2 }
 0x8ef   : > { %14053 = vst [vmem:[#allocation78_spill] sm:$0xff] %v11351_v35  ;;  %v11353_v22 = vpop.f32.mrf.mxu1  ;;  %v11355_v29 = vpop.f32.mrf.mxu3 }
 0x8f0   : > { %14054 = vst [vmem:[#allocation245_spill] sm:$0xff] %v11353_v22 }
 0x8f1   : > { %14055 = vst [vmem:[#allocation85_spill] sm:$0xff] %v11355_v29 }
 0x8f2   : > { %8016 = vmatmul.msk.f32.gmra.mxu1 %vm3852_vm1, %v10717_v11 }
 0x8f3   : > { %7971 = vmatmul.msk.f32.gmra.mxu2 %vm3852_vm1, %v11167_v51 }
 0x8f4   : > { %8069 = vmatmul.msk.f32.vlgmr.msra.gmra.mxu3 %vm3852_vm1, %v11205_v47 }
 0x8f6   : > { %v11363_v44 = vpop.f32.mrf.mxu2 }
 0x8f7   : > { %14056 = vst [vmem:[#allocation76_spill] sm:$0xff] %v11363_v44  ;;  %v11365_v59 = vpop.f32.mrf.mxu1  ;;  %v11367_v34 = vpop.f32.mrf.mxu3 }
 0x8f8   : > { %14057 = vst [vmem:[#allocation244_spill] sm:$0xff] %v11365_v59 }
 0x8f9   : > { %14058 = vst [vmem:[#allocation83_spill] sm:$0xff] %v11367_v34 }
 0x8fa   : > { %8017 = vmatmul.msk.f32.gmra.mxu1 %vm3852_vm1, %v10773_v31 }
 0x8fb   : > { %7972 = vmatmul.msk.f32.gmra.mxu2 %vm3852_vm1, %v11184_v48 }
 0x8fc   : > { %8070 = vmatmul.msk.f32.gmra.mxu3 %vm3852_vm1, %v11222_v56 }
 0x8fe   : > { %v11375_v22 = vpop.f32.mrf.mxu2 }
 0x8ff   : > { %14059 = vst [vmem:[#allocation285_spill] sm:$0xff] %v11375_v22  ;;  %v11377_v29 = vpop.f32.mrf.mxu1  ;;  %v11379_v35 = vpop.f32.mrf.mxu3 }
 0x900   : > { %14060 = vst [vmem:[#allocation74_spill] sm:$0xff] %v11377_v29 }
 0x901   : > { %14061 = vst [vmem:[#allocation243_spill] sm:$0xff] %v11379_v35 }
 0x902   : > { %8018 = vmatmul.msk.f32.gmra.mxu1 %vm3852_vm1, %v10830_v27 }
 0x903   : > { %8037 = vmatmul.msk.f32.vlgmr.msra.gmra.mxu2 %vm3852_vm1, %v11205_v47 }
 0x904   : > { %8071 = vmatmul.msk.f32.gmra.mxu3 %vm3852_vm1, %v11239_v17 }
 0x906   : > { %v11387_v59 = vpop.f32.mrf.mxu2 }
 0x907   : > { %14062 = vst [vmem:[#allocation81_spill] sm:$0xff] %v11387_v59  ;;  %v11389_v34 = vpop.f32.mrf.mxu1  ;;  %v11391_v44 = vpop.f32.mrf.mxu3 }
 0x908   : > { %14063 = vst [vmem:[#allocation283_spill] sm:$0xff] %v11389_v34 }
 0x909   : > { %14064 = vst [vmem:[#allocation72_spill] sm:$0xff] %v11391_v44 }
 0x90a   : > { %8019 = vmatmul.msk.f32.gmra.mxu1 %vm3852_vm1, %v10869_v10 }
 0x90b   : > { %8038 = vmatmul.msk.f32.gmra.mxu2 %vm3852_vm1, %v11222_v56 }
 0x90c   : > { %8072 = vmatmul.msk.f32.gmra.mxu3 %vm3852_vm1, %v11256_v13 }
 0x90e   : > { %v11399_v29 = vpop.f32.mrf.mxu2 }
 0x90f   : > { %14065 = vst [vmem:[#allocation242_spill] sm:$0xff] %v11399_v29  ;;  %v11401_v35 = vpop.f32.mrf.mxu1  ;;  %v11403_v22 = vpop.f32.mrf.mxu3 }
 0x910   : > { %14066 = vst [vmem:[#allocation79_spill] sm:$0xff] %v11401_v35  ;;  %v11424_v35 = vld [vmem:[%s13315_s1 + $0x28] sm:$0xff] }
 0x911   : > { %14067 = vst [vmem:[#allocation281_spill] sm:$0xff] %v11403_v22 }
 0x912   : > { %8020 = vmatmul.msk.f32.gmra.mxu1 %vm3852_vm1, %v10906_v23 }
 0x913   : > { %8039 = vmatmul.msk.f32.gmra.mxu2 %vm3852_vm1, %v11239_v17 }
 0x914   : > { %8073 = vmatmul.msk.f32.gmra.mxu3 %vm3852_vm1, %v11273_v4 }
 0x916   : > { %v11411_v34 = vpop.f32.mrf.mxu2 }
 0x917   : > { %14068 = vst [vmem:[#allocation70_spill] sm:$0xff] %v11411_v34  ;;  %v11413_v44 = vpop.f32.mrf.mxu1  ;;  %v11415_v59 = vpop.f32.mrf.mxu3 }
 0x918   : > { %14069 = vst [vmem:[#allocation241_spill] sm:$0xff] %v11415_v59  ;;  %v11441_v59 = vld [vmem:[%s13315_s1 + $0x30] sm:$0xff] }
 0x91a   : > { %8021 = vmatmul.msk.f32.gmra.mxu1 %vm3852_vm1, %v10939_v57 }
 0x91b   : > { %8040 = vmatmul.msk.f32.gmra.mxu2 %vm3852_vm1, %v11256_v13 }
 0x91c   : > { %8074 = vmatmul.msk.f32.gmra.mxu3 %vm3852_vm1, %v11424_v35 }
 0x91e   : > { %v11428_v22 = vpop.f32.mrf.mxu2 }
 0x91f   : > { %14070 = vst [vmem:[#allocation77_spill] sm:$0xff] %v11428_v22  ;;  %v11430_v34 = vpop.f32.mrf.mxu1  ;;  %v11432_v29 = vpop.f32.mrf.mxu3 }
 0x920   : > { %14071 = vst [vmem:[#allocation240_spill] sm:$0xff] %v11432_v29  ;;  %v11458_v29 = vld [vmem:[%s13315_s1 + $0x38] sm:$0xff] }
 0x922   : > { %8022 = vmatmul.msk.f32.gmra.mxu1 %vm3852_vm1, %v10972_v58 }
 0x923   : > { %8041 = vmatmul.msk.f32.gmra.mxu2 %vm3852_vm1, %v11273_v4 }
 0x924   : > { %8075 = vmatmul.msk.f32.gmra.mxu3 %vm3852_vm1, %v11441_v59 }
 0x926   : > { %v11445_v33 = vpop.f32.mrf.mxu2 }
 0x927   : > { %14072 = vst [vmem:[#allocation75_spill] sm:$0xff] %v11445_v33  ;;  %v11447_v22 = vpop.f32.mrf.mxu1  ;;  %v11449_v25 = vpop.f32.mrf.mxu3 }
 0x928   : > { %14073 = vst [vmem:[#allocation279_spill] sm:$0xff] %v11449_v25  ;;  %v11475_v25 = vld [vmem:[%s13315_s1 + $0x40] sm:$0xff] }
 0x92a   : > { %8023 = vmatmul.msk.f32.gmra.mxu1 %vm3852_vm1, %v11001_v18 }
 0x92b   : > { %8042 = vmatmul.msk.f32.gmra.mxu2 %vm3852_vm1, %v11424_v35 }
 0x92c   : > { %8076 = vmatmul.msk.f32.gmra.mxu3 %vm3852_vm1, %v11458_v29 }
 0x92e   : > { %v11462_v6 = vpop.f32.mrf.mxu2 }
 0x92f   : > { %14074 = vst [vmem:[#allocation277_spill] sm:$0xff] %v11462_v6  ;;  %v11464_v33 = vpop.f32.mrf.mxu1  ;;  %v11466_v3 = vpop.f32.mrf.mxu3 }
 0x930   : > { %14075 = vst [vmem:[#allocation239_spill] sm:$0xff] %v11466_v3  ;;  %v11492_v3 = vld [vmem:[%s13315_s1 + $0x48] sm:$0xff] }
 0x932   : > { %8024 = vmatmul.msk.f32.gmra.mxu1 %vm3852_vm1, %v11018_v9 }
 0x933   : > { %8043 = vmatmul.msk.f32.gmra.mxu2 %vm3852_vm1, %v11441_v59 }
 0x934   : > { %8077 = vmatmul.msk.f32.gmra.mxu3 %vm3852_vm1, %v11475_v25 }
 0x936   : > { %v11479_v45 = vpop.f32.mrf.mxu2 }
 0x937   : > { %14076 = vst [vmem:[#allocation73_spill] sm:$0xff] %v11479_v45  ;;  %v11481_v6 = vpop.f32.mrf.mxu1  ;;  %v11483_v0 = vpop.f32.mrf.mxu3 }
 0x938   : > { %14077 = vst [vmem:[#allocation275_spill] sm:$0xff] %v11483_v0 }
 0x93a   : > { %8025 = vmatmul.msk.f32.gmra.mxu1 %vm3852_vm1, %v11031_v2 }
 0x93b   : > { %8044 = vmatmul.msk.f32.gmra.mxu2 %vm3852_vm1, %v11458_v29 }
 0x93c   : > { %8078 = vmatmul.msk.f32.gmra.mxu3 %vm3852_vm1, %v11492_v3 }
 0x93e   : > { %v11496_v42 = vpop.f32.mrf.mxu2 }
 0x93f   : > { %14078 = vst [vmem:[#allocation238_spill] sm:$0xff] %v11496_v42  ;;  %v11498_v45 = vpop.f32.mrf.mxu1  ;;  %v11500_v60 = vpop.f32.mrf.mxu3 }
 0x940   : > { %14079 = vst [vmem:[#allocation71_spill] sm:$0xff] %v11500_v60 }
 0x942   : > { %8026 = vmatmul.msk.f32.gmra.mxu1 %vm3852_vm1, %v11044_v52 }
 0x943   : > { %8045 = vmatmul.msk.f32.gmra.mxu2 %vm3852_vm1, %v11475_v25 }
 0x944   : > { %8079 = vmatmul.msk.f32.gmra.mxu3 %vm3852_vm1, %v10678_v12 }
 0x946   : > { %v11508_v0 = vpop.f32.mrf.mxu2 }
 0x947   : > { %14080 = vst [vmem:[#allocation273_spill] sm:$0xff] %v11508_v0  ;;  %v11510_v16 = vpop.f32.mrf.mxu1  ;;  %v11512_v14 = vpop.f32.mrf.mxu3 }
 0x948   : > { %14081 = vst [vmem:[#allocation237_spill] sm:$0xff] %v11510_v16 }
 0x949   : > { %14082 = vst [vmem:[#allocation69_spill] sm:$0xff] %v11512_v14  ;;  %v11531_v14 = vld [vmem:[%s13315_s1 + $0x50] sm:$0xff] }
 0x94a   : > { %8027 = vmatmul.msk.f32.gmra.mxu1 %vm3852_vm1, %v11057_v26 }
 0x94b   : > { %8046 = vmatmul.msk.f32.gmra.mxu2 %vm3852_vm1, %v11492_v3 }
 0x94c   : > { %8080 = vmatmul.msk.f32.gmra.mxu3 %vm3852_vm1, %v10717_v11 }
 0x94e   : > { %v11520_v60 = vpop.f32.mrf.mxu2 }
 0x94f   : > { %14083 = vst [vmem:[#allocation271_spill] sm:$0xff] %v11520_v60  ;;  %v11522_v42 = vpop.f32.mrf.mxu1  ;;  %v11524_v12 = vpop.f32.mrf.mxu3 }
 0x950   : > { %14084 = vst [vmem:[#allocation235_spill] sm:$0xff] %v11522_v42 }
 0x951   : > { %14085 = vst [vmem:[#allocation68_spill] sm:$0xff] %v11524_v12 }
 0x952   : > { %8028 = vmatmul.msk.f32.gmra.mxu1 %vm3852_vm1, %v11070_v19 }
 0x953   : > { %8047 = vmatmul.msk.f32.gmra.mxu2 %vm3852_vm1, %v11531_v14 }
 0x954   : > { %8081 = vmatmul.msk.f32.gmra.mxu3 %vm3852_vm1, %v10773_v31 }
 0x956   : > { %v11537_v0 = vpop.f32.mrf.mxu2 }
 0x957   : > { %14086 = vst [vmem:[#allocation269_spill] sm:$0xff] %v11537_v0  ;;  %v11539_v60 = vpop.f32.mrf.mxu1  ;;  %v11541_v42 = vpop.f32.mrf.mxu3 }
 0x958   : > { %14087 = vst [vmem:[#allocation233_spill] sm:$0xff] %v11539_v60 }
 0x959   : > { %14088 = vst [vmem:[#allocation67_spill] sm:$0xff] %v11541_v42 }
 0x95a   : > { %8029 = vmatmul.msk.f32.gmra.mxu1 %vm3852_vm1, %v11083_v28 }
 0x95b   : > { %8048 = vmatmul.msk.f32.gmra.mxu2 %vm3852_vm1, %v10717_v11 }
 0x95c   : > { %8082 = vmatmul.msk.f32.gmra.mxu3 %vm3852_vm1, %v10830_v27 }
 0x95e   : > { %v11549_v12 = vpop.f32.mrf.mxu2 }
 0x95f   : > { %14089 = vst [vmem:[#allocation236_spill] sm:$0xff] %v11549_v12  ;;  %v11551_v16 = vpop.f32.mrf.mxu1  ;;  %v11553_v39 = vpop.f32.mrf.mxu3 }
 0x960   : > { %14090 = vst [vmem:[#allocation284_spill] sm:$0xff] %v11551_v16 }
 0x961   : > { %14091 = vst [vmem:[#allocation231_spill] sm:$0xff] %v11553_v39 }
 0x962   : > { %8030 = vmatmul.msk.f32.gmra.mxu1 %vm3852_vm1, %v11096_v40 }
 0x963   : > { %8049 = vmatmul.msk.f32.gmra.mxu2 %vm3852_vm1, %v10773_v31 }
 0x964   : > { %8083 = vmatmul.msk.f32.gmra.mxu3 %vm3852_vm1, %v10869_v10 }
 0x966   : > { %v11561_v42 = vpop.f32.mrf.mxu2 }
 0x967   : > { %14092 = vst [vmem:[#allocation66_spill] sm:$0xff] %v11561_v42  ;;  %v11563_v11 = vpop.f32.mrf.mxu1  ;;  %v11565_v0 = vpop.f32.mrf.mxu3 }
 0x968   : > { %14093 = vst [vmem:[#allocation234_spill] sm:$0xff] %v11563_v11 }
 0x969   : > { %14094 = vst [vmem:[#allocation282_spill] sm:$0xff] %v11565_v0 }
 0x96a   : > { %8031 = vmatmul.msk.f32.gmra.mxu1 %vm3852_vm1, %v11109_v41 }
 0x96b   : > { %8050 = vmatmul.msk.f32.gmra.mxu2 %vm3852_vm1, %v10830_v27 }
 0x96c   : > { %8084 = vmatmul.msk.f32.gmra.mxu3 %vm3852_vm1, %v10906_v23 }
 0x96e   : > { %v11573_v39 = vpop.f32.mrf.mxu2 }
 0x96f   : > { %14095 = vst [vmem:[#allocation229_spill] sm:$0xff] %v11573_v39  ;;  %v11575_v31 = vpop.f32.mrf.mxu1  ;;  %v11577_v12 = vpop.f32.mrf.mxu3 }
 0x970   : > { %14096 = vst [vmem:[#allocation65_spill] sm:$0xff] %v11575_v31 }
 0x971   : > { %14097 = vst [vmem:[#allocation134_spill] sm:$0xff] %v11577_v12 }
 0x972   : > { %8032 = vmatmul.msk.f32.gmra.mxu1 %vm3852_vm1, %v11122_v24 }
 0x973   : > { %8051 = vmatmul.msk.f32.gmra.mxu2 %vm3852_vm1, %v10869_v10 }
 0x974   : > { %8085 = vmatmul.msk.f32.gmra.mxu3 %vm3852_vm1, %v10939_v57 }
 0x976   : > { %v11585_v0 = vpop.f32.mrf.mxu2 }
 0x977   : > { %14098 = vst [vmem:[#allocation12_spill] sm:$0xff] %v11585_v0  ;;  %v11587_v27 = vpop.f32.mrf.mxu1  ;;  %v11589_v42 = vpop.f32.mrf.mxu3 }
 0x978   : > { %14099 = vst [vmem:[#allocation136_spill] sm:$0xff] %v11587_v27 }
 0x979   : > { %14100 = vst [vmem:[#allocation13_spill] sm:$0xff] %v11589_v42 }
 0x97a   : > { %8033 = vmatmul.msk.f32.gmra.mxu1 %vm3852_vm1, %v11135_v50 }
 0x97b   : > { %8052 = vmatmul.msk.f32.gmra.mxu2 %vm3852_vm1, %v10906_v23 }
 0x97c   : > { %8086 = vmatmul.msk.f32.gmra.mxu3 %vm3852_vm1, %v10972_v58 }
 0x97e   : > { %v11597_v12 = vpop.f32.mrf.mxu2 }
 0x97f   : > { %14101 = vst [vmem:[#allocation138_spill] sm:$0xff] %v11597_v12  ;;  %v11599_v39 = vpop.f32.mrf.mxu1  ;;  %v11601_v16 = vpop.f32.mrf.mxu3 }
 0x980   : > { %14102 = vst [vmem:[#allocation14_spill] sm:$0xff] %v11599_v39 }
 0x981   : > { %14103 = vst [vmem:[#allocation140_spill] sm:$0xff] %v11601_v16 }
 0x982   : > { %8034 = vmatmul.msk.f32.gmra.mxu1 %vm3852_vm1, %v11150_v37 }
 0x983   : > { %8053 = vmatmul.msk.f32.gmra.mxu2 %vm3852_vm1, %v10939_v57 }
 0x984   : > { %8087 = vmatmul.msk.f32.gmra.mxu3 %vm3852_vm1, %v11001_v18 }
 0x986   : > { %v11609_v0 = vpop.f32.mrf.mxu2 }
 0x987   : > { %14104 = vst [vmem:[#allocation15_spill] sm:$0xff] %v11609_v0  ;;  %v11611_v27 = vpop.f32.mrf.mxu1  ;;  %v11613_v60 = vpop.f32.mrf.mxu3 }
 0x988   : > { %14105 = vst [vmem:[#allocation142_spill] sm:$0xff] %v11611_v27 }
 0x98a   : > { %8035 = vmatmul.msk.f32.gmra.mxu1 %vm3852_vm1, %v11167_v51 }
 0x98b   : > { %8054 = vmatmul.msk.f32.gmra.mxu2 %vm3852_vm1, %v10972_v58 }
 0x98c   : > { %8088 = vmatmul.msk.f32.gmra.mxu3 %vm3852_vm1, %v11018_v9 }
 0x98e   : > { %v11621_v12 = vpop.f32.mrf.mxu2 }
 0x98f   : > { %14106 = vst [vmem:[#allocation16_spill] sm:$0xff] %v11621_v12  ;;  %v11623_v39 = vpop.f32.mrf.mxu1  ;;  %v11625_v31 = vpop.f32.mrf.mxu3 }
 0x990   : > { %14107 = vst [vmem:[#allocation144_spill] sm:$0xff] %v11623_v39 }
 0x992   : > { %8036 = vmatmul.msk.f32.gmra.mxu1 %vm3852_vm1, %v11184_v48 }
 0x993   : > { %8055 = vmatmul.msk.f32.gmra.mxu2 %vm3852_vm1, %v11001_v18 }
 0x994   : > { %8089 = vmatmul.msk.f32.gmra.mxu3 %vm3852_vm1, %v11031_v2 }
 0x996   : > { %v11633_v27 = vpop.f32.mrf.mxu2 }
 0x997   : > { %v11635_v11 = vpop.f32.mrf.mxu1  ;;  %v11637_v21 = vpop.f32.mrf.mxu3 }
 0x998   : > { %14108 = vst [vmem:[#allocation17_spill] sm:$0xff] %v11635_v11 }
 0x999   : > { %14109 = vst [vmem:[#allocation146_spill] sm:$0xff] %v11637_v21 }
 0x99a   : > { %8101 = vmatmul.msk.f32.vlgmr.msrb.gmra.mxu1 %vm3852_vm1, %v11205_v47 }
 0x99b   : > { %8056 = vmatmul.msk.f32.gmra.mxu2 %vm3852_vm1, %v11018_v9 }
 0x99c   : > { %8090 = vmatmul.msk.f32.gmra.mxu3 %vm3852_vm1, %v11044_v52 }
 0x99e   : > { %v11645_v39 = vpop.f32.mrf.mxu2 }
 0x99f   : > { %v11647_v46 = vpop.f32.mrf.mxu1  ;;  %v11649_v16 = vpop.f32.mrf.mxu3 }
 0x9a0   : > { %14110 = vst [vmem:[#allocation18_spill] sm:$0xff] %v11647_v46 }
 0x9a1   : > { %14111 = vst [vmem:[#allocation150_spill] sm:$0xff] %v11649_v16 }
 0x9a2   : > { %8102 = vmatmul.msk.f32.gmra.mxu1 %vm3852_vm1, %v11222_v56 }
 0x9a3   : > { %8057 = vmatmul.msk.f32.gmra.mxu2 %vm3852_vm1, %v11031_v2 }
 0x9a4   : > { %8091 = vmatmul.msk.f32.gmra.mxu3 %vm3852_vm1, %v11057_v26 }
 0x9a6   : > { %v11657_v11 = vpop.f32.mrf.mxu2 }
 0x9a7   : > { %v11659_v42 = vpop.f32.mrf.mxu1  ;;  %v11661_v12 = vpop.f32.mrf.mxu3 }
 0x9a8   : > { %14112 = vst [vmem:[#allocation148_spill] sm:$0xff] %v11659_v42 }
 0x9a9   : > { %14113 = vst [vmem:[#allocation19_spill] sm:$0xff] %v11661_v12 }
 0x9aa   : > { %8103 = vmatmul.msk.f32.gmra.mxu1 %vm3852_vm1, %v11239_v17 }
 0x9ab   : > { %8058 = vmatmul.msk.f32.gmra.mxu2 %vm3852_vm1, %v11044_v52 }
 0x9ac   : > { %8092 = vmatmul.msk.f32.gmra.mxu3 %vm3852_vm1, %v11070_v19 }
 0x9ae   : > { %v11669_v46 = vpop.f32.mrf.mxu2 }
 0x9af   : > { %14114 = vst [vmem:[#allocation149_spill] sm:$0xff] %v11669_v46  ;;  %v11671_v16 = vpop.f32.mrf.mxu1  ;;  %v11673_v21 = vpop.f32.mrf.mxu3 }
 0x9b0   : > { %14115 = vst [vmem:[#allocation20_spill] sm:$0xff] %v11671_v16 }
 0x9b1   : > { %14116 = vst [vmem:[#allocation151_spill] sm:$0xff] %v11673_v21 }
 0x9b2   : > { %8104 = vmatmul.msk.f32.gmra.mxu1 %vm3852_vm1, %v11256_v13 }
 0x9b3   : > { %8059 = vmatmul.msk.f32.gmra.mxu2 %vm3852_vm1, %v11057_v26 }
 0x9b4   : > { %8093 = vmatmul.msk.f32.gmra.mxu3 %vm3852_vm1, %v11083_v28 }
 0x9b6   : > { %v11681_v42 = vpop.f32.mrf.mxu2 }
 0x9b7   : > { %14117 = vst [vmem:[#allocation21_spill] sm:$0xff] %v11681_v42  ;;  %v11683_v12 = vpop.f32.mrf.mxu1  ;;  %v11685_v0 = vpop.f32.mrf.mxu3 }
 0x9b8   : > { %14118 = vst [vmem:[#allocation153_spill] sm:$0xff] %v11683_v12 }
 0x9b9   : > { %14119 = vst [vmem:[#allocation22_spill] sm:$0xff] %v11685_v0 }
 0x9ba   : > { %8105 = vmatmul.msk.f32.gmra.mxu1 %vm3852_vm1, %v11273_v4 }
 0x9bb   : > { %8060 = vmatmul.msk.f32.gmra.mxu2 %vm3852_vm1, %v11070_v19 }
 0x9bc   : > { %8094 = vmatmul.msk.f32.gmra.mxu3 %vm3852_vm1, %v11096_v40 }
 0x9be   : > { %v11693_v16 = vpop.f32.mrf.mxu2 }
 0x9bf   : > { %14120 = vst [vmem:[#allocation155_spill] sm:$0xff] %v11693_v16  ;;  %v11695_v21 = vpop.f32.mrf.mxu1  ;;  %v11697_v46 = vpop.f32.mrf.mxu3  ;;  %v8166_v16 = vld [vmem:[%s13318_s4 + $0x28] sm:$0xff] }
 0x9c0   : > { %14121 = vst [vmem:[#allocation23_spill] sm:$0xff] %v11695_v21  ;;  %v8168_v21 = vld [vmem:[%s13318_s4 + $0x38] sm:$0xff] }
 0x9c1   : > { %14122 = vst [vmem:[#allocation156_spill] sm:$0xff] %v11697_v46  ;;  %4923 = vmatpush.msrb.mxu3 %v8168_v21  ;;  %v8165_v21 = vld [vmem:[%s13318_s4 + $0x20] sm:$0xff] }
 0x9c2   : > { %8106 = vmatmul.msk.f32.gmra.mxu1 %vm3852_vm1, %v11424_v35 }
 0x9c3   : > { %8061 = vmatmul.msk.f32.gmra.mxu2 %vm3852_vm1, %v11083_v28 }
 0x9c4   : > { %8095 = vmatmul.msk.f32.gmra.mxu3 %vm3852_vm1, %v11109_v41 }
 0x9c6   : > { %v11705_v12 = vpop.f32.mrf.mxu2 }
 0x9c7   : > { %14123 = vst [vmem:[#allocation24_spill] sm:$0xff] %v11705_v12  ;;  %v11707_v0 = vpop.f32.mrf.mxu1  ;;  %v11709_v42 = vpop.f32.mrf.mxu3 }
 0x9c8   : > { %14124 = vst [vmem:[#allocation157_spill] sm:$0xff] %v11707_v0  ;;  %v8167_v0 = vld [vmem:[%s13318_s4 + $0x30] sm:$0xff] }
 0x9c9   : > { %14125 = vst [vmem:[#allocation25_spill] sm:$0xff] %v11709_v42  ;;  %4924 = vmatpush.msrb.mxu3 %v8167_v0 }
 0x9ca   : > { %8107 = vmatmul.msk.f32.gmra.mxu1 %vm3852_vm1, %v11441_v59 }
 0x9cb   : > { %8062 = vmatmul.msk.f32.gmra.mxu2 %vm3852_vm1, %v11096_v40  ;;  %4925 = vmatpush.msrb.mxu3 %v8166_v16 }
 0x9cc   : > { %8096 = vmatmul.msk.f32.gmra.mxu3 %vm3852_vm1, %v11122_v24 }
 0x9cd   : > { %4926 = vmatpush.msrb.mxu3 %v8165_v21 }
 0x9ce   : > { %v11720_v46 = vpop.f32.mrf.mxu2 }
 0x9cf   : > { %14126 = vst [vmem:[#allocation147_spill] sm:$0xff] %v11720_v46  ;;  %v11725_v42 = vpop.f32.mrf.mxu1  ;;  %v11727_v12 = vpop.f32.mrf.mxu3 }
 0x9d0   : > { %14127 = vst [vmem:[#allocation201_spill] sm:$0xff] %v11725_v42 }
 0x9d1   : > { %14128 = vst [vmem:[#allocation254_spill] sm:$0xff] %v11727_v12 }
 0x9d2   : > { %8108 = vmatmul.msk.f32.gmra.mxu1 %vm3852_vm1, %v11458_v29 }
 0x9d3   : > { %8063 = vmatmul.msk.f32.gmra.mxu2 %vm3852_vm1, %v11109_v41 }
 0x9d4   : > { %8097 = vmatmul.msk.f32.gmra.mxu3 %vm3852_vm1, %v11135_v50 }
 0x9d6   : > { %v11741_v0 = vpop.f32.mrf.mxu2 }
 0x9d7   : > { %14129 = vst [vmem:[#allocation145_spill] sm:$0xff] %v11741_v0  ;;  %v11743_v42 = vpop.f32.mrf.mxu1  ;;  %v11745_v12 = vpop.f32.mrf.mxu3 }
 0x9d8   : > { %14130 = vst [vmem:[#allocation152_spill] sm:$0xff] %v11743_v42 }
 0x9d9   : > { %14131 = vst [vmem:[#allocation51_spill] sm:$0xff] %v11745_v12 }
 0x9da   : > { %8109 = vmatmul.msk.f32.gmra.mxu1 %vm3852_vm1, %v11475_v25 }
 0x9db   : > { %8064 = vmatmul.msk.f32.gmra.mxu2 %vm3852_vm1, %v11122_v24 }
 0x9dc   : > { %8098 = vmatmul.msk.f32.gmra.mxu3 %vm3852_vm1, %v11150_v37 }
 0x9de   : > { %v11753_v16 = vpop.f32.mrf.mxu2 }
 0x9df   : > { %14132 = vst [vmem:[#allocation214_spill] sm:$0xff] %v11753_v16  ;;  %v11755_v21 = vpop.f32.mrf.mxu1  ;;  %v11757_v46 = vpop.f32.mrf.mxu3 }
 0x9e0   : > { %14133 = vst [vmem:[#allocation265_spill] sm:$0xff] %v11755_v21 }
 0x9e1   : > { %14134 = vst [vmem:[#allocation143_spill] sm:$0xff] %v11757_v46 }
 0x9e2   : > { %8110 = vmatmul.msk.f32.gmra.mxu1 %vm3852_vm1, %v11492_v3 }
 0x9e3   : > { %8065 = vmatmul.msk.f32.gmra.mxu2 %vm3852_vm1, %v11135_v50 }
 0x9e4   : > { %8099 = vmatmul.msk.f32.gmra.mxu3 %vm3852_vm1, %v11167_v51 }
 0x9e6   : > { %v11765_v42 = vpop.f32.mrf.mxu2 }
 0x9e7   : > { %v11767_v12 = vpop.f32.mrf.mxu1  ;;  %v11769_v0 = vpop.f32.mrf.mxu3 }
 0x9e8   : > { %14135 = vst [vmem:[#allocation216_spill] sm:$0xff] %v11767_v12  ;;  %v11788_v12 = vld [vmem:[%s13315_s1 + $0x58] sm:$0xff] }
 0x9e9   : > { %14136 = vst [vmem:[#allocation267_spill] sm:$0xff] %v11769_v0 }
 0x9ea   : > { %8111 = vmatmul.msk.f32.gmra.mxu1 %vm3852_vm1, %v11531_v14 }
 0x9eb   : > { %8066 = vmatmul.msk.f32.gmra.mxu2 %vm3852_vm1, %v11150_v37 }
 0x9ec   : > { %8100 = vmatmul.msk.f32.gmra.mxu3 %vm3852_vm1, %v11184_v48 }
 0x9ee   : > { %v11777_v21 = vpop.f32.mrf.mxu2 }
 0x9ef   : > { %14137 = vst [vmem:[#allocation218_spill] sm:$0xff] %v11777_v21  ;;  %v11779_v46 = vpop.f32.mrf.mxu1  ;;  %v11781_v16 = vpop.f32.mrf.mxu3  ;;  %v11805_v21 = vld [vmem:[%s13315_s1 + $0x60] sm:$0xff] }
 0x9f0   : > { %14138 = vst [vmem:[#allocation268_spill] sm:$0xff] %v11779_v46 }
 0x9f1   : > { %14139 = vst [vmem:[#allocation228_spill] sm:$0xff] %v11781_v16 }
 0x9f2   : > { %8112 = vmatmul.msk.f32.gmra.mxu1 %vm3852_vm1, %v11788_v12 }
 0x9f3   : > { %8067 = vmatmul.msk.f32.gmra.mxu2 %vm3852_vm1, %v11167_v51 }
 0x9f4   : > { %8169 = vmatmul.msk.f32.vlgmr.msrb.gmra.mxu3 %vm4862_vm2, %v10996_v43 }
 0x9f6   : > { %v11794_v0 = vpop.f32.mrf.mxu2 }
 0x9f7   : > { %14140 = vst [vmem:[#allocation64_spill] sm:$0xff] %v11794_v0  ;;  %v11796_v46 = vpop.f32.mrf.mxu1  ;;  %v11798_v16 = vpop.f32.mrf.mxu3 }
 0x9f8   : > { %14141 = vst [vmem:[#allocation232_spill] sm:$0xff] %v11796_v46 }
 0x9f9   : > { %14142 = vst [vmem:[#allocation280_spill] sm:$0xff] %v11798_v16  ;;  %v11820_v16 = vld [vmem:[%s13315_s1 + $0x68] sm:$0xff] }
 0x9fa   : > { %8113 = vmatmul.msk.f32.gmra.mxu1 %vm3852_vm1, %v11805_v21 }
 0x9fb   : > { %8068 = vmatmul.msk.f32.gmra.mxu2 %vm3852_vm1, %v11184_v48 }
 0x9fc   : > { %8170 = vmatmul.msk.f32.gmra.mxu3 %vm4862_vm2, %v11013_v53 }
 0x9fe   : > { %v11811_v43 = vpop.f32.mrf.mxu2 }
 0x9ff   : > { %14143 = vst [vmem:[#allocation141_spill] sm:$0xff] %v11811_v43  ;;  %v11813_v0 = vpop.f32.mrf.mxu1  ;;  %v11815_v46 = vpop.f32.mrf.mxu3 }
 0xa00   : > { %14144 = vst [vmem:[#allocation221_spill] sm:$0xff] %v11813_v0 }
 0xa01   : > { %14145 = vst [vmem:[#allocation270_spill] sm:$0xff] %v11815_v46 }
 0xa02   : > { %8114 = vmatmul.msk.f32.gmra.mxu1 %vm3852_vm1, %v11820_v16 }
 0xa03   : > { %8133 = vmatmul.msk.f32.vlgmr.msrb.gmra.mxu2 %vm3852_vm1, %v11205_v47 }
 0xa04   : > { %8171 = vmatmul.msk.f32.gmra.mxu3 %vm4862_vm2, %v11192_v20 }
 0xa06   : > { %v11828_v53 = vpop.f32.mrf.mxu2 }
 0xa07   : > { %v11830_v43 = vpop.f32.mrf.mxu1  ;;  %v11832_v0 = vpop.f32.mrf.mxu3 }
 0xa08   : > { %14146 = vst [vmem:[#allocation223_spill] sm:$0xff] %v11830_v43 }
 0xa0a   : > { %8115 = vmatmul.msk.f32.gmra.mxu1 %vm3852_vm1, %v10869_v10 }
 0xa0b   : > { %8134 = vmatmul.msk.f32.gmra.mxu2 %vm3852_vm1, %v11222_v56 }
 0xa0c   : > { %8172 = vmatmul.msk.f32.gmra.mxu3 %vm4862_vm2, %v11209_v61 }
 0xa0e   : > { %v11840_v46 = vpop.f32.mrf.mxu2 }
 0xa0f   : > { %v11842_v47 = vpop.f32.mrf.mxu1  ;;  %v11844_v20 = vpop.f32.mrf.mxu3 }
 0xa10   : > { %14147 = vst [vmem:[#allocation272_spill] sm:$0xff] %v11842_v47 }
 0xa12   : > { %8116 = vmatmul.msk.f32.gmra.mxu1 %vm3852_vm1, %v10906_v23 }
 0xa13   : > { %8135 = vmatmul.msk.f32.gmra.mxu2 %vm3852_vm1, %v11239_v17 }
 0xa14   : > { %8173 = vmatmul.msk.f32.gmra.mxu3 %vm4862_vm2, %v11169_v62 }
 0xa16   : > { %v11852_v10 = vpop.f32.mrf.mxu2 }
 0xa17   : > { %v11854_v56 = vpop.f32.mrf.mxu1  ;;  %v11856_v61 = vpop.f32.mrf.mxu3 }
 0xa18   : > { %14148 = vst [vmem:[#allocation226_spill] sm:$0xff] %v11856_v61 }
 0xa1a   : > { %8117 = vmatmul.msk.f32.gmra.mxu1 %vm3852_vm1, %v10939_v57 }
 0xa1b   : > { %8136 = vmatmul.msk.f32.gmra.mxu2 %vm3852_vm1, %v11256_v13 }
 0xa1c   : > { %8174 = vmatmul.msk.f32.gmra.mxu3 %vm4862_vm2, %v11186_v55 }
 0xa1e   : > { %v11864_v23 = vpop.f32.mrf.mxu2 }
 0xa1f   : > { %v11866_v17 = vpop.f32.mrf.mxu1  ;;  %v11868_v62 = vpop.f32.mrf.mxu3 }
 0xa20   : > { %14149 = vst [vmem:[#allocation63_spill] sm:$0xff] %v11868_v62 }
 0xa22   : > { %8118 = vmatmul.msk.f32.gmra.mxu1 %vm3852_vm1, %v10972_v58 }
 0xa23   : > { %8137 = vmatmul.msk.f32.gmra.mxu2 %vm3852_vm1, %v11273_v4 }
 0xa24   : > { %8175 = vmatmul.msk.f32.gmra.mxu3 %vm4862_vm2, %v11447_v22 }
 0xa26   : > { %v11876_v57 = vpop.f32.mrf.mxu2 }
 0xa27   : > { %14150 = vst [vmem:[#allocation230_spill] sm:$0xff] %v11876_v57  ;;  %v4650_v13 = vpop.f32.mrf.mxu1  ;;  %v11882_v55 = vpop.f32.mrf.mxu3  ;;  %v14205_v57 = vld [vmem:[#allocation237_spill] sm:$0xff] }
 0xa28   : > { %14151 = vst [vmem:[#allocation278_spill] sm:$0xff] %v11882_v55 }
 0xa2a   : > { %8119 = vmatmul.msk.f32.gmra.mxu1 %vm3852_vm1, %v11001_v18 }
 0xa2b   : > { %8138 = vmatmul.msk.f32.gmra.mxu2 %vm3852_vm1, %v11424_v35 }
 0xa2c   : > { %8176 = vmatmul.msk.f32.gmra.mxu3 %vm4862_vm2, %v11464_v33 }
 0xa2e   : > { %v11886_v47 = vpop.f32.mrf.mxu2 }
 0xa2f   : > { %14152 = vst [vmem:[#allocation139_spill] sm:$0xff] %v11886_v47  ;;  %v4653_v4 = vpop.f32.mrf.mxu1  ;;  %v11896_v35 = vpop.f32.mrf.mxu3 }
 0xa30   : > { %14153 = vst [vmem:[#allocation224_spill] sm:$0xff] %v11896_v35 }
 0xa32   : > { %8120 = vmatmul.msk.f32.gmra.mxu1 %vm3852_vm1, %v11018_v9 }
 0xa33   : > { %8139 = vmatmul.msk.f32.gmra.mxu2 %vm3852_vm1, %v11441_v59 }
 0xa34   : > { %8177 = vmatmul.msk.f32.gmra.mxu3 %vm4862_vm2, %v11633_v27 }
 0xa36   : > { %v11894_v22 = vpop.f32.mrf.mxu2 }
 0xa37   : > { %v11898_v43 = vpop.f32.mrf.mxu1  ;;  %v11910_v27 = vpop.f32.mrf.mxu3 }
 0xa38   : > { %14154 = vst [vmem:[#allocation62_spill] sm:$0xff] %v11910_v27 }
 0xa3a   : > { %8121 = vmatmul.msk.f32.gmra.mxu1 %vm3852_vm1, %v11031_v2 }
 0xa3b   : > { %8140 = vmatmul.msk.f32.gmra.mxu2 %vm3852_vm1, %v11458_v29 }
 0xa3c   : > { %8178 = vmatmul.msk.f32.gmra.mxu3 %vm4862_vm2, %v11645_v39 }
 0xa3e   : > { %v11906_v33 = vpop.f32.mrf.mxu2 }
 0xa3f   : > { %v11908_v59 = vpop.f32.mrf.mxu1  ;;  %v11922_v39 = vpop.f32.mrf.mxu3 }
 0xa40   : > { %14156 = vst [vmem:[#allocation276_spill] sm:$0xff] %v11922_v39 }
 0xa42   : > { %8122 = vmatmul.msk.f32.gmra.mxu1 %vm3852_vm1, %v11044_v52 }
 0xa43   : > { %8141 = vmatmul.msk.f32.gmra.mxu2 %vm3852_vm1, %v11475_v25 }
 0xa44   : > { %8179 = vmatmul.msk.f32.gmra.mxu3 %vm4862_vm2, %v11613_v60 }
 0xa46   : > { %v11918_v62 = vpop.f32.mrf.mxu2 }
 0xa47   : > { %14155 = vst [vmem:[#allocation227_spill] sm:$0xff] %v11918_v62  ;;  %v11920_v29 = vpop.f32.mrf.mxu1  ;;  %v11938_v60 = vpop.f32.mrf.mxu3  ;;  %v4855_v62 = vld [vmem:[%s13318_s4 + $0x10] sm:$0xff] }
 0xa48   : > { %14158 = vst [vmem:[#allocation154_spill] sm:$0xff] %v11938_v60 }
 0xa4a   : > { %8123 = vmatmul.msk.f32.gmra.mxu1 %vm3852_vm1, %v11057_v26 }
 0xa4b   : > { %8142 = vmatmul.msk.f32.gmra.mxu2 %vm3852_vm1, %v11492_v3 }
 0xa4c   : > { %8180 = vmatmul.msk.f32.gmra.mxu3 %vm4862_vm2, %v11625_v31 }
 0xa4e   : > { %v11930_v27 = vpop.f32.mrf.mxu2 }
 0xa4f   : > { %14157 = vst [vmem:[#allocation137_spill] sm:$0xff] %v11930_v27  ;;  %v11932_v25 = vpop.f32.mrf.mxu1  ;;  %v11952_v27 = vpop.f32.mrf.mxu3 }
 0xa50   : > { %14161 = vst [vmem:[#allocation225_spill] sm:$0xff] %v11952_v27 }
 0xa52   : > { %8124 = vmatmul.msk.f32.gmra.mxu1 %vm3852_vm1, %v11070_v19 }
 0xa53   : > { %8143 = vmatmul.msk.f32.gmra.mxu2 %vm3852_vm1, %v11531_v14 }
 0xa54   : > { %8181 = vmatmul.msk.f32.gmra.mxu3 %vm4862_vm2, %v4650_v13 }
 0xa56   : > { %v11941_v39 = vpop.f32.mrf.mxu2 }
 0xa57   : > { %14159 = vst [vmem:[#allocation222_spill] sm:$0xff] %v11941_v39  ;;  %v11943_v3 = vpop.f32.mrf.mxu1  ;;  %v11964_v39 = vpop.f32.mrf.mxu3 }
 0xa58   : > { %14163 = vst [vmem:[#allocation135_spill] sm:$0xff] %v11964_v39 }
 0xa5a   : > { %8125 = vmatmul.msk.f32.gmra.mxu1 %vm3852_vm1, %v11083_v28 }
 0xa5b   : > { %8144 = vmatmul.msk.f32.gmra.mxu2 %vm3852_vm1, %v11788_v12 }
 0xa5c   : > { %8182 = vmatmul.msk.f32.gmra.mxu3 %vm4862_vm2, %v4653_v4 }
 0xa5e   : > { %v11950_v31 = vpop.f32.mrf.mxu2 }
 0xa5f   : > { %14160 = vst [vmem:[#allocation61_spill] sm:$0xff] %v11950_v31  ;;  %v11954_v14 = vpop.f32.mrf.mxu1  ;;  %v11974_v27 = vpop.f32.mrf.mxu3  ;;  %v8204_v31 = vld [vmem:[%s13318_s4 + $0x58] sm:$0xff] }
 0xa60   : > { %14165 = vst [vmem:[#allocation60_spill] sm:$0xff] %v11974_v27  ;;  %5154 = vmatpush.msra.mxu1 %v8204_v31  ;;  %v8203_v27 = vld [vmem:[%s13318_s4 + $0x50] sm:$0xff]  ;;  %v8566_v31 = vld [vmem:[%s13315_s1 + $0x78] sm:$0xff] }
 0xa62   : > { %8126 = vmatmul.msk.f32.gmra.mxu1 %vm3852_vm1, %v11096_v40 }
 0xa63   : > { %8145 = vmatmul.msk.f32.gmra.mxu2 %vm3852_vm1, %v11805_v21  ;;  %v8565_v21 = vld [vmem:[%s13315_s1 + $0x70] sm:$0xff]  ;;  %5155 = vmatpush.msra.mxu1 %v8203_v27 }
 0xa66   : > { %v11960_v13 = vpop.f32.mrf.mxu2 }
 0xa67   : > { %14162 = vst [vmem:[#allocation274_spill] sm:$0xff] %v11960_v13  ;;  %v11962_v60 = vpop.f32.mrf.mxu1  ;;  %v12004_v27 = vpop.f32.mrf.mxu3 }
 0xa68   : > { %14167 = vst [vmem:[#allocation219_spill] sm:$0xff] %v12004_v27 }
 0xa6a   : > { %8127 = vmatmul.msk.f32.gmra.mxu1 %vm3852_vm1, %v11109_v41 }
 0xa6b   : > { %8146 = vmatmul.msk.f32.gmra.mxu2 %vm3852_vm1, %v11820_v16 }
 0xa6e   : > { %v11970_v12 = vpop.f32.mrf.mxu2 }
 0xa6f   : > { %14164 = vst [vmem:[#allocation220_spill] sm:$0xff] %v11970_v12  ;;  %v11972_v4 = vpop.f32.mrf.mxu1  ;;  %v8202_v12 = vld [vmem:[%s13318_s4 + $0x48] sm:$0xff] }
 0xa70   : > { %5156 = vmatpush.msra.mxu1 %v8202_v12  ;;  %v4856_v12 = vld [vmem:[%s13318_s4 + $0x18] sm:$0xff] }
 0xa71   : > { %5036 = vmatpush.msra.mxu3 %v4856_v12  ;;  %v12027_v12 = vpop.f32.mrf.mxu3 }
 0xa72   : > { %8128 = vmatmul.msk.f32.gmra.mxu1 %vm3852_vm1, %v11122_v24  ;;  %14169 = vst [vmem:[#allocation132_spill] sm:$0xff] %v12027_v12 }
 0xa73   : > { %8147 = vmatmul.msk.f32.gmra.mxu2 %vm3852_vm1, %v8565_v21  ;;  %v8201_v21 = vld [vmem:[%s13318_s4 + $0x40] sm:$0xff]  ;;  %5037 = vmatpush.msra.mxu3 %v4855_v62 }
 0xa74   : > { %5157 = vmatpush.msra.mxu1 %v8201_v21  ;;  %v8567_v21 = vld [vmem:[%s13315_s1 + $0x80] sm:$0xff] }
 0xa76   : > { %v11985_v16 = vpop.f32.mrf.mxu2 }
 0xa77   : > { %14166 = vst [vmem:[#allocation133_spill] sm:$0xff] %v11985_v16  ;;  %v11990_v39 = vpop.f32.mrf.mxu1 }
 0xa79   : > { %v12042_v35 = vpop.f32.mrf.mxu3 }
 0xa7a   : > { %8129 = vmatmul.msk.f32.gmra.mxu1 %vm3852_vm1, %v11135_v50 }
 0xa7b   : > { %8148 = vmatmul.msk.f32.gmra.mxu2 %vm3852_vm1, %v8566_v31  ;;  %v4854_v31 = vld [vmem:[%s13318_s4 + $0x8] sm:$0xff] }
 0xa7c   : > { %5038 = vmatpush.msra.mxu3 %v4854_v31 }
 0xa7e   : > { %v12006_v16 = vpop.f32.mrf.mxu2 }
 0xa7f   : > { %14168 = vst [vmem:[#allocation59_spill] sm:$0xff] %v12006_v16  ;;  %v12008_v13 = vpop.f32.mrf.mxu1  ;;  %v4853_v16 = vld [vmem:[%s13318_s4] sm:$0xff] }
 0xa80   : > { %5039 = vmatpush.msra.mxu3 %v4853_v16 }
 0xa81   : > { %v12051_v12 = vpop.f32.mrf.mxu3 }
 0xa82   : > { %8130 = vmatmul.msk.f32.gmra.mxu1 %vm3852_vm1, %v11150_v37 }
 0xa83   : > { %8149 = vmatmul.msk.f32.gmra.mxu2 %vm3852_vm1, %v8567_v21 }
 0xa86   : > { %v12025_v27 = vpop.f32.mrf.mxu2 }
 0xa87   : > { %v12032_v61 = vpop.f32.mrf.mxu1 }
 0xa8a   : > { %8131 = vmatmul.msk.f32.gmra.mxu1 %vm3852_vm1, %v11167_v51 }
 0xa8b   : > { %8150 = vmatmul.msk.f32.gmra.mxu2 %vm3852_vm1, %v10972_v58 }
 0xa8e   : > { %v12038_v21 = vpop.f32.mrf.mxu2 }
 0xa8f   : > { %v12040_v62 = vpop.f32.mrf.mxu1 }
 0xa92   : > { %8132 = vmatmul.msk.f32.gmra.mxu1 %vm3852_vm1, %v11184_v48 }
 0xa93   : > { %8151 = vmatmul.msk.f32.gmra.mxu2 %vm3852_vm1, %v11001_v18  ;;  %v12064_v18 = vpop.f32.mrf.mxu3 }
 0xa96   : > { %v4763_v31 = vpop.f32.mrf.mxu2 }
 0xa97   : > { %8183 = vmatmul.msk.f32.gmra.mxu3 %vm4862_vm2, %v4763_v31  ;;  %v12049_v16 = vpop.f32.mrf.mxu1 }
 0xa9a   : > { %8205 = vmatmul.msk.f32.vlgmr.msra.gmra.mxu1 %vm4862_vm2, %v11026_v7 }
 0xa9b   : > { %8152 = vmatmul.msk.f32.gmra.mxu2 %vm3852_vm1, %v11018_v9 }
 0xa9e   : > { %v4766_v58 = vpop.f32.mrf.mxu2 }
 0xa9f   : > { %8184 = vmatmul.msk.f32.gmra.mxu3 %vm4862_vm2, %v4766_v58  ;;  %v12058_v47 = vpop.f32.mrf.mxu1  ;;  %v14177_v58 = vld [vmem:[#allocation149_spill] sm:$0xff] }
 0xaa2   : > { %8206 = vmatmul.msk.f32.gmra.mxu1 %vm4862_vm2, %v11039_v30 }
 0xaa3   : > { %8153 = vmatmul.msk.f32.gmra.mxu2 %vm3852_vm1, %v11031_v2  ;;  %v12078_v2 = vpop.f32.mrf.mxu3 }
 0xaa6   : > { %v12066_v31 = vpop.f32.mrf.mxu2 }
 0xaa7   : > { %8185 = vmatmul.msk.f32.vlgmr.msra.gmra.mxu3 %vm4862_vm2, %v10930_v8  ;;  %v12070_v9 = vpop.f32.mrf.mxu1 }
 0xaaa   : > { %8207 = vmatmul.msk.f32.gmra.mxu1 %vm4862_vm2, %v11228_v15 }
 0xaab   : > { %8154 = vmatmul.msk.f32.gmra.mxu2 %vm3852_vm1, %v11044_v52  ;;  %v12094_v15 = vpop.f32.mrf.mxu3 }
 0xaae   : > { %v12076_v7 = vpop.f32.mrf.mxu2 }
 0xaaf   : > { %8186 = vmatmul.msk.f32.gmra.mxu3 %vm4862_vm2, %v10965_v54  ;;  %v12082_v30 = vpop.f32.mrf.mxu1 }
 0xab0   : > { %14170 = vst [vmem:[#allocation217_spill] sm:$0xff] %v12082_v30 }
 0xab2   : > { %8208 = vmatmul.msk.f32.gmra.mxu1 %vm4862_vm2, %v11245_v63 }
 0xab3   : > { %8155 = vmatmul.msk.f32.gmra.mxu2 %vm3852_vm1, %v11057_v26  ;;  %v12106_v63 = vpop.f32.mrf.mxu3 }
 0xab6   : > { %v12088_v8 = vpop.f32.mrf.mxu2 }
 0xab7   : > { %8187 = vmatmul.msk.f32.gmra.mxu3 %vm4862_vm2, %v11158_v38  ;;  %v12092_v52 = vpop.f32.mrf.mxu1 }
 0xab8   : > { %14171 = vst [vmem:[#allocation58_spill] sm:$0xff] %v12092_v52  ;;  %v14197_v52 = vld [vmem:[#allocation38_spill] sm:$0xff] }
 0xaba   : > { %8209 = vmatmul.msk.f32.gmra.mxu1 %vm4862_vm2, %v11198_v5 }
 0xabb   : > { %8156 = vmatmul.msk.f32.gmra.mxu2 %vm3852_vm1, %v11070_v19 }
 0xabe   : > { %v12100_v54 = vpop.f32.mrf.mxu2 }
 0xabf   : > { %8188 = vmatmul.msk.f32.gmra.mxu3 %vm4862_vm2, %v11175_v49  ;;  %v12104_v26 = vpop.f32.mrf.mxu1  ;;  %v12122_v49 = vpop.f32.mrf.mxu3 }
 0xac0   : > { %14172 = vst [vmem:[#allocation131_spill] sm:$0xff] %v12104_v26 }
 0xac2   : > { %8210 = vmatmul.msk.f32.gmra.mxu1 %vm4862_vm2, %v11215_v36 }
 0xac3   : > { %8157 = vmatmul.msk.f32.gmra.mxu2 %vm3852_vm1, %v11083_v28 }
 0xac6   : > { %v12112_v38 = vpop.f32.mrf.mxu2 }
 0xac7   : > { %8189 = vmatmul.msk.f32.gmra.mxu3 %vm4862_vm2, %v11137_v32  ;;  %v12116_v19 = vpop.f32.mrf.mxu1 }
 0xac8   : > { %14173 = vst [vmem:[#allocation215_spill] sm:$0xff] %v12116_v19 }
 0xaca   : > { %8211 = vmatmul.msk.f32.gmra.mxu1 %vm4862_vm2, %v11481_v6 }
 0xacb   : > { %8158 = vmatmul.msk.f32.gmra.mxu2 %vm3852_vm1, %v11096_v40  ;;  %v12136_v40 = vpop.f32.mrf.mxu3 }
 0xace   : > { %v12124_v5 = vpop.f32.mrf.mxu2 }
 0xacf   : > { %8190 = vmatmul.msk.f32.gmra.mxu3 %vm4862_vm2, %v11152_v1  ;;  %v12128_v28 = vpop.f32.mrf.mxu1 }
 0xad0   : > { %14174 = vst [vmem:[#allocation57_spill] sm:$0xff] %v12128_v28 }
 0xad2   : > { %8212 = vmatmul.msk.f32.gmra.mxu1 %vm4862_vm2, %v11498_v45  ;;  %v8223_v45 = vld [vmem:[%s13318_s4 + $0x70] sm:$0xff] }
 0xad3   : > { %8159 = vmatmul.msk.f32.gmra.mxu2 %vm3852_vm1, %v11109_v41  ;;  %v8224_v41 = vld [vmem:[%s13318_s4 + $0x78] sm:$0xff] }
 0xad4   : > { %5288 = vmatpush.msra.mxu2 %v8224_v41  ;;  %v14178_v41 = vld [vmem:[#allocation15_spill] sm:$0xff] }
 0xad6   : > { %v12134_v32 = vpop.f32.mrf.mxu2  ;;  %5289 = vmatpush.msra.mxu2 %v8223_v45 }
 0xad7   : > { %8191 = vmatmul.msk.f32.gmra.mxu3 %vm4862_vm2, %v11413_v44  ;;  %v12140_v36 = vpop.f32.mrf.mxu1  ;;  %v8222_v44 = vld [vmem:[%s13318_s4 + $0x68] sm:$0xff] }
 0xad8   : > { %14175 = vst [vmem:[#allocation130_spill] sm:$0xff] %v12140_v36  ;;  %5290 = vmatpush.msra.mxu2 %v8222_v44  ;;  %v14180_v44 = vld [vmem:[#allocation146_spill] sm:$0xff]  ;;  %v14181_v36 = vld [vmem:[#allocation16_spill] sm:$0xff] }
 0xada   : > { %8213 = vmatmul.msk.f32.gmra.mxu1 %vm4862_vm2, %v11657_v11  ;;  %v8221_v11 = vld [vmem:[%s13318_s4 + $0x60] sm:$0xff] }
 0xadb   : > { %8160 = vmatmul.msk.f32.gmra.mxu2 %vm3852_vm1, %v11122_v24  ;;  %v12158_v24 = vpop.f32.mrf.mxu3 }
 0xadc   : > { %5291 = vmatpush.msra.mxu2 %v8221_v11 }
 0xade   : > { %v12149_v1 = vpop.f32.mrf.mxu2 }
 0xadf   : > { %8192 = vmatmul.msk.f32.gmra.mxu3 %vm4862_vm2, %v11430_v34  ;;  %v12156_v6 = vpop.f32.mrf.mxu1 }
 0xae0   : > { %14176 = vst [vmem:[#allocation213_spill] sm:$0xff] %v12156_v6 }
 0xae2   : > { %8214 = vmatmul.msk.f32.gmra.mxu1 %vm4862_vm2, %v14177_v58  ;;  %v14183_v58 = vld [vmem:[#allocation150_spill] sm:$0xff] }
 0xae3   : > { %8161 = vmatmul.msk.f32.gmra.mxu2 %vm3852_vm1, %v11135_v50  ;;  %v12176_v6 = vpop.f32.mrf.mxu3 }
 0xae6   : > { %v12170_v34 = vpop.f32.mrf.mxu2 }
 0xae7   : > { %8193 = vmatmul.msk.f32.gmra.mxu3 %vm4862_vm2, %v14178_v41  ;;  %v12174_v45 = vpop.f32.mrf.mxu1 }
 0xae8   : > { %14179 = vst [vmem:[#allocation56_spill] sm:$0xff] %v12174_v45  ;;  %v14186_v45 = vld [vmem:[#allocation140_spill] sm:$0xff] }
 0xaea   : > { %8215 = vmatmul.msk.f32.gmra.mxu1 %vm4862_vm2, %v14180_v44 }
 0xaeb   : > { %8162 = vmatmul.msk.f32.gmra.mxu2 %vm3852_vm1, %v11150_v37  ;;  %v8264_v37 = vld [vmem:[%s13318_s4 + $0xb8] sm:$0xff]  ;;  %v12195_v41 = vpop.f32.mrf.mxu3 }
 0xaec   : > { %5556 = vmatpush.msrb.mxu1 %v8264_v37  ;;  %v8261_v37 = vld [vmem:[%s13318_s4 + $0xa0] sm:$0xff] }
 0xaee   : > { %v12182_v50 = vpop.f32.mrf.mxu2 }
 0xaef   : > { %8194 = vmatmul.msk.f32.gmra.mxu3 %vm4862_vm2, %v14181_v36  ;;  %v12186_v11 = vpop.f32.mrf.mxu1  ;;  %v8263_v36 = vld [vmem:[%s13318_s4 + $0xb0] sm:$0xff] }
 0xaf0   : > { %14182 = vst [vmem:[#allocation212_spill] sm:$0xff] %v12186_v11  ;;  %v14184_v11 = vld [vmem:[#allocation13_spill] sm:$0xff]  ;;  %5557 = vmatpush.msrb.mxu1 %v8263_v36 }
 0xaf2   : > { %8216 = vmatmul.msk.f32.gmra.mxu1 %vm4862_vm2, %v14183_v58  ;;  %v8262_v58 = vld [vmem:[%s13318_s4 + $0xa8] sm:$0xff] }
 0xaf3   : > { %8163 = vmatmul.msk.f32.gmra.mxu2 %vm3852_vm1, %v11167_v51  ;;  %5558 = vmatpush.msrb.mxu1 %v8262_v58  ;;  %v12218_v36 = vpop.f32.mrf.mxu3  ;;  %v8244_v58 = vld [vmem:[%s13318_s4 + $0x98] sm:$0xff] }
 0xaf4   : > { %5422 = vmatpush.msrb.mxu3 %v8244_v58  ;;  %v8241_v58 = vld [vmem:[%s13318_s4 + $0x80] sm:$0xff] }
 0xaf5   : > { %5559 = vmatpush.msrb.mxu1 %v8261_v37 }
 0xaf6   : > { %v12197_v44 = vpop.f32.mrf.mxu2 }
 0xaf7   : > { %8195 = vmatmul.msk.f32.gmra.mxu3 %vm4862_vm2, %v14184_v11  ;;  %v12204_v51 = vpop.f32.mrf.mxu1 }
 0xaf8   : > { %14185 = vst [vmem:[#allocation263_spill] sm:$0xff] %v12204_v51 }
 0xafa   : > { %8217 = vmatmul.msk.f32.gmra.mxu1 %vm4862_vm2, %v11898_v43  ;;  %v14188_v43 = vld [vmem:[#allocation6_spill] sm:$0xff] }
 0xafb   : > { %8164 = vmatmul.msk.f32.gmra.mxu2 %vm3852_vm1, %v11184_v48  ;;  %v8243_v48 = vld [vmem:[%s13318_s4 + $0x90] sm:$0xff] }
 0xafc   : > { %5423 = vmatpush.msrb.mxu3 %v8243_v48 }
 0xafe   : > { %v12216_v11 = vpop.f32.mrf.mxu2 }
 0xaff   : > { %8196 = vmatmul.msk.f32.gmra.mxu3 %vm4862_vm2, %v14186_v45  ;;  %v12222_v51 = vpop.f32.mrf.mxu1  ;;  %v8242_v45 = vld [vmem:[%s13318_s4 + $0x88] sm:$0xff] }
 0xb00   : > { %14187 = vst [vmem:[#allocation211_spill] sm:$0xff] %v12222_v51  ;;  %v12239_v51 = vpop.f32.mrf.mxu3  ;;  %5424 = vmatpush.msrb.mxu3 %v8242_v45 }
 0xb02   : > { %8218 = vmatmul.msk.f32.gmra.mxu1 %vm4862_vm2, %v11908_v59  ;;  %5425 = vmatpush.msrb.mxu3 %v8241_v58 }
 0xb03   : > { %8225 = vmatmul.msk.f32.vlgmr.msra.gmra.mxu2 %vm4862_vm2, %v14188_v43  ;;  %v14190_v43 = vld [vmem:[#allocation112_spill] sm:$0xff] }
 0xb06   : > { %v12237_v37 = vpop.f32.mrf.mxu2 }
 0xb07   : > { %8197 = vmatmul.msk.f32.gmra.mxu3 %vm4862_vm2, %v11854_v56  ;;  %v12246_v59 = vpop.f32.mrf.mxu1  ;;  %v14192_v56 = vld [vmem:[#allocation35_spill] sm:$0xff] }
 0xb08   : > { %14189 = vst [vmem:[#allocation55_spill] sm:$0xff] %v12246_v59  ;;  %v12258_v26 = vpop.f32.mrf.mxu3  ;;  %v14194_v59 = vld [vmem:[#allocation32_spill] sm:$0xff] }
 0xb0a   : > { %8219 = vmatmul.msk.f32.gmra.mxu1 %vm4862_vm2, %v12066_v31 }
 0xb0b   : > { %8226 = vmatmul.msk.f32.gmra.mxu2 %vm4862_vm2, %v14190_v43 }
 0xb0e   : > { %v12252_v48 = vpop.f32.mrf.mxu2 }
 0xb0f   : > { %8198 = vmatmul.msk.f32.gmra.mxu3 %vm4862_vm2, %v11866_v17  ;;  %v12256_v45 = vpop.f32.mrf.mxu1  ;;  %v14195_v17 = vld [vmem:[#allocation110_spill] sm:$0xff] }
 0xb10   : > { %14191 = vst [vmem:[#allocation209_spill] sm:$0xff] %v12256_v45 }
 0xb12   : > { %8220 = vmatmul.msk.f32.gmra.mxu1 %vm4862_vm2, %v12076_v7 }
 0xb13   : > { %8227 = vmatmul.msk.f32.gmra.mxu2 %vm4862_vm2, %v14192_v56 }
 0xb16   : > { %v12264_v58 = vpop.f32.mrf.mxu2 }
 0xb17   : > { %14193 = vst [vmem:[#allocation261_spill] sm:$0xff] %v12264_v58  ;;  %8199 = vmatmul.msk.f32.gmra.mxu3 %vm4862_vm2, %v12025_v27  ;;  %v5159_v31 = vpop.f32.mrf.mxu1  ;;  %v14198_v27 = vld [vmem:[#allocation117_spill] sm:$0xff]  ;;  %v14201_v58 = vld [vmem:[#allocation36_spill] sm:$0xff] }
 0xb1a   : > { %v12268_v43 = vpop.f32.mrf.mxu3  ;;  %8265 = vmatmul.msk.f32.vlgmr.msrb.gmra.mxu1 %vm4862_vm2, %v14195_v17 }
 0xb1b   : > { %8228 = vmatmul.msk.f32.gmra.mxu2 %vm4862_vm2, %v14194_v59  ;;  %v14200_v59 = vld [vmem:[#allocation119_spill] sm:$0xff] }
 0xb1e   : > { %v12274_v45 = vpop.f32.mrf.mxu2 }
 0xb1f   : > { %14196 = vst [vmem:[#allocation210_spill] sm:$0xff] %v12274_v45  ;;  %8200 = vmatmul.msk.f32.gmra.mxu3 %vm4862_vm2, %v12038_v21  ;;  %v5162_v7 = vpop.f32.mrf.mxu1  ;;  %v14202_v21 = vld [vmem:[#allocation28_spill] sm:$0xff] }
 0xb22   : > { %v12278_v56 = vpop.f32.mrf.mxu3  ;;  %8266 = vmatmul.msk.f32.gmra.mxu1 %vm4862_vm2, %v14198_v27  ;;  %v14204_v27 = vld [vmem:[#allocation5_spill] sm:$0xff] }
 0xb23   : > { %8229 = vmatmul.msk.f32.gmra.mxu2 %vm4862_vm2, %v14197_v52 }
 0xb26   : > { %v12284_v28 = vpop.f32.mrf.mxu2 }
 0xb27   : > { %14199 = vst [vmem:[#allocation54_spill] sm:$0xff] %v12284_v28  ;;  %8245 = vmatmul.msk.f32.vlgmr.msrb.gmra.mxu3 %vm4862_vm2, %v14200_v59  ;;  %v5165_v17 = vpop.f32.mrf.mxu1 }
 0xb2a   : > { %v5041_v19 = vpop.f32.mrf.mxu3  ;;  %8267 = vmatmul.msk.f32.gmra.mxu1 %vm4862_vm2, %v14202_v21 }
 0xb2b   : > { %v5042_v45 = vadd.f32 %v5041_v19, %v12042_v35  ;;  %8230 = vmatmul.msk.f32.gmra.mxu2 %vm4862_vm2, %v14201_v58  ;;  %v14206_v35 = vld [vmem:[#allocation165_spill] sm:$0xff] }
 0xb2d   : > { %v12293_v55 = vadd.f32 %v5159_v31, %v5042_v45  ;;  %v14208_v45 = vld [vmem:[#allocation161_spill] sm:$0xff] }
 0xb2e   : > { %v12295_v52 = vpop.f32.mrf.mxu2 }
 0xb2f   : > { %14203 = vst [vmem:[#allocation202_spill] sm:$0xff] %v12295_v52  ;;  %8246 = vmatmul.msk.f32.gmra.mxu3 %vm4862_vm2, %v14204_v27  ;;  %v5168_v28 = vpop.f32.mrf.mxu1  ;;  %v14209_v52 = vld [vmem:[#allocation235_spill] sm:$0xff] }
 0xb32   : > { %v5044_v30 = vpop.f32.mrf.mxu3  ;;  %8268 = vmatmul.msk.f32.gmra.mxu1 %vm4862_vm2, %v14206_v35 }
 0xb33   : > { %v5045_v59 = vadd.f32 %v5044_v30, %v12051_v12  ;;  %8231 = vmatmul.msk.f32.gmra.mxu2 %vm4862_vm2, %v14205_v57  ;;  %v14210_v12 = vld [vmem:[#allocation29_spill] sm:$0xff] }
 0xb35   : > { %v12304_v19 = vadd.f32 %v5162_v7, %v5045_v59  ;;  %v14212_v7 = vld [vmem:[#allocation160_spill] sm:$0xff] }
 0xb36   : > { %v12306_v58 = vpop.f32.mrf.mxu2 }
 0xb37   : > { %14207 = vst [vmem:[#allocation207_spill] sm:$0xff] %v12306_v58  ;;  %8247 = vmatmul.msk.f32.gmra.mxu3 %vm4862_vm2, %v14208_v45  ;;  %v5171_v31 = vpop.f32.mrf.mxu1  ;;  %v14213_v58 = vld [vmem:[#allocation21_spill] sm:$0xff] }
 0xb3a   : > { %v5047_v21 = vpop.f32.mrf.mxu3  ;;  %8269 = vmatmul.msk.f32.gmra.mxu1 %vm4862_vm2, %v14210_v12 }
 0xb3b   : > { %v5048_v27 = vadd.f32 %v5047_v21, %v12064_v18  ;;  %8232 = vmatmul.msk.f32.gmra.mxu2 %vm4862_vm2, %v14209_v52  ;;  %v14214_v18 = vld [vmem:[#allocation167_spill] sm:$0xff] }
 0xb3d   : > { %v12315_v57 = vadd.f32 %v5165_v17, %v5048_v27  ;;  %v14216_v17 = vld [vmem:[#allocation33_spill] sm:$0xff] }
 0xb3e   : > { %v12317_v30 = vpop.f32.mrf.mxu2 }
 0xb3f   : > { %14211 = vst [vmem:[#allocation258_spill] sm:$0xff] %v12317_v30  ;;  %8248 = vmatmul.msk.f32.gmra.mxu3 %vm4862_vm2, %v14212_v7  ;;  %v5174_v59 = vpop.f32.mrf.mxu1  ;;  %v14217_v30 = vld [vmem:[#allocation155_spill] sm:$0xff] }
 0xb42   : > { %v5050_v35 = vpop.f32.mrf.mxu3  ;;  %8270 = vmatmul.msk.f32.gmra.mxu1 %vm4862_vm2, %v14214_v18 }
 0xb43   : > { %v5051_v45 = vadd.f32 %v5050_v35, %v12078_v2  ;;  %8233 = vmatmul.msk.f32.gmra.mxu2 %vm4862_vm2, %v14213_v58  ;;  %v14218_v2 = vld [vmem:[#allocation234_spill] sm:$0xff] }
 0xb45   : > { %v12326_v52 = vadd.f32 %v5168_v28, %v5051_v45  ;;  %v14220_v28 = vld [vmem:[#allocation30_spill] sm:$0xff] }
 0xb46   : > { %v12328_v21 = vpop.f32.mrf.mxu2 }
 0xb47   : > { %14215 = vst [vmem:[#allocation208_spill] sm:$0xff] %v12328_v21  ;;  %8249 = vmatmul.msk.f32.gmra.mxu3 %vm4862_vm2, %v14216_v17  ;;  %v5177_v27 = vpop.f32.mrf.mxu1  ;;  %v14221_v21 = vld [vmem:[#allocation19_spill] sm:$0xff] }
 0xb4a   : > { %v5053_v12 = vpop.f32.mrf.mxu3  ;;  %8271 = vmatmul.msk.f32.gmra.mxu1 %vm4862_vm2, %v14218_v2 }
 0xb4b   : > { %v5054_v7 = vadd.f32 %v5053_v12, %v12094_v15  ;;  %8234 = vmatmul.msk.f32.gmra.mxu2 %vm4862_vm2, %v14217_v30  ;;  %v14222_v15 = vld [vmem:[#allocation65_spill] sm:$0xff] }
 0xb4d   : > { %v12337_v58 = vadd.f32 %v5171_v31, %v5054_v7  ;;  %v14223_v31 = vld [vmem:[#allocation233_spill] sm:$0xff] }
 0xb4e   : > { %v12339_v35 = vpop.f32.mrf.mxu2 }
 0xb4f   : > { %14219 = vst [vmem:[#allocation53_spill] sm:$0xff] %v12339_v35  ;;  %8250 = vmatmul.msk.f32.gmra.mxu3 %vm4862_vm2, %v14220_v28  ;;  %v5180_v45 = vpop.f32.mrf.mxu1  ;;  %v14224_v35 = vld [vmem:[#allocation151_spill] sm:$0xff] }
 0xb52   : > { %v5056_v18 = vpop.f32.mrf.mxu3  ;;  %8272 = vmatmul.msk.f32.gmra.mxu1 %vm4862_vm2, %v14222_v15  ;;  %v8282_v15 = vld [vmem:[%s13318_s4 + $0xc8] sm:$0xff] }
 0xb53   : > { %v5057_v17 = vadd.f32 %v5056_v18, %v12106_v63  ;;  %8235 = vmatmul.msk.f32.gmra.mxu2 %vm4862_vm2, %v14221_v21  ;;  %v14225_v63 = vld [vmem:[#allocation145_spill] sm:$0xff] }
 0xb55   : > { %v12348_v30 = vadd.f32 %v5174_v59, %v5057_v17  ;;  %v8284_v59 = vld [vmem:[%s13318_s4 + $0xd8] sm:$0xff]  ;;  %v8283_v17 = vld [vmem:[%s13318_s4 + $0xd0] sm:$0xff] }
 0xb56   : > { %v12350_v12 = vpop.f32.mrf.mxu2  ;;  %5690 = vmatpush.msrb.mxu2 %v8284_v59 }
 0xb57   : > { %8251 = vmatmul.msk.f32.gmra.mxu3 %vm4862_vm2, %v14223_v31  ;;  %v5183_v7 = vpop.f32.mrf.mxu1 }
 0xb58   : > { %5691 = vmatpush.msrb.mxu2 %v8283_v17  ;;  %v14228_v17 = vld [vmem:[#allocation24_spill] sm:$0xff] }
 0xb5a   : > { %v5059_v2 = vpop.f32.mrf.mxu3  ;;  %8273 = vmatmul.msk.f32.gmra.mxu1 %vm4862_vm2, %v14225_v63  ;;  %5692 = vmatpush.msrb.mxu2 %v8282_v15 }
 0xb5b   : > { %v5060_v28 = vadd.f32 %v5059_v2, %v12122_v49  ;;  %8236 = vmatmul.msk.f32.gmra.mxu2 %vm4862_vm2, %v14224_v35  ;;  %v14226_v49 = vld [vmem:[#allocation284_spill] sm:$0xff]  ;;  %v14227_v2 = vld [vmem:[#allocation214_spill] sm:$0xff] }
 0xb5d   : > { %v12362_v21 = vadd.f32 %v5177_v27, %v5060_v28  ;;  %v8281_v28 = vld [vmem:[%s13318_s4 + $0xc0] sm:$0xff] }
 0xb5e   : > { %v12364_v18 = vpop.f32.mrf.mxu2  ;;  %5693 = vmatpush.msrb.mxu2 %v8281_v28 }
 0xb5f   : > { %8252 = vmatmul.msk.f32.gmra.mxu3 %vm4862_vm2, %v14226_v49  ;;  %v5186_v35 = vpop.f32.mrf.mxu1 }
 0xb62   : > { %v5062_v31 = vpop.f32.mrf.mxu3  ;;  %8274 = vmatmul.msk.f32.gmra.mxu1 %vm4862_vm2, %v14227_v2 }
 0xb63   : > { %v5063_v27 = vadd.f32 %v5062_v31, %v12136_v40  ;;  %8237 = vmatmul.msk.f32.gmra.mxu2 %vm4862_vm2, %v11920_v29  ;;  %v14229_v29 = vld [vmem:[#allocation25_spill] sm:$0xff] }
 0xb65   : > { %v12382_v63 = vadd.f32 %v5180_v45, %v5063_v27  ;;  %v14230_v45 = vld [vmem:[#allocation147_spill] sm:$0xff] }
 0xb66   : > { %v12384_v59 = vpop.f32.mrf.mxu2 }
 0xb67   : > { %8253 = vmatmul.msk.f32.gmra.mxu3 %vm4862_vm2, %v14228_v17  ;;  %v5189_v49 = vpop.f32.mrf.mxu1 }
 0xb6a   : > { %v5065_v40 = vpop.f32.mrf.mxu3  ;;  %8275 = vmatmul.msk.f32.gmra.mxu1 %vm4862_vm2, %v14229_v29  ;;  %v8322_v29 = vld [vmem:[%s13318_s4 + $0x108] sm:$0xff] }
 0xb6b   : > { %v5066_v15 = vadd.f32 %v5065_v40, %v12158_v24  ;;  %8238 = vmatmul.msk.f32.gmra.mxu2 %vm4862_vm2, %v11932_v25  ;;  %v14231_v24 = vld [vmem:[#allocation254_spill] sm:$0xff]  ;;  %v8324_v25 = vld [vmem:[%s13318_s4 + $0x118] sm:$0xff] }
 0xb6c   : > { %5958 = vmatpush.msra.mxu1 %v8324_v25  ;;  %v14233_v25 = vld [vmem:[#allocation156_spill] sm:$0xff] }
 0xb6d   : > { %v12393_v31 = vadd.f32 %v5183_v7, %v5066_v15  ;;  %v14232_v15 = vld [vmem:[#allocation22_spill] sm:$0xff] }
 0xb6e   : > { %v12395_v2 = vpop.f32.mrf.mxu2 }
 0xb6f   : > { %8254 = vmatmul.msk.f32.gmra.mxu3 %vm4862_vm2, %v14230_v45  ;;  %v5192_v27 = vpop.f32.mrf.mxu1 }
 0xb72   : > { %v5068_v28 = vpop.f32.mrf.mxu3  ;;  %8276 = vmatmul.msk.f32.gmra.mxu1 %vm4862_vm2, %v14231_v24 }
 0xb73   : > { %v5069_v17 = vadd.f32 %v5068_v28, %v12176_v6  ;;  %8239 = vmatmul.msk.f32.gmra.mxu2 %vm4862_vm2, %v12088_v8  ;;  %v8323_v6 = vld [vmem:[%s13318_s4 + $0x110] sm:$0xff]  ;;  %v8321_v28 = vld [vmem:[%s13318_s4 + $0x100] sm:$0xff] }
 0xb74   : > { %5959 = vmatpush.msra.mxu1 %v8323_v6  ;;  %v14234_v6 = vld [vmem:[#allocation4_spill] sm:$0xff] }
 0xb75   : > { %v12407_v7 = vadd.f32 %v5186_v35, %v5069_v17 }
 0xb76   : > { %v12409_v40 = vpop.f32.mrf.mxu2  ;;  %5960 = vmatpush.msra.mxu1 %v8322_v29  ;;  %v8302_v29 = vld [vmem:[%s13318_s4 + $0xe8] sm:$0xff] }
 0xb77   : > { %8255 = vmatmul.msk.f32.gmra.mxu3 %vm4862_vm2, %v14232_v15  ;;  %v5195_v8 = vpop.f32.mrf.mxu1 }
 0xb78   : > { %5961 = vmatpush.msra.mxu1 %v8321_v28 }
 0xb7a   : > { %v5071_v45 = vpop.f32.mrf.mxu3  ;;  %8277 = vmatmul.msk.f32.gmra.mxu1 %vm4862_vm2, %v11962_v60 }
 0xb7b   : > { %v5072_v35 = vadd.f32 %v5071_v45, %v12195_v41  ;;  %8240 = vmatmul.msk.f32.gmra.mxu2 %vm4862_vm2, %v12100_v54  ;;  %v8304_v54 = vld [vmem:[%s13318_s4 + $0xf8] sm:$0xff] }
 0xb7c   : > { %5824 = vmatpush.msra.mxu3 %v8304_v54 }
 0xb7d   : > { %v12427_v17 = vadd.f32 %v5189_v49, %v5072_v35  ;;  %v8303_v49 = vld [vmem:[%s13318_s4 + $0xf0] sm:$0xff] }
 0xb7e   : > { %v12429_v24 = vpop.f32.mrf.mxu2  ;;  %5825 = vmatpush.msra.mxu3 %v8303_v49 }
 0xb7f   : > { %8256 = vmatmul.msk.f32.gmra.mxu3 %vm4862_vm2, %v14233_v25  ;;  %v5198_v15 = vpop.f32.mrf.mxu1 }
 0xb80   : > { %5826 = vmatpush.msra.mxu3 %v8302_v29 }
 0xb82   : > { %v5074_v41 = vpop.f32.mrf.mxu3  ;;  %8278 = vmatmul.msk.f32.gmra.mxu1 %vm4862_vm2, %v11972_v4  ;;  %v8301_v4 = vld [vmem:[%s13318_s4 + $0xe0] sm:$0xff] }
 0xb83   : > { %v5075_v60 = vadd.f32 %v5074_v41, %v12218_v36  ;;  %8285 = vmatmul.msk.f32.vlgmr.msrb.gmra.mxu2 %vm4862_vm2, %v14234_v6  ;;  %5827 = vmatpush.msra.mxu3 %v8301_v4  ;;  %v14237_v4 = vld [vmem:[#allocation78_spill] sm:$0xff] }
 0xb85   : > { %v12447_v45 = vadd.f32 %v5192_v27, %v5075_v60  ;;  %v14235_v27 = vld [vmem:[#allocation108_spill] sm:$0xff] }
 0xb86   : > { %v5293_v35 = vpop.f32.mrf.mxu2 }
 0xb87   : > { %v5341_v36 = vadd.f32 %v5293_v35, %v12293_v55  ;;  %8257 = vmatmul.msk.f32.gmra.mxu3 %vm4862_vm2, %v11943_v3  ;;  %v5201_v28 = vpop.f32.mrf.mxu1 }
 0xb8a   : > { %v5077_v25 = vpop.f32.mrf.mxu3  ;;  %8279 = vmatmul.msk.f32.gmra.mxu1 %vm4862_vm2, %v12134_v32 }
 0xb8b   : > { %v5078_v54 = vadd.f32 %v5077_v25, %v12239_v51  ;;  %8286 = vmatmul.msk.f32.gmra.mxu2 %vm4862_vm2, %v14235_v27  ;;  %v14236_v51 = vld [vmem:[#allocation162_spill] sm:$0xff]  ;;  %v14239_v27 = vld [vmem:[#allocation164_spill] sm:$0xff] }
 0xb8d   : > { %v12460_v41 = vadd.f32 %v5195_v8, %v5078_v54 }
 0xb8e   : > { %v5296_v55 = vpop.f32.mrf.mxu2 }
 0xb8f   : > { %v5342_v3 = vadd.f32 %v5296_v55, %v12304_v19  ;;  %8258 = vmatmul.msk.f32.gmra.mxu3 %vm4862_vm2, %v11954_v14  ;;  %v5204_v60 = vpop.f32.mrf.mxu1 }
 0xb92   : > { %v5080_v6 = vpop.f32.mrf.mxu3  ;;  %8280 = vmatmul.msk.f32.gmra.mxu1 %vm4862_vm2, %v12149_v1 }
 0xb93   : > { %v5081_v49 = vadd.f32 %v5080_v6, %v12258_v26  ;;  %8287 = vmatmul.msk.f32.gmra.mxu2 %vm4862_vm2, %v14236_v51  ;;  %v14238_v26 = vld [vmem:[#allocation106_spill] sm:$0xff] }
 0xb95   : > { %v12470_v32 = vadd.f32 %v5198_v15, %v5081_v49  ;;  %v14241_v49 = vld [vmem:[#allocation115_spill] sm:$0xff] }
 0xb96   : > { %v5299_v8 = vpop.f32.mrf.mxu2 }
 0xb97   : > { %v5343_v29 = vadd.f32 %v5299_v8, %v12315_v57  ;;  %8259 = vmatmul.msk.f32.gmra.mxu3 %vm4862_vm2, %v12112_v38  ;;  %v5561_v19 = vpop.f32.mrf.mxu1  ;;  %v14242_v8 = vld [vmem:[#allocation158_spill] sm:$0xff] }
 0xb9a   : > { %v5083_v14 = vpop.f32.mrf.mxu3  ;;  %8325 = vmatmul.msk.f32.vlgmr.msra.gmra.mxu1 %vm4862_vm2, %v14238_v26 }
 0xb9b   : > { %v5084_v35 = vadd.f32 %v5083_v14, %v12268_v43  ;;  %8288 = vmatmul.msk.f32.gmra.mxu2 %vm4862_vm2, %v14237_v4  ;;  %v14240_v43 = vld [vmem:[#allocation113_spill] sm:$0xff]  ;;  %v14244_v4 = vld [vmem:[#allocation3_spill] sm:$0xff] }
 0xb9d   : > { %v12480_v1 = vadd.f32 %v5201_v28, %v5084_v35 }
 0xb9e   : > { %v5302_v15 = vpop.f32.mrf.mxu2 }
 0xb9f   : > { %v5344_v25 = vadd.f32 %v5302_v15, %v12326_v52  ;;  %8260 = vmatmul.msk.f32.gmra.mxu3 %vm4862_vm2, %v12124_v5  ;;  %v5564_v57 = vpop.f32.mrf.mxu1 }
 0xba2   : > { %v5086_v38 = vpop.f32.mrf.mxu3  ;;  %8326 = vmatmul.msk.f32.gmra.mxu1 %vm4862_vm2, %v14240_v43  ;;  %v14247_v43 = vld [vmem:[#allocation76_spill] sm:$0xff] }
 0xba3   : > { %v5087_v54 = vadd.f32 %v5086_v38, %v12278_v56  ;;  %8289 = vmatmul.msk.f32.gmra.mxu2 %vm4862_vm2, %v14239_v27  ;;  %v14243_v56 = vld [vmem:[#allocation81_spill] sm:$0xff]  ;;  %v14245_v38 = vld [vmem:[#allocation136_spill] sm:$0xff] }
 0xba5   : > { %v12490_v55 = vadd.f32 %v5204_v60, %v5087_v54 }
 0xba6   : > { %v5305_v28 = vpop.f32.mrf.mxu2 }
 0xba7   : > { %v5345_v6 = vadd.f32 %v5305_v28, %v12337_v58  ;;  %8305 = vmatmul.msk.f32.vlgmr.msra.gmra.mxu3 %vm4862_vm2, %v14241_v49  ;;  %v5567_v52 = vpop.f32.mrf.mxu1 }
 0xbaa   : > { %v5427_v5 = vpop.f32.mrf.mxu3  ;;  %8327 = vmatmul.msk.f32.gmra.mxu1 %vm4862_vm2, %v14243_v56  ;;  %v14250_v56 = vld [vmem:[#allocation285_spill] sm:$0xff] }
 0xbab   : > { %v5475_v51 = vadd.f32 %v5427_v5, %v5341_v36  ;;  %8290 = vmatmul.msk.f32.gmra.mxu2 %vm4862_vm2, %v14242_v8  ;;  %v14246_v36 = vld [vmem:[#allocation242_spill] sm:$0xff] }
 0xbac   : > { %v14248_v5 = vld [vmem:[#allocation14_spill] sm:$0xff] }
 0xbad   : > { %v12499_v14 = vadd.f32 %v5561_v19, %v5475_v51 }
 0xbae   : > { %v5308_v35 = vpop.f32.mrf.mxu2 }
 0xbaf   : > { %v5346_v60 = vadd.f32 %v5308_v35, %v12348_v30  ;;  %8306 = vmatmul.msk.f32.gmra.mxu3 %vm4862_vm2, %v14244_v4  ;;  %v5570_v58 = vpop.f32.mrf.mxu1 }
 0xbb2   : > { %v5430_v26 = vpop.f32.mrf.mxu3  ;;  %8328 = vmatmul.msk.f32.gmra.mxu1 %vm4862_vm2, %v14246_v36 }
 0xbb3   : > { %v5476_v15 = vadd.f32 %v5430_v26, %v5342_v3  ;;  %8291 = vmatmul.msk.f32.gmra.mxu2 %vm4862_vm2, %v14245_v38  ;;  %v14249_v3 = vld [vmem:[#allocation83_spill] sm:$0xff]  ;;  %v14252_v38 = vld [vmem:[#allocation26_spill] sm:$0xff] }
 0xbb5   : > { %v12508_v54 = vadd.f32 %v5564_v57, %v5476_v15 }
 0xbb6   : > { %v5311_v27 = vpop.f32.mrf.mxu2 }
 0xbb7   : > { %v5347_v19 = vadd.f32 %v5311_v27, %v12362_v21  ;;  %8307 = vmatmul.msk.f32.gmra.mxu3 %vm4862_vm2, %v14247_v43  ;;  %v5573_v30 = vpop.f32.mrf.mxu1  ;;  %v14253_v43 = vld [vmem:[#allocation218_spill] sm:$0xff] }
 0xbba   : > { %v5433_v28 = vpop.f32.mrf.mxu3  ;;  %8329 = vmatmul.msk.f32.gmra.mxu1 %vm4862_vm2, %v14249_v3 }
 0xbbb   : > { %v5477_v49 = vadd.f32 %v5433_v28, %v5343_v29  ;;  %8292 = vmatmul.msk.f32.gmra.mxu2 %vm4862_vm2, %v14248_v5  ;;  %v14251_v29 = vld [vmem:[#allocation243_spill] sm:$0xff] }
 0xbbd   : > { %v12517_v51 = vadd.f32 %v5567_v52, %v5477_v49  ;;  %v14255_v49 = vld [vmem:[#allocation85_spill] sm:$0xff] }
 0xbbe   : > { %v5314_v8 = vpop.f32.mrf.mxu2 }
 0xbbf   : > { %v5348_v57 = vadd.f32 %v5314_v8, %v12382_v63  ;;  %8308 = vmatmul.msk.f32.gmra.mxu3 %vm4862_vm2, %v14250_v56  ;;  %v5576_v21 = vpop.f32.mrf.mxu1  ;;  %v14256_v8 = vld [vmem:[#allocation51_spill] sm:$0xff] }
 0xbc2   : > { %v5436_v35 = vpop.f32.mrf.mxu3  ;;  %8330 = vmatmul.msk.f32.gmra.mxu1 %vm4862_vm2, %v14251_v29 }
 0xbc3   : > { %v5478_v4 = vadd.f32 %v5436_v35, %v5344_v25  ;;  %8293 = vmatmul.msk.f32.gmra.mxu2 %vm4862_vm2, %v11765_v42  ;;  %v14254_v25 = vld [vmem:[#allocation17_spill] sm:$0xff] }
 0xbc5   : > { %v12526_v26 = vadd.f32 %v5570_v58, %v5478_v4  ;;  %v14258_v4 = vld [vmem:[#allocation142_spill] sm:$0xff] }
 0xbc6   : > { %v5317_v15 = vpop.f32.mrf.mxu2 }
 0xbc7   : > { %v5349_v52 = vadd.f32 %v5317_v15, %v12393_v31  ;;  %8309 = vmatmul.msk.f32.gmra.mxu3 %vm4862_vm2, %v14252_v38  ;;  %v5579_v63 = vpop.f32.mrf.mxu1  ;;  %v14259_v38 = vld [vmem:[#allocation143_spill] sm:$0xff] }
 0xbca   : > { %v5439_v36 = vpop.f32.mrf.mxu3  ;;  %8331 = vmatmul.msk.f32.gmra.mxu1 %vm4862_vm2, %v14254_v25 }
 0xbcb   : > { %v5479_v27 = vadd.f32 %v5439_v36, %v5345_v6  ;;  %8294 = vmatmul.msk.f32.gmra.mxu2 %vm4862_vm2, %v14253_v43  ;;  %v14257_v6 = vld [vmem:[#allocation18_spill] sm:$0xff] }
 0xbcd   : > { %v12535_v42 = vadd.f32 %v5573_v30, %v5479_v27  ;;  %v14260_v27 = vld [vmem:[#allocation144_spill] sm:$0xff] }
 0xbce   : > { %v5320_v28 = vpop.f32.mrf.mxu2 }
 0xbcf   : > { %v5350_v58 = vadd.f32 %v5320_v28, %v12407_v7  ;;  %8310 = vmatmul.msk.f32.gmra.mxu3 %vm4862_vm2, %v14255_v49  ;;  %v5582_v31 = vpop.f32.mrf.mxu1 }
 0xbd2   : > { %v5442_v5 = vpop.f32.mrf.mxu3  ;;  %8332 = vmatmul.msk.f32.gmra.mxu1 %vm4862_vm2, %v14257_v6 }
 0xbd3   : > { %v5480_v3 = vadd.f32 %v5442_v5, %v5346_v60  ;;  %8295 = vmatmul.msk.f32.gmra.mxu2 %vm4862_vm2, %v14256_v8  ;;  %v8344_v60 = vld [vmem:[%s13318_s4 + $0x138] sm:$0xff] }
 0xbd4   : > { %6092 = vmatpush.msra.mxu2 %v8344_v60  ;;  %v14265_v60 = vld [vmem:[#allocation267_spill] sm:$0xff] }
 0xbd5   : > { %v12544_v56 = vadd.f32 %v5576_v21, %v5480_v3  ;;  %v14261_v3 = vld [vmem:[#allocation64_spill] sm:$0xff] }
 0xbd6   : > { %v5323_v35 = vpop.f32.mrf.mxu2 }
 0xbd7   : > { %v5351_v30 = vadd.f32 %v5323_v35, %v12427_v17  ;;  %8311 = vmatmul.msk.f32.gmra.mxu3 %vm4862_vm2, %v14258_v4  ;;  %v5585_v7 = vpop.f32.mrf.mxu1  ;;  %v14263_v4 = vld [vmem:[#allocation141_spill] sm:$0xff] }
 0xbda   : > { %v5445_v29 = vpop.f32.mrf.mxu3  ;;  %8333 = vmatmul.msk.f32.gmra.mxu1 %vm4862_vm2, %v11828_v53  ;;  %v8342_v53 = vld [vmem:[%s13318_s4 + $0x128] sm:$0xff] }
 0xbdb   : > { %v5481_v15 = vadd.f32 %v5445_v29, %v5347_v19  ;;  %8296 = vmatmul.msk.f32.gmra.mxu2 %vm4862_vm2, %v14259_v38  ;;  %v8343_v19 = vld [vmem:[%s13318_s4 + $0x130] sm:$0xff] }
 0xbdc   : > { %6093 = vmatpush.msra.mxu2 %v8343_v19 }
 0xbdd   : > { %v12556_v21 = vadd.f32 %v5579_v63, %v5481_v15 }
 0xbde   : > { %v5326_v17 = vpop.f32.mrf.mxu2  ;;  %6094 = vmatpush.msra.mxu2 %v8342_v53 }
 0xbdf   : > { %v5352_v36 = vadd.f32 %v5326_v17, %v12447_v45  ;;  %8312 = vmatmul.msk.f32.gmra.mxu3 %vm4862_vm2, %v14260_v27  ;;  %v5588_v43 = vpop.f32.mrf.mxu1  ;;  %v8341_v45 = vld [vmem:[%s13318_s4 + $0x120] sm:$0xff]  ;;  %v8382_v17 = vld [vmem:[%s13318_s4 + $0x168] sm:$0xff] }
 0xbe0   : > { %6095 = vmatpush.msra.mxu2 %v8341_v45 }
 0xbe2   : > { %v5448_v25 = vpop.f32.mrf.mxu3  ;;  %8334 = vmatmul.msk.f32.gmra.mxu1 %vm4862_vm2, %v11840_v46  ;;  %v14262_v46 = vld [vmem:[#allocation280_spill] sm:$0xff] }
 0xbe3   : > { %v5482_v63 = vadd.f32 %v5448_v25, %v5348_v57  ;;  %8297 = vmatmul.msk.f32.gmra.mxu2 %vm4862_vm2, %v11990_v39 }
 0xbe5   : > { %v12574_v28 = vadd.f32 %v5582_v31, %v5482_v63  ;;  %v14266_v63 = vld [vmem:[#allocation228_spill] sm:$0xff] }
 0xbe6   : > { %v5329_v49 = vpop.f32.mrf.mxu2 }
 0xbe7   : > { %v5353_v5 = vadd.f32 %v5329_v49, %v12460_v41  ;;  %8313 = vmatmul.msk.f32.gmra.mxu3 %vm4862_vm2, %v14261_v3  ;;  %v5591_v57 = vpop.f32.mrf.mxu1  ;;  %v14267_v49 = vld [vmem:[#allocation2_spill] sm:$0xff]  ;;  %v8362_v3 = vld [vmem:[%s13318_s4 + $0x148] sm:$0xff] }
 0xbea   : > { %v5451_v8 = vpop.f32.mrf.mxu3  ;;  %8335 = vmatmul.msk.f32.gmra.mxu1 %vm4862_vm2, %v14262_v46 }
 0xbeb   : > { %v5483_v6 = vadd.f32 %v5451_v8, %v5349_v52  ;;  %8298 = vmatmul.msk.f32.gmra.mxu2 %vm4862_vm2, %v12008_v13  ;;  %v14264_v52 = vld [vmem:[#allocation270_spill] sm:$0xff]  ;;  %v8384_v13 = vld [vmem:[%s13318_s4 + $0x178] sm:$0xff] }
 0xbec   : > { %6360 = vmatpush.msrb.mxu1 %v8384_v13 }
 0xbed   : > { %v12583_v39 = vadd.f32 %v5585_v7, %v5483_v6 }
 0xbee   : > { %v5332_v35 = vpop.f32.mrf.mxu2 }
 0xbef   : > { %v5354_v31 = vadd.f32 %v5332_v35, %v12470_v32  ;;  %8314 = vmatmul.msk.f32.gmra.mxu3 %vm4862_vm2, %v14263_v4  ;;  %v5594_v41 = vpop.f32.mrf.mxu1  ;;  %v14268_v4 = vld [vmem:[#allocation37_spill] sm:$0xff] }
 0xbf2   : > { %v5454_v29 = vpop.f32.mrf.mxu3  ;;  %8336 = vmatmul.msk.f32.gmra.mxu1 %vm4862_vm2, %v14264_v52 }
 0xbf3   : > { %v5484_v15 = vadd.f32 %v5454_v29, %v5350_v58  ;;  %8299 = vmatmul.msk.f32.gmra.mxu2 %vm4862_vm2, %v12170_v34  ;;  %v8383_v34 = vld [vmem:[%s13318_s4 + $0x170] sm:$0xff] }
 0xbf4   : > { %6361 = vmatpush.msrb.mxu1 %v8383_v34  ;;  %v14270_v34 = vld [vmem:[#allocation77_spill] sm:$0xff] }
 0xbf5   : > { %v12595_v7 = vadd.f32 %v5588_v43, %v5484_v15 }
 0xbf6   : > { %v5335_v32 = vpop.f32.mrf.mxu2  ;;  %6362 = vmatpush.msrb.mxu1 %v8382_v17 }
 0xbf7   : > { %v5355_v38 = vadd.f32 %v5335_v32, %v12480_v1  ;;  %8315 = vmatmul.msk.f32.gmra.mxu3 %vm4862_vm2, %v14265_v60  ;;  %v5597_v58 = vpop.f32.mrf.mxu1  ;;  %v8381_v1 = vld [vmem:[%s13318_s4 + $0x160] sm:$0xff] }
 0xbf8   : > { %6363 = vmatpush.msrb.mxu1 %v8381_v1 }
 0xbfa   : > { %v5457_v27 = vpop.f32.mrf.mxu3  ;;  %8337 = vmatmul.msk.f32.gmra.mxu1 %vm4862_vm2, %v12049_v16 }
 0xbfb   : > { %v5485_v19 = vadd.f32 %v5457_v27, %v5351_v30  ;;  %8300 = vmatmul.msk.f32.gmra.mxu2 %vm4862_vm2, %v12182_v50  ;;  %v8364_v50 = vld [vmem:[%s13318_s4 + $0x158] sm:$0xff] }
 0xbfc   : > { %6226 = vmatpush.msrb.mxu3 %v8364_v50 }
 0xbfd   : > { %v12613_v43 = vadd.f32 %v5591_v57, %v5485_v19  ;;  %v14272_v19 = vld [vmem:[#allocation72_spill] sm:$0xff] }
 0xbfe   : > { %v5338_v53 = vpop.f32.mrf.mxu2 }
 0xbff   : > { %v5356_v25 = vadd.f32 %v5338_v53, %v12490_v55  ;;  %8316 = vmatmul.msk.f32.gmra.mxu3 %vm4862_vm2, %v14266_v63  ;;  %v5600_v30 = vpop.f32.mrf.mxu1  ;;  %v8363_v55 = vld [vmem:[%s13318_s4 + $0x150] sm:$0xff] }
 0xc00   : > { %6227 = vmatpush.msrb.mxu3 %v8363_v55 }
 0xc02   : > { %v5460_v16 = vpop.f32.mrf.mxu3  ;;  %8338 = vmatmul.msk.f32.gmra.mxu1 %vm4862_vm2, %v12058_v47  ;;  %6228 = vmatpush.msrb.mxu3 %v8362_v3  ;;  %v8361_v47 = vld [vmem:[%s13318_s4 + $0x140] sm:$0xff]  ;;  %v14277_v3 = vld [vmem:[#allocation31_spill] sm:$0xff] }
 0xc03   : > { %v5486_v45 = vadd.f32 %v5460_v16, %v5352_v36  ;;  %8345 = vmatmul.msk.f32.vlgmr.msra.gmra.mxu2 %vm4862_vm2, %v14267_v49  ;;  %v14275_v16 = vld [vmem:[#allocation281_spill] sm:$0xff] }
 0xc04   : > { %6229 = vmatpush.msrb.mxu3 %v8361_v47 }
 0xc05   : > { %v12631_v57 = vadd.f32 %v5594_v41, %v5486_v45 }
 0xc06   : > { %v5695_v8 = vpop.f32.mrf.mxu2 }
 0xc07   : > { %v5743_v36 = vadd.f32 %v5695_v8, %v12499_v14  ;;  %8317 = vmatmul.msk.f32.gmra.mxu3 %vm4862_vm2, %v12032_v61  ;;  %v5603_v6 = vpop.f32.mrf.mxu1 }
 0xc0a   : > { %v5463_v46 = vpop.f32.mrf.mxu3  ;;  %8339 = vmatmul.msk.f32.gmra.mxu1 %vm4862_vm2, %v12237_v37 }
 0xc0b   : > { %v5487_v35 = vadd.f32 %v5463_v46, %v5353_v5  ;;  %8346 = vmatmul.msk.f32.gmra.mxu2 %vm4862_vm2, %v14268_v4  ;;  %v14269_v5 = vld [vmem:[#allocation70_spill] sm:$0xff] }
 0xc0d   : > { %v12643_v41 = vadd.f32 %v5597_v58, %v5487_v35 }
 0xc0e   : > { %v5698_v14 = vpop.f32.mrf.mxu2 }
 0xc0f   : > { %v5744_v29 = vadd.f32 %v5698_v14, %v12508_v54  ;;  %8318 = vmatmul.msk.f32.gmra.mxu3 %vm4862_vm2, %v12040_v62  ;;  %v5606_v61 = vpop.f32.mrf.mxu1  ;;  %v14280_v14 = vld [vmem:[#allocation75_spill] sm:$0xff] }
 0xc12   : > { %v5466_v15 = vpop.f32.mrf.mxu3  ;;  %8340 = vmatmul.msk.f32.gmra.mxu1 %vm4862_vm2, %v12252_v48 }
 0xc13   : > { %v5488_v52 = vadd.f32 %v5466_v15, %v5354_v31  ;;  %8347 = vmatmul.msk.f32.gmra.mxu2 %vm4862_vm2, %v14269_v5  ;;  %v14271_v31 = vld [vmem:[#allocation168_spill] sm:$0xff] }
 0xc15   : > { %v12652_v37 = vadd.f32 %v5600_v30, %v5488_v52  ;;  %v14274_v30 = vld [vmem:[#allocation34_spill] sm:$0xff]  ;;  %v14281_v52 = vld [vmem:[#allocation20_spill] sm:$0xff] }
 0xc16   : > { %v5701_v13 = vpop.f32.mrf.mxu2 }
 0xc17   : > { %v5745_v32 = vadd.f32 %v5701_v13, %v12517_v51  ;;  %8319 = vmatmul.msk.f32.gmra.mxu3 %vm4862_vm2, %v12197_v44  ;;  %v5963_v54 = vpop.f32.mrf.mxu1 }
 0xc1a   : > { %v5469_v60 = vpop.f32.mrf.mxu3  ;;  %8385 = vmatmul.msk.f32.vlgmr.msrb.gmra.mxu1 %vm4862_vm2, %v14271_v31 }
 0xc1b   : > { %v5489_v62 = vadd.f32 %v5469_v60, %v5355_v38  ;;  %8348 = vmatmul.msk.f32.gmra.mxu2 %vm4862_vm2, %v14270_v34  ;;  %v14273_v38 = vld [vmem:[#allocation166_spill] sm:$0xff]  ;;  %v14283_v60 = vld [vmem:[#allocation277_spill] sm:$0xff] }
 0xc1d   : > { %v12661_v48 = vadd.f32 %v5603_v6, %v5489_v62  ;;  %v14278_v6 = vld [vmem:[#allocation148_spill] sm:$0xff] }
 0xc1e   : > { %v5704_v58 = vpop.f32.mrf.mxu2 }
 0xc1f   : > { %v5746_v17 = vadd.f32 %v5704_v58, %v12526_v26  ;;  %8320 = vmatmul.msk.f32.gmra.mxu3 %vm4862_vm2, %v12216_v11  ;;  %v5966_v51 = vpop.f32.mrf.mxu1 }
 0xc22   : > { %v5472_v27 = vpop.f32.mrf.mxu3  ;;  %8386 = vmatmul.msk.f32.gmra.mxu1 %vm4862_vm2, %v14273_v38 }
 0xc23   : > { %v5490_v44 = vadd.f32 %v5472_v27, %v5356_v25  ;;  %8349 = vmatmul.msk.f32.gmra.mxu2 %vm4862_vm2, %v14272_v19  ;;  %v14276_v25 = vld [vmem:[#allocation73_spill] sm:$0xff] }
 0xc24   : > { %v14285_v27 = vld [vmem:[#allocation241_spill] sm:$0xff] }
 0xc25   : > { %v12670_v1 = vadd.f32 %v5606_v61, %v5490_v44 }
 0xc26   : > { %v5707_v53 = vpop.f32.mrf.mxu2 }
 0xc27   : > { %v5747_v63 = vadd.f32 %v5707_v53, %v12535_v42  ;;  %8365 = vmatmul.msk.f32.vlgmr.msrb.gmra.mxu3 %vm4862_vm2, %v14274_v30  ;;  %v5969_v26 = vpop.f32.mrf.mxu1  ;;  %v14287_v30 = vld [vmem:[#allocation240_spill] sm:$0xff] }
 0xc2a   : > { %v5829_v50 = vpop.f32.mrf.mxu3  ;;  %8387 = vmatmul.msk.f32.gmra.mxu1 %vm4862_vm2, %v14276_v25  ;;  %v14289_v25 = vld [vmem:[#allocation153_spill] sm:$0xff] }
 0xc2b   : > { %v5877_v11 = vadd.f32 %v5829_v50, %v5743_v36  ;;  %8350 = vmatmul.msk.f32.gmra.mxu2 %vm4862_vm2, %v14275_v16  ;;  %v14279_v36 = vld [vmem:[#allocation238_spill] sm:$0xff] }
 0xc2d   : > { %v12679_v45 = vadd.f32 %v5963_v54, %v5877_v11 }
 0xc2e   : > { %v5710_v49 = vpop.f32.mrf.mxu2 }
 0xc2f   : > { %v5748_v55 = vadd.f32 %v5710_v49, %v12544_v56  ;;  %8366 = vmatmul.msk.f32.gmra.mxu3 %vm4862_vm2, %v14277_v3  ;;  %v5972_v42 = vpop.f32.mrf.mxu1 }
 0xc32   : > { %v5832_v8 = vpop.f32.mrf.mxu3  ;;  %8388 = vmatmul.msk.f32.gmra.mxu1 %vm4862_vm2, %v14279_v36 }
 0xc33   : > { %v5878_v47 = vadd.f32 %v5832_v8, %v5744_v29  ;;  %8351 = vmatmul.msk.f32.gmra.mxu2 %vm4862_vm2, %v14278_v6  ;;  %v14282_v29 = vld [vmem:[#allocation279_spill] sm:$0xff] }
 0xc34   : > { %v14290_v8 = vld [vmem:[#allocation23_spill] sm:$0xff] }
 0xc35   : > { %v12688_v46 = vadd.f32 %v5966_v51, %v5878_v47 }
 0xc36   : > { %v5713_v35 = vpop.f32.mrf.mxu2 }
 0xc37   : > { %v5749_v4 = vadd.f32 %v5713_v35, %v12556_v21  ;;  %8367 = vmatmul.msk.f32.gmra.mxu3 %vm4862_vm2, %v14280_v14  ;;  %v5975_v56 = vpop.f32.mrf.mxu1 }
 0xc3a   : > { %v5835_v61 = vpop.f32.mrf.mxu3  ;;  %8389 = vmatmul.msk.f32.gmra.mxu1 %vm4862_vm2, %v14282_v29 }
 0xc3b   : > { %v5879_v15 = vadd.f32 %v5835_v61, %v5745_v32  ;;  %8352 = vmatmul.msk.f32.gmra.mxu2 %vm4862_vm2, %v14281_v52  ;;  %v14284_v32 = vld [vmem:[#allocation239_spill] sm:$0xff] }
 0xc3d   : > { %v12697_v5 = vadd.f32 %v5969_v26, %v5879_v15 }
 0xc3e   : > { %v5716_v13 = vpop.f32.mrf.mxu2 }
 0xc3f   : > { %v5750_v54 = vadd.f32 %v5716_v13, %v12574_v28  ;;  %8368 = vmatmul.msk.f32.gmra.mxu3 %vm4862_vm2, %v14283_v60  ;;  %v5978_v21 = vpop.f32.mrf.mxu1  ;;  %v14294_v60 = vld [vmem:[#allocation139_spill] sm:$0xff] }
 0xc42   : > { %v5838_v62 = vpop.f32.mrf.mxu3  ;;  %8390 = vmatmul.msk.f32.gmra.mxu1 %vm4862_vm2, %v14284_v32  ;;  %v14296_v32 = vld [vmem:[#allocation224_spill] sm:$0xff] }
 0xc43   : > { %v5880_v34 = vadd.f32 %v5838_v62, %v5746_v17  ;;  %8353 = vmatmul.msk.f32.gmra.mxu2 %vm4862_vm2, %v11852_v10  ;;  %v14286_v17 = vld [vmem:[#allocation157_spill] sm:$0xff] }
 0xc45   : > { %v12706_v31 = vadd.f32 %v5972_v42, %v5880_v34  ;;  %v14295_v34 = vld [vmem:[#allocation261_spill] sm:$0xff] }
 0xc46   : > { %v5719_v58 = vpop.f32.mrf.mxu2 }
 0xc47   : > { %v5751_v51 = vadd.f32 %v5719_v58, %v12583_v39  ;;  %8369 = vmatmul.msk.f32.gmra.mxu3 %vm4862_vm2, %v14285_v27  ;;  %v5981_v28 = vpop.f32.mrf.mxu1  ;;  %v8444_v58 = vld [vmem:[%s13318_s4 + $0x1d8] sm:$0xff] }
 0xc48   : > { %6762 = vmatpush.msra.mxu1 %v8444_v58 }
 0xc4a   : > { %v5841_v44 = vpop.f32.mrf.mxu3  ;;  %8391 = vmatmul.msk.f32.gmra.mxu1 %vm4862_vm2, %v14286_v17  ;;  %v8442_v17 = vld [vmem:[%s13318_s4 + $0x1c8] sm:$0xff] }
 0xc4b   : > { %v5881_v19 = vadd.f32 %v5841_v44, %v5747_v63  ;;  %8354 = vmatmul.msk.f32.gmra.mxu2 %vm4862_vm2, %v11864_v23  ;;  %v14288_v63 = vld [vmem:[#allocation201_spill] sm:$0xff]  ;;  %v8443_v44 = vld [vmem:[%s13318_s4 + $0x1d0] sm:$0xff] }
 0xc4c   : > { %6763 = vmatpush.msra.mxu1 %v8443_v44 }
 0xc4d   : > { %v12715_v10 = vadd.f32 %v5975_v56, %v5881_v19  ;;  %v14291_v56 = vld [vmem:[#allocation230_spill] sm:$0xff] }
 0xc4e   : > { %v5722_v38 = vpop.f32.mrf.mxu2  ;;  %6764 = vmatpush.msra.mxu1 %v8442_v17  ;;  %v14312_v17 = vld [vmem:[#allocation202_spill] sm:$0xff] }
 0xc4f   : > { %v5752_v53 = vadd.f32 %v5722_v38, %v12595_v7  ;;  %8370 = vmatmul.msk.f32.gmra.mxu3 %vm4862_vm2, %v14287_v30  ;;  %v5984_v39 = vpop.f32.mrf.mxu1  ;;  %v14298_v30 = vld [vmem:[#allocation210_spill] sm:$0xff] }
 0xc52   : > { %v5844_v26 = vpop.f32.mrf.mxu3  ;;  %8392 = vmatmul.msk.f32.gmra.mxu1 %vm4862_vm2, %v14288_v63 }
 0xc53   : > { %v5882_v50 = vadd.f32 %v5844_v26, %v5748_v55  ;;  %8355 = vmatmul.msk.f32.gmra.mxu2 %vm4862_vm2, %v11832_v0  ;;  %v8404_v0 = vld [vmem:[%s13318_s4 + $0x198] sm:$0xff] }
 0xc54   : > { %6494 = vmatpush.msrb.mxu2 %v8404_v0  ;;  %v14302_v0 = vld [vmem:[#allocation159_spill] sm:$0xff] }
 0xc55   : > { %v12724_v23 = vadd.f32 %v5978_v21, %v5882_v50 }
 0xc56   : > { %v5725_v11 = vpop.f32.mrf.mxu2 }
 0xc57   : > { %v5753_v16 = vadd.f32 %v5725_v11, %v12613_v43  ;;  %8371 = vmatmul.msk.f32.gmra.mxu3 %vm4862_vm2, %v14289_v25  ;;  %v5987_v7 = vpop.f32.mrf.mxu1  ;;  %v14300_v11 = vld [vmem:[#allocation63_spill] sm:$0xff]  ;;  %v8424_v25 = vld [vmem:[%s13318_s4 + $0x1b8] sm:$0xff] }
 0xc58   : > { %6628 = vmatpush.msra.mxu3 %v8424_v25 }
 0xc5a   : > { %v5847_v49 = vpop.f32.mrf.mxu3  ;;  %8393 = vmatmul.msk.f32.gmra.mxu1 %vm4862_vm2, %v11894_v22  ;;  %v8402_v22 = vld [vmem:[%s13318_s4 + $0x188] sm:$0xff] }
 0xc5b   : > { %v5883_v3 = vadd.f32 %v5847_v49, %v5749_v4  ;;  %8356 = vmatmul.msk.f32.gmra.mxu2 %vm4862_vm2, %v11844_v20  ;;  %v8403_v20 = vld [vmem:[%s13318_s4 + $0x190] sm:$0xff] }
 0xc5c   : > { %6495 = vmatpush.msrb.mxu2 %v8403_v20 }
 0xc5d   : > { %v12736_v55 = vadd.f32 %v5981_v28, %v5883_v3  ;;  %v14297_v28 = vld [vmem:[#allocation226_spill] sm:$0xff]  ;;  %v14301_v3 = vld [vmem:[#allocation57_spill] sm:$0xff] }
 0xc5e   : > { %v5728_v43 = vpop.f32.mrf.mxu2  ;;  %6496 = vmatpush.msrb.mxu2 %v8402_v22  ;;  %v8421_v22 = vld [vmem:[%s13318_s4 + $0x1a0] sm:$0xff] }
 0xc5f   : > { %v5754_v42 = vadd.f32 %v5728_v43, %v12631_v57  ;;  %8372 = vmatmul.msk.f32.gmra.mxu3 %vm4862_vm2, %v14290_v8  ;;  %v5990_v47 = vpop.f32.mrf.mxu1  ;;  %v8401_v57 = vld [vmem:[%s13318_s4 + $0x180] sm:$0xff]  ;;  %v8422_v43 = vld [vmem:[%s13318_s4 + $0x1a8] sm:$0xff] }
 0xc60   : > { %6497 = vmatpush.msrb.mxu2 %v8401_v57 }
 0xc62   : > { %v5850_v6 = vpop.f32.mrf.mxu3  ;;  %8394 = vmatmul.msk.f32.gmra.mxu1 %vm4862_vm2, %v11906_v33  ;;  %v14293_v33 = vld [vmem:[#allocation278_spill] sm:$0xff] }
 0xc63   : > { %v5884_v36 = vadd.f32 %v5850_v6, %v5750_v54  ;;  %8357 = vmatmul.msk.f32.gmra.mxu2 %vm4862_vm2, %v12070_v9  ;;  %v14292_v9 = vld [vmem:[#allocation217_spill] sm:$0xff] }
 0xc65   : > { %v12754_v35 = vadd.f32 %v5984_v39, %v5884_v36  ;;  %v8441_v39 = vld [vmem:[%s13318_s4 + $0x1c0] sm:$0xff] }
 0xc66   : > { %v5731_v4 = vpop.f32.mrf.mxu2  ;;  %6765 = vmatpush.msra.mxu1 %v8441_v39 }
 0xc67   : > { %v5755_v14 = vadd.f32 %v5731_v4, %v12643_v41  ;;  %8373 = vmatmul.msk.f32.gmra.mxu3 %vm4862_vm2, %v14291_v56  ;;  %v5993_v61 = vpop.f32.mrf.mxu1  ;;  %v14304_v4 = vld [vmem:[#allocation207_spill] sm:$0xff] }
 0xc68   : > { %v14305_v56 = vld [vmem:[#allocation27_spill] sm:$0xff] }
 0xc6a   : > { %v5853_v15 = vpop.f32.mrf.mxu3  ;;  %8395 = vmatmul.msk.f32.gmra.mxu1 %vm4862_vm2, %v14293_v33 }
 0xc6b   : > { %v5885_v52 = vadd.f32 %v5853_v15, %v5751_v51  ;;  %8358 = vmatmul.msk.f32.gmra.mxu2 %vm4862_vm2, %v14292_v9 }
 0xc6d   : > { %v12763_v29 = vadd.f32 %v5987_v7, %v5885_v52  ;;  %v14306_v52 = vld [vmem:[#allocation131_spill] sm:$0xff] }
 0xc6e   : > { %v5734_v13 = vpop.f32.mrf.mxu2 }
 0xc6f   : > { %v5756_v54 = vadd.f32 %v5734_v13, %v12652_v37  ;;  %8374 = vmatmul.msk.f32.gmra.mxu3 %vm4862_vm2, %v14294_v60  ;;  %v5996_v41 = vpop.f32.mrf.mxu1  ;;  %v14307_v60 = vld [vmem:[#allocation258_spill] sm:$0xff] }
 0xc72   : > { %v5856_v21 = vpop.f32.mrf.mxu3  ;;  %8396 = vmatmul.msk.f32.gmra.mxu1 %vm4862_vm2, %v14296_v32 }
 0xc73   : > { %v5886_v62 = vadd.f32 %v5856_v21, %v5752_v53  ;;  %8359 = vmatmul.msk.f32.gmra.mxu2 %vm4862_vm2, %v14295_v34  ;;  %v14309_v34 = vld [vmem:[#allocation54_spill] sm:$0xff] }
 0xc75   : > { %v12775_v51 = vadd.f32 %v5990_v47, %v5886_v62  ;;  %v14303_v47 = vld [vmem:[#allocation58_spill] sm:$0xff] }
 0xc76   : > { %v5737_v37 = vpop.f32.mrf.mxu2 }
 0xc77   : > { %v5757_v27 = vadd.f32 %v5737_v37, %v12661_v48  ;;  %8375 = vmatmul.msk.f32.gmra.mxu3 %vm4862_vm2, %v14297_v28  ;;  %v5999_v19 = vpop.f32.mrf.mxu1  ;;  %v14299_v48 = vld [vmem:[#allocation215_spill] sm:$0xff] }
 0xc78   : > { %v14310_v37 = vld [vmem:[#allocation271_spill] sm:$0xff] }
 0xc7a   : > { %v5859_v38 = vpop.f32.mrf.mxu3  ;;  %8397 = vmatmul.msk.f32.gmra.mxu1 %vm4862_vm2, %v14299_v48 }
 0xc7b   : > { %v5887_v53 = vadd.f32 %v5859_v38, %v5753_v16  ;;  %8360 = vmatmul.msk.f32.gmra.mxu2 %vm4862_vm2, %v14298_v30  ;;  %v14313_v30 = vld [vmem:[#allocation275_spill] sm:$0xff] }
 0xc7d   : > { %v12793_v26 = vadd.f32 %v5993_v61, %v5887_v53 }
 0xc7e   : > { %v5740_v50 = vpop.f32.mrf.mxu2 }
 0xc7f   : > { %v5758_v63 = vadd.f32 %v5740_v50, %v12670_v1  ;;  %8376 = vmatmul.msk.f32.gmra.mxu3 %vm4862_vm2, %v14300_v11  ;;  %v6002_v16 = vpop.f32.mrf.mxu1  ;;  %v8423_v1 = vld [vmem:[%s13318_s4 + $0x1b0] sm:$0xff]  ;;  %v14315_v11 = vld [vmem:[#allocation163_spill] sm:$0xff] }
 0xc80   : > { %6629 = vmatpush.msra.mxu3 %v8423_v1  ;;  %v14318_v1 = vld [vmem:[#allocation245_spill] sm:$0xff] }
 0xc82   : > { %v5862_v7 = vpop.f32.mrf.mxu3  ;;  %8398 = vmatmul.msk.f32.gmra.mxu1 %vm4862_vm2, %v14301_v3  ;;  %6630 = vmatpush.msra.mxu3 %v8422_v43 }
 0xc83   : > { %v5888_v49 = vadd.f32 %v5862_v7, %v5754_v42  ;;  %8405 = vmatmul.msk.f32.vlgmr.msrb.gmra.mxu2 %vm4862_vm2, %v14302_v0  ;;  %v14316_v7 = vld [vmem:[#allocation71_spill] sm:$0xff] }
 0xc84   : > { %6631 = vmatpush.msra.mxu3 %v8421_v22 }
 0xc85   : > { %v12811_v8 = vadd.f32 %v5996_v41, %v5888_v49 }
 0xc86   : > { %v6097_v20 = vpop.f32.mrf.mxu2 }
 0xc87   : > { %v6145_v42 = vadd.f32 %v6097_v20, %v12679_v45  ;;  %8377 = vmatmul.msk.f32.gmra.mxu3 %vm4862_vm2, %v14303_v47  ;;  %v6005_v6 = vpop.f32.mrf.mxu1  ;;  %v14319_v47 = vld [vmem:[#allocation152_spill] sm:$0xff] }
 0xc8a   : > { %v5865_v36 = vpop.f32.mrf.mxu3  ;;  %8399 = vmatmul.msk.f32.gmra.mxu1 %vm4862_vm2, %v14304_v4 }
 0xc8b   : > { %v5889_v57 = vadd.f32 %v5865_v36, %v5755_v14  ;;  %8406 = vmatmul.msk.f32.gmra.mxu2 %vm4862_vm2, %v14305_v56  ;;  %v14308_v14 = vld [vmem:[#allocation273_spill] sm:$0xff] }
 0xc8d   : > { %v12823_v61 = vadd.f32 %v5999_v19, %v5889_v57  ;;  %v14321_v57 = vld [vmem:[#allocation269_spill] sm:$0xff] }
 0xc8e   : > { %v6100_v45 = vpop.f32.mrf.mxu2 }
 0xc8f   : > { %v6146_v15 = vadd.f32 %v6100_v45, %v12688_v46  ;;  %8378 = vmatmul.msk.f32.gmra.mxu3 %vm4862_vm2, %v14306_v52  ;;  %v6008_v9 = vpop.f32.mrf.mxu1  ;;  %v14322_v45 = vld [vmem:[#allocation265_spill] sm:$0xff] }
 0xc92   : > { %v5868_v33 = vpop.f32.mrf.mxu3  ;;  %8400 = vmatmul.msk.f32.gmra.mxu1 %vm4862_vm2, %v14307_v60 }
 0xc93   : > { %v5890_v13 = vadd.f32 %v5868_v33, %v5756_v54  ;;  %8407 = vmatmul.msk.f32.gmra.mxu2 %vm4862_vm2, %v14308_v14  ;;  %v14311_v54 = vld [vmem:[#allocation244_spill] sm:$0xff] }
 0xc95   : > { %v12832_v41 = vadd.f32 %v6002_v16, %v5890_v13  ;;  %v14324_v13 = vld [vmem:[#allocation236_spill] sm:$0xff] }
 0xc96   : > { %v6103_v21 = vpop.f32.mrf.mxu2 }
 0xc97   : > { %v6147_v62 = vadd.f32 %v6103_v21, %v12697_v5  ;;  %8379 = vmatmul.msk.f32.gmra.mxu3 %vm4862_vm2, %v14309_v34  ;;  %v6365_v46 = vpop.f32.mrf.mxu1  ;;  %v14325_v21 = vld [vmem:[#allocation227_spill] sm:$0xff] }
 0xc9a   : > { %v5871_v32 = vpop.f32.mrf.mxu3  ;;  %8445 = vmatmul.msk.f32.vlgmr.msra.gmra.mxu1 %vm4862_vm2, %v14311_v54 }
 0xc9b   : > { %v5891_v58 = vadd.f32 %v5871_v32, %v5757_v27  ;;  %8408 = vmatmul.msk.f32.gmra.mxu2 %vm4862_vm2, %v14310_v37  ;;  %v14314_v27 = vld [vmem:[#allocation74_spill] sm:$0xff] }
 0xc9d   : > { %v12841_v28 = vadd.f32 %v6005_v6, %v5891_v58  ;;  %v14327_v58 = vld [vmem:[#allocation69_spill] sm:$0xff] }
 0xc9e   : > { %v6106_v44 = vpop.f32.mrf.mxu2 }
 0xc9f   : > { %v6148_v19 = vadd.f32 %v6106_v44, %v12706_v31  ;;  %8380 = vmatmul.msk.f32.gmra.mxu3 %vm4862_vm2, %v14312_v17  ;;  %v6368_v5 = vpop.f32.mrf.mxu1  ;;  %v14328_v44 = vld [vmem:[#allocation137_spill] sm:$0xff] }
 0xca2   : > { %v5874_v38 = vpop.f32.mrf.mxu3  ;;  %8446 = vmatmul.msk.f32.gmra.mxu1 %vm4862_vm2, %v14314_v27 }
 0xca3   : > { %v5892_v53 = vadd.f32 %v5874_v38, %v5758_v63  ;;  %8409 = vmatmul.msk.f32.gmra.mxu2 %vm4862_vm2, %v14313_v30  ;;  %v14317_v63 = vld [vmem:[#allocation66_spill] sm:$0xff] }
 0xca5   : > { %v12850_v48 = vadd.f32 %v6008_v9, %v5892_v53  ;;  %v14330_v53 = vld [vmem:[#allocation68_spill] sm:$0xff] }
 0xca6   : > { %v6109_v39 = vpop.f32.mrf.mxu2 }
 0xca7   : > { %v6149_v50 = vadd.f32 %v6109_v39, %v12715_v10  ;;  %8425 = vmatmul.msk.f32.vlgmr.msra.gmra.mxu3 %vm4862_vm2, %v14315_v11  ;;  %v6371_v31 = vpop.f32.mrf.mxu1  ;;  %v14331_v39 = vld [vmem:[#allocation62_spill] sm:$0xff] }
 0xcaa   : > { %v6231_v16 = vpop.f32.mrf.mxu3  ;;  %8447 = vmatmul.msk.f32.gmra.mxu1 %vm4862_vm2, %v14317_v63 }
 0xcab   : > { %v6279_v25 = vadd.f32 %v6231_v16, %v6145_v42  ;;  %8410 = vmatmul.msk.f32.gmra.mxu2 %vm4862_vm2, %v14316_v7  ;;  %v14320_v42 = vld [vmem:[#allocation229_spill] sm:$0xff] }
 0xcad   : > { %v12859_v49 = vadd.f32 %v6365_v46, %v6279_v25  ;;  %v14333_v25 = vld [vmem:[#allocation216_spill] sm:$0xff] }
 0xcae   : > { %v6112_v3 = vpop.f32.mrf.mxu2 }
 0xcaf   : > { %v6150_v0 = vadd.f32 %v6112_v3, %v12724_v23  ;;  %8426 = vmatmul.msk.f32.gmra.mxu3 %vm4862_vm2, %v14318_v1  ;;  %v6374_v10 = vpop.f32.mrf.mxu1  ;;  %v14334_v3 = vld [vmem:[#allocation276_spill] sm:$0xff]  ;;  %v8464_v1 = vld [vmem:[%s13318_s4 + $0x1f8] sm:$0xff] }
 0xcb0   : > { %6896 = vmatpush.msra.mxu2 %v8464_v1 }
 0xcb2   : > { %v6234_v43 = vpop.f32.mrf.mxu3  ;;  %8448 = vmatmul.msk.f32.gmra.mxu1 %vm4862_vm2, %v14320_v42 }
 0xcb3   : > { %v6280_v20 = vadd.f32 %v6234_v43, %v6146_v15  ;;  %8411 = vmatmul.msk.f32.gmra.mxu2 %vm4862_vm2, %v14319_v47  ;;  %v14323_v15 = vld [vmem:[#allocation67_spill] sm:$0xff]  ;;  %v8463_v47 = vld [vmem:[%s13318_s4 + $0x1f0] sm:$0xff] }
 0xcb4   : > { %6897 = vmatpush.msra.mxu2 %v8463_v47 }
 0xcb5   : > { %v12868_v22 = vadd.f32 %v6368_v5, %v6280_v20  ;;  %v14336_v20 = vld [vmem:[#allocation268_spill] sm:$0xff] }
 0xcb6   : > { %v6115_v6 = vpop.f32.mrf.mxu2 }
 0xcb7   : > { %v6151_v36 = vadd.f32 %v6115_v6, %v12736_v55  ;;  %8427 = vmatmul.msk.f32.gmra.mxu3 %vm4862_vm2, %v14321_v57  ;;  %v6377_v23 = vpop.f32.mrf.mxu1  ;;  %v8462_v6 = vld [vmem:[%s13318_s4 + $0x1e8] sm:$0xff] }
 0xcb8   : > { %6898 = vmatpush.msra.mxu2 %v8462_v6 }
 0xcba   : > { %v6237_v4 = vpop.f32.mrf.mxu3  ;;  %8449 = vmatmul.msk.f32.gmra.mxu1 %vm4862_vm2, %v14323_v15 }
 0xcbb   : > { %v6281_v56 = vadd.f32 %v6237_v4, %v6147_v62  ;;  %8412 = vmatmul.msk.f32.gmra.mxu2 %vm4862_vm2, %v14322_v45  ;;  %v14326_v62 = vld [vmem:[#allocation231_spill] sm:$0xff]  ;;  %v8461_v4 = vld [vmem:[%s13318_s4 + $0x1e0] sm:$0xff] }
 0xcbc   : > { %6899 = vmatpush.msra.mxu2 %v8461_v4 }
 0xcbd   : > { %v12877_v52 = vadd.f32 %v6371_v31, %v6281_v56 }
 0xcbe   : > { %v6118_v9 = vpop.f32.mrf.mxu2 }
 0xcbf   : > { %v6152_v33 = vadd.f32 %v6118_v9, %v12754_v35  ;;  %8428 = vmatmul.msk.f32.gmra.mxu3 %vm4862_vm2, %v14324_v13  ;;  %v6380_v55 = vpop.f32.mrf.mxu1  ;;  %v14339_v9 = vld [vmem:[#allocation222_spill] sm:$0xff] }
 0xcc2   : > { %v6240_v60 = vpop.f32.mrf.mxu3  ;;  %8450 = vmatmul.msk.f32.gmra.mxu1 %vm4862_vm2, %v14326_v62 }
 0xcc3   : > { %v6282_v14 = vadd.f32 %v6240_v60, %v6148_v19  ;;  %8413 = vmatmul.msk.f32.gmra.mxu2 %vm4862_vm2, %v14325_v21  ;;  %v14329_v19 = vld [vmem:[#allocation232_spill] sm:$0xff]  ;;  %v14340_v60 = vld [vmem:[#allocation213_spill] sm:$0xff] }
 0xcc5   : > { %v12886_v34 = vadd.f32 %v6374_v10, %v6282_v14  ;;  %v14341_v14 = vld [vmem:[#allocation135_spill] sm:$0xff] }
 0xcc6   : > { %v6121_v46 = vpop.f32.mrf.mxu2 }
 0xcc7   : > { %v6153_v32 = vadd.f32 %v6121_v46, %v12763_v29  ;;  %8429 = vmatmul.msk.f32.gmra.mxu3 %vm4862_vm2, %v14327_v58  ;;  %v6383_v35 = vpop.f32.mrf.mxu1  ;;  %v14342_v58 = vld [vmem:[#allocation61_spill] sm:$0xff] }
 0xcca   : > { %v6243_v37 = vpop.f32.mrf.mxu3  ;;  %8451 = vmatmul.msk.f32.gmra.mxu1 %vm4862_vm2, %v14329_v19 }
 0xccb   : > { %v6283_v54 = vadd.f32 %v6243_v37, %v6149_v50  ;;  %8414 = vmatmul.msk.f32.gmra.mxu2 %vm4862_vm2, %v14328_v44  ;;  %v14332_v50 = vld [vmem:[#allocation221_spill] sm:$0xff] }
 0xccd   : > { %v12895_v17 = vadd.f32 %v6377_v23, %v6283_v54  ;;  %v14337_v23 = vld [vmem:[#allocation130_spill] sm:$0xff]  ;;  %v14343_v54 = vld [vmem:[#allocation208_spill] sm:$0xff] }
 0xcce   : > { %v6124_v5 = vpop.f32.mrf.mxu2 }
 0xccf   : > { %v6154_v38 = vadd.f32 %v6124_v5, %v12775_v51  ;;  %8430 = vmatmul.msk.f32.gmra.mxu3 %vm4862_vm2, %v14330_v53  ;;  %v6386_v29 = vpop.f32.mrf.mxu1  ;;  %v14345_v53 = vld [vmem:[#allocation154_spill] sm:$0xff] }
 0xcd2   : > { %v6246_v30 = vpop.f32.mrf.mxu3  ;;  %8452 = vmatmul.msk.f32.gmra.mxu1 %vm4862_vm2, %v14332_v50 }
 0xcd3   : > { %v6284_v27 = vadd.f32 %v6246_v30, %v6150_v0  ;;  %8415 = vmatmul.msk.f32.gmra.mxu2 %vm4862_vm2, %v14331_v39  ;;  %v14335_v0 = vld [vmem:[#allocation274_spill] sm:$0xff] }
 0xcd5   : > { %v12904_v11 = vadd.f32 %v6380_v55, %v6284_v27  ;;  %v14346_v27 = vld [vmem:[#allocation53_spill] sm:$0xff] }
 0xcd6   : > { %v6127_v31 = vpop.f32.mrf.mxu2 }
 0xcd7   : > { %v6155_v16 = vadd.f32 %v6127_v31, %v12793_v26  ;;  %8431 = vmatmul.msk.f32.gmra.mxu3 %vm4862_vm2, %v14333_v25  ;;  %v6389_v51 = vpop.f32.mrf.mxu1  ;;  %v14348_v25 = vld [vmem:[#allocation225_spill] sm:$0xff] }
 0xcda   : > { %v6249_v7 = vpop.f32.mrf.mxu3  ;;  %8453 = vmatmul.msk.f32.gmra.mxu1 %vm4862_vm2, %v14335_v0 }
 0xcdb   : > { %v6285_v63 = vadd.f32 %v6249_v7, %v6151_v36  ;;  %8416 = vmatmul.msk.f32.gmra.mxu2 %vm4862_vm2, %v14334_v3 }
 0xcdd   : > { %v12916_v10 = vadd.f32 %v6383_v35, %v6285_v63  ;;  %v14349_v63 = vld [vmem:[#allocation211_spill] sm:$0xff] }
 0xcde   : > { %v6130_v26 = vpop.f32.mrf.mxu2 }
 0xcdf   : > { %v6156_v43 = vadd.f32 %v6130_v26, %v12811_v8  ;;  %8432 = vmatmul.msk.f32.gmra.mxu3 %vm4862_vm2, %v14336_v20  ;;  %v6392_v42 = vpop.f32.mrf.mxu1  ;;  %v14338_v8 = vld [vmem:[#allocation220_spill] sm:$0xff] }
 0xce0   : > { %v14351_v26 = vld [vmem:[#allocation56_spill] sm:$0xff] }
 0xce2   : > { %v6252_v36 = vpop.f32.mrf.mxu3  ;;  %8454 = vmatmul.msk.f32.gmra.mxu1 %vm4862_vm2, %v14338_v8  ;;  %v14354_v8 = vld [vmem:[#allocation12_spill] sm:$0xff] }
 0xce3   : > { %v6286_v57 = vadd.f32 %v6252_v36, %v6152_v33  ;;  %8417 = vmatmul.msk.f32.gmra.mxu2 %vm4862_vm2, %v14337_v23 }
 0xce5   : > { %v12934_v56 = vadd.f32 %v6386_v29, %v6286_v57  ;;  %v14353_v57 = vld [vmem:[#allocation212_spill] sm:$0xff] }
 0xce6   : > { %v6133_v45 = vpop.f32.mrf.mxu2 }
 0xce7   : > { %v6157_v15 = vadd.f32 %v6133_v45, %v12823_v61  ;;  %8433 = vmatmul.msk.f32.gmra.mxu3 %vm4862_vm2, %v14339_v9  ;;  %v6395_v33 = vpop.f32.mrf.mxu1 }
 0xcea   : > { %v6255_v13 = vpop.f32.mrf.mxu3  ;;  %8455 = vmatmul.msk.f32.gmra.mxu1 %vm4862_vm2, %v14341_v14 }
 0xceb   : > { %v6287_v55 = vadd.f32 %v6255_v13, %v6153_v32  ;;  %8418 = vmatmul.msk.f32.gmra.mxu2 %vm4862_vm2, %v14340_v60  ;;  %v14344_v32 = vld [vmem:[#allocation60_spill] sm:$0xff] }
 0xced   : > { %v12943_v21 = vadd.f32 %v6389_v51, %v6287_v55 }
 0xcee   : > { %v6136_v62 = vpop.f32.mrf.mxu2 }
 0xcef   : > { %v6158_v46 = vadd.f32 %v6136_v62, %v12832_v41  ;;  %8434 = vmatmul.msk.f32.gmra.mxu3 %vm4862_vm2, %v14342_v58  ;;  %v6398_v61 = vpop.f32.mrf.mxu1 }
 0xcf2   : > { %v6258_v35 = vpop.f32.mrf.mxu3  ;;  %8456 = vmatmul.msk.f32.gmra.mxu1 %vm4862_vm2, %v14344_v32 }
 0xcf3   : > { %v6288_v37 = vadd.f32 %v6258_v35, %v6154_v38  ;;  %8419 = vmatmul.msk.f32.gmra.mxu2 %vm4862_vm2, %v14343_v54  ;;  %v14347_v38 = vld [vmem:[#allocation263_spill] sm:$0xff]  ;;  %v14357_v54 = vld [vmem:[#allocation134_spill] sm:$0xff] }
 0xcf5   : > { %v12952_v44 = vadd.f32 %v6392_v42, %v6288_v37 }
 0xcf6   : > { %v6139_v19 = vpop.f32.mrf.mxu2 }
 0xcf7   : > { %v6159_v5 = vadd.f32 %v6139_v19, %v12841_v28  ;;  %8435 = vmatmul.msk.f32.gmra.mxu3 %vm4862_vm2, %v14345_v53  ;;  %v6401_v41 = vpop.f32.mrf.mxu1 }
 0xcfa   : > { %v6261_v29 = vpop.f32.mrf.mxu3  ;;  %8457 = vmatmul.msk.f32.gmra.mxu1 %vm4862_vm2, %v14347_v38 }
 0xcfb   : > { %v6289_v30 = vadd.f32 %v6261_v29, %v6155_v16  ;;  %8420 = vmatmul.msk.f32.gmra.mxu2 %vm4862_vm2, %v14346_v27  ;;  %v14350_v16 = vld [vmem:[#allocation283_spill] sm:$0xff] }
 0xcfd   : > { %v12961_v39 = vadd.f32 %v6395_v33, %v6289_v30  ;;  %v14355_v33 = vld [vmem:[#allocation138_spill] sm:$0xff] }
 0xcfe   : > { %v6142_v50 = vpop.f32.mrf.mxu2 }
 0xcff   : > { %v6160_v31 = vadd.f32 %v6142_v50, %v12850_v48  ;;  %8436 = vmatmul.msk.f32.gmra.mxu3 %vm4862_vm2, %v14348_v25  ;;  %v6404_v28 = vpop.f32.mrf.mxu1  ;;  %v14359_v50 = vld [vmem:[#allocation272_spill] sm:$0xff] }
 0xd02   : > { %v6264_v51 = vpop.f32.mrf.mxu3  ;;  %8458 = vmatmul.msk.f32.gmra.mxu1 %vm4862_vm2, %v14349_v63  ;;  %v14360_v63 = vld [vmem:[#allocation133_spill] sm:$0xff] }
 0xd03   : > { %v6290_v7 = vadd.f32 %v6264_v51, %v6156_v43  ;;  %8465 = vmatmul.msk.f32.vlgmr.msra.gmra.mxu2 %vm4862_vm2, %v14350_v16  ;;  %v14352_v43 = vld [vmem:[#allocation79_spill] sm:$0xff] }
 0xd05   : > { %v12970_v3 = vadd.f32 %v6398_v61, %v6290_v7 }
 0xd06   : > { %v6499_v0 = vpop.f32.mrf.mxu2 }
 0xd07   : > { %v6547_v1 = vadd.f32 %v6499_v0, %v12859_v49  ;;  %8437 = vmatmul.msk.f32.gmra.mxu3 %vm4862_vm2, %v14351_v26  ;;  %v6407_v48 = vpop.f32.mrf.mxu1 }
 0xd0a   : > { %v6267_v20 = vpop.f32.mrf.mxu3  ;;  %8459 = vmatmul.msk.f32.gmra.mxu1 %vm4862_vm2, %v12384_v59 }
 0xd0b   : > { %v6291_v47 = vadd.f32 %v6267_v20, %v6157_v15  ;;  %8466 = vmatmul.msk.f32.gmra.mxu2 %vm4862_vm2, %v14352_v43  ;;  %v14361_v20 = vld [vmem:[#allocation59_spill] sm:$0xff] }
 0xd0d   : > { %v12979_v42 = vadd.f32 %v6401_v41, %v6291_v47  ;;  %v14358_v41 = vld [vmem:[#allocation223_spill] sm:$0xff] }
 0xd0e   : > { %v6502_v6 = vpop.f32.mrf.mxu2 }
 0xd0f   : > { %v6548_v36 = vadd.f32 %v6502_v6, %v12868_v22  ;;  %8438 = vmatmul.msk.f32.gmra.mxu3 %vm4862_vm2, %v14353_v57  ;;  %v6410_v59 = vpop.f32.mrf.mxu1 }
 0xd12   : > { %v6270_v49 = vpop.f32.mrf.mxu3  ;;  %8460 = vmatmul.msk.f32.gmra.mxu1 %vm4862_vm2, %v12395_v2 }
 0xd13   : > { %v6292_v23 = vadd.f32 %v6270_v49, %v6158_v46  ;;  %8467 = vmatmul.msk.f32.gmra.mxu2 %vm4862_vm2, %v14354_v8  ;;  %v14362_v49 = vld [vmem:[#allocation219_spill] sm:$0xff] }
 0xd15   : > { %v12988_v4 = vadd.f32 %v6404_v28, %v6292_v23 }
 0xd16   : > { %v6505_v45 = vpop.f32.mrf.mxu2 }
 0xd17   : > { %v6549_v15 = vadd.f32 %v6505_v45, %v12877_v52  ;;  %8439 = vmatmul.msk.f32.gmra.mxu3 %vm4862_vm2, %v12350_v12  ;;  %v6767_v2 = vpop.f32.mrf.mxu1  ;;  %v14356_v52 = vld [vmem:[#allocation282_spill] sm:$0xff] }
 0xd1a   : > { %v6273_v22 = vpop.f32.mrf.mxu3 }
 0xd1b   : > { %v6293_v9 = vadd.f32 %v6273_v22, %v6159_v5  ;;  %8468 = vmatmul.msk.f32.gmra.mxu2 %vm4862_vm2, %v14355_v33 }
 0xd1d   : > { %v12995_v13 = vadd.f32 %v6407_v48, %v6293_v9 }
 0xd1e   : > { %v6508_v55 = vpop.f32.mrf.mxu2 }
 0xd1f   : > { %v6550_v60 = vadd.f32 %v6508_v55, %v12886_v34  ;;  %8440 = vmatmul.msk.f32.gmra.mxu3 %vm4862_vm2, %v12364_v18  ;;  %v6770_v61 = vpop.f32.mrf.mxu1 }
 0xd22   : > { %v6276_v14 = vpop.f32.mrf.mxu3 }
 0xd23   : > { %v6294_v62 = vadd.f32 %v6276_v14, %v6160_v31  ;;  %8469 = vmatmul.msk.f32.gmra.mxu2 %vm4862_vm2, %v14356_v52 }
 0xd25   : > { %v13002_v12 = vadd.f32 %v6410_v59, %v6294_v62  ;;  %v14365_v62 = vld [vmem:[#allocation209_spill] sm:$0xff] }
 0xd26   : > { %v6511_v46 = vpop.f32.mrf.mxu2 }
 0xd27   : > { %v6551_v58 = vadd.f32 %v6511_v46, %v12895_v17  ;;  %v6773_v19 = vpop.f32.mrf.mxu1 }
 0xd2a   : > { %v6633_v35 = vpop.f32.mrf.mxu3 }
 0xd2b   : > { %v6681_v37 = vadd.f32 %v6633_v35, %v6547_v1  ;;  %8470 = vmatmul.msk.f32.gmra.mxu2 %vm4862_vm2, %v14357_v54  ;;  %v13071_v35 = vld [vmem:[%s13319_s5] ss:$0 sm:$0xff] }
 0xd2d   : > { %v6815_v34 = vadd.f32 %v6767_v2, %v6681_v37  ;;  %v14364_v2 = vld [vmem:[#allocation55_spill] sm:$0xff] }
 0xd2e   : > { %v6514_v32 = vpop.f32.mrf.mxu2 }
 0xd2f   : > { %v6552_v18 = vadd.f32 %v6514_v32, %v12904_v11  ;;  %v6776_v31 = vpop.f32.mrf.mxu1 }
 0xd32   : > { %v6636_v5 = vpop.f32.mrf.mxu3 }
 0xd33   : > { %v6682_v53 = vadd.f32 %v6636_v5, %v6548_v36  ;;  %8471 = vmatmul.msk.f32.gmra.mxu2 %vm4862_vm2, %v14358_v41 }
 0xd35   : > { %v6816_v29 = vadd.f32 %v6770_v61, %v6682_v53 }
 0xd36   : > { %v6517_v30 = vpop.f32.mrf.mxu2 }
 0xd37   : > { %v13011_v17 = vadd.f32 %v6517_v30, %v12916_v10  ;;  %v6779_v0 = vpop.f32.mrf.mxu1 }
 0xd3a   : > { %v6639_v27 = vpop.f32.mrf.mxu3 }
 0xd3b   : > { %v6683_v38 = vadd.f32 %v6639_v27, %v6549_v15  ;;  %8472 = vmatmul.msk.f32.gmra.mxu2 %vm4862_vm2, %v14359_v50  ;;  %v14363_v15 = vld [vmem:[#allocation132_spill] sm:$0xff] }
 0xd3d   : > { %v6817_v25 = vadd.f32 %v6773_v19, %v6683_v38 }
 0xd3e   : > { %v6520_v28 = vpop.f32.mrf.mxu2 }
 0xd3f   : > { %v6554_v11 = vadd.f32 %v6520_v28, %v12934_v56  ;;  %v6782_v6 = vpop.f32.mrf.mxu1 }
 0xd42   : > { %v6642_v51 = vpop.f32.mrf.mxu3 }
 0xd43   : > { %v6684_v7 = vadd.f32 %v6642_v51, %v6550_v60  ;;  %8473 = vmatmul.msk.f32.gmra.mxu2 %vm4862_vm2, %v14360_v63 }
 0xd45   : > { %v13018_v16 = vadd.f32 %v6776_v31, %v6684_v7 }
 0xd46   : > { %v6523_v10 = vpop.f32.mrf.mxu2 }
 0xd47   : > { %v13021_v1 = vadd.f32 %v6523_v10, %v12943_v21  ;;  %v13037_v59 = vpop.f32.mrf.mxu1 }
 0xd4a   : > { %v6645_v26 = vpop.f32.mrf.mxu3 }
 0xd4b   : > { %v6685_v48 = vadd.f32 %v6645_v26, %v6551_v58  ;;  %8474 = vmatmul.msk.f32.gmra.mxu2 %vm4862_vm2, %v14361_v20 }
 0xd4d   : > { %v13025_v47 = vadd.f32 %v6779_v0, %v6685_v48 }
 0xd4e   : > { %v6526_v56 = vpop.f32.mrf.mxu2 }
 0xd4f   : > { %v13028_v43 = vadd.f32 %v6526_v56, %v12952_v44  ;;  %v6788_v55 = vpop.f32.mrf.mxu1 }
 0xd52   : > { %v6648_v36 = vpop.f32.mrf.mxu3 }
 0xd53   : > { %v6686_v57 = vadd.f32 %v6648_v36, %v6552_v18  ;;  %8475 = vmatmul.msk.f32.gmra.mxu2 %vm4862_vm2, %v14362_v49 }
 0xd55   : > { %v13032_v23 = vadd.f32 %v6782_v6, %v6686_v57 }
 0xd56   : > { %v6529_v21 = vpop.f32.mrf.mxu2 }
 0xd57   : > { %v13035_v8 = vadd.f32 %v6529_v21, %v12961_v39 }
 0xd5a   : > { %v13039_v45 = vpop.f32.mrf.mxu3 }
 0xd5b   : > { %8476 = vmatmul.msk.f32.gmra.mxu2 %vm4862_vm2, %v14363_v15 }
 0xd5e   : > { %v6532_v44 = vpop.f32.mrf.mxu2 }
 0xd5f   : > { %v13044_v22 = vadd.f32 %v6532_v44, %v12970_v3 }
 0xd62   : > { %v6654_v9 = vpop.f32.mrf.mxu3 }
 0xd63   : > { %v6688_v33 = vadd.f32 %v6654_v9, %v6554_v11  ;;  %8477 = vmatmul.msk.f32.gmra.mxu2 %vm4862_vm2, %v14364_v2 }
 0xd65   : > { %v13048_v60 = vadd.f32 %v6788_v55, %v6688_v33 }
 0xd66   : > { %v6535_v39 = vpop.f32.mrf.mxu2 }
 0xd67   : > { %v13051_v14 = vadd.f32 %v6535_v39, %v12979_v42 }
 0xd6b   : > { %8478 = vmatmul.msk.f32.gmra.mxu2 %vm4862_vm2, %v14365_v62 }
 0xd6e   : > { %v6538_v52 = vpop.f32.mrf.mxu2 }
 0xd6f   : > { %v13056_v46 = vadd.f32 %v6538_v52, %v12988_v4 }
 0xd73   : > { %8479 = vmatmul.msk.f32.gmra.mxu2 %vm4862_vm2, %v12409_v40 }
 0xd76   : > { %v6541_v3 = vpop.f32.mrf.mxu2 }
 0xd77   : > { %v13061_v58 = vadd.f32 %v6541_v3, %v12995_v13 }
 0xd7b   : > { %8480 = vmatmul.msk.f32.gmra.mxu2 %vm4862_vm2, %v12429_v24 }
 0xd7e   : > { %v6544_v61 = vpop.f32.mrf.mxu2 }
 0xd7f   : > { %v13066_v42 = vadd.f32 %v6544_v61, %v13002_v12 }
 0xd86   : > { %v6901_v4 = vpop.f32.mrf.mxu2 }
 0xd87   : > { %v6949_v37 = vadd.f32 %v6901_v4, %v6815_v34 }
 0xd89   : > { %v6969_v40 = vadd.f32 %v13071_v35, %v6949_v37 }
 0xd8b   : > { %v6985_v54 = vmax.f32 %v6969_v40, 0.0 }
 0xd8d   : > { %v7002_v13 = vsel %vm7001_vm3, %v6985_v54, -inf  ;;  %v7081_v18 = vsel %vm7080_vm4, %v6985_v54, -inf }
 0xd8e   : > { %v6904_v32 = vpop.f32.mrf.mxu2  ;;  %v7003_v12 = vrot.slane %v7002_v13, 4  ;;  %v7082_v5 = vrot.slane %v7081_v18, 4 }
 0xd8f   : > { %v6950_v24 = vadd.f32 %v6904_v32, %v6816_v29 }
 0xd90   : > { %v7004_v41 = vmax.f32 %v7002_v13, %v7003_v12  ;;  %v7083_v27 = vmax.f32 %v7081_v18, %v7082_v5 }
 0xd91   : > { %v6970_v19 = vadd.f32 %v13071_v35, %v6950_v24 }
 0xd92   : > { %v7005_v31 = vrot.slane %v7004_v41, 2  ;;  %v7084_v11 = vrot.slane %v7083_v27, 2 }
 0xd93   : > { %v6986_v53 = vmax.f32 %v6970_v19, 0.0 }
 0xd94   : > { %v7006_v63 = vmax.f32 %v7004_v41, %v7005_v31 }
 0xd95   : > { %v7199_v38 = vsel %vm7001_vm3, %v6986_v53, -inf  ;;  %v7295_v50 = vsel %vm7080_vm4, %v6986_v53, -inf }
 0xd96   : > { %v6907_v30 = vpop.f32.mrf.mxu2  ;;  %v7200_v29 = vrot.slane %v7199_v38, 4  ;;  %v7296_v51 = vrot.slane %v7295_v50, 4  ;;  %v7007_v21 = vrot.slane %v7006_v63, 1 }
 0xd97   : > { %v6951_v34 = vadd.f32 %v6907_v30, %v6817_v25  ;;  %v7085_v25 = vmax.f32 %v7083_v27, %v7084_v11 }
 0xd98   : > { %v7201_v56 = vmax.f32 %v7199_v38, %v7200_v29  ;;  %v7297_v6 = vmax.f32 %v7295_v50, %v7296_v51  ;;  %v7008_v3 = vmax.f32 %v7006_v63, %v7007_v21 }
 0xd99   : > { %v6971_v28 = vadd.f32 %v13071_v35, %v6951_v34  ;;  %v7086_v33 = vrot.slane %v7085_v25, 1 }
 0xd9a   : > { %v7202_v2 = vrot.slane %v7201_v56, 2  ;;  %v7298_v55 = vrot.slane %v7297_v6, 2 }
 0xd9b   : > { %v6987_v7 = vmax.f32 %v6971_v28, 0.0  ;;  %v7087_v32 = vmax.f32 %v7085_v25, %v7086_v33 }
 0xd9c   : > { %v7203_v24 = vmax.f32 %v7201_v56, %v7202_v2  ;;  %v7299_v18 = vmax.f32 %v7297_v6, %v7298_v55  ;;  %v6657_v6 = vpop.f32.mrf.mxu3 }
 0xd9d   : > { %v7009_v0 = vsel %vm7001_vm3, %v6987_v7, -inf  ;;  %v7088_v10 = vsel %vm7080_vm4, %v6987_v7, -inf }
 0xd9e   : > { %v7010_v26 = vrot.slane %v7009_v0, 4  ;;  %v7089_v48 = vrot.slane %v7088_v10, 4  ;;  %v6910_v20 = vpop.f32.mrf.mxu2  ;;  %v7204_v31 = vrot.slane %v7203_v24, 1  ;;  %v7300_v28 = vrot.slane %v7299_v18, 1 }
 0xd9f   : > { %v6952_v36 = vadd.f32 %v6910_v20, %v13018_v16 }
 0xda0   : > { %v7011_v57 = vmax.f32 %v7009_v0, %v7010_v26  ;;  %v7090_v49 = vmax.f32 %v7088_v10, %v7089_v48  ;;  %v7205_v20 = vmax.f32 %v7203_v24, %v7204_v31  ;;  %v7301_v25 = vmax.f32 %v7299_v18, %v7300_v28 }
 0xda1   : > { %v6972_v15 = vadd.f32 %v13071_v35, %v6952_v36 }
 0xda2   : > { %v7012_v44 = vrot.slane %v7011_v57, 2  ;;  %v7091_v9 = vrot.slane %v7090_v49, 2 }
 0xda3   : > { %v6988_v39 = vmax.f32 %v6972_v15, 0.0  ;;  %v6687_v15 = vadd.f32 %v13039_v45, %v13011_v17 }
 0xda4   : > { %v7013_v62 = vmax.f32 %v7011_v57, %v7012_v44  ;;  %v7092_v52 = vmax.f32 %v7090_v49, %v7091_v9 }
 0xda5   : > { %v7206_v61 = vsel %vm7001_vm3, %v6988_v39, -inf  ;;  %v7302_v4 = vsel %vm7080_vm4, %v6988_v39, -inf }
 0xda6   : > { %v7014_v16 = vrot.slane %v7013_v62, 1  ;;  %v7093_v37 = vrot.slane %v7092_v52, 1  ;;  %v7207_v40 = vrot.slane %v7206_v61, 4  ;;  %v7303_v54 = vrot.slane %v7302_v4, 4  ;;  %v6913_v13 = vpop.f32.mrf.mxu2 }
 0xda7   : > { %v6953_v12 = vadd.f32 %v6913_v13, %v13025_v47 }
 0xda8   : > { %v7015_v19 = vmax.f32 %v7013_v62, %v7014_v16  ;;  %v7094_v5 = vmax.f32 %v7092_v52, %v7093_v37  ;;  %v7208_v53 = vmax.f32 %v7206_v61, %v7207_v40  ;;  %v7304_v41 = vmax.f32 %v7302_v4, %v7303_v54  ;;  %v6791_v4 = vpop.f32.mrf.mxu1 }
 0xda9   : > { %v6973_v30 = vadd.f32 %v13071_v35, %v6953_v12  ;;  %v6821_v61 = vadd.f32 %v13037_v59, %v6687_v15 }
 0xdaa   : > { %v7059_v27 = vsel %vm7058_vm5, %v7008_v3, %v7015_v19  ;;  %v7137_v34 = vsel %vm7058_vm5, %v7087_v32, %v7094_v5  ;;  %v7209_v38 = vrot.slane %v7208_v53, 2  ;;  %v7305_v50 = vrot.slane %v7304_v41, 2  ;;  %v6660_v19 = vpop.f32.mrf.mxu3 }
 0xdab   : > { %v6989_v11 = vmax.f32 %v6973_v30, 0.0 }
 0xdac   : > { %v7210_v29 = vmax.f32 %v7208_v53, %v7209_v38  ;;  %v7306_v51 = vmax.f32 %v7304_v41, %v7305_v50 }
 0xdad   : > { %v7016_v7 = vsel %vm7001_vm3, %v6989_v11, -inf  ;;  %v7095_v47 = vsel %vm7080_vm4, %v6989_v11, -inf }
 0xdae   : > { %v7211_v63 = vrot.slane %v7210_v29, 1  ;;  %v7307_v0 = vrot.slane %v7306_v51, 1  ;;  %v7017_v10 = vrot.slane %v7016_v7, 4  ;;  %v7096_v26 = vrot.slane %v7095_v47, 4  ;;  %v6916_v48 = vpop.f32.mrf.mxu2 }
 0xdaf   : > { %v6954_v56 = vadd.f32 %v6916_v48, %v13032_v23  ;;  %v6689_v48 = vadd.f32 %v6657_v6, %v13021_v1 }
 0xdb0   : > { %v7212_v36 = vmax.f32 %v7210_v29, %v7211_v63  ;;  %v7308_v57 = vmax.f32 %v7306_v51, %v7307_v0  ;;  %v7018_v49 = vmax.f32 %v7016_v7, %v7017_v10  ;;  %v7097_v21 = vmax.f32 %v7095_v47, %v7096_v26  ;;  %v6794_v0 = vpop.f32.mrf.mxu1 }
 0xdb1   : > { %v6974_v44 = vadd.f32 %v13071_v35, %v6954_v56 }
 0xdb2   : > { %v7255_v9 = vsel %vm7058_vm5, %v7205_v20, %v7212_v36  ;;  %v7351_v33 = vsel %vm7058_vm5, %v7301_v25, %v7308_v57  ;;  %v7019_v2 = vrot.slane %v7018_v49, 2  ;;  %v7098_v55 = vrot.slane %v7097_v21, 2 }
 0xdb3   : > { %v6990_v39 = vmax.f32 %v6974_v44, 0.0 }
 0xdb4   : > { %v7020_v62 = vmax.f32 %v7018_v49, %v7019_v2  ;;  %v7099_v52 = vmax.f32 %v7097_v21, %v7098_v55  ;;  %v6663_v21 = vpop.f32.mrf.mxu3  ;;  %v6823_v55 = vadd.f32 %v6791_v4, %v6689_v48 }
 0xdb5   : > { %v7213_v23 = vsel %vm7001_vm3, %v6990_v39, -inf  ;;  %v7309_v3 = vsel %vm7080_vm4, %v6990_v39, -inf }
 0xdb6   : > { %v7021_v16 = vrot.slane %v7020_v62, 1  ;;  %v7100_v17 = vrot.slane %v7099_v52, 1  ;;  %v7214_v45 = vrot.slane %v7213_v23, 4  ;;  %v7310_v37 = vrot.slane %v7309_v3, 4  ;;  %v6919_v40 = vpop.f32.mrf.mxu2 }
 0xdb7   : > { %v6955_v54 = vadd.f32 %v6919_v40, %v6821_v61 }
 0xdb8   : > { %v7022_v13 = vmax.f32 %v7020_v62, %v7021_v16  ;;  %v7101_v32 = vmax.f32 %v7099_v52, %v7100_v17  ;;  %v7215_v24 = vmax.f32 %v7213_v23, %v7214_v45  ;;  %v7311_v18 = vmax.f32 %v7309_v3, %v7310_v37  ;;  %v6797_v45 = vpop.f32.mrf.mxu1 }
 0xdb9   : > { %v6975_v12 = vadd.f32 %v13071_v35, %v6955_v54  ;;  %v6690_v16 = vadd.f32 %v6660_v19, %v13028_v43 }
 0xdba   : > { %v7061_v5 = vsel %vm7060_vm6, %v7059_v27, %v7022_v13  ;;  %v7138_v53 = vsel %vm7060_vm6, %v7137_v34, %v7101_v32  ;;  %v7216_v59 = vrot.slane %v7215_v24, 2  ;;  %v7312_v41 = vrot.slane %v7311_v18, 2 }
 0xdbb   : > { %v6991_v30 = vmax.f32 %v6975_v12, 0.0 }
 0xdbc   : > { %v7217_v38 = vmax.f32 %v7215_v24, %v7216_v59  ;;  %v7313_v50 = vmax.f32 %v7311_v18, %v7312_v41  ;;  %v6824_v59 = vadd.f32 %v6794_v0, %v6690_v16  ;;  %v6666_v41 = vpop.f32.mrf.mxu3 }
 0xdbd   : > { %v7023_v31 = vsel %vm7001_vm3, %v6991_v30, -inf  ;;  %v7102_v28 = vsel %vm7080_vm4, %v6991_v30, -inf }
 0xdbe   : > { %v7218_v11 = vrot.slane %v7217_v38, 1  ;;  %v7314_v29 = vrot.slane %v7313_v50, 1  ;;  %v7024_v51 = vrot.slane %v7023_v31, 4  ;;  %v7103_v7 = vrot.slane %v7102_v28, 4  ;;  %v6922_v47 = vpop.f32.mrf.mxu2 }
 0xdbf   : > { %v6956_v63 = vadd.f32 %v6922_v47, %v13048_v60 }
 0xdc0   : > { %v7219_v27 = vmax.f32 %v7217_v38, %v7218_v11  ;;  %v7315_v10 = vmax.f32 %v7313_v50, %v7314_v29  ;;  %v7025_v34 = vmax.f32 %v7023_v31, %v7024_v51  ;;  %v7104_v26 = vmax.f32 %v7102_v28, %v7103_v7  ;;  %v8487_v51 = vld [vmem:[%s13320_s6 + $0x70] sm:$0xff]  ;;  %v6800_v48 = vpop.f32.mrf.mxu1 }
 0xdc1   : > { %v6976_v20 = vadd.f32 %v13071_v35, %v6956_v63  ;;  %v6691_v7 = vadd.f32 %v6663_v21, %v13035_v8 }
 0xdc2   : > { %v7256_v25 = vsel %vm7060_vm6, %v7255_v9, %v7219_v27  ;;  %v7352_v56 = vsel %vm7060_vm6, %v7351_v33, %v7315_v10  ;;  %v7026_v36 = vrot.slane %v7025_v34, 2  ;;  %v7105_v57 = vrot.slane %v7104_v26, 2 }
 0xdc3   : > { %v6992_v49 = vmax.f32 %v6976_v20, 0.0 }
 0xdc4   : > { %v7027_v15 = vmax.f32 %v7025_v34, %v7026_v36  ;;  %v7106_v44 = vmax.f32 %v7104_v26, %v7105_v57  ;;  %v8486_v34 = vld [vmem:[%s13320_s6 + $0x68] sm:$0xff]  ;;  %v8485_v36 = vld [vmem:[%s13320_s6 + $0x60] sm:$0xff]  ;;  %v6825_v57 = vadd.f32 %v6797_v45, %v6691_v7 }
 0xdc5   : > { %v7220_v60 = vsel %vm7001_vm3, %v6992_v49, -inf  ;;  %v7316_v2 = vsel %vm7080_vm4, %v6992_v49, -inf  ;;  %v8482_v45 = vld [vmem:[%s13320_s6 + $0x48] sm:$0xff] }
 0xdc6   : > { %v7028_v39 = vrot.slane %v7027_v15, 1  ;;  %v7107_v62 = vrot.slane %v7106_v44, 1  ;;  %v7221_v1 = vrot.slane %v7220_v60, 4  ;;  %v7317_v6 = vrot.slane %v7316_v2, 4  ;;  %v6925_v52 = vpop.f32.mrf.mxu2 }
 0xdc7   : > { %v6957_v9 = vadd.f32 %v6925_v52, %v6823_v55 }
 0xdc8   : > { %v7029_v23 = vmax.f32 %v7027_v15, %v7028_v39  ;;  %v7108_v33 = vmax.f32 %v7106_v44, %v7107_v62  ;;  %v7222_v3 = vmax.f32 %v7220_v60, %v7221_v1  ;;  %v7318_v61 = vmax.f32 %v7316_v2, %v7317_v6  ;;  %v8484_v2 = vld [vmem:[%s13320_s6 + $0x58] sm:$0xff]  ;;  %v6669_v39 = vpop.f32.mrf.mxu3 }
 0xdc9   : > { %v6977_v17 = vadd.f32 %v13071_v35, %v6957_v9  ;;  %v8483_v9 = vld [vmem:[%s13320_s6 + $0x50] sm:$0xff] }
 0xdca   : > { %v7063_v37 = vsel %vm7062_vm7, %v7061_v5, %v7029_v23  ;;  %v7139_v4 = vsel %vm7062_vm7, %v7138_v53, %v7108_v33  ;;  %v7223_v40 = vrot.slane %v7222_v3, 2  ;;  %v7319_v54 = vrot.slane %v7318_v61, 2  ;;  %v8488_v5 = vld [vmem:[%s13320_s6 + $0x78] sm:$0xff] }
 0xdcb   : > { %v6993_v13 = vmax.f32 %v6977_v17, 0.0  ;;  %7164 = vmatpush.msrb.mxu3 %v8488_v5  ;;  %v6692_v23 = vadd.f32 %v6666_v41, %v13044_v22  ;;  %v8481_v22 = vld [vmem:[%s13320_s6 + $0x40] sm:$0xff] }
 0xdcc   : > { %v7224_v32 = vmax.f32 %v7222_v3, %v7223_v40  ;;  %v7320_v24 = vmax.f32 %v7318_v61, %v7319_v54 }
 0xdcd   : > { %v7030_v18 = vsel %vm7001_vm3, %v6993_v13, -inf  ;;  %v7109_v12 = vsel %vm7080_vm4, %v6993_v13, -inf  ;;  %7165 = vmatpush.msrb.mxu3 %v8487_v51 }
 0xdce   : > { %v7225_v30 = vrot.slane %v7224_v32, 1  ;;  %v7321_v43 = vrot.slane %v7320_v24, 1  ;;  %v7031_v19 = vrot.slane %v7030_v18, 4  ;;  %v7110_v38 = vrot.slane %v7109_v12, 4  ;;  %v6928_v50 = vpop.f32.mrf.mxu2 }
 0xdcf   : > { %v6958_v53 = vadd.f32 %v6928_v50, %v6824_v59  ;;  %7166 = vmatpush.msrb.mxu3 %v8486_v34 }
 0xdd0   : > { %v7226_v31 = vmax.f32 %v7224_v32, %v7225_v30  ;;  %v7322_v28 = vmax.f32 %v7320_v24, %v7321_v43  ;;  %v7032_v11 = vmax.f32 %v7030_v18, %v7031_v19  ;;  %v7111_v29 = vmax.f32 %v7109_v12, %v7110_v38  ;;  %v7079_v24 = vld [vmem:[%s13320_s6 + $0x38] sm:$0xff]  ;;  %v6803_v18 = vpop.f32.mrf.mxu1  ;;  %v7078_v38 = vld [vmem:[%s13320_s6 + $0x30] sm:$0xff]  ;;  %v6672_v51 = vpop.f32.mrf.mxu3 }
 0xdd1   : > { %v6978_v47 = vadd.f32 %v13071_v35, %v6958_v53  ;;  %7167 = vmatpush.msrb.mxu3 %v8485_v36 }
 0xdd2   : > { %v13128_v63 = vsel %vm7062_vm7, %v7256_v25, %v7226_v31  ;;  %v13131_v0 = vsel %vm7062_vm7, %v7352_v56, %v7322_v28  ;;  %v7033_v27 = vrot.slane %v7032_v11, 2  ;;  %v7112_v10 = vrot.slane %v7111_v29, 2 }
 0xdd3   : > { %v6994_v26 = vmax.f32 %v6978_v47, 0.0  ;;  %7168 = vmatpush.msrb.mxu3 %v8484_v2  ;;  %v6693_v28 = vadd.f32 %v6669_v39, %v13051_v14  ;;  %v7076_v14 = vld [vmem:[%s13320_s6 + $0x20] sm:$0xff] }
 0xdd4   : > { %v7034_v20 = vmax.f32 %v7032_v11, %v7033_v27  ;;  %v7113_v8 = vmax.f32 %v7111_v29, %v7112_v10  ;;  %v7077_v29 = vld [vmem:[%s13320_s6 + $0x28] sm:$0xff] }
 0xdd5   : > { %v7227_v25 = vsel %vm7001_vm3, %v6994_v26, -inf  ;;  %v7323_v56 = vsel %vm7080_vm4, %v6994_v26, -inf  ;;  %7169 = vmatpush.msrb.mxu3 %v8483_v9  ;;  %v6827_v36 = vadd.f32 %v6803_v18, %v6693_v28 }
 0xdd6   : > { %v7035_v49 = vrot.slane %v7034_v20, 1  ;;  %v7114_v21 = vrot.slane %v7113_v8, 1  ;;  %v7228_v15 = vrot.slane %v7227_v25, 4  ;;  %v7324_v44 = vrot.slane %v7323_v56, 4  ;;  %v6931_v60 = vpop.f32.mrf.mxu2 }
 0xdd7   : > { %v6959_v55 = vadd.f32 %v6931_v60, %v6825_v57  ;;  %7170 = vmatpush.msrb.mxu3 %v8482_v45 }
 0xdd8   : > { %v7036_v62 = vmax.f32 %v7034_v20, %v7035_v49  ;;  %v7115_v1 = vmax.f32 %v7113_v8, %v7114_v21  ;;  %v7229_v6 = vmax.f32 %v7227_v25, %v7228_v15  ;;  %v7325_v52 = vmax.f32 %v7323_v56, %v7324_v44  ;;  %v7074_v15 = vld [vmem:[%s13320_s6 + $0x10] sm:$0xff]  ;;  %v6806_v44 = vpop.f32.mrf.mxu1 }
 0xdd9   : > { %v6979_v33 = vadd.f32 %v13071_v35, %v6959_v55  ;;  %7171 = vmatpush.msrb.mxu3 %v8481_v22 }
 0xdda   : > { %v13150_v3 = vsel %vm7064_vm8, %v7063_v37, %v7036_v62  ;;  %v13153_v61 = vsel %vm7064_vm8, %v7139_v4, %v7115_v1  ;;  %v7230_v16 = vrot.slane %v7229_v6, 2  ;;  %v7326_v17 = vrot.slane %v7325_v52, 2 }
 0xddb   : > { %v6995_v40 = vmax.f32 %v6979_v33, 0.0  ;;  %v6826_v4 = vadd.f32 %v6800_v48, %v6692_v23  ;;  %7187 = vmatpush.msra.mxu3 %v7079_v24  ;;  %v6694_v62 = vadd.f32 %v6672_v51, %v13056_v46  ;;  %v7072_v46 = vld [vmem:[%s13320_s6] sm:$0xff] }
 0xddc   : > { %v7231_v54 = vmax.f32 %v7229_v6, %v7230_v16  ;;  %v7327_v13 = vmax.f32 %v7325_v52, %v7326_v17  ;;  %v7073_v6 = vld [vmem:[%s13320_s6 + $0x8] sm:$0xff]  ;;  %v6675_v17 = vpop.f32.mrf.mxu3 }
 0xddd   : > { %v7037_v37 = vsel %vm7001_vm3, %v6995_v40, -inf  ;;  %v7116_v32 = vsel %vm7080_vm4, %v6995_v40, -inf  ;;  %7188 = vmatpush.msra.mxu3 %v7078_v38  ;;  %v6828_v22 = vadd.f32 %v6806_v44, %v6694_v62 }
 0xdde   : > { %v7232_v12 = vrot.slane %v7231_v54, 1  ;;  %v7328_v59 = vrot.slane %v7327_v13, 1  ;;  %v7038_v41 = vrot.slane %v7037_v37, 4  ;;  %v7117_v30 = vrot.slane %v7116_v32, 4  ;;  %v6934_v43 = vpop.f32.mrf.mxu2 }
 0xddf   : > { %v6960_v19 = vadd.f32 %v6934_v43, %v6826_v4  ;;  %7189 = vmatpush.msra.mxu3 %v7077_v29 }
 0xde0   : > { %v7233_v50 = vmax.f32 %v7231_v54, %v7232_v12  ;;  %v7329_v5 = vmax.f32 %v7327_v13, %v7328_v59  ;;  %v7039_v53 = vmax.f32 %v7037_v37, %v7038_v41  ;;  %v7118_v31 = vmax.f32 %v7116_v32, %v7117_v30 }
 0xde1   : > { %v6980_v11 = vadd.f32 %v13071_v35, %v6960_v19  ;;  %7190 = vmatpush.msra.mxu3 %v7076_v14  ;;  %v6695_v30 = vadd.f32 %v6675_v17, %v13061_v58  ;;  %v6809_v19 = vpop.f32.mrf.mxu1 }
 0xde2   : > { %v7258_v7 = vsel %vm7064_vm8, %v13128_v63, %v7233_v50  ;;  %v7354_v47 = vsel %vm7064_vm8, %v13131_v0, %v7329_v5  ;;  %v7040_v27 = vrot.slane %v7039_v53, 2  ;;  %v7119_v10 = vrot.slane %v7118_v31, 2  ;;  %v7075_v63 = vld [vmem:[%s13320_s6 + $0x18] sm:$0xff] }
 0xde3   : > { %v6996_v34 = vmax.f32 %v6980_v11, 0.0  ;;  %7191 = vmatpush.msra.mxu3 %v7075_v63 }
 0xde4   : > { %v7041_v26 = vmax.f32 %v7039_v53, %v7040_v27  ;;  %v7120_v48 = vmax.f32 %v7118_v31, %v7119_v10  ;;  %v6829_v27 = vadd.f32 %v6809_v19, %v6695_v30  ;;  %v6678_v10 = vpop.f32.mrf.mxu3 }
 0xde5   : > { %v7234_v20 = vsel %vm7001_vm3, %v6996_v34, -inf  ;;  %v7330_v8 = vsel %vm7080_vm4, %v6996_v34, -inf  ;;  %7192 = vmatpush.msra.mxu3 %v7074_v15  ;;  %v6696_v63 = vadd.f32 %v6678_v10, %v13066_v42 }
 0xde6   : > { %v7042_v0 = vrot.slane %v7041_v26, 1  ;;  %v7121_v25 = vrot.slane %v7120_v48, 1  ;;  %v7235_v56 = vrot.slane %v7234_v20, 4  ;;  %v7331_v57 = vrot.slane %v7330_v8, 4  ;;  %v6937_v49 = vpop.f32.mrf.mxu2 }
 0xde7   : > { %v6961_v21 = vadd.f32 %v6937_v49, %v6827_v36  ;;  %7193 = vmatpush.msra.mxu3 %v7073_v6 }
 0xde8   : > { %v7043_v60 = vmax.f32 %v7041_v26, %v7042_v0  ;;  %v7122_v2 = vmax.f32 %v7120_v48, %v7121_v25  ;;  %v7236_v55 = vmax.f32 %v7234_v20, %v7235_v56  ;;  %v7332_v39 = vmax.f32 %v7330_v8, %v7331_v57 }
 0xde9   : > { %v6981_v1 = vadd.f32 %v13071_v35, %v6961_v21  ;;  %7194 = vmatpush.msra.mxu3 %v7072_v46  ;;  %v6812_v15 = vpop.f32.mrf.mxu1 }
 0xdea   : > { %v7237_v52 = vrot.slane %v7236_v55, 2  ;;  %v7333_v9 = vrot.slane %v7332_v39, 2  ;;  %v7141_v23 = vsel %vm7066_vm9, %v13153_v61, %v7122_v2  ;;  %v7067_v33 = vsel %vm7066_vm9, %v13150_v3, %v7043_v60 }
 0xdeb   : > { %v6997_v16 = vmax.f32 %v6981_v1, 0.0 }
 0xdec   : > { %v7238_v45 = vmax.f32 %v7236_v55, %v7237_v52  ;;  %v7334_v40 = vmax.f32 %v7332_v39, %v7333_v9  ;;  %v6830_v39 = vadd.f32 %v6812_v15, %v6696_v63  ;;  %v8504_v63 = vld [vmem:[%s13320_s6 + $0xe0] sm:$0xff]  ;;  %v7402_v15 = vld [vmem:[%s13322_s8 + $0x28] sm:$0xff] }
 0xded   : > { %v7044_v54 = vsel %vm7001_vm3, %v6997_v16, -inf  ;;  %v7123_v13 = vsel %vm7080_vm4, %v6997_v16, -inf }
 0xdee   : > { %v7239_v37 = vrot.slane %v7238_v45, 1  ;;  %v7335_v32 = vrot.slane %v7334_v40, 1  ;;  %v7045_v61 = vrot.slane %v7044_v54, 4  ;;  %v7124_v4 = vrot.slane %v7123_v13, 4  ;;  %v6940_v24 = vpop.f32.mrf.mxu2 }
 0xdef   : > { %v6962_v3 = vadd.f32 %v6940_v24, %v6828_v22 }
 0xdf0   : > { %v7240_v18 = vmax.f32 %v7238_v45, %v7239_v37  ;;  %v7336_v12 = vmax.f32 %v7334_v40, %v7335_v32  ;;  %v7046_v59 = vmax.f32 %v7044_v54, %v7045_v61  ;;  %v7125_v41 = vmax.f32 %v7123_v13, %v7124_v4 }
 0xdf1   : > { %v6982_v43 = vadd.f32 %v13071_v35, %v6962_v3 }
 0xdf2   : > { %v7047_v38 = vrot.slane %v7046_v59, 2  ;;  %v7126_v50 = vrot.slane %v7125_v41, 2  ;;  %v7259_v5 = vsel %vm7066_vm9, %v7258_v7, %v7240_v18  ;;  %v7355_v53 = vsel %vm7066_vm9, %v7354_v47, %v7336_v12 }
 0xdf3   : > { %v6998_v31 = vmax.f32 %v6982_v43, 0.0  ;;  %v8498_v43 = vld [vmem:[%s13320_s6 + $0xb8] sm:$0xff] }
 0xdf4   : > { %v7048_v28 = vmax.f32 %v7046_v59, %v7047_v38  ;;  %v7127_v11 = vmax.f32 %v7125_v41, %v7126_v50 }
 0xdf5   : > { %v7241_v29 = vsel %vm7001_vm3, %v6998_v31, -inf  ;;  %v7337_v51 = vsel %vm7080_vm4, %v6998_v31, -inf }
 0xdf6   : > { %v7049_v34 = vrot.slane %v7048_v28, 1  ;;  %v7128_v58 = vrot.slane %v7127_v11, 1  ;;  %v7242_v14 = vrot.slane %v7241_v29, 4  ;;  %v7338_v26 = vrot.slane %v7337_v51, 4  ;;  %v6943_v48 = vpop.f32.mrf.mxu2 }
 0xdf7   : > { %v6963_v20 = vadd.f32 %v6943_v48, %v6829_v27  ;;  %v8495_v27 = vld [vmem:[%s13320_s6 + $0xa0] sm:$0xff]  ;;  %v8493_v48 = vld [vmem:[%s13320_s6 + $0x90] sm:$0xff] }
 0xdf8   : > { %v7050_v8 = vmax.f32 %v7048_v28, %v7049_v34  ;;  %v7129_v7 = vmax.f32 %v7127_v11, %v7128_v58  ;;  %v7243_v36 = vmax.f32 %v7241_v29, %v7242_v14  ;;  %v7339_v47 = vmax.f32 %v7337_v51, %v7338_v26  ;;  %v8496_v11 = vld [vmem:[%s13320_s6 + $0xa8] sm:$0xff]  ;;  %v8494_v58 = vld [vmem:[%s13320_s6 + $0x98] sm:$0xff] }
 0xdf9   : > { %v6983_v0 = vadd.f32 %v13071_v35, %v6963_v20  ;;  %v8492_v20 = vld [vmem:[%s13320_s6 + $0x88] sm:$0xff] }
 0xdfa   : > { %v7244_v25 = vrot.slane %v7243_v36, 2  ;;  %v7340_v56 = vrot.slane %v7339_v47, 2  ;;  %v7142_v57 = vsel %vm7068_vm10, %v7141_v23, %v7129_v7  ;;  %v7069_v49 = vsel %vm7068_vm10, %v7067_v33, %v7050_v8  ;;  %v8491_v8 = vld [vmem:[%s13320_s6 + $0x80] sm:$0xff]  ;;  %v8507_v7 = vld [vmem:[%s13320_s6 + $0xf8] sm:$0xff] }
 0xdfb   : > { %v6999_v21 = vmax.f32 %v6983_v0, 0.0  ;;  %v8503_v0 = vld [vmem:[%s13320_s6 + $0xd8] sm:$0xff] }
 0xdfc   : > { %v7245_v44 = vmax.f32 %v7243_v36, %v7244_v25  ;;  %v7341_v60 = vmax.f32 %v7339_v47, %v7340_v56  ;;  %v8506_v36 = vld [vmem:[%s13320_s6 + $0xf0] sm:$0xff]  ;;  %v8505_v47 = vld [vmem:[%s13320_s6 + $0xe8] sm:$0xff] }
 0xdfd   : > { %v7051_v2 = vsel %vm7001_vm3, %v6999_v21, -inf  ;;  %v7130_v55 = vsel %vm7080_vm4, %v6999_v21, -inf  ;;  %v8502_v25 = vld [vmem:[%s13320_s6 + $0xd0] sm:$0xff]  ;;  %v8501_v56 = vld [vmem:[%s13320_s6 + $0xc8] sm:$0xff] }
 0xdfe   : > { %v7246_v62 = vrot.slane %v7245_v44, 1  ;;  %v7342_v1 = vrot.slane %v7341_v60, 1  ;;  %v7052_v42 = vrot.slane %v7051_v2, 4  ;;  %v7131_v6 = vrot.slane %v7130_v55, 4  ;;  %v6946_v52 = vpop.f32.mrf.mxu2  ;;  %v7403_v21 = vld [vmem:[%s13322_s8 + $0x30] sm:$0xff] }
 0xdff   : > { %v6964_v9 = vadd.f32 %v6946_v52, %v6830_v39  ;;  %v7398_v39 = vld [vmem:[%s13322_s8 + $0x8] sm:$0xff] }
 0xe00   : > { %v7247_v16 = vmax.f32 %v7245_v44, %v7246_v62  ;;  %v7343_v46 = vmax.f32 %v7341_v60, %v7342_v1  ;;  %v7053_v23 = vmax.f32 %v7051_v2, %v7052_v42  ;;  %v7132_v17 = vmax.f32 %v7130_v55, %v7131_v6  ;;  %v7401_v44 = vld [vmem:[%s13322_s8 + $0x20] sm:$0xff]  ;;  %v7400_v60 = vld [vmem:[%s13322_s8 + $0x18] sm:$0xff]  ;;  %v7399_v2 = vld [vmem:[%s13322_s8 + $0x10] sm:$0xff] }
 0xe01   : > { %v6984_v33 = vadd.f32 %v13071_v35, %v6964_v9  ;;  %v7397_v62 = vld [vmem:[%s13322_s8] sm:$0xff] }
 0xe02   : > { %v7054_v45 = vrot.slane %v7053_v23, 2  ;;  %v7133_v40 = vrot.slane %v7132_v17, 2  ;;  %v7260_v54 = vsel %vm7068_vm10, %v7259_v5, %v7247_v16  ;;  %v7356_v13 = vsel %vm7068_vm10, %v7355_v53, %v7343_v46  ;;  %v8497_v53 = vld [vmem:[%s13320_s6 + $0xb0] sm:$0xff]  ;;  %v8547_v9 = vld [vmem:[%s13321_s7] ss:$0 sm:$0xff] }
 0xe03   : > { %v7000_v22 = vmax.f32 %v6984_v33, 0.0  ;;  %v8548_v33 = vld [vmem:[%s13323_s9] ss:$0 sm:$0xff] }
 0xe04   : > { %v7055_v37 = vmax.f32 %v7053_v23, %v7054_v45  ;;  %v7134_v32 = vmax.f32 %v7132_v17, %v7133_v40 }
 0xe05   : > { %v7248_v61 = vsel %vm7001_vm3, %v7000_v22, -inf  ;;  %v7344_v4 = vsel %vm7080_vm4, %v7000_v22, -inf }
 0xe06   : > { %v7056_v24 = vrot.slane %v7055_v37, 1  ;;  %v7135_v3 = vrot.slane %v7134_v32, 1  ;;  %v7249_v18 = vrot.slane %v7248_v61, 4  ;;  %v7345_v12 = vrot.slane %v7344_v4, 4 }
 0xe08   : > { %v7057_v59 = vmax.f32 %v7055_v37, %v7056_v24  ;;  %v7136_v35 = vmax.f32 %v7134_v32, %v7135_v3  ;;  %v7250_v41 = vmax.f32 %v7248_v61, %v7249_v18  ;;  %v7346_v30 = vmax.f32 %v7344_v4, %v7345_v12 }
 0xe0a   : > { %v7251_v19 = vrot.slane %v7250_v41, 2  ;;  %v7347_v38 = vrot.slane %v7346_v30, 2  ;;  %v7143_v50 = vsel %vm7070_vm11, %v7142_v57, %v7136_v35  ;;  %v7071_v5 = vsel %vm7070_vm11, %v7069_v49, %v7057_v59  ;;  %v8500_v57 = vld [vmem:[%s13320_s6 + $0xc0] sm:$0xff]  ;;  %v7404_v49 = vld [vmem:[%s13322_s8 + $0x38] sm:$0xff] }
 0xe0b   : > { %8489 = vmatmul.msk.f32.vlgmr.msrb.gmra.mxu3 %vm782_vm0, %v7143_v50 }
 0xe0c   : > { %v7252_v31 = vmax.f32 %v7250_v41, %v7251_v19  ;;  %v7348_v28 = vmax.f32 %v7346_v30, %v7347_v38  ;;  %7282 = vmatpush.msrb.mxu3 %v8498_v43 }
 0xe0e   : > { %v7253_v29 = vrot.slane %v7252_v31, 1  ;;  %v7349_v51 = vrot.slane %v7348_v28, 1  ;;  %7283 = vmatpush.msrb.mxu3 %v8497_v53 }
 0xe10   : > { %v7254_v10 = vmax.f32 %v7252_v31, %v7253_v29  ;;  %v7350_v34 = vmax.f32 %v7348_v28, %v7349_v51  ;;  %7284 = vmatpush.msrb.mxu3 %v8496_v11 }
 0xe12   : > { %7285 = vmatpush.msrb.mxu3 %v8495_v27  ;;  %v7261_v14 = vsel %vm7070_vm11, %v7260_v54, %v7254_v10  ;;  %v7357_v26 = vsel %vm7070_vm11, %v7356_v13, %v7350_v34 }
 0xe13   : > { %8490 = vmatmul.msk.f32.vlgmr.msra.gmra.mxu3 %vm782_vm0, %v7071_v5 }
 0xe14   : > { %7286 = vmatpush.msrb.mxu3 %v8494_v58 }
 0xe16   : > { %7287 = vmatpush.msrb.mxu3 %v8493_v48 }
 0xe18   : > { %7288 = vmatpush.msrb.mxu3 %v8492_v20 }
 0xe1a   : > { %7289 = vmatpush.msrb.mxu3 %v8491_v8 }
 0xe1b   : > { %8499 = vmatmul.msk.f32.vlgmr.msrb.gmra.mxu3 %vm782_vm0, %v7261_v14 }
 0xe1c   : > { %7378 = vmatpush.msra.mxu3 %v8507_v7 }
 0xe1e   : > { %7379 = vmatpush.msra.mxu3 %v8506_v36 }
 0xe20   : > { %7380 = vmatpush.msra.mxu3 %v8505_v47 }
 0xe22   : > { %7381 = vmatpush.msra.mxu3 %v8504_v63 }
 0xe24   : > { %7382 = vmatpush.msra.mxu3 %v8503_v0 }
 0xe26   : > { %7383 = vmatpush.msra.mxu3 %v8502_v25 }
 0xe28   : > { %7384 = vmatpush.msra.mxu3 %v8501_v56 }
 0xe2a   : > { %7385 = vmatpush.msra.mxu3 %v8500_v57 }
 0xe2b   : > { %8508 = vmatmul.msk.f32.vlgmr.msra.gmra.mxu3 %vm782_vm0, %v7357_v26 }
 0xe2c   : > { %7420 = vmatpush.msrb.mxu3 %v7404_v49 }
 0xe2e   : > { %7421 = vmatpush.msrb.mxu3 %v7403_v21 }
 0xe30   : > { %7422 = vmatpush.msrb.mxu3 %v7402_v15 }
 0xe32   : > { %7423 = vmatpush.msrb.mxu3 %v7401_v44 }
 0xe34   : > { %7424 = vmatpush.msrb.mxu3 %v7400_v60 }
 0xe36   : > { %7425 = vmatpush.msrb.mxu3 %v7399_v2 }
 0xe38   : > { %7426 = vmatpush.msrb.mxu3 %v7398_v39 }
 0xe3a   : > { %7427 = vmatpush.msrb.mxu3 %v7397_v62 }
 0xe8e   : > { %v7173_v55 = vpop.f32.mrf.mxu3 }
 0xe96   : > { %v7196_v1 = vpop.f32.mrf.mxu3 }
 0xe97   : > { %v7197_v6 = vadd.f32 %v7196_v1, %v7173_v55 }
 0xe9e   : > { %v7291_v42 = vpop.f32.mrf.mxu3 }
 0xe9f   : > { %v7294_v52 = vadd.f32 %v7291_v42, %v7197_v6 }
 0xeae   : > { %v7387_v16 = vpop.f32.mrf.mxu3 }
 0xeaf   : > { %v7390_v46 = vadd.f32 %v7387_v16, %v7294_v52 }
 0xeb1   : > { %v7395_v23 = vadd.f32 %v8547_v9, %v7390_v46 }
 0xeb3   : > { %v7396_v17 = vmax.f32 %v7395_v23, 0.0 }
 0xeb5   : > { %8509 = vmatmul.msk.f32.vlgmr.msrb.gmra.mxu3 %vm782_vm0, %v7396_v17 }
 0xf38   : > { %v7429_v45 = vpop.f32.mrf.mxu3 }
 0xf39   : > { %v7430_v40 = vadd.f32 %v8548_v33, %v7429_v45 }
 0xf3b   : > { %7432 = vst [vmem:[%s357_s12] sm:$0xff] %v7430_v40 }
 0xf3c PF: > { %s20_s13 = sadd.s32 1, %s8574_s13  }
 0xf3d   : > { %p17_p4 = scmp.ge.s32.totalorder %s20_s13, 4  }
 0xf3f   :  { %19 = sbr.rel (!%p17_p4) target bundleno = 1 (0x1), region = 108 }

</bundles_post_ra>
